<compile_context>
chip_gen: v7x
topology: tpu7x:2x2x1
jax: 0.10.0
libtpu: 0.0.40
codegen_flags: <defaults>
</compile_context>

<pallas_src>
import functools

import jax
import jax.numpy as jnp
import numpy as np
from jax.experimental import pallas as pl
from jax.experimental.pallas import tpu as pltpu

BATCH   = 4     # graphs (point clouds) per pallas_call -> "parallel" grid axis
N_NODES = 64    # nodes per graph
IN_CH   = 16    # in_channels
OUT_CH  = 32    # out_channels (edge-MLP hidden/output width)
KNN_DIM = 8     # kwargs['knn_dim']
K_NEIGH = 8     # kwargs['k']
LN_EPS  = 1e-5  # torch.nn.LayerNorm default eps

_HI = jax.lax.Precision.HIGHEST


def _ln(h, gamma, beta):
    """Two-pass LayerNorm over the last axis (biased variance, like PyTorch)."""
    mu = jnp.mean(h, axis=-1, keepdims=True)
    d = h - mu
    var = jnp.mean(d * d, axis=-1, keepdims=True)
    return d * jax.lax.rsqrt(var + LN_EPS) * gamma + beta


# --------------------------- fully fused kernel ------------------------------
def _fused_dgcnn_kernel(x_ref, wf_ref, bf_ref, w2_ref, b2_ref,
                        g1_ref, be1_ref, g2_ref, be2_ref,
                        out_ref, oh_ref, *, k, hdim, kd):
    f32 = jnp.float32
    x = x_ref[0]                                       # [N, Cin]  current graph
    n = x.shape[0]

    # ---- (1) ONE fused projection (3 prologue matmuls -> 1) -----------------
    #   proj = [ x@(w1_i - w1_j)+b1 | x@w1_j | lin_s(x) ]
    proj = jnp.dot(x, wf_ref[...], preferred_element_type=f32,
                   precision=_HI) + bf_ref[...]        # [N, 2H+KD]
    a_proj = proj[:, :hdim]                            # hidden(i,j) = a[i] + b[j]
    b_proj = proj[:, hdim:2 * hdim]
    s = proj[:, 2 * hdim:2 * hdim + kd]                # knn projection

    # ---- (2) knn scores: ||s_j||^2 - 2 s_i.s_j (row-constant ||s_i||^2 dropped)
    gram = jax.lax.dot_general(s, s, (((1,), (1,)), ((), ())),
                               preferred_element_type=f32, precision=_HI)
    sq_c = jax.lax.dot_general(jnp.ones((1, kd), f32), s * s,
                               (((1,), (1,)), ((), ())),
                               preferred_element_type=f32, precision=_HI)
    score = sq_c - 2.0 * gram                          # [N, N]

    # ---- (3) k masked-argmin rounds: selection ONLY, stack one-hots in VMEM -
    colf = jax.lax.broadcasted_iota(jnp.int32, (n, n), 1).astype(f32)
    for r in range(k):                                 # k small & static
        m = jnp.min(score, axis=-1, keepdims=True)
        first = jnp.min(jnp.where(score == m, colf, float(n)),
                        axis=-1, keepdims=True)        # first-index tie-break
        sel = colf == first
        score = jnp.where(sel, jnp.inf, score)         # mask for next round
        oh_ref[pl.ds(r * n, n), :] = sel.astype(f32)

    # ---- (4) edge MLP batched over all k*N edges: 2 matmuls + batched LN ----
    onehot = oh_ref[...]                                               # [k*N, N]
    h = jnp.dot(onehot, b_proj, preferred_element_type=f32,
                precision=_HI)                                          # gather
    h = h + jnp.tile(a_proj, (k, 1))                                    # a[i]+b[j]
    h = jnp.maximum(_ln(h, g1_ref[...], be1_ref[...]), 0.0)
    h = jnp.dot(h, w2_ref[...], preferred_element_type=f32,
                precision=_HI) + b2_ref[...]
    h = jnp.maximum(_ln(h, g2_ref[...], be2_ref[...]), 0.0)

    # ---- (5) aggr='mean': k-way block reduce over the stacked rounds --------
    acc = h[0:n]
    for r in range(1, k):
        acc = acc + h[r * n:(r + 1) * n]
    out_ref[0] = acc * (1.0 / k)


# --------------------------------- wrapper -----------------------------------
def custom_dgcnn_conv(x, params, *, k=K_NEIGH, edge_index=None, eta=None,
                      phi=None, edge_weight=None):
    """x: [B, N, Cin] batch of graphs (or [N, Cin] single graph)."""
    squeeze = x.ndim == 2
    if squeeze:
        x = x[None]
    bsz, n, cin = x.shape
    kd = params["ws"].shape[1]
    h = params["w1"].shape[1]

    # wrapper-side weight fusion: one projection weight / bias for a | b | s.
    w1 = params["w1"]
    w_fused = jnp.concatenate([w1[:cin] - w1[cin:], w1[cin:], params["ws"]],
                              axis=1)                                  # [Cin, 2H+KD]
    b_fused = jnp.concatenate([params["b1"], jnp.zeros((1, h), w1.dtype),
                               params["bs"]], axis=1)                  # [1, 2H+KD]

    kernel = functools.partial(_fused_dgcnn_kernel, k=k, hdim=h, kd=kd)
    wspec = lambda shape: pl.BlockSpec(shape, lambda b: (0,) * len(shape))

    out = pl.pallas_call(
        kernel,
        out_shape=jax.ShapeDtypeStruct((bsz, n, h), jnp.float32),
        grid=(bsz,),
        in_specs=[pl.BlockSpec((1, n, cin), lambda b: (b, 0, 0)),
                  wspec((cin, 2 * h + kd)), wspec((1, 2 * h + kd)),
                  wspec((h, h)), wspec((1, h)),
                  wspec((1, h)), wspec((1, h)), wspec((1, h)), wspec((1, h))],
        out_specs=pl.BlockSpec((1, n, h), lambda b: (b, 0, 0)),
        scratch_shapes=[pltpu.VMEM((k * n, n), jnp.float32)],
        compiler_params=pltpu.CompilerParams(
            dimension_semantics=("parallel",)),   # batch axis -> both TCs on v7x
    )(x, w_fused, b_fused, params["w2"], params["b2"],
      params["g1"], params["be1"], params["g2"], params["be2"])
    return out[0] if squeeze else out


# ---------------------------- pure-JAX references -----------------------------
def _knn_idx(x, params, k):
    """Mirrors the kernel's score construction exactly."""
    s = jnp.dot(x, params["ws"]) + params["bs"]
    gram = jax.lax.dot_general(s, s, (((1,), (1,)), ((), ())))
    sq_c = jax.lax.dot_general(jnp.ones((1, s.shape[1]), s.dtype), s * s,
                               (((1,), (1,)), ((), ())))
    score = sq_c - 2.0 * gram
    _, idx = jax.lax.top_k(-score, k)
    return idx


def _reference_structural(x, params, k):
    """Same algebra as the kernel (split w1, gather, two-pass LN)."""
    cin = x.shape[1]
    idx = _knn_idx(x, params, k)
    w1 = params["w1"]
    a = x @ (w1[:cin] - w1[cin:]) + params["b1"]
    b = x @ w1[cin:]
    h = a[:, None, :] + b[idx]
    h = jnp.maximum(_ln(h, params["g1"], params["be1"]), 0.0)
    h = h @ params["w2"] + params["b2"]
    h = jnp.maximum(_ln(h, params["g2"], params["be2"]), 0.0)
    return jnp.mean(h, axis=1)


def _reference_pytorch(x, params, k):
    """Exact PyTorch-module math: concat([x_i, x_j - x_i]) edge features."""
    idx = _knn_idx(x, params, k)
    x_j = x[idx]
    x_i = jnp.broadcast_to(x[:, None, :], x_j.shape)
    f = jnp.concatenate([x_i, x_j - x_i], axis=-1)
    h = f @ params["w1"] + params["b1"]
    h = jnp.maximum(_ln(h, params["g1"], params["be1"]), 0.0)
    h = h @ params["w2"] + params["b2"]
    h = jnp.maximum(_ln(h, params["g2"], params["be2"]), 0.0)
    return jnp.mean(h, axis=1)


if __name__ == "__main__":
    key = jax.random.PRNGKey(0)
    k_x, k_ws, k_bs, k_w1, k_b1, k_w2, k_b2 = jax.random.split(key, 7)

    x = jax.random.normal(k_x, (BATCH, N_NODES, IN_CH), jnp.float32)

    def lin_init(kw, kb, fan_in, fan_out):
        lim = 1.0 / float(np.sqrt(fan_in))
        w = jax.random.uniform(kw, (fan_in, fan_out), jnp.float32, -lim, lim)
        b = jax.random.uniform(kb, (1, fan_out), jnp.float32, -lim, lim)
        return w, b

    ws, bs = lin_init(k_ws, k_bs, IN_CH, KNN_DIM)        # self.lin_s
    w1, b1 = lin_init(k_w1, k_b1, 2 * IN_CH, OUT_CH)     # nn[0]
    w2, b2 = lin_init(k_w2, k_b2, OUT_CH, OUT_CH)        # nn[3]
    params = dict(
        ws=ws, bs=bs,
        w1=w1, b1=b1, g1=jnp.ones((1, OUT_CH)), be1=jnp.zeros((1, OUT_CH)),
        w2=w2, b2=b2, g2=jnp.ones((1, OUT_CH)), be2=jnp.zeros((1, OUT_CH)),
    )

    out = jax.block_until_ready(custom_dgcnn_conv(x, params, k=K_NEIGH))
    assert out.shape == (BATCH, N_NODES, OUT_CH)

    # references with exact-f32 matmuls to match the kernel's HIGHEST precision
    with jax.default_matmul_precision("float32"):
        out_struct = jax.vmap(lambda g: _reference_structural(g, params, K_NEIGH))(x)
        out_torch = jax.vmap(lambda g: _reference_pytorch(g, params, K_NEIGH))(x)

    # tight check against a structurally identical pure-JAX computation
    np.testing.assert_allclose(np.asarray(out), np.asarray(out_struct),
                               rtol=1e-3, atol=1e-3)
    # semantic check against the exact PyTorch-form math (concat features);
    # only matmul-associativity of the algebraic w1 split differs.
    np.testing.assert_allclose(np.asarray(out), np.asarray(out_torch),
                               rtol=5e-3, atol=5e-3)

    print("KERNEL_OK")
</pallas_src>

<mosaic_0001>
module attributes {stable_mosaic.version = 11 : i64} {
  func.func @_fused_dgcnn_kernel(%arg0: i32, %arg1: memref<1x64x16xf32, #tpu.memory_space<vmem>>, %arg2: memref<16x72xf32, #tpu.memory_space<vmem>>, %arg3: memref<1x72xf32, #tpu.memory_space<vmem>>, %arg4: memref<32x32xf32, #tpu.memory_space<vmem>>, %arg5: memref<1x32xf32, #tpu.memory_space<vmem>>, %arg6: memref<1x32xf32, #tpu.memory_space<vmem>>, %arg7: memref<1x32xf32, #tpu.memory_space<vmem>>, %arg8: memref<1x32xf32, #tpu.memory_space<vmem>>, %arg9: memref<1x32xf32, #tpu.memory_space<vmem>>, %arg10: memref<1x64x32xf32, #tpu.memory_space<vmem>>, %arg11: memref<512x64xf32, #tpu.memory_space<vmem>>) attributes {dimension_semantics = [#tpu.dimension_semantics<parallel>], iteration_bounds = array<i64: 4>, scalar_prefetch = 0 : i64, scratch_operands = 1 : i64, tpu.core_type = #tpu.core_type<tc>, window_params = [{transform_indices = @transform_0, window_bounds = array<i64: 1, 64, 16>}, {pipeline_mode = #tpu.pipeline_mode<synchronous>, transform_indices = @transform_1, window_bounds = array<i64: 16, 72>}, {pipeline_mode = #tpu.pipeline_mode<synchronous>, transform_indices = @transform_2, window_bounds = array<i64: 1, 72>}, {pipeline_mode = #tpu.pipeline_mode<synchronous>, transform_indices = @transform_3, window_bounds = array<i64: 32, 32>}, {pipeline_mode = #tpu.pipeline_mode<synchronous>, transform_indices = @transform_4, window_bounds = array<i64: 1, 32>}, {pipeline_mode = #tpu.pipeline_mode<synchronous>, transform_indices = @transform_5, window_bounds = array<i64: 1, 32>}, {pipeline_mode = #tpu.pipeline_mode<synchronous>, transform_indices = @transform_6, window_bounds = array<i64: 1, 32>}, {pipeline_mode = #tpu.pipeline_mode<synchronous>, transform_indices = @transform_7, window_bounds = array<i64: 1, 32>}, {pipeline_mode = #tpu.pipeline_mode<synchronous>, transform_indices = @transform_8, window_bounds = array<i64: 1, 32>}, {transform_indices = @transform_9, window_bounds = array<i64: 1, 64, 32>}]} {
    %c0 = arith.constant 0 : index
    %c0_0 = arith.constant 0 : index
    %c0_1 = arith.constant 0 : index
    %0 = vector.load %arg1[%c0, %c0_0, %c0_1] : memref<1x64x16xf32, #tpu.memory_space<vmem>>, vector<1x64x16xf32>
    %1 = vector.shape_cast %0 : vector<1x64x16xf32> to vector<64x16xf32>
    %c0_2 = arith.constant 0 : index
    %c0_3 = arith.constant 0 : index
    %2 = vector.load %arg2[%c0_2, %c0_3] : memref<16x72xf32, #tpu.memory_space<vmem>>, vector<16x72xf32>
    %cst = arith.constant dense<0.000000e+00> : vector<64x72xf32>
    %3 = tpu.matmul %1, %2, %cst {dimension_numbers = #tpu.dot_dimension_numbers<[1], [0], [0], [1], [0, 0, 1, 1], [], []>, precision = #tpu.contract_precision<fp32>} : vector<64x16xf32>, vector<16x72xf32>, vector<64x72xf32> -> vector<64x72xf32>
    %c0_4 = arith.constant 0 : index
    %c0_5 = arith.constant 0 : index
    %4 = vector.load %arg3[%c0_4, %c0_5] : memref<1x72xf32, #tpu.memory_space<vmem>>, vector<1x72xf32>
    %5 = vector.broadcast %4 : vector<1x72xf32> to vector<64x72xf32>
    %6 = arith.addf %3, %5 : vector<64x72xf32>
    %7 = vector.extract_strided_slice %6 {offsets = [0, 0], sizes = [64, 32], strides = [1, 1]} : vector<64x72xf32> to vector<64x32xf32>
    %8 = vector.extract_strided_slice %6 {offsets = [0, 32], sizes = [64, 32], strides = [1, 1]} : vector<64x72xf32> to vector<64x32xf32>
    %9 = vector.extract_strided_slice %6 {offsets = [0, 64], sizes = [64, 8], strides = [1, 1]} : vector<64x72xf32> to vector<64x8xf32>
    %cst_6 = arith.constant dense<0.000000e+00> : vector<64x64xf32>
    %10 = tpu.matmul %9, %9, %cst_6 {dimension_numbers = #tpu.dot_dimension_numbers<[1], [1], [0], [0], [0, 0, 1, 0], [], []>, precision = #tpu.contract_precision<fp32>} : vector<64x8xf32>, vector<64x8xf32>, vector<64x64xf32> -> vector<64x64xf32>
    %cst_7 = arith.constant 1.000000e+00 : f32
    %11 = vector.broadcast %cst_7 : f32 to vector<1x8xf32>
    %12 = arith.mulf %9, %9 : vector<64x8xf32>
    %cst_8 = arith.constant dense<0.000000e+00> : vector<1x64xf32>
    %13 = tpu.matmul %11, %12, %cst_8 {dimension_numbers = #tpu.dot_dimension_numbers<[1], [1], [0], [0], [0, 0, 1, 0], [], []>, precision = #tpu.contract_precision<fp32>} : vector<1x8xf32>, vector<64x8xf32>, vector<1x64xf32> -> vector<1x64xf32>
    %cst_9 = arith.constant 2.000000e+00 : f32
    %14 = vector.broadcast %cst_9 : f32 to vector<64x64xf32>
    %15 = arith.mulf %14, %10 : vector<64x64xf32>
    %16 = vector.broadcast %13 : vector<1x64xf32> to vector<64x64xf32>
    %17 = arith.subf %16, %15 : vector<64x64xf32>
    %18 = tpu.iota {dimensions = array<i32: 1>} : vector<64x64xi32>
    %19 = arith.sitofp %18 : vector<64x64xi32> to vector<64x64xf32>
    %cst_10 = arith.constant dense<0x7F800000> : vector<64xf32>
    %20 = vector.multi_reduction <minimumf>, %17, %cst_10 [1] : vector<64x64xf32> to vector<64xf32>
    %21 = vector.shape_cast %20 : vector<64xf32> to vector<64x1xf32>
    %22 = vector.broadcast %21 : vector<64x1xf32> to vector<64x64xf32>
    %23 = arith.cmpf oeq, %17, %22 : vector<64x64xf32>
    %cst_11 = arith.constant 6.400000e+01 : f32
    %24 = vector.broadcast %cst_11 : f32 to vector<64x64xf32>
    %25 = arith.select %23, %19, %24 : vector<64x64xi1>, vector<64x64xf32>
    %cst_12 = arith.constant dense<0x7F800000> : vector<64xf32>
    %26 = vector.multi_reduction <minimumf>, %25, %cst_12 [1] : vector<64x64xf32> to vector<64xf32>
    %27 = vector.shape_cast %26 : vector<64xf32> to vector<64x1xf32>
    %28 = vector.broadcast %27 : vector<64x1xf32> to vector<64x64xf32>
    %29 = arith.cmpf oeq, %19, %28 : vector<64x64xf32>
    %cst_13 = arith.constant 0x7F800000 : f32
    %30 = vector.broadcast %cst_13 : f32 to vector<64x64xf32>
    %31 = arith.select %29, %30, %17 : vector<64x64xi1>, vector<64x64xf32>
    %32 = arith.extui %29 : vector<64x64xi1> to vector<64x64xi32>
    %33 = arith.sitofp %32 : vector<64x64xi32> to vector<64x64xf32>
    %c0_14 = arith.constant 0 : index
    %c0_15 = arith.constant 0 : index
    %34 = vector.load %arg11[%c0_14, %c0_15] : memref<512x64xf32, #tpu.memory_space<vmem>>, vector<64x64xf32>
    tpu.vector_store %arg11[%c0_14, %c0_15], %33 {strides = array<i32>} : memref<512x64xf32, #tpu.memory_space<vmem>>, vector<64x64xf32>,
    %cst_16 = arith.constant dense<0x7F800000> : vector<64xf32>
    %35 = vector.multi_reduction <minimumf>, %31, %cst_16 [1] : vector<64x64xf32> to vector<64xf32>
    %36 = vector.shape_cast %35 : vector<64xf32> to vector<64x1xf32>
    %37 = vector.broadcast %36 : vector<64x1xf32> to vector<64x64xf32>
    %38 = arith.cmpf oeq, %31, %37 : vector<64x64xf32>
    %cst_17 = arith.constant 6.400000e+01 : f32
    %39 = vector.broadcast %cst_17 : f32 to vector<64x64xf32>
    %40 = arith.select %38, %19, %39 : vector<64x64xi1>, vector<64x64xf32>
    %cst_18 = arith.constant dense<0x7F800000> : vector<64xf32>
    %41 = vector.multi_reduction <minimumf>, %40, %cst_18 [1] : vector<64x64xf32> to vector<64xf32>
    %42 = vector.shape_cast %41 : vector<64xf32> to vector<64x1xf32>
    %43 = vector.broadcast %42 : vector<64x1xf32> to vector<64x64xf32>
    %44 = arith.cmpf oeq, %19, %43 : vector<64x64xf32>
    %cst_19 = arith.constant 0x7F800000 : f32
    %45 = vector.broadcast %cst_19 : f32 to vector<64x64xf32>
    %46 = arith.select %44, %45, %31 : vector<64x64xi1>, vector<64x64xf32>
    %47 = arith.extui %44 : vector<64x64xi1> to vector<64x64xi32>
    %48 = arith.sitofp %47 : vector<64x64xi32> to vector<64x64xf32>
    %c64 = arith.constant 64 : index
    %c0_20 = arith.constant 0 : index
    %49 = vector.load %arg11[%c64, %c0_20] : memref<512x64xf32, #tpu.memory_space<vmem>>, vector<64x64xf32>
    tpu.vector_store %arg11[%c64, %c0_20], %48 {strides = array<i32>} : memref<512x64xf32, #tpu.memory_space<vmem>>, vector<64x64xf32>,
    %cst_21 = arith.constant dense<0x7F800000> : vector<64xf32>
    %50 = vector.multi_reduction <minimumf>, %46, %cst_21 [1] : vector<64x64xf32> to vector<64xf32>
    %51 = vector.shape_cast %50 : vector<64xf32> to vector<64x1xf32>
    %52 = vector.broadcast %51 : vector<64x1xf32> to vector<64x64xf32>
    %53 = arith.cmpf oeq, %46, %52 : vector<64x64xf32>
    %cst_22 = arith.constant 6.400000e+01 : f32
    %54 = vector.broadcast %cst_22 : f32 to vector<64x64xf32>
    %55 = arith.select %53, %19, %54 : vector<64x64xi1>, vector<64x64xf32>
    %cst_23 = arith.constant dense<0x7F800000> : vector<64xf32>
    %56 = vector.multi_reduction <minimumf>, %55, %cst_23 [1] : vector<64x64xf32> to vector<64xf32>
    %57 = vector.shape_cast %56 : vector<64xf32> to vector<64x1xf32>
    %58 = vector.broadcast %57 : vector<64x1xf32> to vector<64x64xf32>
    %59 = arith.cmpf oeq, %19, %58 : vector<64x64xf32>
    %cst_24 = arith.constant 0x7F800000 : f32
    %60 = vector.broadcast %cst_24 : f32 to vector<64x64xf32>
    %61 = arith.select %59, %60, %46 : vector<64x64xi1>, vector<64x64xf32>
    %62 = arith.extui %59 : vector<64x64xi1> to vector<64x64xi32>
    %63 = arith.sitofp %62 : vector<64x64xi32> to vector<64x64xf32>
    %c128 = arith.constant 128 : index
    %c0_25 = arith.constant 0 : index
    %64 = vector.load %arg11[%c128, %c0_25] : memref<512x64xf32, #tpu.memory_space<vmem>>, vector<64x64xf32>
    tpu.vector_store %arg11[%c128, %c0_25], %63 {strides = array<i32>} : memref<512x64xf32, #tpu.memory_space<vmem>>, vector<64x64xf32>,
    %cst_26 = arith.constant dense<0x7F800000> : vector<64xf32>
    %65 = vector.multi_reduction <minimumf>, %61, %cst_26 [1] : vector<64x64xf32> to vector<64xf32>
    %66 = vector.shape_cast %65 : vector<64xf32> to vector<64x1xf32>
    %67 = vector.broadcast %66 : vector<64x1xf32> to vector<64x64xf32>
    %68 = arith.cmpf oeq, %61, %67 : vector<64x64xf32>
    %cst_27 = arith.constant 6.400000e+01 : f32
    %69 = vector.broadcast %cst_27 : f32 to vector<64x64xf32>
    %70 = arith.select %68, %19, %69 : vector<64x64xi1>, vector<64x64xf32>
    %cst_28 = arith.constant dense<0x7F800000> : vector<64xf32>
    %71 = vector.multi_reduction <minimumf>, %70, %cst_28 [1] : vector<64x64xf32> to vector<64xf32>
    %72 = vector.shape_cast %71 : vector<64xf32> to vector<64x1xf32>
    %73 = vector.broadcast %72 : vector<64x1xf32> to vector<64x64xf32>
    %74 = arith.cmpf oeq, %19, %73 : vector<64x64xf32>
    %cst_29 = arith.constant 0x7F800000 : f32
    %75 = vector.broadcast %cst_29 : f32 to vector<64x64xf32>
    %76 = arith.select %74, %75, %61 : vector<64x64xi1>, vector<64x64xf32>
    %77 = arith.extui %74 : vector<64x64xi1> to vector<64x64xi32>
    %78 = arith.sitofp %77 : vector<64x64xi32> to vector<64x64xf32>
    %c192 = arith.constant 192 : index
    %c0_30 = arith.constant 0 : index
    %79 = vector.load %arg11[%c192, %c0_30] : memref<512x64xf32, #tpu.memory_space<vmem>>, vector<64x64xf32>
    tpu.vector_store %arg11[%c192, %c0_30], %78 {strides = array<i32>} : memref<512x64xf32, #tpu.memory_space<vmem>>, vector<64x64xf32>,
    %cst_31 = arith.constant dense<0x7F800000> : vector<64xf32>
    %80 = vector.multi_reduction <minimumf>, %76, %cst_31 [1] : vector<64x64xf32> to vector<64xf32>
    %81 = vector.shape_cast %80 : vector<64xf32> to vector<64x1xf32>
    %82 = vector.broadcast %81 : vector<64x1xf32> to vector<64x64xf32>
    %83 = arith.cmpf oeq, %76, %82 : vector<64x64xf32>
    %cst_32 = arith.constant 6.400000e+01 : f32
    %84 = vector.broadcast %cst_32 : f32 to vector<64x64xf32>
    %85 = arith.select %83, %19, %84 : vector<64x64xi1>, vector<64x64xf32>
    %cst_33 = arith.constant dense<0x7F800000> : vector<64xf32>
    %86 = vector.multi_reduction <minimumf>, %85, %cst_33 [1] : vector<64x64xf32> to vector<64xf32>
    %87 = vector.shape_cast %86 : vector<64xf32> to vector<64x1xf32>
    %88 = vector.broadcast %87 : vector<64x1xf32> to vector<64x64xf32>
    %89 = arith.cmpf oeq, %19, %88 : vector<64x64xf32>
    %cst_34 = arith.constant 0x7F800000 : f32
    %90 = vector.broadcast %cst_34 : f32 to vector<64x64xf32>
    %91 = arith.select %89, %90, %76 : vector<64x64xi1>, vector<64x64xf32>
    %92 = arith.extui %89 : vector<64x64xi1> to vector<64x64xi32>
    %93 = arith.sitofp %92 : vector<64x64xi32> to vector<64x64xf32>
    %c256 = arith.constant 256 : index
    %c0_35 = arith.constant 0 : index
    %94 = vector.load %arg11[%c256, %c0_35] : memref<512x64xf32, #tpu.memory_space<vmem>>, vector<64x64xf32>
    tpu.vector_store %arg11[%c256, %c0_35], %93 {strides = array<i32>} : memref<512x64xf32, #tpu.memory_space<vmem>>, vector<64x64xf32>,
    %cst_36 = arith.constant dense<0x7F800000> : vector<64xf32>
    %95 = vector.multi_reduction <minimumf>, %91, %cst_36 [1] : vector<64x64xf32> to vector<64xf32>
    %96 = vector.shape_cast %95 : vector<64xf32> to vector<64x1xf32>
    %97 = vector.broadcast %96 : vector<64x1xf32> to vector<64x64xf32>
    %98 = arith.cmpf oeq, %91, %97 : vector<64x64xf32>
    %cst_37 = arith.constant 6.400000e+01 : f32
    %99 = vector.broadcast %cst_37 : f32 to vector<64x64xf32>
    %100 = arith.select %98, %19, %99 : vector<64x64xi1>, vector<64x64xf32>
    %cst_38 = arith.constant dense<0x7F800000> : vector<64xf32>
    %101 = vector.multi_reduction <minimumf>, %100, %cst_38 [1] : vector<64x64xf32> to vector<64xf32>
    %102 = vector.shape_cast %101 : vector<64xf32> to vector<64x1xf32>
    %103 = vector.broadcast %102 : vector<64x1xf32> to vector<64x64xf32>
    %104 = arith.cmpf oeq, %19, %103 : vector<64x64xf32>
    %cst_39 = arith.constant 0x7F800000 : f32
    %105 = vector.broadcast %cst_39 : f32 to vector<64x64xf32>
    %106 = arith.select %104, %105, %91 : vector<64x64xi1>, vector<64x64xf32>
    %107 = arith.extui %104 : vector<64x64xi1> to vector<64x64xi32>
    %108 = arith.sitofp %107 : vector<64x64xi32> to vector<64x64xf32>
    %c320 = arith.constant 320 : index
    %c0_40 = arith.constant 0 : index
    %109 = vector.load %arg11[%c320, %c0_40] : memref<512x64xf32, #tpu.memory_space<vmem>>, vector<64x64xf32>
    tpu.vector_store %arg11[%c320, %c0_40], %108 {strides = array<i32>} : memref<512x64xf32, #tpu.memory_space<vmem>>, vector<64x64xf32>,
    %cst_41 = arith.constant dense<0x7F800000> : vector<64xf32>
    %110 = vector.multi_reduction <minimumf>, %106, %cst_41 [1] : vector<64x64xf32> to vector<64xf32>
    %111 = vector.shape_cast %110 : vector<64xf32> to vector<64x1xf32>
    %112 = vector.broadcast %111 : vector<64x1xf32> to vector<64x64xf32>
    %113 = arith.cmpf oeq, %106, %112 : vector<64x64xf32>
    %cst_42 = arith.constant 6.400000e+01 : f32
    %114 = vector.broadcast %cst_42 : f32 to vector<64x64xf32>
    %115 = arith.select %113, %19, %114 : vector<64x64xi1>, vector<64x64xf32>
    %cst_43 = arith.constant dense<0x7F800000> : vector<64xf32>
    %116 = vector.multi_reduction <minimumf>, %115, %cst_43 [1] : vector<64x64xf32> to vector<64xf32>
    %117 = vector.shape_cast %116 : vector<64xf32> to vector<64x1xf32>
    %118 = vector.broadcast %117 : vector<64x1xf32> to vector<64x64xf32>
    %119 = arith.cmpf oeq, %19, %118 : vector<64x64xf32>
    %cst_44 = arith.constant 0x7F800000 : f32
    %120 = vector.broadcast %cst_44 : f32 to vector<64x64xf32>
    %121 = arith.select %119, %120, %106 : vector<64x64xi1>, vector<64x64xf32>
    %122 = arith.extui %119 : vector<64x64xi1> to vector<64x64xi32>
    %123 = arith.sitofp %122 : vector<64x64xi32> to vector<64x64xf32>
    %c384 = arith.constant 384 : index
    %c0_45 = arith.constant 0 : index
    %124 = vector.load %arg11[%c384, %c0_45] : memref<512x64xf32, #tpu.memory_space<vmem>>, vector<64x64xf32>
    tpu.vector_store %arg11[%c384, %c0_45], %123 {strides = array<i32>} : memref<512x64xf32, #tpu.memory_space<vmem>>, vector<64x64xf32>,
    %cst_46 = arith.constant dense<0x7F800000> : vector<64xf32>
    %125 = vector.multi_reduction <minimumf>, %121, %cst_46 [1] : vector<64x64xf32> to vector<64xf32>
    %126 = vector.shape_cast %125 : vector<64xf32> to vector<64x1xf32>
    %127 = vector.broadcast %126 : vector<64x1xf32> to vector<64x64xf32>
    %128 = arith.cmpf oeq, %121, %127 : vector<64x64xf32>
    %cst_47 = arith.constant 6.400000e+01 : f32
    %129 = vector.broadcast %cst_47 : f32 to vector<64x64xf32>
    %130 = arith.select %128, %19, %129 : vector<64x64xi1>, vector<64x64xf32>
    %cst_48 = arith.constant dense<0x7F800000> : vector<64xf32>
    %131 = vector.multi_reduction <minimumf>, %130, %cst_48 [1] : vector<64x64xf32> to vector<64xf32>
    %132 = vector.shape_cast %131 : vector<64xf32> to vector<64x1xf32>
    %133 = vector.broadcast %132 : vector<64x1xf32> to vector<64x64xf32>
    %134 = arith.cmpf oeq, %19, %133 : vector<64x64xf32>
    %135 = arith.extui %134 : vector<64x64xi1> to vector<64x64xi32>
    %136 = arith.sitofp %135 : vector<64x64xi32> to vector<64x64xf32>
    %c448 = arith.constant 448 : index
    %c0_49 = arith.constant 0 : index
    %137 = vector.load %arg11[%c448, %c0_49] : memref<512x64xf32, #tpu.memory_space<vmem>>, vector<64x64xf32>
    tpu.vector_store %arg11[%c448, %c0_49], %136 {strides = array<i32>} : memref<512x64xf32, #tpu.memory_space<vmem>>, vector<64x64xf32>,
    %c0_50 = arith.constant 0 : index
    %c0_51 = arith.constant 0 : index
    %138 = vector.load %arg11[%c0_50, %c0_51] : memref<512x64xf32, #tpu.memory_space<vmem>>, vector<512x64xf32>
    %cst_52 = arith.constant dense<0.000000e+00> : vector<512x32xf32>
    %139 = tpu.matmul %138, %8, %cst_52 {dimension_numbers = #tpu.dot_dimension_numbers<[1], [0], [0], [1], [0, 0, 1, 1], [], []>, precision = #tpu.contract_precision<fp32>} : vector<512x64xf32>, vector<64x32xf32>, vector<512x32xf32> -> vector<512x32xf32>
    %140 = tpu.concatenate %7, %7, %7, %7, %7, %7, %7, %7 in 0 : vector<64x32xf32>, vector<64x32xf32>, vector<64x32xf32>, vector<64x32xf32>, vector<64x32xf32>, vector<64x32xf32>, vector<64x32xf32>, vector<64x32xf32> -> vector<512x32xf32>
    %141 = arith.addf %139, %140 : vector<512x32xf32>
    %c0_53 = arith.constant 0 : index
    %c0_54 = arith.constant 0 : index
    %142 = vector.load %arg6[%c0_53, %c0_54] : memref<1x32xf32, #tpu.memory_space<vmem>>, vector<1x32xf32>
    %c0_55 = arith.constant 0 : index
    %c0_56 = arith.constant 0 : index
    %143 = vector.load %arg7[%c0_55, %c0_56] : memref<1x32xf32, #tpu.memory_space<vmem>>, vector<1x32xf32>
    %cst_57 = arith.constant dense<0.000000e+00> : vector<512xf32>
    %144 = vector.multi_reduction <add>, %141, %cst_57 [1] : vector<512x32xf32> to vector<512xf32>
    %145 = vector.shape_cast %144 : vector<512xf32> to vector<512x1xf32>
    %cst_58 = arith.constant 3.200000e+01 : f32
    %146 = vector.broadcast %cst_58 : f32 to vector<512x1xf32>
    %147 = arith.divf %145, %146 : vector<512x1xf32>
    %148 = vector.broadcast %147 : vector<512x1xf32> to vector<512x32xf32>
    %149 = arith.subf %141, %148 : vector<512x32xf32>
    %150 = arith.mulf %149, %149 : vector<512x32xf32>
    %cst_59 = arith.constant dense<0.000000e+00> : vector<512xf32>
    %151 = vector.multi_reduction <add>, %150, %cst_59 [1] : vector<512x32xf32> to vector<512xf32>
    %152 = vector.shape_cast %151 : vector<512xf32> to vector<512x1xf32>
    %cst_60 = arith.constant 3.200000e+01 : f32
    %153 = vector.broadcast %cst_60 : f32 to vector<512x1xf32>
    %154 = arith.divf %152, %153 : vector<512x1xf32>
    %cst_61 = arith.constant 9.99999974E-6 : f32
    %155 = vector.broadcast %cst_61 : f32 to vector<512x1xf32>
    %156 = arith.addf %154, %155 : vector<512x1xf32>
    %157 = math.rsqrt %156 : vector<512x1xf32>
    %158 = vector.broadcast %157 : vector<512x1xf32> to vector<512x32xf32>
    %159 = arith.mulf %149, %158 : vector<512x32xf32>
    %160 = vector.broadcast %142 : vector<1x32xf32> to vector<512x32xf32>
    %161 = arith.mulf %159, %160 : vector<512x32xf32>
    %162 = vector.broadcast %143 : vector<1x32xf32> to vector<512x32xf32>
    %163 = arith.addf %161, %162 : vector<512x32xf32>
    %cst_62 = arith.constant 0.000000e+00 : f32
    %164 = vector.broadcast %cst_62 : f32 to vector<512x32xf32>
    %165 = arith.maximumf %163, %164 : vector<512x32xf32>
    %c0_63 = arith.constant 0 : index
    %c0_64 = arith.constant 0 : index
    %166 = vector.load %arg4[%c0_63, %c0_64] : memref<32x32xf32, #tpu.memory_space<vmem>>, vector<32x32xf32>
    %cst_65 = arith.constant dense<0.000000e+00> : vector<512x32xf32>
    %167 = tpu.matmul %165, %166, %cst_65 {dimension_numbers = #tpu.dot_dimension_numbers<[1], [0], [0], [1], [0, 0, 1, 1], [], []>, precision = #tpu.contract_precision<fp32>} : vector<512x32xf32>, vector<32x32xf32>, vector<512x32xf32> -> vector<512x32xf32>
    %c0_66 = arith.constant 0 : index
    %c0_67 = arith.constant 0 : index
    %168 = vector.load %arg5[%c0_66, %c0_67] : memref<1x32xf32, #tpu.memory_space<vmem>>, vector<1x32xf32>
    %169 = vector.broadcast %168 : vector<1x32xf32> to vector<512x32xf32>
    %170 = arith.addf %167, %169 : vector<512x32xf32>
    %c0_68 = arith.constant 0 : index
    %c0_69 = arith.constant 0 : index
    %171 = vector.load %arg8[%c0_68, %c0_69] : memref<1x32xf32, #tpu.memory_space<vmem>>, vector<1x32xf32>
    %c0_70 = arith.constant 0 : index
    %c0_71 = arith.constant 0 : index
    %172 = vector.load %arg9[%c0_70, %c0_71] : memref<1x32xf32, #tpu.memory_space<vmem>>, vector<1x32xf32>
    %cst_72 = arith.constant dense<0.000000e+00> : vector<512xf32>
    %173 = vector.multi_reduction <add>, %170, %cst_72 [1] : vector<512x32xf32> to vector<512xf32>
    %174 = vector.shape_cast %173 : vector<512xf32> to vector<512x1xf32>
    %cst_73 = arith.constant 3.200000e+01 : f32
    %175 = vector.broadcast %cst_73 : f32 to vector<512x1xf32>
    %176 = arith.divf %174, %175 : vector<512x1xf32>
    %177 = vector.broadcast %176 : vector<512x1xf32> to vector<512x32xf32>
    %178 = arith.subf %170, %177 : vector<512x32xf32>
    %179 = arith.mulf %178, %178 : vector<512x32xf32>
    %cst_74 = arith.constant dense<0.000000e+00> : vector<512xf32>
    %180 = vector.multi_reduction <add>, %179, %cst_74 [1] : vector<512x32xf32> to vector<512xf32>
    %181 = vector.shape_cast %180 : vector<512xf32> to vector<512x1xf32>
    %cst_75 = arith.constant 3.200000e+01 : f32
    %182 = vector.broadcast %cst_75 : f32 to vector<512x1xf32>
    %183 = arith.divf %181, %182 : vector<512x1xf32>
    %cst_76 = arith.constant 9.99999974E-6 : f32
    %184 = vector.broadcast %cst_76 : f32 to vector<512x1xf32>
    %185 = arith.addf %183, %184 : vector<512x1xf32>
    %186 = math.rsqrt %185 : vector<512x1xf32>
    %187 = vector.broadcast %186 : vector<512x1xf32> to vector<512x32xf32>
    %188 = arith.mulf %178, %187 : vector<512x32xf32>
    %189 = vector.broadcast %171 : vector<1x32xf32> to vector<512x32xf32>
    %190 = arith.mulf %188, %189 : vector<512x32xf32>
    %191 = vector.broadcast %172 : vector<1x32xf32> to vector<512x32xf32>
    %192 = arith.addf %190, %191 : vector<512x32xf32>
    %cst_77 = arith.constant 0.000000e+00 : f32
    %193 = vector.broadcast %cst_77 : f32 to vector<512x32xf32>
    %194 = arith.maximumf %192, %193 : vector<512x32xf32>
    %195 = vector.extract_strided_slice %194 {offsets = [0, 0], sizes = [64, 32], strides = [1, 1]} : vector<512x32xf32> to vector<64x32xf32>
    %196 = vector.extract_strided_slice %194 {offsets = [64, 0], sizes = [64, 32], strides = [1, 1]} : vector<512x32xf32> to vector<64x32xf32>
    %197 = arith.addf %195, %196 : vector<64x32xf32>
    %198 = vector.extract_strided_slice %194 {offsets = [128, 0], sizes = [64, 32], strides = [1, 1]} : vector<512x32xf32> to vector<64x32xf32>
    %199 = arith.addf %197, %198 : vector<64x32xf32>
    %200 = vector.extract_strided_slice %194 {offsets = [192, 0], sizes = [64, 32], strides = [1, 1]} : vector<512x32xf32> to vector<64x32xf32>
    %201 = arith.addf %199, %200 : vector<64x32xf32>
    %202 = vector.extract_strided_slice %194 {offsets = [256, 0], sizes = [64, 32], strides = [1, 1]} : vector<512x32xf32> to vector<64x32xf32>
    %203 = arith.addf %201, %202 : vector<64x32xf32>
    %204 = vector.extract_strided_slice %194 {offsets = [320, 0], sizes = [64, 32], strides = [1, 1]} : vector<512x32xf32> to vector<64x32xf32>
    %205 = arith.addf %203, %204 : vector<64x32xf32>
    %206 = vector.extract_strided_slice %194 {offsets = [384, 0], sizes = [64, 32], strides = [1, 1]} : vector<512x32xf32> to vector<64x32xf32>
    %207 = arith.addf %205, %206 : vector<64x32xf32>
    %208 = vector.extract_strided_slice %194 {offsets = [448, 0], sizes = [64, 32], strides = [1, 1]} : vector<512x32xf32> to vector<64x32xf32>
    %209 = arith.addf %207, %208 : vector<64x32xf32>
    %cst_78 = arith.constant 1.250000e-01 : f32
    %210 = vector.broadcast %cst_78 : f32 to vector<64x32xf32>
    %211 = arith.mulf %209, %210 : vector<64x32xf32>
    %c0_79 = arith.constant 0 : index
    %c0_80 = arith.constant 0 : index
    %c0_81 = arith.constant 0 : index
    %212 = vector.load %arg10[%c0_79, %c0_80, %c0_81] : memref<1x64x32xf32, #tpu.memory_space<vmem>>, vector<1x64x32xf32>
    %213 = vector.shape_cast %212 : vector<1x64x32xf32> to vector<64x32xf32>
    %214 = vector.shape_cast %211 : vector<64x32xf32> to vector<1x64x32xf32>
    tpu.vector_store %arg10[%c0_79, %c0_80, %c0_81], %214 {strides = array<i32>} : memref<1x64x32xf32, #tpu.memory_space<vmem>>, vector<1x64x32xf32>,
    return
  }
  func.func @transform_0(%arg0: i32) -> (i32, i32, i32) {
    %c0_i32 = arith.constant 0 : i32
    %c0_i32_0 = arith.constant 0 : i32
    %c0_i32_1 = arith.constant 0 : i32
    return %arg0, %c0_i32, %c0_i32_0 : i32, i32, i32
  }
  func.func @transform_1(%arg0: i32) -> (i32, i32) {
    %c0_i32 = arith.constant 0 : i32
    %c0_i32_0 = arith.constant 0 : i32
    %c0_i32_1 = arith.constant 0 : i32
    return %c0_i32, %c0_i32_0 : i32, i32
  }
  func.func @transform_2(%arg0: i32) -> (i32, i32) {
    %c0_i32 = arith.constant 0 : i32
    %c0_i32_0 = arith.constant 0 : i32
    %c0_i32_1 = arith.constant 0 : i32
    return %c0_i32, %c0_i32_0 : i32, i32
  }
  func.func @transform_3(%arg0: i32) -> (i32, i32) {
    %c0_i32 = arith.constant 0 : i32
    %c0_i32_0 = arith.constant 0 : i32
    %c0_i32_1 = arith.constant 0 : i32
    return %c0_i32, %c0_i32_0 : i32, i32
  }
  func.func @transform_4(%arg0: i32) -> (i32, i32) {
    %c0_i32 = arith.constant 0 : i32
    %c0_i32_0 = arith.constant 0 : i32
    %c0_i32_1 = arith.constant 0 : i32
    return %c0_i32, %c0_i32_0 : i32, i32
  }
  func.func @transform_5(%arg0: i32) -> (i32, i32) {
    %c0_i32 = arith.constant 0 : i32
    %c0_i32_0 = arith.constant 0 : i32
    %c0_i32_1 = arith.constant 0 : i32
    return %c0_i32, %c0_i32_0 : i32, i32
  }
  func.func @transform_6(%arg0: i32) -> (i32, i32) {
    %c0_i32 = arith.constant 0 : i32
    %c0_i32_0 = arith.constant 0 : i32
    %c0_i32_1 = arith.constant 0 : i32
    return %c0_i32, %c0_i32_0 : i32, i32
  }
  func.func @transform_7(%arg0: i32) -> (i32, i32) {
    %c0_i32 = arith.constant 0 : i32
    %c0_i32_0 = arith.constant 0 : i32
    %c0_i32_1 = arith.constant 0 : i32
    return %c0_i32, %c0_i32_0 : i32, i32
  }
  func.func @transform_8(%arg0: i32) -> (i32, i32) {
    %c0_i32 = arith.constant 0 : i32
    %c0_i32_0 = arith.constant 0 : i32
    %c0_i32_1 = arith.constant 0 : i32
    return %c0_i32, %c0_i32_0 : i32, i32
  }
  func.func @transform_9(%arg0: i32) -> (i32, i32, i32) {
    %c0_i32 = arith.constant 0 : i32
    %c0_i32_0 = arith.constant 0 : i32
    %c0_i32_1 = arith.constant 0 : i32
    return %arg0, %c0_i32, %c0_i32_0 : i32, i32, i32
  }
}

</mosaic_0001>

<bundles_post_ra>
// kernel: tpu_custom_call.1
= control target key start
LH: loop header
LB: loop body
LE: loop exit
PB: predicated region body
PF: predicated region fallthrough
CT: control target
= control target key end

     0   :  { %s16939_s30 = smov 0   ;;  %s22751_s0 = inlined_call_operand.vmem [shape: f32[4,64,16], index: 0, kind: input, shape index: {}]   ;;  %s22752_s1 = inlined_call_operand.vmem [shape: f32[16,72], index: 1, kind: input, shape index: {}]   ;;  %s22753_s2 = inlined_call_operand.vmem [shape: f32[1,72], index: 2, kind: input, shape index: {}]   ;;  %s22754_s3 = inlined_call_operand.vmem [shape: f32[32,32], index: 3, kind: input, shape index: {}]   ;;  %s22755_s4 = inlined_call_operand.vmem [shape: f32[1,32], index: 4, kind: input, shape index: {}]   ;;  %s22756_s5 = inlined_call_operand.vmem [shape: f32[1,32], index: 5, kind: input, shape index: {}]   ;;  %s22757_s6 = inlined_call_operand.vmem [shape: f32[1,32], index: 6, kind: input, shape index: {}]   ;;  %s22758_s7 = inlined_call_operand.vmem [shape: f32[1,32], index: 7, kind: input, shape index: {}]   ;;  %s22759_s8 = inlined_call_operand.vmem [shape: f32[1,32], index: 8, kind: input, shape index: {}]   ;;  %s22760_s9 = inlined_call_operand.vmem [shape: f32[4,64,32], index: 9, kind: output, shape index: {}]  }
   0x1 LB: > { %s12578_s10 = sadd.s32 4294967295, %s16880_s30   ;;  %p12582_p0 = scmp.ge.s32.totalorder %s16880_s30, 1  ;;  %s16880_s30 = sphi %s16939_s30, %s19_s30  }
   0x2   : > { %p287_p1 = scmp.lt.s32.totalorder %s16880_s30, 5 }
   0x4   : > { %p288_p2 = pnand %p12582_p0, %p287_p1 }
   0x6   : > { %291 = sbr.rel (%p288_p2) target bundleno = 5643 (0x160b), region = 56 }
   0xd   : > { %v341_v0 = vld [vmem:[%s22752_s1] sm:$0xff]  ;;  %v342_v1 = vld [vmem:[%s22752_s1 + $0x8] sm:$0xff]  ;;  %p323_p3 = scmp.lt.s32.totalorder %s12578_s10, 3  ;;  %vm350_vm0 = vcmask 130048   ;;  %s16883_s21 = smov 64   ;;  %vm16884_vm1 = vmmov 0  }
   0xe   : > { %v376_v2 = vand.u32 4294901760, %v341_v0  ;;  %v379_v3 = vand.u32 4294901760, %v342_v1  ;;  %vm1159_vm2 = vcmask 64512   ;;  %vm2625_vm3 = vcmask 523264   ;;  %s16888_s22 = smov 96  }
   0xf   : > { %s24461_s10 = smov (!%p323_p3, %s12578_s10), 3 }
  0x10   : > { %v16955_v4 = vpack.c.bf16 %v379_v3, %v376_v2  ;;  %v16957_v5 = vsub.f32 %v341_v0, %v376_v2  ;;  %v16959_v6 = vsub.f32 %v342_v1, %v379_v3  ;;  %s12662_s15 = sshll.u32 %s24461_s10, 6 }
  0x11   : > { %s16968_s18 = scalar_lea.vmem %s22751_s0, %s12662_s15  ;;  %s22698_s25 = scalar_lea.vmem %s22760_s9, %s12662_s15 }
  0x12   : > { %15389 = vmatprep.subr.bf16.mxu0 %v16955_v4  ;;  %v525_v7 = vand.u32 4294901760, %v16957_v5  ;;  %v532_v8 = vand.u32 4294901760, %v16959_v6  ;;  %v333_v9 = vld [vmem:[%s16968_s18] sm:$0xff]  ;;  %v334_v10 = vld [vmem:[%s16968_s18 + $0x8] sm:$0xff]  ;;  %v335_v11 = vld [vmem:[%s16968_s18 + $0x10] sm:$0xff]  ;;  %v15396_v60 = vpack.c.bf16 %v16959_v6, %v16957_v5 }
  0x13   : > { %15391 = vmatpush3.bf16.msra.mxu0 %v16955_v4  ;;  %v352_v12 = vsel %vm350_vm0, %v333_v9, 0  ;;  %v355_v15 = vsel %vm350_vm0, %v334_v10, 0  ;;  %v336_v16 = vld [vmem:[%s16968_s18 + $0x18] sm:$0xff]  ;;  %v337_v17 = vld [vmem:[%s16968_s18 + $0x20] sm:$0xff]  ;;  %v338_v18 = vld [vmem:[%s16968_s18 + $0x28] sm:$0xff]  ;;  %v358_v21 = vsel %vm350_vm0, %v335_v11, 0 }
  0x14   : > { %v526_v13 = vsub.f32 %v16957_v5, %v525_v7  ;;  %v533_v14 = vsub.f32 %v16959_v6, %v532_v8  ;;  %v16987_v19 = vand.u32 4294901760, %v352_v12  ;;  %v16989_v20 = vand.u32 4294901760, %v355_v15  ;;  %v339_v27 = vld [vmem:[%s16968_s18 + $0x30] sm:$0xff]  ;;  %v340_v36 = vld [vmem:[%s16968_s18 + $0x38] sm:$0xff] }
  0x15   : > { %v361_v22 = vsel %vm350_vm0, %v336_v16, 0  ;;  %v16993_v25 = vand.u32 4294901760, %v358_v21  ;;  %v364_v30 = vsel %vm350_vm0, %v337_v17, 0  ;;  %v367_v31 = vsel %vm350_vm0, %v338_v18, 0 }
  0x16   : > { %v527_v23 = vand.u32 4294901760, %v526_v13  ;;  %v534_v24 = vand.u32 4294901760, %v533_v14  ;;  %v16995_v26 = vand.u32 4294901760, %v361_v22  ;;  %v16999_v28 = vsub.f32 %v352_v12, %v16987_v19 }
  0x17   : > { %v17002_v29 = vsub.f32 %v355_v15, %v16989_v20  ;;  %v17007_v33 = vsub.f32 %v358_v21, %v16993_v25  ;;  %v17012_v35 = vand.u32 4294901760, %v364_v30  ;;  %v17017_v39 = vand.u32 4294901760, %v367_v31 }
  0x18   : > { %v15392_v32 = vpack.c.bf16 %v534_v24, %v527_v23  ;;  %v17010_v34 = vsub.f32 %v361_v22, %v16995_v26  ;;  %v444_v37 = vand.u32 4294901760, %v16999_v28  ;;  %v370_v40 = vsel %vm350_vm0, %v339_v27, 0 }
  0x19   : > { %v454_v38 = vand.u32 4294901760, %v17002_v29  ;;  %v464_v41 = vand.u32 4294901760, %v17007_v33  ;;  %v17023_v43 = vsub.f32 %v364_v30, %v17012_v35  ;;  %v17025_v44 = vand.u32 4294901760, %v370_v40 }
  0x1a   : > { %15393 = vmatprep.subr.bf16.mxu0 %v15392_v32  ;;  %v474_v42 = vand.u32 4294901760, %v17010_v34  ;;  %v445_v45 = vsub.f32 %v16999_v28, %v444_v37  ;;  %v493_v47 = vsub.f32 %v367_v31, %v17017_v39  ;;  %v373_v48 = vsel %vm350_vm0, %v340_v36, 0 }
  0x1b   : > { %v455_v46 = vsub.f32 %v17002_v29, %v454_v38  ;;  %v465_v49 = vsub.f32 %v17007_v33, %v464_v41  ;;  %v484_v51 = vand.u32 4294901760, %v17023_v43  ;;  %v503_v52 = vsub.f32 %v370_v40, %v17025_v44 }
  0x1c   : > { %v475_v50 = vsub.f32 %v17010_v34, %v474_v42  ;;  %v446_v53 = vand.u32 4294901760, %v445_v45  ;;  %v494_v55 = vand.u32 4294901760, %v493_v47  ;;  %v17043_v56 = vand.u32 4294901760, %v373_v48 }
  0x1d   : > { %v456_v54 = vand.u32 4294901760, %v455_v46  ;;  %v466_v57 = vand.u32 4294901760, %v465_v49  ;;  %v485_v58 = vsub.f32 %v17023_v43, %v484_v51  ;;  %v504_v59 = vand.u32 4294901760, %v503_v52 }
  0x1e   : > { %13718 = vmatprep.mubr.f32.mxu0 %v446_v53  ;;  %v513_v61 = vsub.f32 %v373_v48, %v17043_v56  ;;  %v476_v62 = vand.u32 4294901760, %v475_v50  ;;  %v495_v63 = vsub.f32 %v493_v47, %v494_v55  ;;  %v15404_v12 = vpack.c.bf16 %v532_v8, %v525_v7 }
  0x1f   : > { %13719 = vmatmul.mubr.f32.vlgmr.msra.gmra.mrb[0].mxu0 %v456_v54  ;;  %v486_v0 = vand.u32 4294901760, %v485_v58  ;;  %v505_v1 = vsub.f32 %v503_v52, %v504_v59  ;;  %v22765_v6 = vmov 0.0|0.0  }
  0x20   : > { %15395 = vmatpush3.bf16.msra.mxu0 %v15392_v32  ;;  %13721 = vmatprep.mubr.f32.mxu0 %v466_v57  ;;  %v514_v2 = vand.u32 4294901760, %v513_v61  ;;  %v496_v3 = vand.u32 4294901760, %v495_v63 }
  0x21   : > { %15397 = vmatprep.subr.bf16.mxu0 %v15396_v60  ;;  %v506_v10 = vand.u32 4294901760, %v505_v1 }
  0x22   : > { %v515_v9 = vsub.f32 %v513_v61, %v514_v2 }
  0x23   : > { %13722 = vmatmul.mubr.f32.gmra.mrb[2].mxu0 %v476_v62 }
  0x24   : > { %13724 = vmatprep.mubr.f32.mxu0 %v486_v0  ;;  %v516_v11 = vand.u32 4294901760, %v515_v9 }
  0x27   : > { %13725 = vmatmul.mubr.f32.gmra.mrb[4].mxu0 %v496_v3 }
  0x28   : > { %13727 = vmatprep.mubr.f32.mxu0 %v506_v10 }
  0x2b   : > { %13728 = vmatmul.mubr.f32.gmra.mrb[6].mxu0 %v516_v11 }
  0x2c   : > { %13734 = vmatprep.mubr.f32.mxu0 %v16987_v19 }
  0x2f   : > { %13735 = vmatmul.mubr.f32.vlgmr.msra.gmra.mrb[0].mxu0 %v16989_v20 }
  0x30   : > { %15399 = vmatpush3.bf16.msra.mxu0 %v15396_v60  ;;  %13737 = vmatprep.mubr.f32.mxu0 %v16993_v25 }
  0x31   : > { %15401 = vmatprep.subr.bf16.mxu0 %v16955_v4 }
  0x33   : > { %13738 = vmatmul.mubr.f32.gmra.mrb[2].mxu0 %v16995_v26 }
  0x34   : > { %13740 = vmatprep.mubr.f32.mxu0 %v17012_v35 }
  0x37   : > { %13741 = vmatmul.mubr.f32.gmra.mrb[4].mxu0 %v17017_v39 }
  0x38   : > { %13743 = vmatprep.mubr.f32.mxu0 %v17025_v44 }
  0x3b   : > { %13744 = vmatmul.mubr.f32.gmra.mrb[6].mxu0 %v17043_v56 }
  0x3c   : > { %13750 = vmatprep.mubr.f32.mxu0 %v16999_v28 }
  0x3f   : > { %13751 = vmatmul.mubr.f32.vlgmr.msra.gmra.mrb[0].mxu0 %v17002_v29 }
  0x40   : > { %15403 = vmatpush3.bf16.msra.mxu0 %v16955_v4  ;;  %13753 = vmatprep.mubr.f32.mxu0 %v17007_v33 }
  0x41   : > { %15405 = vmatprep.subr.bf16.mxu0 %v15404_v12 }
  0x43   : > { %13754 = vmatmul.mubr.f32.gmra.mrb[2].mxu0 %v17010_v34  ;;  %v22761_v34 = vmov 0.0  }
  0x44   : > { %13756 = vmatprep.mubr.f32.mxu0 %v17023_v43 }
  0x47   : > { %13757 = vmatmul.mubr.f32.gmra.mrb[4].mxu0 %v493_v47 }
  0x48   : > { %13759 = vmatprep.mubr.f32.mxu0 %v503_v52 }
  0x4b   : > { %13760 = vmatmul.mubr.f32.gmra.mrb[6].mxu0 %v513_v61 }
  0x4c   : > { %13766 = vmatprep.mubr.f32.mxu0 %v444_v37 }
  0x4f   : > { %13767 = vmatmul.mubr.f32.vlgmr.msra.gmra.mrb[0].mxu0 %v454_v38 }
  0x50   : > { %15407 = vmatpush3.bf16.msra.mxu0 %v15404_v12  ;;  %13769 = vmatprep.mubr.f32.mxu0 %v464_v41 }
  0x51   : > { %15409 = vmatprep.subr.bf16.mxu0 %v16955_v4 }
  0x53   : > { %13770 = vmatmul.mubr.f32.gmra.mrb[2].mxu0 %v474_v42 }
  0x54   : > { %13772 = vmatprep.mubr.f32.mxu0 %v484_v51 }
  0x57   : > { %13773 = vmatmul.mubr.f32.gmra.mrb[4].mxu0 %v494_v55 }
  0x58   : > { %13775 = vmatprep.mubr.f32.mxu0 %v504_v59 }
  0x5b   : > { %13776 = vmatmul.mubr.f32.gmra.mrb[6].mxu0 %v514_v2 }
  0x5c   : > { %13782 = vmatprep.mubr.f32.mxu0 %v16987_v19 }
  0x5f   : > { %13783 = vmatmul.mubr.f32.vlgmr.msra.gmra.mrb[0].mxu0 %v16989_v20 }
  0x60   : > { %15411 = vmatpush3.bf16.msra.mxu0 %v16955_v4  ;;  %13785 = vmatprep.mubr.f32.mxu0 %v16993_v25  ;;  %v12587_v4 = vld [vmem:[%s22753_s2] ss:$0 sm:$0xff] }
  0x61   : > { %15508 = vmatprep.subr.bf16.mxu0 %v22765_v6 }
  0x63   : > { %13786 = vmatmul.mubr.f32.gmra.mrb[2].mxu0 %v16995_v26 }
  0x64   : > { %13788 = vmatprep.mubr.f32.mxu0 %v17012_v35 }
  0x67   : > { %13789 = vmatmul.mubr.f32.gmra.mrb[4].mxu0 %v17017_v39 }
  0x68   : > { %13791 = vmatprep.mubr.f32.mxu0 %v17025_v44 }
  0x6b   : > { %13792 = vmatmul.mubr.f32.gmra.mrb[6].mxu0 %v17043_v56 }
  0x6c   : > { %13798 = vmatprep.mubr.f32.mxu0 %v16987_v19 }
  0x6f   : > { %13799 = vmatmul.mubr.f32.vlgmr.msra.gmra.mrb[0].mxu0 %v16989_v20 }
  0x70   : > { %13801 = vmatprep.mubr.f32.mxu0 %v16993_v25 }
  0x73   : > { %13802 = vmatmul.mubr.f32.gmra.mrb[2].mxu0 %v16995_v26 }
  0x74   : > { %13804 = vmatprep.mubr.f32.mxu0 %v17012_v35 }
  0x77   : > { %13805 = vmatmul.mubr.f32.gmra.mrb[4].mxu0 %v17017_v39 }
  0x78   : > { %13807 = vmatprep.mubr.f32.mxu0 %v17025_v44 }
  0x7b   : > { %13808 = vmatmul.mubr.f32.gmra.mrb[6].mxu0 %v17043_v56 }
  0x7c   : > { %13994 = vmatprep.mubr.msk.f32.mxu0 %vm16884_vm1, %v22761_v34 }
 0x142   : > { %v17097_v5 = vpop.f32.mrb[0].mxu0 }
 0x143   : > { %23450 = vst [vmem:[#allocation3_spill] sm:$0xff] %v17097_v5  ;;  %v17101_v7 = vadd.f32 %v17097_v5, %v12587_v4  ;;  %v17103_v8 = vpop.f32.mrb[1].mxu0 }
 0x144   : > { %23452 = vst [vmem:[#allocation5_spill] sm:$0xff] %v17103_v8  ;;  %v17106_v13 = vadd.f32 %v12587_v4, %v17103_v8 }
 0x145   : > { %23451 = vst [vmem:[#allocation4_spill] sm:$0xff] %v17101_v7  ;;  %v2015_v14 = vmul.f32 %v17101_v7, %v17101_v7 }
 0x146   : > { %23453 = vst [vmem:[#allocation6_spill] sm:$0xff] %v17106_v13  ;;  %v17110_v15 = vpop.f32.mrb[2].mxu0  ;;  %1143 = vrot.lane.b32.xlu0 %v17106_v13, %s16883_s21  ;;  %v2014_v17 = vmul.f32 %v17106_v13, %v17106_v13 }
 0x147   : > { %23454 = vst [vmem:[#allocation7_spill] sm:$0xff] %v17110_v15  ;;  %2032 = vrot.lane.b32.xlu1 %v2015_v14, %s16883_s21  ;;  %v17115_v16 = vpop.f32.mrb[3].mxu0  ;;  %v17130_v21 = vadd.f32 %v17110_v15, %v12587_v4 }
 0x148   : > { %23455 = vst [vmem:[#allocation8_spill] sm:$0xff] %v17115_v16  ;;  %v17127_v20 = vadd.f32 %v12587_v4, %v17115_v16 }
 0x149   : > { %23459 = vst [vmem:[#allocation12_spill] sm:$0xff] %v17130_v21  ;;  %v2017_v25 = vmul.f32 %v17130_v21, %v17130_v21 }
 0x14a   : > { %v17119_v18 = vpop.f32.mrb[4].mxu0  ;;  %1145 = vrot.lane.b32.xlu0 %v17101_v7, %s16883_s21  ;;  %23458 = vst [vmem:[#allocation11_spill] sm:$0xff] %v17127_v20  ;;  %v2016_v24 = vmul.f32 %v17127_v20, %v17127_v20 }
 0x14b   : > { %23456 = vst [vmem:[#allocation9_spill] sm:$0xff] %v17119_v18  ;;  %v17123_v19 = vpop.f32.mrb[5].mxu0  ;;  %2030 = vrot.lane.b32.xlu1 %v2014_v17, %s16883_s21  ;;  %v17150_v27 = vadd.f32 %v17119_v18, %v12587_v4 }
 0x14c   : > { %23457 = vst [vmem:[#allocation10_spill] sm:$0xff] %v17123_v19  ;;  %v17147_v26 = vadd.f32 %v12587_v4, %v17123_v19 }
 0x14d   : > { %23463 = vst [vmem:[#allocation16_spill] sm:$0xff] %v17150_v27  ;;  %v2019_v29 = vmul.f32 %v17150_v27, %v17150_v27 }
 0x14e   : > { %v17132_v22 = vpop.f32.mrb[6].mxu0  ;;  %1147 = vrot.lane.b32.xlu0 %v17127_v20, %s16883_s21  ;;  %23462 = vst [vmem:[#allocation15_spill] sm:$0xff] %v17147_v26  ;;  %v2018_v28 = vmul.f32 %v17147_v26, %v17147_v26 }
 0x14f   : > { %23460 = vst [vmem:[#allocation13_spill] sm:$0xff] %v17132_v22  ;;  %v17136_v23 = vpop.f32.mrb[7].mxu0  ;;  %1149 = vrot.lane.b32.xlu1 %v17130_v21, %s16883_s21  ;;  %v17166_v31 = vadd.f32 %v17132_v22, %v12587_v4 }
 0x150   : > { %23461 = vst [vmem:[#allocation14_spill] sm:$0xff] %v17136_v23  ;;  %v17163_v30 = vadd.f32 %v12587_v4, %v17136_v23 }
 0x151   : > { %23465 = vst [vmem:[#allocation18_spill] sm:$0xff] %v17166_v31  ;;  %v2021_v33 = vmul.f32 %v17166_v31, %v17166_v31 }
 0x152   : > { %2034 = vrot.lane.b32.xlu0 %v2016_v24, %s16883_s21  ;;  %23464 = vst [vmem:[#allocation17_spill] sm:$0xff] %v17163_v30  ;;  %v2020_v32 = vmul.f32 %v17163_v30, %v17163_v30 }
 0x153   : > { %2036 = vrot.lane.b32.xlu1 %v2017_v25, %s16883_s21 }
 0x156   : > { %1151 = vrot.lane.b32.xlu0 %v17147_v26, %s16883_s21 }
 0x157   : > { %1153 = vrot.lane.b32.xlu1 %v17150_v27, %s16883_s21 }
 0x15a   : > { %2038 = vrot.lane.b32.xlu0 %v2018_v28, %s16883_s21 }
 0x15b   : > { %2040 = vrot.lane.b32.xlu1 %v2019_v29, %s16883_s21 }
 0x15e   : > { %1155 = vrot.lane.b32.xlu0 %v17163_v30, %s16883_s21 }
 0x15f   : > { %1157 = vrot.lane.b32.xlu1 %v17166_v31, %s16883_s21 }
 0x162   : > { %2042 = vrot.lane.b32.xlu0 %v2020_v32, %s16883_s21 }
 0x163   : > { %2044 = vrot.lane.b32.xlu1 %v2021_v33, %s16883_s21 }
 0x1b8   : > { %v1144_v35 = vpop.permute.xlu0 %1143 }
 0x1b9   : > { %v1160_v36 = vsel %vm1159_vm2, %v1144_v35, 0  ;;  %v2033_v37 = vpop.permute.xlu1 %2032 }
 0x1ba   : > { %v17181_v38 = vand.u32 4294901760, %v1160_v36  ;;  %v2051_v40 = vsel %vm1159_vm2, %v2033_v37, 0 }
 0x1bb   : > { %v2069_v47 = vand.u32 4294901760, %v2051_v40 }
 0x1bc   : > { %v17184_v39 = vsub.f32 %v1160_v36, %v17181_v38  ;;  %v1146_v41 = vpop.permute.xlu0 %1145 }
 0x1bd   : > { %v1162_v42 = vsel %vm1159_vm2, %v1146_v41, 0  ;;  %v2031_v43 = vpop.permute.xlu1 %2030  ;;  %v17222_v0 = vsub.f32 %v2051_v40, %v2069_v47 }
 0x1be   : > { %v17188_v44 = vand.u32 4294901760, %v1162_v42  ;;  %v2049_v45 = vsel %vm1159_vm2, %v2031_v43, 0  ;;  %v17192_v46 = vand.u32 4294901760, %v17184_v39 }
 0x1bf   : > { %v2066_v48 = vand.u32 4294901760, %v2049_v45  ;;  %v22767_v25 = vand.u32 4294901760, %v17222_v0 }
 0x1c0   : > { %v17196_v49 = vpack.c.bf16 %v17188_v44, %v17181_v38  ;;  %v1148_v50 = vpop.permute.xlu0 %1147  ;;  %v1252_v51 = vsub.f32 %v17184_v39, %v17192_v46  ;;  %v17227_v9 = vsub.f32 %v1162_v42, %v17188_v44 }
 0x1c1   : > { %v17200_v52 = vpack.c.bf16 %v2069_v47, %v2066_v48  ;;  %v1164_v53 = vsel %vm1159_vm2, %v1148_v50, 0  ;;  %v1150_v54 = vpop.permute.xlu1 %1149  ;;  %v17213_v59 = vsub.f32 %v2049_v45, %v2066_v48  ;;  %v16886_v45 = vmov 0  }
 0x1c2   : > { %v17203_v55 = vand.u32 4294901760, %v1164_v53  ;;  %v1166_v56 = vsel %vm1159_vm2, %v1150_v54, 0  ;;  %15413 = vmatprep.subr.bf16.mxu1 %v17196_v49  ;;  %v17207_v57 = vand.u32 4294901760, %v1252_v51  ;;  %v17246_v33 = vand.u32 4294901760, %v17227_v9 }
 0x1c3   : > { %v17209_v58 = vand.u32 4294901760, %v1166_v56  ;;  %15415 = vmatpush3.bf16.xpose.msra.mxu1 %v17196_v49  ;;  %15510 = vmatpush3.bf16.xpose.msra.mxu0 %v17200_v52  ;;  %v2151_v10 = vand.u32 4294901760, %v17213_v59  ;;  %v2047_v47 = vsel %vm1159_vm2, 1.0, %v16886_v45 }
 0x1c4   : > { %13826 = vmatprep.mubr.f32.mxu1 %v17207_v57  ;;  %v2035_v60 = vpop.permute.xlu0 %2034  ;;  %15511 = vmatprep.subr.bf16.mxu0 %v22765_v6  ;;  %v1262_v54 = vsub.f32 %v17227_v9, %v17246_v33 }
 0x1c5   : > { %v17219_v61 = vpack.c.bf16 %v17209_v58, %v17203_v55  ;;  %v2053_v62 = vsel %vm1159_vm2, %v2035_v60, 0  ;;  %v2037_v63 = vpop.permute.xlu1 %2036  ;;  %v17253_v40 = vpack.c.bf16 %v22767_v25, %v2151_v10 }
 0x1c6   : > { %v2072_v1 = vand.u32 4294901760, %v2053_v62  ;;  %v2055_v2 = vsel %vm1159_vm2, %v2037_v63, 0 }
 0x1c7   : > { %v2075_v3 = vand.u32 4294901760, %v2055_v2  ;;  %15417 = vmatprep.subr.bf16.mxu1 %v17219_v61 }
 0x1c8   : > { %v17230_v11 = vsub.f32 %v2053_v62, %v2072_v1  ;;  %v1152_v12 = vpop.permute.xlu0 %1151  ;;  %v17265_v62 = vsub.f32 %v2047_v47, %v2047_v47 }
 0x1c9   : > { %v17232_v4 = vpack.c.bf16 %v2075_v3, %v2072_v1  ;;  %v17234_v14 = vsub.f32 %v2055_v2, %v2075_v3  ;;  %v1168_v17 = vsel %vm1159_vm2, %v1152_v12, 0  ;;  %v1154_v24 = vpop.permute.xlu1 %1153  ;;  %v17274_v1 = vsub.f32 %v1164_v53, %v17203_v55 }
 0x1ca   : > { %v17238_v28 = vand.u32 4294901760, %v1168_v17  ;;  %v1170_v29 = vsel %vm1159_vm2, %v1154_v24, 0  ;;  %v22764_v35 = vand.u32 4294901760, %v17230_v11  ;;  %v17277_v2 = vsub.f32 %v1166_v56, %v17209_v58 }
 0x1cb   : > { %v17241_v32 = vand.u32 4294901760, %v1170_v29  ;;  %15419 = vmatpush3.bf16.xpose.msra.mxu1 %v17219_v61  ;;  %15513 = vmatpush3.bf16.xpose.msra.mxu0 %v17232_v4  ;;  %v22763_v36 = vand.u32 4294901760, %v17234_v14  ;;  %v1263_v53 = vand.u32 4294901760, %v1262_v54 }
 0x1cc   : > { %v2039_v37 = vpop.permute.xlu0 %2038  ;;  %15514 = vmatprep.subr.bf16.mxu0 %v22765_v6  ;;  %v17318_v18 = vsub.f32 %v1168_v17, %v17238_v28  ;;  %v23469_v17 = vand.u32 4294901760, %v17222_v0 }
 0x1cd   : > { %v17257_v41 = vpack.c.bf16 %v17241_v32, %v17238_v28  ;;  %v2057_v42 = vsel %vm1159_vm2, %v2039_v37, 0  ;;  %v2041_v43 = vpop.permute.xlu1 %2040  ;;  %v17271_v63 = vpack.c.bf16 %v22763_v36, %v22764_v35  ;;  %v15428_v23 = vpack.c.bf16 %v1263_v53, %v17207_v57 }
 0x1ce   : > { %v2078_v48 = vand.u32 4294901760, %v2057_v42  ;;  %v2059_v50 = vsel %vm1159_vm2, %v2041_v43, 0  ;;  %v17345_v5 = vand.u32 4294901760, %v17318_v18 }
 0x1cf   : > { %v2081_v51 = vand.u32 4294901760, %v2059_v50  ;;  %15421 = vmatprep.subr.bf16.mxu1 %v17257_v41  ;;  %23466 = vst [vmem:[#allocation19_spill] sm:$0xff] %v17271_v63 }
 0x1d0   : > { %v1156_v60 = vpop.permute.xlu0 %1155  ;;  %v17282_v37 = vsub.f32 %v2057_v42, %v2078_v48  ;;  %v17296_v42 = vand.u32 4294901760, %v17277_v2  ;;  %v1292_v13 = vsub.f32 %v17318_v18, %v17345_v5 }
 0x1d1   : > { %v17279_v3 = vpack.c.bf16 %v2081_v51, %v2078_v48  ;;  %v1172_v12 = vsel %vm1159_vm2, %v1156_v60, 0  ;;  %v1158_v24 = vpop.permute.xlu1 %1157  ;;  %v17284_v43 = vsub.f32 %v2059_v50, %v2081_v51  ;;  %v2152_v60 = vsub.f32 %v17213_v59, %v2151_v10 }
 0x1d2   : > { %v17286_v45 = vand.u32 4294901760, %v1172_v12  ;;  %v1174_v47 = vsel %vm1159_vm2, %v1158_v24, 0  ;;  %v17304_v24 = vand.u32 4294901760, %v17274_v1  ;;  %v2179_v54 = vand.u32 4294901760, %v17282_v37 }
 0x1d3   : > { %v17289_v34 = vand.u32 4294901760, %v1174_v47  ;;  %15423 = vmatpush3.bf16.xpose.msra.mxu1 %v17257_v41  ;;  %15516 = vmatpush3.bf16.xpose.msra.mxu0 %v17279_v3  ;;  %v2186_v36 = vand.u32 4294901760, %v17284_v43  ;;  %v17327_v10 = vsub.f32 %v1170_v29, %v17241_v32  ;;  %v2153_v29 = vand.u32 4294901760, %v2152_v60 }
 0x1d4   : > { %v2043_v56 = vpop.permute.xlu0 %2042  ;;  %15517 = vmatprep.subr.bf16.mxu0 %v22765_v6  ;;  %v23472_v60 = vand.u32 4294901760, %v17230_v11 }
 0x1d5   : > { %v17300_v48 = vpack.c.bf16 %v17289_v34, %v17286_v45  ;;  %v2061_v50 = vsel %vm1159_vm2, %v2043_v56, 0  ;;  %v2045_v51 = vpop.permute.xlu1 %2044  ;;  %v23467_v56 = vand.u32 4294901760, %v17265_v62  ;;  %v17332_v8 = vpack.c.bf16 %v2186_v36, %v2179_v54 }
 0x1d6   : > { %v2084_v35 = vand.u32 4294901760, %v2061_v50  ;;  %v2063_v6 = vsel %vm1159_vm2, %v2045_v51, 0  ;;  %v1272_v51 = vsub.f32 %v17274_v1, %v17304_v24  ;;  %v17350_v7 = vand.u32 4294901760, %v17327_v10 }
 0x1d7   : > { %v2087_v25 = vand.u32 4294901760, %v2063_v6  ;;  %15425 = vmatprep.subr.bf16.mxu1 %v17300_v48  ;;  %v2141_v19 = vsub.f32 %v17265_v62, %v23467_v56  ;;  %23468 = vst [vmem:[#allocation20_spill] sm:$0xff] %v17332_v8  ;;  %v17342_v56 = vsub.f32 %v1172_v12, %v17286_v45  ;;  %v17353_v21 = vsub.f32 %v1174_v47, %v17289_v34 }
 0x1d8   : > { %v17312_v22 = vsub.f32 %v2061_v50, %v2084_v35  ;;  %v1282_v50 = vsub.f32 %v17277_v2, %v17296_v42  ;;  %v1273_v26 = vand.u32 4294901760, %v1272_v51  ;;  %v2166_v12 = vsub.f32 %v17230_v11, %v23472_v60 }
 0x1d9   : > { %v17320_v16 = vpack.c.bf16 %v2087_v25, %v2084_v35  ;;  %v17322_v15 = vsub.f32 %v2063_v6, %v2087_v25  ;;  %v2159_v35 = vsub.f32 %v17222_v0, %v23469_v17  ;;  %v23470_v25 = vmov 0.0|0.0  }
 0x1da   : > { %v2193_v57 = vand.u32 4294901760, %v17312_v22  ;;  %v2142_v17 = vand.u32 4294901760, %v2141_v19  ;;  %v1283_v31 = vand.u32 4294901760, %v1282_v50  ;;  %v23473_v19 = vand.u32 4294901760, %v17234_v14 }
 0x1db   : > { %v2200_v6 = vand.u32 4294901760, %v17322_v15  ;;  %15427 = vmatpush3.bf16.xpose.msra.mxu1 %v17300_v48  ;;  %15519 = vmatpush3.bf16.xpose.msra.mxu0 %v17320_v16  ;;  %v2160_v27 = vand.u32 4294901760, %v2159_v35  ;;  %v1302_v47 = vsub.f32 %v17327_v10, %v17350_v7  ;;  %v1293_v35 = vand.u32 4294901760, %v1292_v13 }
 0x1dc   : > { %15429 = vmatprep.subr.bf16.mxu1 %v15428_v23  ;;  %15520 = vmatprep.subr.bf16.mxu0 %v23470_v25  ;;  %v2173_v51 = vsub.f32 %v17234_v14, %v23473_v19  ;;  %v15432_v50 = vpack.c.bf16 %v1283_v31, %v1273_v26  ;;  %v23474_v60 = vmov 0.0   ;;  %v2187_v13 = vsub.f32 %v17284_v43, %v2186_v36 }
 0x1dd   : > { %v17347_v30 = vpack.c.bf16 %v2200_v6, %v2193_v57  ;;  %v15521_v20 = vpack.c.bf16 %v2160_v27, %v2153_v29  ;;  %v17369_v27 = vand.u32 4294901760, %v17353_v21  ;;  %v1303_v19 = vand.u32 4294901760, %v1302_v47 }
 0x1de   : > { %v2194_v47 = vsub.f32 %v17312_v22, %v2193_v57  ;;  %v15533_v57 = vpack.c.bf16 %v17222_v0, %v17213_v59  ;;  %v15452_v59 = vpack.c.bf16 %v17327_v10, %v17318_v18  ;;  %v15536_v0 = vpack.c.bf16 %v17234_v14, %v17230_v11 }
 0x1df   : > { %23471 = vst [vmem:[#allocation21_spill] sm:$0xff] %v17347_v30  ;;  %v17361_v30 = vand.u32 4294901760, %v17342_v56  ;;  %v15436_v63 = vpack.c.bf16 %v1303_v19, %v1293_v35  ;;  %v15542_v11 = vpack.c.bf16 %v17322_v15, %v17312_v22  ;;  %v15484_v22 = vpack.c.bf16 %v17350_v7, %v17345_v5 }
 0x1e1   : > { %v1312_v29 = vsub.f32 %v17342_v56, %v17361_v30 }
 0x1e2   : > { %13827 = vmatmul.mubr.f32.vlgmr.msra.gmra.mrb[0].mxu1 %v1263_v53  ;;  %13995 = vmatmul.mubr.f32.vlgmr.msra.gmra.mrb[8].mxu0 %v2142_v17  ;;  %v2167_v53 = vand.u32 4294901760, %v2166_v12  ;;  %v2174_v17 = vand.u32 4294901760, %v2173_v51  ;;  %v2188_v51 = vand.u32 4294901760, %v2187_v13 }
 0x1e3   : > { %13829 = vmatprep.mubr.f32.mxu1 %v1273_v26  ;;  %15431 = vmatpush3.bf16.xpose.msra.mxu1 %v15428_v23  ;;  %v1313_v23 = vand.u32 4294901760, %v1312_v29  ;;  %v2180_v26 = vsub.f32 %v17282_v37, %v2179_v54  ;;  %v2201_v54 = vsub.f32 %v17322_v15, %v2200_v6  ;;  %v16887_v6 = vmov 1.0  }
 0x1e4   : > { %15522 = vmatpush3.bf16.xpose.msra.mxu0 %v15521_v20  ;;  %15433 = vmatprep.subr.bf16.mxu1 %v15432_v50  ;;  %v1322_v20 = vsub.f32 %v17353_v21, %v17369_v27  ;;  %v15524_v8 = vpack.c.bf16 %v2174_v17, %v2167_v53  ;;  %v15444_v53 = vpack.c.bf16 %v17227_v9, %v17184_v39 }
 0x1e5   : > { %15523 = vmatprep.subr.bf16.mxu0 %v23470_v25  ;;  %14013 = vmatprep.mubr.msk.f32.mxu0 %vm16884_vm1, %v23474_v60  ;;  %v15456_v17 = vpack.c.bf16 %v17353_v21, %v17342_v56  ;;  %v15476_v15 = vpack.c.bf16 %v17246_v33, %v17192_v46 }
 0x1e6   : > { %13830 = vmatmul.mubr.f32.gmra.mrb[2].mxu1 %v1283_v31  ;;  %v1323_v12 = vand.u32 4294901760, %v1322_v20  ;;  %v2181_v31 = vand.u32 4294901760, %v2180_v26 }
 0x1e7   : > { %13832 = vmatprep.mubr.f32.mxu1 %v1293_v35 }
 0x1e8   : > { %v15527_v36 = vpack.c.bf16 %v2188_v51, %v2181_v31  ;;  %v15440_v29 = vpack.c.bf16 %v1323_v12, %v1313_v23 }
 0x1ea   : > { %13833 = vmatmul.mubr.f32.gmra.mrb[4].mxu1 %v1303_v19  ;;  %v15539_v19 = vpack.c.bf16 %v17284_v43, %v17282_v37 }
 0x1eb   : > { %13835 = vmatprep.mubr.f32.mxu1 %v1313_v23  ;;  %15435 = vmatpush3.bf16.xpose.msra.mxu1 %v15432_v50  ;;  %v2202_v50 = vand.u32 4294901760, %v2201_v54 }
 0x1ec   : > { %15525 = vmatpush3.bf16.xpose.msra.mxu0 %v15524_v8  ;;  %15437 = vmatprep.subr.bf16.mxu1 %v15436_v63  ;;  %v2195_v8 = vand.u32 4294901760, %v2194_v47 }
 0x1ed   : > { %15526 = vmatprep.subr.bf16.mxu0 %v23470_v25 }
 0x1ee   : > { %13836 = vmatmul.mubr.f32.gmra.mrb[6].mxu1 %v1323_v12  ;;  %v15530_v35 = vpack.c.bf16 %v2202_v50, %v2195_v8 }
 0x1ef   : > { %13854 = vmatprep.mubr.f32.mxu1 %v17181_v38 }
 0x1f3   : > { %15439 = vmatpush3.bf16.xpose.msra.mxu1 %v15436_v63  ;;  %v15448_v63 = vpack.c.bf16 %v17277_v2, %v17274_v1 }
 0x1f4   : > { %15528 = vmatpush3.bf16.xpose.msra.mxu0 %v15527_v36  ;;  %15441 = vmatprep.subr.bf16.mxu1 %v15440_v29 }
 0x1f5   : > { %15529 = vmatprep.subr.bf16.mxu0 %v23470_v25 }
 0x1fb   : > { %15443 = vmatpush3.bf16.xpose.msra.mxu1 %v15440_v29 }
 0x1fc   : > { %15531 = vmatpush3.bf16.xpose.msra.mxu0 %v15530_v35  ;;  %15445 = vmatprep.subr.bf16.mxu1 %v15444_v53 }
 0x1fd   : > { %15532 = vmatprep.subr.bf16.mxu0 %v23470_v25 }
 0x202   : > { %13855 = vmatmul.mubr.f32.vlgmr.msra.gmra.mrb[0].mxu1 %v17188_v44 }
 0x203   : > { %13857 = vmatprep.mubr.f32.mxu1 %v17203_v55  ;;  %15447 = vmatpush3.bf16.xpose.msra.mxu1 %v15444_v53 }
 0x204   : > { %14014 = vmatmul.mubr.msk.f32.vlgmr.msra.gmra.mrb[8].mxu0 %vm1159_vm2, %v16887_v6  ;;  %15449 = vmatprep.subr.bf16.mxu1 %v15448_v63 }
 0x205   : > { %15534 = vmatpush3.bf16.xpose.msra.mxu0 %v15533_v57  ;;  %14032 = vmatprep.mubr.msk.f32.mxu0 %vm16884_vm1, %v23474_v60 }
 0x206   : > { %13858 = vmatmul.mubr.f32.gmra.mrb[2].mxu1 %v17209_v58  ;;  %15535 = vmatprep.subr.bf16.mxu0 %v23470_v25 }
 0x207   : > { %13860 = vmatprep.mubr.f32.mxu1 %v17238_v28 }
 0x20a   : > { %13861 = vmatmul.mubr.f32.gmra.mrb[4].mxu1 %v17241_v32 }
 0x20b   : > { %13863 = vmatprep.mubr.f32.mxu1 %v17286_v45  ;;  %15451 = vmatpush3.bf16.xpose.msra.mxu1 %v15448_v63 }
 0x20c   : > { %15453 = vmatprep.subr.bf16.mxu1 %v15452_v59 }
 0x20d   : > { %15537 = vmatpush3.bf16.xpose.msra.mxu0 %v15536_v0 }
 0x20e   : > { %13864 = vmatmul.mubr.f32.gmra.mrb[6].mxu1 %v17289_v34  ;;  %15538 = vmatprep.subr.bf16.mxu0 %v23470_v25 }
 0x20f   : > { %13882 = vmatprep.mubr.f32.mxu1 %v17184_v39  ;;  %v23476_v39 = vld [vmem:[#allocation19_spill] sm:$0xff] }
 0x213   : > { %15455 = vmatpush3.bf16.xpose.msra.mxu1 %v15452_v59 }
 0x214   : > { %15457 = vmatprep.subr.bf16.mxu1 %v15456_v17 }
 0x215   : > { %15540 = vmatpush3.bf16.xpose.msra.mxu0 %v15539_v19 }
 0x216   : > { %15541 = vmatprep.subr.bf16.mxu0 %v23470_v25 }
 0x21b   : > { %15459 = vmatpush3.bf16.xpose.msra.mxu1 %v15456_v17 }
 0x21c   : > { %15461 = vmatprep.subr.bf16.mxu1 %v17196_v49 }
 0x21d   : > { %15543 = vmatpush3.bf16.xpose.msra.mxu0 %v15542_v11 }
 0x21e   : > { %15544 = vmatprep.subr.bf16.mxu0 %v23470_v25 }
 0x222   : > { %13883 = vmatmul.mubr.f32.vlgmr.msra.gmra.mrb[0].mxu1 %v17227_v9  ;;  %v23477_v9 = vld [vmem:[#allocation20_spill] sm:$0xff] }
 0x223   : > { %13885 = vmatprep.mubr.f32.mxu1 %v17274_v1  ;;  %15463 = vmatpush3.bf16.xpose.msra.mxu1 %v17196_v49 }
 0x224   : > { %14033 = vmatmul.mubr.f32.vlgmr.msra.gmra.mrb[8].mxu0 %v17265_v62  ;;  %15465 = vmatprep.subr.bf16.mxu1 %v17219_v61 }
 0x225   : > { %15546 = vmatpush3.bf16.xpose.msra.mxu0 %v17200_v52  ;;  %14051 = vmatprep.mubr.msk.f32.mxu0 %vm16884_vm1, %v23474_v60 }
 0x226   : > { %13886 = vmatmul.mubr.f32.gmra.mrb[2].mxu1 %v17277_v2  ;;  %15547 = vmatprep.subr.bf16.mxu0 %v23470_v25 }
 0x227   : > { %13888 = vmatprep.mubr.f32.mxu1 %v17318_v18  ;;  %v15480_v18 = vpack.c.bf16 %v17296_v42, %v17304_v24 }
 0x22a   : > { %13889 = vmatmul.mubr.f32.gmra.mrb[4].mxu1 %v17327_v10 }
 0x22b   : > { %13891 = vmatprep.mubr.f32.mxu1 %v17342_v56  ;;  %15467 = vmatpush3.bf16.xpose.msra.mxu1 %v17219_v61 }
 0x22c   : > { %15469 = vmatprep.subr.bf16.mxu1 %v17257_v41 }
 0x22d   : > { %15549 = vmatpush3.bf16.xpose.msra.mxu0 %v17232_v4 }
 0x22e   : > { %13892 = vmatmul.mubr.f32.gmra.mrb[6].mxu1 %v17353_v21  ;;  %15550 = vmatprep.subr.bf16.mxu0 %v23470_v25  ;;  %v23475_v21 = vand.u32 4294901760, %v17265_v62 }
 0x22f   : > { %13910 = vmatprep.mubr.f32.mxu1 %v17192_v46  ;;  %v15488_v46 = vpack.c.bf16 %v17369_v27, %v17361_v30 }
 0x233   : > { %15471 = vmatpush3.bf16.xpose.msra.mxu1 %v17257_v41 }
 0x234   : > { %15473 = vmatprep.subr.bf16.mxu1 %v17300_v48 }
 0x235   : > { %15552 = vmatpush3.bf16.xpose.msra.mxu0 %v17279_v3 }
 0x236   : > { %15553 = vmatprep.subr.bf16.mxu0 %v23470_v25 }
 0x23b   : > { %15475 = vmatpush3.bf16.xpose.msra.mxu1 %v17300_v48 }
 0x23c   : > { %15477 = vmatprep.subr.bf16.mxu1 %v15476_v15 }
 0x23d   : > { %15555 = vmatpush3.bf16.xpose.msra.mxu0 %v17320_v16 }
 0x23e   : > { %15556 = vmatprep.subr.bf16.mxu0 %v23470_v25 }
 0x242   : > { %13911 = vmatmul.mubr.f32.vlgmr.msra.gmra.mrb[0].mxu1 %v17246_v33 }
 0x243   : > { %13913 = vmatprep.mubr.f32.mxu1 %v17304_v24  ;;  %15479 = vmatpush3.bf16.xpose.msra.mxu1 %v15476_v15 }
 0x244   : > { %14052 = vmatmul.mubr.f32.vlgmr.msra.gmra.mrb[8].mxu0 %v23475_v21  ;;  %15481 = vmatprep.subr.bf16.mxu1 %v15480_v18 }
 0x245   : > { %15558 = vmatpush3.bf16.xpose.msra.mxu0 %v17253_v40  ;;  %14070 = vmatprep.mubr.msk.f32.mxu0 %vm16884_vm1, %v23474_v60 }
 0x246   : > { %13914 = vmatmul.mubr.f32.gmra.mrb[2].mxu1 %v17296_v42  ;;  %15559 = vmatprep.subr.bf16.mxu0 %v23470_v25 }
 0x247   : > { %13916 = vmatprep.mubr.f32.mxu1 %v17345_v5  ;;  %v23478_v5 = vld [vmem:[#allocation21_spill] sm:$0xff] }
 0x24a   : > { %13917 = vmatmul.mubr.f32.gmra.mrb[4].mxu1 %v17350_v7  ;;  %v2610_v7 = vlaneseq }
 0x24b   : > { %13919 = vmatprep.mubr.f32.mxu1 %v17361_v30  ;;  %15483 = vmatpush3.bf16.xpose.msra.mxu1 %v15480_v18 }
 0x24c   : > { %15485 = vmatprep.subr.bf16.mxu1 %v15484_v22  ;;  %v2611_v30 = vshrl.u32 %v2610_v7, 7  ;;  %v2623_v51 = vand.u32 127, %v2610_v7 }
 0x24d   : > { %15561 = vmatpush3.bf16.xpose.msra.mxu0 %v23476_v39 }
 0x24e   : > { %13920 = vmatmul.mubr.f32.gmra.mrb[6].mxu1 %v17369_v27  ;;  %15562 = vmatprep.subr.bf16.mxu0 %v23470_v25  ;;  %v17541_v47 = vcvt.s32.f32 %v2623_v51 }
 0x24f   : > { %13938 = vmatprep.mubr.f32.mxu1 %v17181_v38 }
 0x253   : > { %15487 = vmatpush3.bf16.xpose.msra.mxu1 %v15484_v22 }
 0x254   : > { %15489 = vmatprep.subr.bf16.mxu1 %v15488_v46 }
 0x255   : > { %15564 = vmatpush3.bf16.xpose.msra.mxu0 %v23477_v9 }
 0x256   : > { %15565 = vmatprep.subr.bf16.mxu0 %v23470_v25 }
 0x25b   : > { %15491 = vmatpush3.bf16.xpose.msra.mxu1 %v15488_v46 }
 0x25c   : > { %15493 = vmatprep.subr.bf16.mxu1 %v17196_v49 }
 0x25d   : > { %15567 = vmatpush3.bf16.xpose.msra.mxu0 %v23478_v5 }
 0x25e   : > { %15568 = vmatprep.subr.bf16.mxu0 %v23470_v25 }
 0x262   : > { %13939 = vmatmul.mubr.f32.vlgmr.msra.gmra.mrb[0].mxu1 %v17188_v44 }
 0x263   : > { %13941 = vmatprep.mubr.f32.mxu1 %v17203_v55  ;;  %15495 = vmatpush3.bf16.xpose.msra.mxu1 %v17196_v49 }
 0x264   : > { %14071 = vmatmul.mubr.msk.f32.vlgmr.msra.gmra.mrb[8].mxu0 %vm1159_vm2, %v16887_v6  ;;  %15497 = vmatprep.subr.bf16.mxu1 %v17219_v61 }
 0x265   : > { %15570 = vmatpush3.bf16.xpose.msra.mxu0 %v17200_v52  ;;  %14089 = vmatprep.mubr.msk.f32.mxu0 %vm16884_vm1, %v23474_v60 }
 0x266   : > { %13942 = vmatmul.mubr.f32.gmra.mrb[2].mxu1 %v17209_v58  ;;  %15571 = vmatprep.subr.bf16.mxu0 %v23470_v25 }
 0x267   : > { %13944 = vmatprep.mubr.f32.mxu1 %v17238_v28 }
 0x26a   : > { %13945 = vmatmul.mubr.f32.gmra.mrb[4].mxu1 %v17241_v32 }
 0x26b   : > { %13947 = vmatprep.mubr.f32.mxu1 %v17286_v45  ;;  %15499 = vmatpush3.bf16.xpose.msra.mxu1 %v17219_v61 }
 0x26c   : > { %15501 = vmatprep.subr.bf16.mxu1 %v17257_v41 }
 0x26d   : > { %15573 = vmatpush3.bf16.xpose.msra.mxu0 %v17232_v4 }
 0x26e   : > { %13948 = vmatmul.mubr.f32.gmra.mrb[6].mxu1 %v17289_v34  ;;  %15574 = vmatprep.subr.bf16.mxu0 %v23470_v25 }
 0x26f   : > { %13966 = vmatprep.mubr.f32.mxu1 %v17181_v38 }
 0x273   : > { %15503 = vmatpush3.bf16.xpose.msra.mxu1 %v17257_v41 }
 0x274   : > { %15505 = vmatprep.subr.bf16.mxu1 %v17300_v48 }
 0x275   : > { %15576 = vmatpush3.bf16.xpose.msra.mxu0 %v17279_v3 }
 0x276   : > { %15577 = vmatprep.subr.bf16.mxu0 %v23470_v25 }
 0x27b   : > { %15507 = vmatpush3.bf16.xpose.msra.mxu1 %v17300_v48 }
 0x27d   : > { %15579 = vmatpush3.bf16.xpose.msra.mxu0 %v17320_v16  ;;  %v2612_v16 = vsub.s32 0, %v2611_v30 }
 0x282   : > { %13967 = vmatmul.mubr.f32.vlgmr.msra.gmra.mrb[0].mxu1 %v17188_v44 }
 0x283   : > { %13969 = vmatprep.mubr.f32.mxu1 %v17203_v55 }
 0x284   : > { %14090 = vmatmul.mubr.msk.f32.vlgmr.msra.gmra.mrb[8].mxu0 %vm1159_vm2, %v16887_v6 }
 0x286   : > { %13970 = vmatmul.mubr.f32.gmra.mrb[2].mxu1 %v17209_v58 }
 0x287   : > { %13972 = vmatprep.mubr.f32.mxu1 %v17238_v28 }
 0x28a   : > { %13973 = vmatmul.mubr.f32.gmra.mrb[4].mxu1 %v17241_v32 }
 0x28b   : > { %13975 = vmatprep.mubr.f32.mxu1 %v17286_v45 }
 0x28e   : > { %13976 = vmatmul.mubr.f32.gmra.mrb[6].mxu1 %v17289_v34 }
 0x355   : > { %v13968_v38 = vpop.f32.mrb[0].mxu1 }
 0x356   : > { %v2603_v44 = vmul.f32 2.0, %v13968_v38  ;;  %v1968_v49 = vpop.f32.mrb[1].mxu1 }
 0x357   : > { %v2598_v52 = vpop.f32.mrb[8].mxu0  ;;  %v2602_v55 = vmul.f32 2.0, %v1968_v49 }
 0x358   : > { %v2613_v61 = vrot.slane %v2598_v52, %v2612_v16  ;;  %v14091_v4 = vpop.f32.mrb[9].mxu0 }
 0x359   : > { %v13971_v14 = vpop.f32.mrb[2].mxu1 }
 0x35a   : > { %v17509_v58 = vsub.f32 %v2613_v61, %v2602_v55  ;;  %v2605_v28 = vmul.f32 2.0, %v13971_v14  ;;  %v1980_v32 = vpop.f32.mrb[3].mxu1  ;;  %v17511_v33 = vsub.f32 %v2613_v61, %v2603_v44 }
 0x35b   : > { %v2604_v40 = vmul.f32 2.0, %v1980_v32 }
 0x35c   : > { %v17513_v34 = vsub.f32 %v2613_v61, %v2605_v28  ;;  %v2629_v41 = vsel %vm2625_vm3, %v17511_v33, inf  ;;  %v2626_v62 = vsel %vm2625_vm3, %v17509_v58, inf }
 0x35d   : > { %v17519_v1 = vsub.f32 %v2613_v61, %v2604_v40  ;;  %2630 = vmin.xlane.f32.xlu1 %v2629_v41  ;;  %2627 = vmin.xlane.f32.xlu0 %v2626_v62  ;;  %v13974_v2 = vpop.f32.mrb[4].mxu1 }
 0x35e   : > { %v2607_v3 = vmul.f32 2.0, %v13974_v2  ;;  %v1992_v37 = vpop.f32.mrb[5].mxu1  ;;  %v2635_v23 = vsel %vm2625_vm3, %v17513_v34, inf }
 0x35f   : > { %v2606_v43 = vmul.f32 2.0, %v1992_v37  ;;  %v2632_v45 = vsel %vm2625_vm3, %v17519_v1, inf }
 0x360   : > { %v17523_v42 = vsub.f32 %v2613_v61, %v2607_v3 }
 0x361   : > { %v17525_v48 = vsub.f32 %v2613_v61, %v2606_v43  ;;  %2633 = vmin.xlane.f32.xlu0 %v2632_v45  ;;  %v13977_v24 = vpop.f32.mrb[6].mxu1 }
 0x362   : > { %v2609_v10 = vmul.f32 2.0, %v13977_v24  ;;  %v2004_v25 = vpop.f32.mrb[7].mxu1  ;;  %v2641_v12 = vsel %vm2625_vm3, %v17523_v42, inf }
 0x363   : > { %v2608_v56 = vmul.f32 2.0, %v2004_v25  ;;  %v2638_v27 = vsel %vm2625_vm3, %v17525_v48, inf }
 0x364   : > { %v17529_v20 = vsub.f32 %v2613_v61, %v2609_v10  ;;  %2639 = vmin.xlane.f32.xlu1 %v2638_v27 }
 0x365   : > { %v17533_v26 = vsub.f32 %v2613_v61, %v2608_v56  ;;  %2636 = vmin.xlane.f32.xlu0 %v2635_v23 }
 0x366   : > { %v2647_v31 = vsel %vm2625_vm3, %v17529_v20, inf }
 0x367   : > { %v2644_v13 = vsel %vm2625_vm3, %v17533_v26, inf }
 0x368   : > { %2645 = vmin.xlane.f32.xlu1 %v2644_v13 }
 0x369   : > { %2642 = vmin.xlane.f32.xlu0 %v2641_v12 }
 0x36d   : > { %2648 = vmin.xlane.f32.xlu0 %v2647_v31 }
 0x3ea   : > { %v2631_v54 = vpop.xlane.xlu1 %2630  ;;  %v2628_v36 = vpop.xlane.xlu0 %2627 }
 0x3eb   : > { %vm2651_vm4 = vcmp.eq.f32.partialorder %v17511_v33, %v2631_v54  ;;  %vm2650_vm5 = vcmp.eq.f32.partialorder %v17509_v58, %v2628_v36 }
 0x3ec   : > { %v2659_v29 = vsel %vm2651_vm4, %v17541_v47, 64.0  ;;  %v2658_v8 = vsel %vm2650_vm5, %v17541_v47, 64.0 }
 0x3ed   : > { %v2669_v50 = vsel %vm2625_vm3, %v2659_v29, inf  ;;  %v2666_v35 = vsel %vm2625_vm3, %v2658_v8, inf }
 0x3ee   : > { %2670 = vmin.xlane.f32.xlu0 %v2669_v50  ;;  %2667 = vmin.xlane.f32.xlu1 %v2666_v35  ;;  %v2634_v53 = vpop.xlane.xlu0 %2633 }
 0x3ef   : > { %vm2652_vm6 = vcmp.eq.f32.partialorder %v17519_v1, %v2634_v53 }
 0x3f0   : > { %v2660_v63 = vsel %vm2652_vm6, %v17541_v47, 64.0 }
 0x3f1   : > { %v2640_v57 = vpop.xlane.xlu1 %2639  ;;  %v2672_v6 = vsel %vm2625_vm3, %v2660_v63, inf }
 0x3f2   : > { %vm2654_vm7 = vcmp.eq.f32.partialorder %v17525_v48, %v2640_v57  ;;  %2673 = vmin.xlane.f32.xlu1 %v2672_v6  ;;  %v2637_v59 = vpop.xlane.xlu0 %2636 }
 0x3f3   : > { %vm2653_vm8 = vcmp.eq.f32.partialorder %v17513_v34, %v2637_v59  ;;  %v2662_v0 = vsel %vm2654_vm7, %v17541_v47, 64.0 }
 0x3f4   : > { %v2678_v17 = vsel %vm2625_vm3, %v2662_v0, inf  ;;  %v2661_v19 = vsel %vm2653_vm8, %v17541_v47, 64.0 }
 0x3f5   : > { %v2646_v11 = vpop.xlane.xlu1 %2645  ;;  %v2675_v15 = vsel %vm2625_vm3, %v2661_v19, inf }
 0x3f6   : > { %vm2656_vm9 = vcmp.eq.f32.partialorder %v17533_v26, %v2646_v11  ;;  %2679 = vmin.xlane.f32.xlu1 %v2678_v17  ;;  %2676 = vmin.xlane.f32.xlu0 %v2675_v15  ;;  %v2643_v18 = vpop.xlane.xlu0 %2642 }
 0x3f7   : > { %vm2655_vm10 = vcmp.eq.f32.partialorder %v17523_v42, %v2643_v18  ;;  %v2664_v21 = vsel %vm2656_vm9, %v17541_v47, 64.0 }
 0x3f8   : > { %v2684_v22 = vsel %vm2625_vm3, %v2664_v21, inf  ;;  %v2663_v39 = vsel %vm2655_vm10, %v17541_v47, 64.0 }
 0x3f9   : > { %v2681_v46 = vsel %vm2625_vm3, %v2663_v39, inf }
 0x3fa   : > { %2685 = vmin.xlane.f32.xlu1 %v2684_v22  ;;  %2682 = vmin.xlane.f32.xlu0 %v2681_v46  ;;  %v2649_v9 = vpop.xlane.xlu0 %2648 }
 0x3fb   : > { %vm2657_vm11 = vcmp.eq.f32.partialorder %v17529_v20, %v2649_v9 }
 0x3fc   : > { %v2665_v5 = vsel %vm2657_vm11, %v17541_v47, 64.0 }
 0x3fd   : > { %v2687_v7 = vsel %vm2625_vm3, %v2665_v5, inf }
 0x3fe   : > { %2688 = vmin.xlane.f32.xlu0 %v2687_v7 }
 0x47b   : > { %v2671_v30 = vpop.xlane.xlu0 %2670  ;;  %v2668_v16 = vpop.xlane.xlu1 %2667 }
 0x47c   : > { %vm2691_vm12 = vcmp.eq.f32.partialorder %v17541_v47, %v2671_v30  ;;  %vm2690_vm13 = vcmp.eq.f32.partialorder %v17541_v47, %v2668_v16 }
 0x47d   : > { %v12592_v38 = vsel %vm2691_vm12, 1.0, %v23474_v60  ;;  %v12591_v44 = vsel %vm2690_vm13, 1.0, %v23474_v60  ;;  %v17572_v49 = vsel %vm2691_vm12, inf, %v17511_v33  ;;  %v17575_v52 = vsel %vm2690_vm13, inf, %v17509_v58 }
 0x47e   : > { %2723 = vst.msk [vmem:[#allocation2 + $0x8] sm:$0xff] %vm2625_vm3, %v12592_v38  ;;  %2722 = vst.msk [vmem:[#allocation2] sm:$0xff] %vm2625_vm3, %v12591_v44  ;;  %v2733_v55 = vsel %vm2625_vm3, %v17572_v49, inf  ;;  %v2730_v61 = vsel %vm2625_vm3, %v17575_v52, inf }
 0x47f   : > { %2734 = vmin.xlane.f32.xlu0 %v2733_v55  ;;  %2731 = vmin.xlane.f32.xlu1 %v2730_v61  ;;  %v2674_v4 = vpop.xlane.xlu1 %2673 }
 0x480   : > { %vm2692_vm14 = vcmp.eq.f32.partialorder %v17541_v47, %v2674_v4 }
 0x481   : > { %v12593_v14 = vsel %vm2692_vm14, 1.0, %v23474_v60  ;;  %v17586_v58 = vsel %vm2692_vm14, inf, %v17519_v1 }
 0x482   : > { %2724 = vst.msk [vmem:[#allocation2 + $0x10] sm:$0xff] %vm2625_vm3, %v12593_v14  ;;  %v2736_v28 = vsel %vm2625_vm3, %v17586_v58, inf }
 0x483   : > { %2737 = vmin.xlane.f32.xlu1 %v2736_v28  ;;  %v2680_v32 = vpop.xlane.xlu1 %2679  ;;  %v2677_v33 = vpop.xlane.xlu0 %2676 }
 0x484   : > { %vm2694_vm15 = vcmp.eq.f32.partialorder %v17541_v47, %v2680_v32  ;;  %vm2693_vm0 = vcmp.eq.f32.partialorder %v17541_v47, %v2677_v33 }
 0x485   : > { %v12595_v40 = vsel %vm2694_vm15, 1.0, %v23474_v60  ;;  %v12594_v41 = vsel %vm2693_vm0, 1.0, %v23474_v60  ;;  %v17596_v62 = vsel %vm2694_vm15, inf, %v17525_v48  ;;  %v17599_v1 = vsel %vm2693_vm0, inf, %v17513_v34  ;;  %v3450_v2 = vld [vmem:[#allocation2] sm:$0xff] }
 0x486   : > { %2726 = vst.msk [vmem:[#allocation2 + $0x20] sm:$0xff] %vm2625_vm3, %v12595_v40  ;;  %2725 = vst.msk [vmem:[#allocation2 + $0x18] sm:$0xff] %vm2625_vm3, %v12594_v41  ;;  %v2742_v3 = vsel %vm2625_vm3, %v17596_v62, inf  ;;  %v2739_v37 = vsel %vm2625_vm3, %v17599_v1, inf  ;;  %v3539_v43 = vsel %vm2625_vm3, %v3450_v2, 0 }
 0x487   : > { %2743 = vmin.xlane.f32.xlu1 %v2742_v3  ;;  %v2686_v45 = vpop.xlane.xlu1 %2685  ;;  %2740 = vmin.xlane.f32.xlu0 %v2739_v37  ;;  %v2683_v48 = vpop.xlane.xlu0 %2682  ;;  %v17608_v24 = vand.u32 4294901760, %v3539_v43 }
 0x488   : > { %vm2696_vm1 = vcmp.eq.f32.partialorder %v17541_v47, %v2686_v45  ;;  %vm2695_vm2 = vcmp.eq.f32.partialorder %v17541_v47, %v2683_v48 }
 0x489   : > { %23479 = vst [vmem:[#allocation19_spill] sm:$0xff] %v17608_v24  ;;  %v12597_v34 = vsel %vm2696_vm1, 1.0, %v23474_v60  ;;  %v12596_v10 = vsel %vm2695_vm2, 1.0, %v23474_v60  ;;  %v17615_v25 = vsel %vm2696_vm1, inf, %v17533_v26  ;;  %v17618_v56 = vsel %vm2695_vm2, inf, %v17523_v42 }
 0x48a   : > { %2728 = vst.msk [vmem:[#allocation2 + $0x30] sm:$0xff] %vm2625_vm3, %v12597_v34  ;;  %2727 = vst.msk [vmem:[#allocation2 + $0x28] sm:$0xff] %vm2625_vm3, %v12596_v10  ;;  %v2748_v27 = vsel %vm2625_vm3, %v17615_v25, inf  ;;  %v2745_v23 = vsel %vm2625_vm3, %v17618_v56, inf  ;;  %v17627_v13 = vsub.f32 %v3539_v43, %v17608_v24 }
 0x48b   : > { %2749 = vmin.xlane.f32.xlu1 %v2748_v27  ;;  %2746 = vmin.xlane.f32.xlu0 %v2745_v23  ;;  %v2689_v26 = vpop.xlane.xlu0 %2688 }
 0x48c   : > { %23480 = vst [vmem:[#allocation20_spill] sm:$0xff] %v17627_v13  ;;  %vm2697_vm4 = vcmp.eq.f32.partialorder %v17541_v47, %v2689_v26  ;;  %v22788_v42 = vand.u32 4294901760, %v17627_v13 }
 0x48d   : > { %v12598_v12 = vsel %vm2697_vm4, 1.0, %v23474_v60  ;;  %v17633_v31 = vsel %vm2697_vm4, inf, %v17529_v20 }
 0x48e   : > { %2729 = vst.msk [vmem:[#allocation2 + $0x38] sm:$0xff] %vm2625_vm3, %v12598_v12  ;;  %v2751_v51 = vsel %vm2625_vm3, %v17633_v31, inf  ;;  %v3806_v54 = vsub.f32 %v17627_v13, %v22788_v42 }
 0x48f   : > { %2752 = vmin.xlane.f32.xlu0 %v2751_v51 }
 0x490   : > { %v3807_v36 = vand.u32 4294901760, %v3806_v54 }
 0x492   : > { %14108 = vmatprep.mubr.f32.mxu1 %v3807_v36 }
 0x50c   : > { %v2735_v29 = vpop.xlane.xlu0 %2734  ;;  %v2732_v8 = vpop.xlane.xlu1 %2731 }
 0x50d   : > { %vm2755_vm5 = vcmp.eq.f32.partialorder %v17572_v49, %v2735_v29  ;;  %vm2754_vm6 = vcmp.eq.f32.partialorder %v17575_v52, %v2732_v8 }
 0x50e   : > { %v2763_v20 = vsel %vm2755_vm5, %v17541_v47, 64.0  ;;  %v2762_v50 = vsel %vm2754_vm6, %v17541_v47, 64.0 }
 0x50f   : > { %v2773_v35 = vsel %vm2625_vm3, %v2763_v20, inf  ;;  %v2770_v53 = vsel %vm2625_vm3, %v2762_v50, inf }
 0x510   : > { %2774 = vmin.xlane.f32.xlu0 %v2773_v35  ;;  %2771 = vmin.xlane.f32.xlu1 %v2770_v53  ;;  %v2738_v63 = vpop.xlane.xlu1 %2737 }
 0x511   : > { %vm2756_vm7 = vcmp.eq.f32.partialorder %v17586_v58, %v2738_v63 }
 0x512   : > { %v2764_v57 = vsel %vm2756_vm7, %v17541_v47, 64.0 }
 0x513   : > { %v2776_v6 = vsel %vm2625_vm3, %v2764_v57, inf }
 0x514   : > { %2777 = vmin.xlane.f32.xlu1 %v2776_v6  ;;  %v2744_v59 = vpop.xlane.xlu1 %2743  ;;  %v2741_v0 = vpop.xlane.xlu0 %2740 }
 0x515   : > { %vm2758_vm8 = vcmp.eq.f32.partialorder %v17596_v62, %v2744_v59  ;;  %vm2757_vm9 = vcmp.eq.f32.partialorder %v17599_v1, %v2741_v0 }
 0x516   : > { %v2766_v17 = vsel %vm2758_vm8, %v17541_v47, 64.0  ;;  %v2765_v19 = vsel %vm2757_vm9, %v17541_v47, 64.0 }
 0x517   : > { %v2782_v11 = vsel %vm2625_vm3, %v2766_v17, inf  ;;  %v2779_v15 = vsel %vm2625_vm3, %v2765_v19, inf }
 0x518   : > { %2783 = vmin.xlane.f32.xlu1 %v2782_v11  ;;  %v2750_v18 = vpop.xlane.xlu1 %2749  ;;  %2780 = vmin.xlane.f32.xlu0 %v2779_v15  ;;  %v2747_v21 = vpop.xlane.xlu0 %2746 }
 0x519   : > { %vm2760_vm10 = vcmp.eq.f32.partialorder %v17615_v25, %v2750_v18  ;;  %vm2759_vm11 = vcmp.eq.f32.partialorder %v17618_v56, %v2747_v21 }
 0x51a   : > { %v2768_v22 = vsel %vm2760_vm10, %v17541_v47, 64.0  ;;  %v2767_v39 = vsel %vm2759_vm11, %v17541_v47, 64.0 }
 0x51b   : > { %v2788_v46 = vsel %vm2625_vm3, %v2768_v22, inf  ;;  %v2785_v9 = vsel %vm2625_vm3, %v2767_v39, inf }
 0x51c   : > { %2789 = vmin.xlane.f32.xlu1 %v2788_v46  ;;  %2786 = vmin.xlane.f32.xlu0 %v2785_v9  ;;  %v2753_v5 = vpop.xlane.xlu0 %2752 }
 0x51d   : > { %vm2761_vm12 = vcmp.eq.f32.partialorder %v17633_v31, %v2753_v5 }
 0x51e   : > { %v2769_v7 = vsel %vm2761_vm12, %v17541_v47, 64.0 }
 0x51f   : > { %v2791_v30 = vsel %vm2625_vm3, %v2769_v7, inf }
 0x520   : > { %2792 = vmin.xlane.f32.xlu0 %v2791_v30 }
 0x59d   : > { %v2775_v16 = vpop.xlane.xlu0 %2774  ;;  %v2772_v38 = vpop.xlane.xlu1 %2771 }
 0x59e   : > { %vm2795_vm13 = vcmp.eq.f32.partialorder %v17541_v47, %v2775_v16  ;;  %vm2794_vm14 = vcmp.eq.f32.partialorder %v17541_v47, %v2772_v38 }
 0x59f   : > { %v12600_v44 = vsel %vm2795_vm13, 1.0, %v23474_v60  ;;  %v12599_v55 = vsel %vm2794_vm14, 1.0, %v23474_v60  ;;  %v17670_v61 = vsel %vm2795_vm13, inf, %v17572_v49  ;;  %v17673_v4 = vsel %vm2794_vm14, inf, %v17575_v52 }
 0x5a0   : > { %2827 = vst.msk [vmem:[#allocation2 + $0x48] sm:$0xff] %vm2625_vm3, %v12600_v44  ;;  %2826 = vst.msk [vmem:[#allocation2 + $0x40] sm:$0xff] %vm2625_vm3, %v12599_v55  ;;  %v2837_v14 = vsel %vm2625_vm3, %v17670_v61, inf  ;;  %v2834_v28 = vsel %vm2625_vm3, %v17673_v4, inf }
 0x5a1   : > { %2838 = vmin.xlane.f32.xlu0 %v2837_v14  ;;  %2835 = vmin.xlane.f32.xlu1 %v2834_v28  ;;  %v2778_v32 = vpop.xlane.xlu1 %2777 }
 0x5a2   : > { %vm2796_vm15 = vcmp.eq.f32.partialorder %v17541_v47, %v2778_v32 }
 0x5a3   : > { %v12601_v49 = vsel %vm2796_vm15, 1.0, %v23474_v60  ;;  %v17684_v52 = vsel %vm2796_vm15, inf, %v17586_v58 }
 0x5a4   : > { %2828 = vst.msk [vmem:[#allocation2 + $0x50] sm:$0xff] %vm2625_vm3, %v12601_v49  ;;  %v2840_v33 = vsel %vm2625_vm3, %v17684_v52, inf }
 0x5a5   : > { %2841 = vmin.xlane.f32.xlu1 %v2840_v33  ;;  %v2784_v40 = vpop.xlane.xlu1 %2783  ;;  %v2781_v41 = vpop.xlane.xlu0 %2780 }
 0x5a6   : > { %vm2798_vm0 = vcmp.eq.f32.partialorder %v17541_v47, %v2784_v40  ;;  %vm2797_vm1 = vcmp.eq.f32.partialorder %v17541_v47, %v2781_v41 }
 0x5a7   : > { %v12603_v2 = vsel %vm2798_vm0, 1.0, %v23474_v60  ;;  %v12602_v3 = vsel %vm2797_vm1, 1.0, %v23474_v60  ;;  %v17694_v37 = vsel %vm2798_vm0, inf, %v17596_v62  ;;  %v17697_v58 = vsel %vm2797_vm1, inf, %v17599_v1 }
 0x5a8   : > { %2830 = vst.msk [vmem:[#allocation2 + $0x60] sm:$0xff] %vm2625_vm3, %v12603_v2  ;;  %2829 = vst.msk [vmem:[#allocation2 + $0x58] sm:$0xff] %vm2625_vm3, %v12602_v3  ;;  %v2846_v43 = vsel %vm2625_vm3, %v17694_v37, inf  ;;  %v2843_v45 = vsel %vm2625_vm3, %v17697_v58, inf }
 0x5a9   : > { %2847 = vmin.xlane.f32.xlu1 %v2846_v43  ;;  %v2790_v48 = vpop.xlane.xlu1 %2789  ;;  %2844 = vmin.xlane.f32.xlu0 %v2843_v45  ;;  %v2787_v34 = vpop.xlane.xlu0 %2786 }
 0x5aa   : > { %vm2800_vm2 = vcmp.eq.f32.partialorder %v17541_v47, %v2790_v48  ;;  %vm2799_vm4 = vcmp.eq.f32.partialorder %v17541_v47, %v2787_v34 }
 0x5ab   : > { %v12605_v62 = vsel %vm2800_vm2, 1.0, %v23474_v60  ;;  %v12604_v1 = vsel %vm2799_vm4, 1.0, %v23474_v60  ;;  %v17710_v10 = vsel %vm2800_vm2, inf, %v17615_v25  ;;  %v17713_v27 = vsel %vm2799_vm4, inf, %v17618_v56 }
 0x5ac   : > { %2832 = vst.msk [vmem:[#allocation2 + $0x70] sm:$0xff] %vm2625_vm3, %v12605_v62  ;;  %2831 = vst.msk [vmem:[#allocation2 + $0x68] sm:$0xff] %vm2625_vm3, %v12604_v1  ;;  %v2852_v23 = vsel %vm2625_vm3, %v17710_v10, inf  ;;  %v2849_v26 = vsel %vm2625_vm3, %v17713_v27, inf }
 0x5ad   : > { %2853 = vmin.xlane.f32.xlu1 %v2852_v23  ;;  %2850 = vmin.xlane.f32.xlu0 %v2849_v26  ;;  %v2793_v12 = vpop.xlane.xlu0 %2792 }
 0x5ae   : > { %vm2801_vm5 = vcmp.eq.f32.partialorder %v17541_v47, %v2793_v12 }
 0x5af   : > { %v12606_v25 = vsel %vm2801_vm5, 1.0, %v23474_v60  ;;  %v17724_v56 = vsel %vm2801_vm5, inf, %v17633_v31 }
 0x5b0   : > { %2833 = vst.msk [vmem:[#allocation2 + $0x78] sm:$0xff] %vm2625_vm3, %v12606_v25  ;;  %v2855_v51 = vsel %vm2625_vm3, %v17724_v56, inf }
 0x5b1   : > { %2856 = vmin.xlane.f32.xlu0 %v2855_v51 }
 0x62e   : > { %v2839_v54 = vpop.xlane.xlu0 %2838  ;;  %v2836_v36 = vpop.xlane.xlu1 %2835 }
 0x62f   : > { %vm2859_vm6 = vcmp.eq.f32.partialorder %v17670_v61, %v2839_v54  ;;  %vm2858_vm7 = vcmp.eq.f32.partialorder %v17673_v4, %v2836_v36 }
 0x630   : > { %v2867_v29 = vsel %vm2859_vm6, %v17541_v47, 64.0  ;;  %v2866_v8 = vsel %vm2858_vm7, %v17541_v47, 64.0 }
 0x631   : > { %v2877_v20 = vsel %vm2625_vm3, %v2867_v29, inf  ;;  %v2874_v31 = vsel %vm2625_vm3, %v2866_v8, inf }
 0x632   : > { %2878 = vmin.xlane.f32.xlu0 %v2877_v20  ;;  %2875 = vmin.xlane.f32.xlu1 %v2874_v31  ;;  %v2842_v50 = vpop.xlane.xlu1 %2841 }
 0x633   : > { %vm2860_vm8 = vcmp.eq.f32.partialorder %v17684_v52, %v2842_v50 }
 0x634   : > { %v2868_v35 = vsel %vm2860_vm8, %v17541_v47, 64.0 }
 0x635   : > { %v2880_v53 = vsel %vm2625_vm3, %v2868_v35, inf }
 0x636   : > { %2881 = vmin.xlane.f32.xlu1 %v2880_v53  ;;  %v2848_v63 = vpop.xlane.xlu1 %2847  ;;  %v2845_v57 = vpop.xlane.xlu0 %2844 }
 0x637   : > { %vm2862_vm9 = vcmp.eq.f32.partialorder %v17694_v37, %v2848_v63  ;;  %vm2861_vm10 = vcmp.eq.f32.partialorder %v17697_v58, %v2845_v57 }
 0x638   : > { %v2870_v6 = vsel %vm2862_vm9, %v17541_v47, 64.0  ;;  %v2869_v59 = vsel %vm2861_vm10, %v17541_v47, 64.0 }
 0x639   : > { %v2886_v0 = vsel %vm2625_vm3, %v2870_v6, inf  ;;  %v2883_v17 = vsel %vm2625_vm3, %v2869_v59, inf }
 0x63a   : > { %2887 = vmin.xlane.f32.xlu1 %v2886_v0  ;;  %v2854_v19 = vpop.xlane.xlu1 %2853  ;;  %2884 = vmin.xlane.f32.xlu0 %v2883_v17  ;;  %v2851_v11 = vpop.xlane.xlu0 %2850 }
 0x63b   : > { %vm2864_vm11 = vcmp.eq.f32.partialorder %v17710_v10, %v2854_v19  ;;  %vm2863_vm12 = vcmp.eq.f32.partialorder %v17713_v27, %v2851_v11 }
 0x63c   : > { %v2872_v15 = vsel %vm2864_vm11, %v17541_v47, 64.0  ;;  %v2871_v18 = vsel %vm2863_vm12, %v17541_v47, 64.0 }
 0x63d   : > { %v2892_v21 = vsel %vm2625_vm3, %v2872_v15, inf  ;;  %v2889_v22 = vsel %vm2625_vm3, %v2871_v18, inf }
 0x63e   : > { %2893 = vmin.xlane.f32.xlu1 %v2892_v21  ;;  %2890 = vmin.xlane.f32.xlu0 %v2889_v22  ;;  %v2857_v39 = vpop.xlane.xlu0 %2856 }
 0x63f   : > { %vm2865_vm13 = vcmp.eq.f32.partialorder %v17724_v56, %v2857_v39 }
 0x640   : > { %v2873_v46 = vsel %vm2865_vm13, %v17541_v47, 64.0 }
 0x641   : > { %v2895_v9 = vsel %vm2625_vm3, %v2873_v46, inf }
 0x642   : > { %2896 = vmin.xlane.f32.xlu0 %v2895_v9 }
 0x6bf   : > { %v2879_v5 = vpop.xlane.xlu0 %2878  ;;  %v2876_v7 = vpop.xlane.xlu1 %2875 }
 0x6c0   : > { %vm2899_vm14 = vcmp.eq.f32.partialorder %v17541_v47, %v2879_v5  ;;  %vm2898_vm15 = vcmp.eq.f32.partialorder %v17541_v47, %v2876_v7 }
 0x6c1   : > { %v12608_v30 = vsel %vm2899_vm14, 1.0, %v23474_v60  ;;  %v12607_v16 = vsel %vm2898_vm15, 1.0, %v23474_v60  ;;  %v17758_v38 = vsel %vm2899_vm14, inf, %v17670_v61  ;;  %v17761_v44 = vsel %vm2898_vm15, inf, %v17673_v4 }
 0x6c2   : > { %2931 = vst.msk [vmem:[#allocation2 + $0x88] sm:$0xff] %vm2625_vm3, %v12608_v30  ;;  %2930 = vst.msk [vmem:[#allocation2 + $0x80] sm:$0xff] %vm2625_vm3, %v12607_v16  ;;  %v2941_v55 = vsel %vm2625_vm3, %v17758_v38, inf  ;;  %v2938_v14 = vsel %vm2625_vm3, %v17761_v44, inf }
 0x6c3   : > { %2942 = vmin.xlane.f32.xlu0 %v2941_v55  ;;  %2939 = vmin.xlane.f32.xlu1 %v2938_v14  ;;  %v2882_v28 = vpop.xlane.xlu1 %2881 }
 0x6c4   : > { %vm2900_vm0 = vcmp.eq.f32.partialorder %v17541_v47, %v2882_v28 }
 0x6c5   : > { %v12609_v61 = vsel %vm2900_vm0, 1.0, %v23474_v60  ;;  %v17772_v4 = vsel %vm2900_vm0, inf, %v17684_v52 }
 0x6c6   : > { %2932 = vst.msk [vmem:[#allocation2 + $0x90] sm:$0xff] %vm2625_vm3, %v12609_v61  ;;  %v2944_v32 = vsel %vm2625_vm3, %v17772_v4, inf }
 0x6c7   : > { %2945 = vmin.xlane.f32.xlu1 %v2944_v32  ;;  %v2888_v49 = vpop.xlane.xlu1 %2887  ;;  %v2885_v33 = vpop.xlane.xlu0 %2884 }
 0x6c8   : > { %vm2902_vm1 = vcmp.eq.f32.partialorder %v17541_v47, %v2888_v49  ;;  %vm2901_vm2 = vcmp.eq.f32.partialorder %v17541_v47, %v2885_v33 }
 0x6c9   : > { %v12611_v40 = vsel %vm2902_vm1, 1.0, %v23474_v60  ;;  %v12610_v41 = vsel %vm2901_vm2, 1.0, %v23474_v60  ;;  %v17782_v2 = vsel %vm2902_vm1, inf, %v17694_v37  ;;  %v17785_v52 = vsel %vm2901_vm2, inf, %v17697_v58 }
 0x6ca   : > { %2934 = vst.msk [vmem:[#allocation2 + $0xa0] sm:$0xff] %vm2625_vm3, %v12611_v40  ;;  %2933 = vst.msk [vmem:[#allocation2 + $0x98] sm:$0xff] %vm2625_vm3, %v12610_v41  ;;  %v2950_v3 = vsel %vm2625_vm3, %v17782_v2, inf  ;;  %v2947_v43 = vsel %vm2625_vm3, %v17785_v52, inf }
 0x6cb   : > { %2951 = vmin.xlane.f32.xlu1 %v2950_v3  ;;  %v2894_v45 = vpop.xlane.xlu1 %2893  ;;  %2948 = vmin.xlane.f32.xlu0 %v2947_v43  ;;  %v2891_v48 = vpop.xlane.xlu0 %2890 }
 0x6cc   : > { %vm2904_vm4 = vcmp.eq.f32.partialorder %v17541_v47, %v2894_v45  ;;  %vm2903_vm5 = vcmp.eq.f32.partialorder %v17541_v47, %v2891_v48 }
 0x6cd   : > { %v12613_v37 = vsel %vm2904_vm4, 1.0, %v23474_v60  ;;  %v12612_v58 = vsel %vm2903_vm5, 1.0, %v23474_v60  ;;  %v17798_v34 = vsel %vm2904_vm4, inf, %v17710_v10  ;;  %v17801_v62 = vsel %vm2903_vm5, inf, %v17713_v27 }
 0x6ce   : > { %2936 = vst.msk [vmem:[#allocation2 + $0xb0] sm:$0xff] %vm2625_vm3, %v12613_v37  ;;  %2935 = vst.msk [vmem:[#allocation2 + $0xa8] sm:$0xff] %vm2625_vm3, %v12612_v58  ;;  %v2956_v1 = vsel %vm2625_vm3, %v17798_v34, inf  ;;  %v2953_v23 = vsel %vm2625_vm3, %v17801_v62, inf }
 0x6cf   : > { %2957 = vmin.xlane.f32.xlu1 %v2956_v1  ;;  %2954 = vmin.xlane.f32.xlu0 %v2953_v23  ;;  %v2897_v26 = vpop.xlane.xlu0 %2896 }
 0x6d0   : > { %vm2905_vm6 = vcmp.eq.f32.partialorder %v17541_v47, %v2897_v26 }
 0x6d1   : > { %v12614_v10 = vsel %vm2905_vm6, 1.0, %v23474_v60  ;;  %v17812_v27 = vsel %vm2905_vm6, inf, %v17724_v56 }
 0x6d2   : > { %2937 = vst.msk [vmem:[#allocation2 + $0xb8] sm:$0xff] %vm2625_vm3, %v12614_v10  ;;  %v2959_v12 = vsel %vm2625_vm3, %v17812_v27, inf }
 0x6d3   : > { %2960 = vmin.xlane.f32.xlu0 %v2959_v12 }
 0x750   : > { %v2943_v25 = vpop.xlane.xlu0 %2942  ;;  %v2940_v51 = vpop.xlane.xlu1 %2939 }
 0x751   : > { %vm2963_vm7 = vcmp.eq.f32.partialorder %v17758_v38, %v2943_v25  ;;  %vm2962_vm8 = vcmp.eq.f32.partialorder %v17761_v44, %v2940_v51 }
 0x752   : > { %v2971_v54 = vsel %vm2963_vm7, %v17541_v47, 64.0  ;;  %v2970_v36 = vsel %vm2962_vm8, %v17541_v47, 64.0 }
 0x753   : > { %v2981_v29 = vsel %vm2625_vm3, %v2971_v54, inf  ;;  %v2978_v56 = vsel %vm2625_vm3, %v2970_v36, inf }
 0x754   : > { %2982 = vmin.xlane.f32.xlu0 %v2981_v29  ;;  %2979 = vmin.xlane.f32.xlu1 %v2978_v56  ;;  %v2946_v8 = vpop.xlane.xlu1 %2945 }
 0x755   : > { %vm2964_vm9 = vcmp.eq.f32.partialorder %v17772_v4, %v2946_v8 }
 0x756   : > { %v2972_v20 = vsel %vm2964_vm9, %v17541_v47, 64.0 }
 0x757   : > { %v2984_v31 = vsel %vm2625_vm3, %v2972_v20, inf }
 0x758   : > { %2985 = vmin.xlane.f32.xlu1 %v2984_v31  ;;  %v2952_v50 = vpop.xlane.xlu1 %2951  ;;  %v2949_v35 = vpop.xlane.xlu0 %2948 }
 0x759   : > { %vm2966_vm10 = vcmp.eq.f32.partialorder %v17782_v2, %v2952_v50  ;;  %vm2965_vm11 = vcmp.eq.f32.partialorder %v17785_v52, %v2949_v35 }
 0x75a   : > { %v2974_v53 = vsel %vm2966_vm10, %v17541_v47, 64.0  ;;  %v2973_v63 = vsel %vm2965_vm11, %v17541_v47, 64.0 }
 0x75b   : > { %v2990_v57 = vsel %vm2625_vm3, %v2974_v53, inf  ;;  %v2987_v6 = vsel %vm2625_vm3, %v2973_v63, inf }
 0x75c   : > { %2991 = vmin.xlane.f32.xlu1 %v2990_v57  ;;  %v2958_v59 = vpop.xlane.xlu1 %2957  ;;  %2988 = vmin.xlane.f32.xlu0 %v2987_v6  ;;  %v2955_v0 = vpop.xlane.xlu0 %2954 }
 0x75d   : > { %vm2968_vm12 = vcmp.eq.f32.partialorder %v17798_v34, %v2958_v59  ;;  %vm2967_vm13 = vcmp.eq.f32.partialorder %v17801_v62, %v2955_v0 }
 0x75e   : > { %v2976_v17 = vsel %vm2968_vm12, %v17541_v47, 64.0  ;;  %v2975_v19 = vsel %vm2967_vm13, %v17541_v47, 64.0 }
 0x75f   : > { %v2996_v11 = vsel %vm2625_vm3, %v2976_v17, inf  ;;  %v2993_v15 = vsel %vm2625_vm3, %v2975_v19, inf }
 0x760   : > { %2997 = vmin.xlane.f32.xlu1 %v2996_v11  ;;  %2994 = vmin.xlane.f32.xlu0 %v2993_v15  ;;  %v2961_v18 = vpop.xlane.xlu0 %2960 }
 0x761   : > { %vm2969_vm14 = vcmp.eq.f32.partialorder %v17812_v27, %v2961_v18 }
 0x762   : > { %v2977_v21 = vsel %vm2969_vm14, %v17541_v47, 64.0 }
 0x763   : > { %v2999_v22 = vsel %vm2625_vm3, %v2977_v21, inf }
 0x764   : > { %3000 = vmin.xlane.f32.xlu0 %v2999_v22 }
 0x7e1   : > { %v2983_v39 = vpop.xlane.xlu0 %2982  ;;  %v2980_v46 = vpop.xlane.xlu1 %2979 }
 0x7e2   : > { %vm3003_vm15 = vcmp.eq.f32.partialorder %v17541_v47, %v2983_v39  ;;  %vm3002_vm0 = vcmp.eq.f32.partialorder %v17541_v47, %v2980_v46 }
 0x7e3   : > { %v12616_v9 = vsel %vm3003_vm15, 1.0, %v23474_v60  ;;  %v12615_v5 = vsel %vm3002_vm0, 1.0, %v23474_v60  ;;  %v17846_v7 = vsel %vm3003_vm15, inf, %v17758_v38  ;;  %v17849_v30 = vsel %vm3002_vm0, inf, %v17761_v44 }
 0x7e4   : > { %3035 = vst.msk [vmem:[#allocation2 + $0xc8] sm:$0xff] %vm2625_vm3, %v12616_v9  ;;  %3034 = vst.msk [vmem:[#allocation2 + $0xc0] sm:$0xff] %vm2625_vm3, %v12615_v5  ;;  %v3045_v16 = vsel %vm2625_vm3, %v17846_v7, inf  ;;  %v3042_v55 = vsel %vm2625_vm3, %v17849_v30, inf }
 0x7e5   : > { %3046 = vmin.xlane.f32.xlu0 %v3045_v16  ;;  %3043 = vmin.xlane.f32.xlu1 %v3042_v55  ;;  %v2986_v14 = vpop.xlane.xlu1 %2985 }
 0x7e6   : > { %vm3004_vm1 = vcmp.eq.f32.partialorder %v17541_v47, %v2986_v14 }
 0x7e7   : > { %v12617_v38 = vsel %vm3004_vm1, 1.0, %v23474_v60  ;;  %v17860_v44 = vsel %vm3004_vm1, inf, %v17772_v4 }
 0x7e8   : > { %3036 = vst.msk [vmem:[#allocation2 + $0xd0] sm:$0xff] %vm2625_vm3, %v12617_v38  ;;  %v3048_v28 = vsel %vm2625_vm3, %v17860_v44, inf }
 0x7e9   : > { %3049 = vmin.xlane.f32.xlu1 %v3048_v28  ;;  %v2992_v61 = vpop.xlane.xlu1 %2991  ;;  %v2989_v32 = vpop.xlane.xlu0 %2988 }
 0x7ea   : > { %vm3006_vm2 = vcmp.eq.f32.partialorder %v17541_v47, %v2992_v61  ;;  %vm3005_vm4 = vcmp.eq.f32.partialorder %v17541_v47, %v2989_v32 }
 0x7eb   : > { %v12619_v49 = vsel %vm3006_vm2, 1.0, %v23474_v60  ;;  %v12618_v33 = vsel %vm3005_vm4, 1.0, %v23474_v60  ;;  %v17870_v40 = vsel %vm3006_vm2, inf, %v17782_v2  ;;  %v17873_v4 = vsel %vm3005_vm4, inf, %v17785_v52 }
 0x7ec   : > { %3038 = vst.msk [vmem:[#allocation2 + $0xe0] sm:$0xff] %vm2625_vm3, %v12619_v49  ;;  %3037 = vst.msk [vmem:[#allocation2 + $0xd8] sm:$0xff] %vm2625_vm3, %v12618_v33  ;;  %v3054_v41 = vsel %vm2625_vm3, %v17870_v40, inf  ;;  %v3051_v3 = vsel %vm2625_vm3, %v17873_v4, inf }
 0x7ed   : > { %3055 = vmin.xlane.f32.xlu1 %v3054_v41  ;;  %v2998_v43 = vpop.xlane.xlu1 %2997  ;;  %3052 = vmin.xlane.f32.xlu0 %v3051_v3  ;;  %v2995_v45 = vpop.xlane.xlu0 %2994 }
 0x7ee   : > { %vm3008_vm5 = vcmp.eq.f32.partialorder %v17541_v47, %v2998_v43  ;;  %vm3007_vm6 = vcmp.eq.f32.partialorder %v17541_v47, %v2995_v45 }
 0x7ef   : > { %v12621_v2 = vsel %vm3008_vm5, 1.0, %v23474_v60  ;;  %v12620_v52 = vsel %vm3007_vm6, 1.0, %v23474_v60  ;;  %v17886_v48 = vsel %vm3008_vm5, inf, %v17798_v34  ;;  %v17889_v37 = vsel %vm3007_vm6, inf, %v17801_v62 }
 0x7f0   : > { %3040 = vst.msk [vmem:[#allocation2 + $0xf0] sm:$0xff] %vm2625_vm3, %v12621_v2  ;;  %3039 = vst.msk [vmem:[#allocation2 + $0xe8] sm:$0xff] %vm2625_vm3, %v12620_v52  ;;  %v3060_v58 = vsel %vm2625_vm3, %v17886_v48, inf  ;;  %v3057_v1 = vsel %vm2625_vm3, %v17889_v37, inf }
 0x7f1   : > { %3061 = vmin.xlane.f32.xlu1 %v3060_v58  ;;  %3058 = vmin.xlane.f32.xlu0 %v3057_v1  ;;  %v3001_v23 = vpop.xlane.xlu0 %3000 }
 0x7f2   : > { %vm3009_vm7 = vcmp.eq.f32.partialorder %v17541_v47, %v3001_v23 }
 0x7f3   : > { %v12622_v34 = vsel %vm3009_vm7, 1.0, %v23474_v60  ;;  %v17900_v62 = vsel %vm3009_vm7, inf, %v17812_v27 }
 0x7f4   : > { %3041 = vst.msk [vmem:[#allocation2 + $0xf8] sm:$0xff] %vm2625_vm3, %v12622_v34  ;;  %v3063_v26 = vsel %vm2625_vm3, %v17900_v62, inf }
 0x7f5   : > { %3064 = vmin.xlane.f32.xlu0 %v3063_v26 }
 0x872   : > { %v3047_v10 = vpop.xlane.xlu0 %3046  ;;  %v3044_v12 = vpop.xlane.xlu1 %3043 }
 0x873   : > { %vm3067_vm8 = vcmp.eq.f32.partialorder %v17846_v7, %v3047_v10  ;;  %vm3066_vm9 = vcmp.eq.f32.partialorder %v17849_v30, %v3044_v12 }
 0x874   : > { %v3075_v25 = vsel %vm3067_vm8, %v17541_v47, 64.0  ;;  %v3074_v51 = vsel %vm3066_vm9, %v17541_v47, 64.0 }
 0x875   : > { %v3085_v54 = vsel %vm2625_vm3, %v3075_v25, inf  ;;  %v3082_v27 = vsel %vm2625_vm3, %v3074_v51, inf }
 0x876   : > { %3086 = vmin.xlane.f32.xlu0 %v3085_v54  ;;  %3083 = vmin.xlane.f32.xlu1 %v3082_v27  ;;  %v3050_v36 = vpop.xlane.xlu1 %3049 }
 0x877   : > { %vm3068_vm10 = vcmp.eq.f32.partialorder %v17860_v44, %v3050_v36 }
 0x878   : > { %v3076_v29 = vsel %vm3068_vm10, %v17541_v47, 64.0 }
 0x879   : > { %v3088_v56 = vsel %vm2625_vm3, %v3076_v29, inf }
 0x87a   : > { %3089 = vmin.xlane.f32.xlu1 %v3088_v56  ;;  %v3056_v8 = vpop.xlane.xlu1 %3055  ;;  %v3053_v20 = vpop.xlane.xlu0 %3052 }
 0x87b   : > { %vm3070_vm11 = vcmp.eq.f32.partialorder %v17870_v40, %v3056_v8  ;;  %vm3069_vm12 = vcmp.eq.f32.partialorder %v17873_v4, %v3053_v20 }
 0x87c   : > { %v3078_v31 = vsel %vm3070_vm11, %v17541_v47, 64.0  ;;  %v3077_v50 = vsel %vm3069_vm12, %v17541_v47, 64.0 }
 0x87d   : > { %v3094_v35 = vsel %vm2625_vm3, %v3078_v31, inf  ;;  %v3091_v53 = vsel %vm2625_vm3, %v3077_v50, inf }
 0x87e   : > { %3095 = vmin.xlane.f32.xlu1 %v3094_v35  ;;  %v3062_v63 = vpop.xlane.xlu1 %3061  ;;  %3092 = vmin.xlane.f32.xlu0 %v3091_v53  ;;  %v3059_v57 = vpop.xlane.xlu0 %3058 }
 0x87f   : > { %vm3072_vm13 = vcmp.eq.f32.partialorder %v17886_v48, %v3062_v63  ;;  %vm3071_vm14 = vcmp.eq.f32.partialorder %v17889_v37, %v3059_v57 }
 0x880   : > { %v3080_v6 = vsel %vm3072_vm13, %v17541_v47, 64.0  ;;  %v3079_v59 = vsel %vm3071_vm14, %v17541_v47, 64.0 }
 0x881   : > { %v3100_v0 = vsel %vm2625_vm3, %v3080_v6, inf  ;;  %v3097_v17 = vsel %vm2625_vm3, %v3079_v59, inf }
 0x882   : > { %3101 = vmin.xlane.f32.xlu1 %v3100_v0  ;;  %3098 = vmin.xlane.f32.xlu0 %v3097_v17  ;;  %v3065_v19 = vpop.xlane.xlu0 %3064 }
 0x883   : > { %vm3073_vm15 = vcmp.eq.f32.partialorder %v17900_v62, %v3065_v19 }
 0x884   : > { %v3081_v11 = vsel %vm3073_vm15, %v17541_v47, 64.0 }
 0x885   : > { %v3103_v15 = vsel %vm2625_vm3, %v3081_v11, inf }
 0x886   : > { %3104 = vmin.xlane.f32.xlu0 %v3103_v15 }
 0x903   : > { %v3087_v18 = vpop.xlane.xlu0 %3086  ;;  %v3084_v21 = vpop.xlane.xlu1 %3083 }
 0x904   : > { %vm3107_vm0 = vcmp.eq.f32.partialorder %v17541_v47, %v3087_v18  ;;  %vm3106_vm1 = vcmp.eq.f32.partialorder %v17541_v47, %v3084_v21 }
 0x905   : > { %v17932_v22 = vsel %vm3107_vm0, inf, %v17846_v7  ;;  %v12624_v39 = vsel %vm3107_vm0, 1.0, %v23474_v60  ;;  %v12623_v46 = vsel %vm3106_vm1, 1.0, %v23474_v60  ;;  %v17937_v9 = vsel %vm3106_vm1, inf, %v17849_v30 }
 0x906   : > { %3139 = vst.msk [vmem:[#allocation2 + $0x108] sm:$0xff] %vm2625_vm3, %v12624_v39  ;;  %3138 = vst.msk [vmem:[#allocation2 + $0x100] sm:$0xff] %vm2625_vm3, %v12623_v46  ;;  %v3149_v5 = vsel %vm2625_vm3, %v17932_v22, inf  ;;  %v3146_v16 = vsel %vm2625_vm3, %v17937_v9, inf }
 0x907   : > { %3150 = vmin.xlane.f32.xlu0 %v3149_v5  ;;  %3147 = vmin.xlane.f32.xlu1 %v3146_v16  ;;  %v3090_v7 = vpop.xlane.xlu1 %3089 }
 0x908   : > { %vm3108_vm2 = vcmp.eq.f32.partialorder %v17541_v47, %v3090_v7 }
 0x909   : > { %v12625_v55 = vsel %vm3108_vm2, 1.0, %v23474_v60  ;;  %v17948_v30 = vsel %vm3108_vm2, inf, %v17860_v44 }
 0x90a   : > { %3140 = vst.msk [vmem:[#allocation2 + $0x110] sm:$0xff] %vm2625_vm3, %v12625_v55  ;;  %v3152_v14 = vsel %vm2625_vm3, %v17948_v30, inf }
 0x90b   : > { %3153 = vmin.xlane.f32.xlu1 %v3152_v14  ;;  %v3096_v38 = vpop.xlane.xlu1 %3095  ;;  %v3093_v28 = vpop.xlane.xlu0 %3092 }
 0x90c   : > { %vm3110_vm4 = vcmp.eq.f32.partialorder %v17541_v47, %v3096_v38  ;;  %vm3109_vm5 = vcmp.eq.f32.partialorder %v17541_v47, %v3093_v28 }
 0x90d   : > { %v17956_v61 = vsel %vm3110_vm4, inf, %v17870_v40  ;;  %v12627_v32 = vsel %vm3110_vm4, 1.0, %v23474_v60  ;;  %v17960_v44 = vsel %vm3109_vm5, inf, %v17873_v4  ;;  %v12626_v49 = vsel %vm3109_vm5, 1.0, %v23474_v60 }
 0x90e   : > { %3142 = vst.msk [vmem:[#allocation2 + $0x120] sm:$0xff] %vm2625_vm3, %v12627_v32  ;;  %3141 = vst.msk [vmem:[#allocation2 + $0x118] sm:$0xff] %vm2625_vm3, %v12626_v49  ;;  %v3158_v33 = vsel %vm2625_vm3, %v17956_v61, inf  ;;  %v3155_v41 = vsel %vm2625_vm3, %v17960_v44, inf }
 0x90f   : > { %3159 = vmin.xlane.f32.xlu1 %v3158_v33  ;;  %v3102_v40 = vpop.xlane.xlu1 %3101  ;;  %3156 = vmin.xlane.f32.xlu0 %v3155_v41  ;;  %v3099_v3 = vpop.xlane.xlu0 %3098 }
 0x910   : > { %vm3112_vm6 = vcmp.eq.f32.partialorder %v17541_v47, %v3102_v40  ;;  %vm3111_vm7 = vcmp.eq.f32.partialorder %v17541_v47, %v3099_v3 }
 0x911   : > { %v17972_v4 = vsel %vm3112_vm6, inf, %v17886_v48  ;;  %v12629_v43 = vsel %vm3112_vm6, 1.0, %v23474_v60  ;;  %v17976_v45 = vsel %vm3111_vm7, inf, %v17889_v37  ;;  %v12628_v2 = vsel %vm3111_vm7, 1.0, %v23474_v60 }
 0x912   : > { %3144 = vst.msk [vmem:[#allocation2 + $0x130] sm:$0xff] %vm2625_vm3, %v12629_v43  ;;  %3143 = vst.msk [vmem:[#allocation2 + $0x128] sm:$0xff] %vm2625_vm3, %v12628_v2  ;;  %v3164_v52 = vsel %vm2625_vm3, %v17972_v4, inf  ;;  %v3161_v58 = vsel %vm2625_vm3, %v17976_v45, inf }
 0x913   : > { %3165 = vmin.xlane.f32.xlu1 %v3164_v52  ;;  %3162 = vmin.xlane.f32.xlu0 %v3161_v58  ;;  %v3105_v48 = vpop.xlane.xlu0 %3104 }
 0x914   : > { %vm3113_vm8 = vcmp.eq.f32.partialorder %v17541_v47, %v3105_v48 }
 0x915   : > { %v17987_v37 = vsel %vm3113_vm8, inf, %v17900_v62  ;;  %v12630_v1 = vsel %vm3113_vm8, 1.0, %v23474_v60 }
 0x916   : > { %3145 = vst.msk [vmem:[#allocation2 + $0x138] sm:$0xff] %vm2625_vm3, %v12630_v1  ;;  %v3167_v23 = vsel %vm2625_vm3, %v17987_v37, inf  ;;  %v23481_v1 = vld [vmem:[#allocation6_spill] sm:$0xff] }
 0x917   : > { %3168 = vmin.xlane.f32.xlu0 %v3167_v23 }
 0x994   : > { %v3151_v34 = vpop.xlane.xlu0 %3150  ;;  %v3148_v26 = vpop.xlane.xlu1 %3147 }
 0x995   : > { %vm3171_vm9 = vcmp.eq.f32.partialorder %v17932_v22, %v3151_v34  ;;  %vm3170_vm10 = vcmp.eq.f32.partialorder %v17937_v9, %v3148_v26 }
 0x996   : > { %v3179_v10 = vsel %vm3171_vm9, %v17541_v47, 64.0  ;;  %v3178_v12 = vsel %vm3170_vm10, %v17541_v47, 64.0 }
 0x997   : > { %v3189_v62 = vsel %vm2625_vm3, %v3179_v10, inf  ;;  %v3186_v25 = vsel %vm2625_vm3, %v3178_v12, inf }
 0x998   : > { %3190 = vmin.xlane.f32.xlu0 %v3189_v62  ;;  %3187 = vmin.xlane.f32.xlu1 %v3186_v25  ;;  %v3154_v51 = vpop.xlane.xlu1 %3153 }
 0x999   : > { %vm3172_vm11 = vcmp.eq.f32.partialorder %v17948_v30, %v3154_v51 }
 0x99a   : > { %v3180_v54 = vsel %vm3172_vm11, %v17541_v47, 64.0 }
 0x99b   : > { %v3192_v27 = vsel %vm2625_vm3, %v3180_v54, inf }
 0x99c   : > { %3193 = vmin.xlane.f32.xlu1 %v3192_v27  ;;  %v3160_v36 = vpop.xlane.xlu1 %3159  ;;  %v3157_v29 = vpop.xlane.xlu0 %3156 }
 0x99d   : > { %vm3174_vm12 = vcmp.eq.f32.partialorder %v17956_v61, %v3160_v36  ;;  %vm3173_vm13 = vcmp.eq.f32.partialorder %v17960_v44, %v3157_v29 }
 0x99e   : > { %v3182_v56 = vsel %vm3174_vm12, %v17541_v47, 64.0  ;;  %v3181_v8 = vsel %vm3173_vm13, %v17541_v47, 64.0 }
 0x99f   : > { %v3198_v20 = vsel %vm2625_vm3, %v3182_v56, inf  ;;  %v3195_v31 = vsel %vm2625_vm3, %v3181_v8, inf }
 0x9a0   : > { %3199 = vmin.xlane.f32.xlu1 %v3198_v20  ;;  %v3166_v50 = vpop.xlane.xlu1 %3165  ;;  %3196 = vmin.xlane.f32.xlu0 %v3195_v31  ;;  %v3163_v35 = vpop.xlane.xlu0 %3162 }
 0x9a1   : > { %vm3176_vm14 = vcmp.eq.f32.partialorder %v17972_v4, %v3166_v50  ;;  %vm3175_vm15 = vcmp.eq.f32.partialorder %v17976_v45, %v3163_v35 }
 0x9a2   : > { %v3184_v53 = vsel %vm3176_vm14, %v17541_v47, 64.0  ;;  %v3183_v63 = vsel %vm3175_vm15, %v17541_v47, 64.0 }
 0x9a3   : > { %v3204_v57 = vsel %vm2625_vm3, %v3184_v53, inf  ;;  %v3201_v6 = vsel %vm2625_vm3, %v3183_v63, inf }
 0x9a4   : > { %3205 = vmin.xlane.f32.xlu1 %v3204_v57  ;;  %3202 = vmin.xlane.f32.xlu0 %v3201_v6  ;;  %v3169_v59 = vpop.xlane.xlu0 %3168 }
 0x9a5   : > { %vm3177_vm0 = vcmp.eq.f32.partialorder %v17987_v37, %v3169_v59 }
 0x9a6   : > { %v3185_v0 = vsel %vm3177_vm0, %v17541_v47, 64.0 }
 0x9a7   : > { %v3207_v17 = vsel %vm2625_vm3, %v3185_v0, inf  ;;  %v23482_v0 = vld [vmem:[#allocation11_spill] sm:$0xff] }
 0x9a8   : > { %3208 = vmin.xlane.f32.xlu0 %v3207_v17  ;;  %v23483_v17 = vld [vmem:[#allocation12_spill] sm:$0xff] }
 0xa25   : > { %v3191_v19 = vpop.xlane.xlu0 %3190  ;;  %v3188_v11 = vpop.xlane.xlu1 %3187 }
 0xa26   : > { %vm3211_vm1 = vcmp.eq.f32.partialorder %v17541_v47, %v3191_v19  ;;  %vm3210_vm2 = vcmp.eq.f32.partialorder %v17541_v47, %v3188_v11  ;;  %v23484_v19 = vld [vmem:[#allocation16_spill] sm:$0xff] }
 0xa27   : > { %v18020_v15 = vsel %vm3211_vm1, inf, %v17932_v22  ;;  %v12632_v18 = vsel %vm3211_vm1, 1.0, %v23474_v60  ;;  %v18024_v21 = vsel %vm3210_vm2, inf, %v17937_v9  ;;  %v12631_v39 = vsel %vm3210_vm2, 1.0, %v23474_v60  ;;  %v23485_v11 = vld [vmem:[#allocation4_spill] sm:$0xff] }
 0xa28   : > { %3243 = vst.msk [vmem:[#allocation2 + $0x148] sm:$0xff] %vm2625_vm3, %v12632_v18  ;;  %3242 = vst.msk [vmem:[#allocation2 + $0x140] sm:$0xff] %vm2625_vm3, %v12631_v39  ;;  %v3253_v46 = vsel %vm2625_vm3, %v18020_v15, inf  ;;  %v3250_v5 = vsel %vm2625_vm3, %v18024_v21, inf  ;;  %v23486_v18 = vld [vmem:[#allocation18_spill] sm:$0xff]  ;;  %v23487_v39 = vld [vmem:[#allocation15_spill] sm:$0xff] }
 0xa29   : > { %3254 = vmin.xlane.f32.xlu0 %v3253_v46  ;;  %3251 = vmin.xlane.f32.xlu1 %v3250_v5  ;;  %v3194_v22 = vpop.xlane.xlu1 %3193  ;;  %v23488_v46 = vld [vmem:[#allocation17_spill] sm:$0xff] }
 0xa2a   : > { %vm3212_vm4 = vcmp.eq.f32.partialorder %v17541_v47, %v3194_v22 }
 0xa2b   : > { %v18035_v9 = vsel %vm3212_vm4, inf, %v17948_v30  ;;  %v12633_v16 = vsel %vm3212_vm4, 1.0, %v23474_v60 }
 0xa2c   : > { %3244 = vst.msk [vmem:[#allocation2 + $0x150] sm:$0xff] %vm2625_vm3, %v12633_v16  ;;  %v3256_v7 = vsel %vm2625_vm3, %v18035_v9, inf }
 0xa2d   : > { %3257 = vmin.xlane.f32.xlu1 %v3256_v7  ;;  %v3200_v55 = vpop.xlane.xlu1 %3199  ;;  %v3197_v14 = vpop.xlane.xlu0 %3196 }
 0xa2e   : > { %vm3214_vm5 = vcmp.eq.f32.partialorder %v17541_v47, %v3200_v55  ;;  %vm3213_vm6 = vcmp.eq.f32.partialorder %v17541_v47, %v3197_v14 }
 0xa2f   : > { %v18044_v38 = vsel %vm3214_vm5, inf, %v17956_v61  ;;  %v12635_v30 = vsel %vm3214_vm5, 1.0, %v23474_v60  ;;  %v18048_v28 = vsel %vm3213_vm6, inf, %v17960_v44  ;;  %v12634_v32 = vsel %vm3213_vm6, 1.0, %v23474_v60 }
 0xa30   : > { %3246 = vst.msk [vmem:[#allocation2 + $0x160] sm:$0xff] %vm2625_vm3, %v12635_v30  ;;  %3245 = vst.msk [vmem:[#allocation2 + $0x158] sm:$0xff] %vm2625_vm3, %v12634_v32  ;;  %v3262_v49 = vsel %vm2625_vm3, %v18044_v38, inf  ;;  %v3259_v33 = vsel %vm2625_vm3, %v18048_v28, inf }
 0xa31   : > { %3263 = vmin.xlane.f32.xlu1 %v3262_v49  ;;  %v3206_v61 = vpop.xlane.xlu1 %3205  ;;  %3260 = vmin.xlane.f32.xlu0 %v3259_v33  ;;  %v3203_v41 = vpop.xlane.xlu0 %3202  ;;  %v3451_v33 = vld [vmem:[#allocation2 + $0x8] sm:$0xff] }
 0xa32   : > { %vm3216_vm7 = vcmp.eq.f32.partialorder %v17541_v47, %v3206_v61  ;;  %vm3215_vm8 = vcmp.eq.f32.partialorder %v17541_v47, %v3203_v41  ;;  %v3542_v41 = vsel %vm2625_vm3, %v3451_v33, 0 }
 0xa33   : > { %v18060_v44 = vsel %vm3216_vm7, inf, %v17972_v4  ;;  %v12637_v40 = vsel %vm3216_vm7, 1.0, %v23474_v60  ;;  %v18064_v3 = vsel %vm3215_vm8, inf, %v17976_v45  ;;  %v12636_v43 = vsel %vm3215_vm8, 1.0, %v23474_v60 }
 0xa34   : > { %3248 = vst.msk [vmem:[#allocation2 + $0x170] sm:$0xff] %vm2625_vm3, %v12637_v40  ;;  %3247 = vst.msk [vmem:[#allocation2 + $0x168] sm:$0xff] %vm2625_vm3, %v12636_v43  ;;  %v3268_v2 = vsel %vm2625_vm3, %v18060_v44, inf  ;;  %v3265_v52 = vsel %vm2625_vm3, %v18064_v3, inf  ;;  %v3452_v40 = vld [vmem:[#allocation2 + $0x10] sm:$0xff] }
 0xa35   : > { %3269 = vmin.xlane.f32.xlu1 %v3268_v2  ;;  %3266 = vmin.xlane.f32.xlu0 %v3265_v52  ;;  %v3209_v4 = vpop.xlane.xlu0 %3208 }
 0xa36   : > { %vm3217_vm9 = vcmp.eq.f32.partialorder %v17541_v47, %v3209_v4  ;;  %v18150_v4 = vand.u32 4294901760, %v3542_v41 }
 0xa37   : > { %v18075_v45 = vsel %vm3217_vm9, inf, %v17987_v37  ;;  %v12638_v58 = vsel %vm3217_vm9, 1.0, %v23474_v60 }
 0xa38   : > { %3249 = vst.msk [vmem:[#allocation2 + $0x178] sm:$0xff] %vm2625_vm3, %v12638_v58  ;;  %v3271_v48 = vsel %vm2625_vm3, %v18075_v45, inf  ;;  %23489 = vst [vmem:[#allocation21_spill] sm:$0xff] %v18150_v4 }
 0xa39   : > { %3272 = vmin.xlane.f32.xlu0 %v3271_v48 }
 0xa46   : > { %3514 = vrot.lane.b32.xlu1 %v23481_v1, %s16888_s22 }
 0xab6   : > { %v3255_v23 = vpop.xlane.xlu0 %3254  ;;  %v3252_v34 = vpop.xlane.xlu1 %3251 }
 0xab7   : > { %vm3275_vm10 = vcmp.eq.f32.partialorder %v18020_v15, %v3255_v23  ;;  %vm3274_vm11 = vcmp.eq.f32.partialorder %v18024_v21, %v3252_v34 }
 0xab8   : > { %v3283_v37 = vsel %vm3275_vm10, %v17541_v47, 64.0  ;;  %v3282_v26 = vsel %vm3274_vm11, %v17541_v47, 64.0 }
 0xab9   : > { %v3293_v10 = vsel %vm2625_vm3, %v3283_v37, inf  ;;  %v3290_v12 = vsel %vm2625_vm3, %v3282_v26, inf }
 0xaba   : > { %3294 = vmin.xlane.f32.xlu0 %v3293_v10  ;;  %3291 = vmin.xlane.f32.xlu1 %v3290_v12  ;;  %v3258_v62 = vpop.xlane.xlu1 %3257  ;;  %v3453_v12 = vld [vmem:[#allocation2 + $0x18] sm:$0xff] }
 0xabb   : > { %vm3276_vm12 = vcmp.eq.f32.partialorder %v18035_v9, %v3258_v62 }
 0xabc   : > { %v3284_v25 = vsel %vm3276_vm12, %v17541_v47, 64.0 }
 0xabd   : > { %v3296_v51 = vsel %vm2625_vm3, %v3284_v25, inf }
 0xabe   : > { %3297 = vmin.xlane.f32.xlu1 %v3296_v51  ;;  %v3264_v54 = vpop.xlane.xlu1 %3263  ;;  %v3261_v27 = vpop.xlane.xlu0 %3260 }
 0xabf   : > { %vm3278_vm13 = vcmp.eq.f32.partialorder %v18044_v38, %v3264_v54  ;;  %vm3277_vm14 = vcmp.eq.f32.partialorder %v18048_v28, %v3261_v27  ;;  %v3454_v27 = vld [vmem:[#allocation2 + $0x20] sm:$0xff] }
 0xac0   : > { %v3286_v36 = vsel %vm3278_vm13, %v17541_v47, 64.0  ;;  %v3285_v29 = vsel %vm3277_vm14, %v17541_v47, 64.0 }
 0xac1   : > { %v3302_v56 = vsel %vm2625_vm3, %v3286_v36, inf  ;;  %v3299_v8 = vsel %vm2625_vm3, %v3285_v29, inf }
 0xac2   : > { %3303 = vmin.xlane.f32.xlu1 %v3302_v56  ;;  %v3270_v20 = vpop.xlane.xlu1 %3269  ;;  %3300 = vmin.xlane.f32.xlu0 %v3299_v8  ;;  %v3267_v31 = vpop.xlane.xlu0 %3266  ;;  %v3548_v56 = vsel %vm2625_vm3, %v3453_v12, 0 }
 0xac3   : > { %vm3280_vm15 = vcmp.eq.f32.partialorder %v18060_v44, %v3270_v20  ;;  %vm3279_vm0 = vcmp.eq.f32.partialorder %v18064_v3, %v3267_v31  ;;  %v3551_v20 = vsel %vm2625_vm3, %v3454_v27, 0 }
 0xac4   : > { %v3288_v50 = vsel %vm3280_vm15, %v17541_v47, 64.0  ;;  %v3287_v35 = vsel %vm3279_vm0, %v17541_v47, 64.0 }
 0xac5   : > { %v3308_v53 = vsel %vm2625_vm3, %v3288_v50, inf  ;;  %v3305_v63 = vsel %vm2625_vm3, %v3287_v35, inf }
 0xac6   : > { %3309 = vmin.xlane.f32.xlu1 %v3308_v53  ;;  %3306 = vmin.xlane.f32.xlu0 %v3305_v63  ;;  %v3273_v57 = vpop.xlane.xlu0 %3272  ;;  %v18121_v5 = vpop.permute.xlu1 %3514  ;;  %v18199_v53 = vand.u32 4294901760, %v3548_v56 }
 0xac7   : > { %vm3281_vm1 = vcmp.eq.f32.partialorder %v18075_v45, %v3273_v57  ;;  %v3731_v63 = vand.u32 4294901760, %v18121_v5 }
 0xac8   : > { %v3289_v6 = vsel %vm3281_vm1, %v17541_v47, 64.0  ;;  %23493 = vst [vmem:[#allocation16_spill] sm:$0xff] %v18199_v53 }
 0xac9   : > { %v3311_v59 = vsel %vm2625_vm3, %v3289_v6, inf  ;;  %v3455_v6 = vld [vmem:[#allocation2 + $0x28] sm:$0xff] }
 0xaca   : > { %3312 = vmin.xlane.f32.xlu0 %v3311_v59 }
 0xad7   : > { %3518 = vrot.lane.b32.xlu1 %v23482_v0, %s16888_s22 }
 0xadb   : > { %3520 = vrot.lane.b32.xlu1 %v23483_v17, %s16888_s22  ;;  %v18205_v17 = vand.u32 4294901760, %v3551_v20 }
 0xadd   : > { %23494 = vst [vmem:[#allocation4_spill] sm:$0xff] %v18205_v17 }
 0xadf   : > { %3524 = vrot.lane.b32.xlu1 %v23484_v19, %s16888_s22 }
 0xae0   : > { %3516 = vrot.lane.b32.xlu0 %v23485_v11, %s16888_s22 }
 0xae3   : > { %3528 = vrot.lane.b32.xlu1 %v23486_v18, %s16888_s22 }
 0xae4   : > { %3522 = vrot.lane.b32.xlu0 %v23487_v39, %s16888_s22 }
 0xae8   : > { %3526 = vrot.lane.b32.xlu0 %v23488_v46, %s16888_s22 }
 0xb47   : > { %v3295_v22 = vpop.xlane.xlu0 %3294  ;;  %v3292_v16 = vpop.xlane.xlu1 %3291 }
 0xb48   : > { %vm3315_vm2 = vcmp.eq.f32.partialorder %v17541_v47, %v3295_v22  ;;  %vm3314_vm4 = vcmp.eq.f32.partialorder %v17541_v47, %v3292_v16  ;;  %v18214_v22 = vsub.f32 %v3548_v56, %v18199_v53  ;;  %v3554_v16 = vsel %vm2625_vm3, %v3455_v6, 0 }
 0xb49   : > { %v12640_v7 = vsel %vm3315_vm2, 1.0, %v23474_v60  ;;  %v12639_v55 = vsel %vm3314_vm4, 1.0, %v23474_v60  ;;  %v18128_v14 = vsel %vm3315_vm2, inf, %v18020_v15  ;;  %v18131_v30 = vsel %vm3314_vm4, inf, %v18024_v21 }
 0xb4a   : > { %3347 = vst.msk [vmem:[#allocation2 + $0x188] sm:$0xff] %vm2625_vm3, %v12640_v7  ;;  %3346 = vst.msk [vmem:[#allocation2 + $0x180] sm:$0xff] %vm2625_vm3, %v12639_v55  ;;  %v3357_v32 = vsel %vm2625_vm3, %v18128_v14, inf  ;;  %v3354_v49 = vsel %vm2625_vm3, %v18131_v30, inf  ;;  %v18218_v7 = vsub.f32 %v18121_v5, %v3731_v63 }
 0xb4b   : > { %3358 = vmin.xlane.f32.xlu1 %v3357_v32  ;;  %v3298_v61 = vpop.xlane.xlu1 %3297  ;;  %3355 = vmin.xlane.f32.xlu0 %v3354_v49  ;;  %23495 = vst [vmem:[#allocation18_spill] sm:$0xff] %v18214_v22 }
 0xb4c   : > { %vm3316_vm5 = vcmp.eq.f32.partialorder %v17541_v47, %v3298_v61  ;;  %23496 = vst [vmem:[#allocation15_spill] sm:$0xff] %v18218_v7 }
 0xb4d   : > { %v12641_v15 = vsel %vm3316_vm5, 1.0, %v23474_v60  ;;  %v18142_v21 = vsel %vm3316_vm5, inf, %v18035_v9  ;;  %v3545_v9 = vsel %vm2625_vm3, %v3452_v40, 0 }
 0xb4e   : > { %3348 = vst.msk [vmem:[#allocation2 + $0x190] sm:$0xff] %vm2625_vm3, %v12641_v15  ;;  %v3360_v43 = vsel %vm2625_vm3, %v18142_v21, inf }
 0xb4f   : > { %v3304_v2 = vpop.xlane.xlu1 %3303  ;;  %3361 = vmin.xlane.f32.xlu0 %v3360_v43  ;;  %v3301_v52 = vpop.xlane.xlu0 %3300 }
 0xb50   : > { %vm3318_vm6 = vcmp.eq.f32.partialorder %v17541_v47, %v3304_v2  ;;  %vm3317_vm7 = vcmp.eq.f32.partialorder %v17541_v47, %v3301_v52 }
 0xb51   : > { %v12643_v58 = vsel %vm3318_vm6, 1.0, %v23474_v60  ;;  %v12642_v48 = vsel %vm3317_vm7, 1.0, %v23474_v60  ;;  %v18156_v1 = vsel %vm3318_vm6, inf, %v18044_v38  ;;  %v18159_v23 = vsel %vm3317_vm7, inf, %v18048_v28 }
 0xb52   : > { %3350 = vst.msk [vmem:[#allocation2 + $0x1a0] sm:$0xff] %vm2625_vm3, %v12643_v58  ;;  %3349 = vst.msk [vmem:[#allocation2 + $0x198] sm:$0xff] %vm2625_vm3, %v12642_v48  ;;  %v3366_v34 = vsel %vm2625_vm3, %v18156_v1, inf  ;;  %v3363_v37 = vsel %vm2625_vm3, %v18159_v23, inf  ;;  %v18170_v38 = vsub.f32 %v3542_v41, %v18150_v4  ;;  %v18172_v28 = vand.u32 4294901760, %v3545_v9 }
 0xb53   : > { %v3310_v26 = vpop.xlane.xlu1 %3309  ;;  %3367 = vmin.xlane.f32.xlu1 %v3366_v34  ;;  %3364 = vmin.xlane.f32.xlu0 %v3363_v37  ;;  %v3307_v10 = vpop.xlane.xlu0 %3306  ;;  %v18228_v41 = vsub.f32 %v3551_v20, %v18205_v17  ;;  %v18242_v58 = vand.u32 4294901760, %v3554_v16  ;;  %v22790_v34 = vand.u32 4294901760, %v18218_v7 }
 0xb54   : > { %vm3320_vm8 = vcmp.eq.f32.partialorder %v17541_v47, %v3310_v26  ;;  %vm3319_vm9 = vcmp.eq.f32.partialorder %v17541_v47, %v3307_v10  ;;  %23490 = vst [vmem:[#allocation6_spill] sm:$0xff] %v18170_v38  ;;  %23491 = vst [vmem:[#allocation11_spill] sm:$0xff] %v18172_v28  ;;  %v18197_v35 = vsub.f32 %v3545_v9, %v18172_v28  ;;  %v22784_v26 = vand.u32 4294901760, %v18214_v22 }
 0xb55   : > { %v12645_v62 = vsel %vm3320_vm8, 1.0, %v23474_v60  ;;  %v12644_v25 = vsel %vm3319_vm9, 1.0, %v23474_v60  ;;  %v18177_v51 = vsel %vm3320_vm8, inf, %v18060_v44  ;;  %v18180_v54 = vsel %vm3319_vm9, inf, %v18064_v3  ;;  %23498 = vst [vmem:[#allocation22_spill] sm:$0xff] %v18228_v41  ;;  %23500 = vst [vmem:[#allocation24_spill] sm:$0xff] %v18242_v58 }
 0xb56   : > { %3352 = vst.msk [vmem:[#allocation2 + $0x1b0] sm:$0xff] %vm2625_vm3, %v12645_v62  ;;  %3351 = vst.msk [vmem:[#allocation2 + $0x1a8] sm:$0xff] %vm2625_vm3, %v12644_v25  ;;  %v3372_v36 = vsel %vm2625_vm3, %v18177_v51, inf  ;;  %v3369_v29 = vsel %vm2625_vm3, %v18180_v54, inf  ;;  %v22787_v3 = vand.u32 4294901760, %v18170_v38  ;;  %v22785_v46 = vand.u32 4294901760, %v18197_v35 }
 0xb57   : > { %v3519_v8 = vpop.permute.xlu1 %3518  ;;  %3373 = vmin.xlane.f32.xlu1 %v3372_v36  ;;  %3370 = vmin.xlane.f32.xlu0 %v3369_v29  ;;  %v3313_v44 = vpop.xlane.xlu0 %3312  ;;  %23492 = vst [vmem:[#allocation12_spill] sm:$0xff] %v18197_v35  ;;  %v22786_v36 = vand.u32 4294901760, %v18228_v41  ;;  %v3457_v29 = vld [vmem:[#allocation2 + $0x38] sm:$0xff]  ;;  %v18261_v6 = vsub.f32 %v3554_v16, %v18242_v58  ;;  %v18275_v16 = vsub.f32 %v18214_v22, %v22784_v26 }
 0xb58   : > { %vm3321_vm10 = vcmp.eq.f32.partialorder %v17541_v47, %v3313_v44  ;;  %v18210_v18 = vsub.f32 %v18170_v38, %v22787_v3  ;;  %v3737_v39 = vand.u32 4294901760, %v3519_v8  ;;  %v18240_v9 = vsub.f32 %v18197_v35, %v22785_v46  ;;  %v3460_v46 = vld [vmem:[#allocation2 + $0x50] sm:$0xff] }
 0xb59   : > { %v12646_v31 = vsel %vm3321_vm10, 1.0, %v23474_v60  ;;  %v18194_v50 = vsel %vm3321_vm10, inf, %v18075_v45  ;;  %v3456_v45 = vld [vmem:[#allocation2 + $0x30] sm:$0xff]  ;;  %23503 = vst [vmem:[#allocation27_spill] sm:$0xff] %v18261_v6 }
 0xb5a   : > { %3353 = vst.msk [vmem:[#allocation2 + $0x1b8] sm:$0xff] %vm2625_vm3, %v12646_v31  ;;  %v3375_v57 = vsel %vm2625_vm3, %v18194_v50, inf  ;;  %v3557_v49 = vsel %vm2625_vm3, %v3456_v45, 0  ;;  %v18234_v52 = vsub.f32 %v3519_v8, %v3737_v39  ;;  %v3458_v31 = vld [vmem:[#allocation2 + $0x40] sm:$0xff] }
 0xb5b   : > { %v3521_v59 = vpop.permute.xlu1 %3520  ;;  %3376 = vmin.xlane.f32.xlu0 %v3375_v57  ;;  %v3517_v0 = vpop.permute.xlu0 %3516  ;;  %v18244_v48 = vand.u32 4294901760, %v3557_v49  ;;  %v3827_v57 = vand.u32 4294901760, %v18240_v9 }
 0xb5c   : > { %v3740_v19 = vand.u32 4294901760, %v3521_v59  ;;  %v3734_v11 = vand.u32 4294901760, %v3517_v0 }
 0xb5d   : > { %23501 = vst [vmem:[#allocation25_spill] sm:$0xff] %v18244_v48 }
 0xb5e   : > { %v18220_v55 = vpack.c.bf16 %v3734_v11, %v3731_v63  ;;  %v18222_v32 = vsub.f32 %v3517_v0, %v3734_v11  ;;  %v18225_v33 = vsub.f32 %v3521_v59, %v3740_v19  ;;  %v18230_v40 = vpack.c.bf16 %v3740_v19, %v3737_v39 }
 0xb5f   : > { %v3525_v61 = vpop.permute.xlu1 %3524  ;;  %v3523_v15 = vpop.permute.xlu0 %3522  ;;  %v4460_v63 = vand.u32 4294901760, %v18234_v52  ;;  %v18264_v59 = vsub.f32 %v3557_v49, %v18244_v48  ;;  %v4447_v19 = vsub.f32 %v18218_v7, %v22790_v34  ;;  %v3560_v11 = vsel %vm2625_vm3, %v3457_v29, 0 }
 0xb60   : > { %23497 = vst [vmem:[#allocation17_spill] sm:$0xff] %v18222_v32  ;;  %23499 = vst [vmem:[#allocation23_spill] sm:$0xff] %v18230_v40  ;;  %v22789_v43 = vand.u32 4294901760, %v18222_v32  ;;  %v3746_v2 = vand.u32 4294901760, %v3525_v61  ;;  %v3743_v5 = vand.u32 4294901760, %v3523_v15  ;;  %15581 = vmatprep.subr.bf16.mxu1 %v18220_v55  ;;  %v4467_v10 = vand.u32 4294901760, %v18225_v33 }
 0xb61   : > { %15583 = vmatpush3.bf16.msra.mxu1 %v18220_v55  ;;  %23504 = vst [vmem:[#allocation28_spill] sm:$0xff] %v18264_v59  ;;  %v18280_v49 = vsub.f32 %v18228_v41, %v22786_v36  ;;  %v18288_v26 = vand.u32 4294901760, %v3560_v11  ;;  %v18292_v36 = vpack.c.bf16 %v18225_v33, %v18234_v52 }
 0xb62   : > { %15585 = vmatprep.subr.bf16.mxu1 %v18230_v40  ;;  %v4480_v12 = vsub.f32 %v3525_v61, %v3746_v2  ;;  %v18251_v62 = vpack.c.bf16 %v3746_v2, %v3743_v5  ;;  %v4473_v56 = vsub.f32 %v3523_v15, %v3743_v5  ;;  %v4454_v20 = vsub.f32 %v18222_v32, %v22789_v43  ;;  %v3459_v15 = vld [vmem:[#allocation2 + $0x48] sm:$0xff]  ;;  %v3461_v43 = vld [vmem:[#allocation2 + $0x58] sm:$0xff] }
 0xb63   : > { %v3529_v25 = vpop.permute.xlu1 %3528  ;;  %v3527_v27 = vpop.permute.xlu0 %3526  ;;  %v4468_v39 = vsub.f32 %v18225_v33, %v4467_v10  ;;  %v3563_v61 = vsel %vm2625_vm3, %v3458_v31, 0  ;;  %23506 = vst [vmem:[#allocation30_spill] sm:$0xff] %v18288_v26  ;;  %v3569_v33 = vsel %vm2625_vm3, %v3460_v46, 0  ;;  %v18312_v35 = vsub.f32 %v3560_v11, %v18288_v26 }
 0xb64   : > { %23502 = vst [vmem:[#allocation26_spill] sm:$0xff] %v18251_v62  ;;  %v3752_v8 = vand.u32 4294901760, %v3529_v25  ;;  %v3749_v44 = vand.u32 4294901760, %v3527_v27  ;;  %v4481_v2 = vand.u32 4294901760, %v4480_v12  ;;  %v4474_v5 = vand.u32 4294901760, %v4473_v56 }
 0xb65   : > { %15587 = vmatpush3.bf16.msra.mxu1 %v18230_v40  ;;  %v18296_v42 = vand.u32 4294901760, %v3563_v61  ;;  %v18298_v34 = vpack.c.bf16 %v4480_v12, %v4473_v56  ;;  %23511 = vst [vmem:[#allocation35_spill] sm:$0xff] %v18312_v35 }
 0xb66   : > { %v4494_v0 = vsub.f32 %v3529_v25, %v3752_v8  ;;  %v4487_v45 = vsub.f32 %v3527_v27, %v3749_v44  ;;  %15589 = vmatprep.subr.bf16.mxu1 %v18251_v62  ;;  %v18283_v9 = vpack.c.bf16 %v3752_v8, %v3749_v44  ;;  %v4455_v25 = vand.u32 4294901760, %v4454_v20 }
 0xb67   : > { %v4461_v27 = vsub.f32 %v18234_v52, %v4460_v63  ;;  %v4448_v8 = vand.u32 4294901760, %v4447_v19  ;;  %v3566_v44 = vsel %vm2625_vm3, %v3459_v15, 0  ;;  %v4469_v20 = vand.u32 4294901760, %v4468_v39  ;;  %23507 = vst [vmem:[#allocation31_spill] sm:$0xff] %v18296_v42  ;;  %v3462_v52 = vld [vmem:[#allocation2 + $0x60] sm:$0xff] }
 0xb68   : > { %23505 = vst [vmem:[#allocation29_spill] sm:$0xff] %v18283_v9  ;;  %v4495_v31 = vand.u32 4294901760, %v4494_v0  ;;  %v4488_v3 = vand.u32 4294901760, %v4487_v45  ;;  %v18300_v29 = vpack.c.bf16 %v4494_v0, %v4487_v45  ;;  %v4482_v41 = vsub.f32 %v4480_v12, %v4481_v2 }
 0xb69   : > { %15591 = vmatpush3.bf16.msra.mxu1 %v18251_v62  ;;  %v15596_v37 = vpack.c.bf16 %v4455_v25, %v4448_v8  ;;  %v4475_v62 = vsub.f32 %v4473_v56, %v4474_v5  ;;  %v4462_v22 = vand.u32 4294901760, %v4461_v27  ;;  %v18304_v19 = vand.u32 4294901760, %v3566_v44 }
 0xb6a   : > { %15593 = vmatprep.subr.bf16.mxu1 %v18283_v9  ;;  %v18306_v15 = vpack.c.bf16 %v4467_v10, %v4460_v63  ;;  %v18308_v39 = vpack.c.bf16 %v4481_v2, %v4474_v5  ;;  %v3572_v12 = vsel %vm2625_vm3, %v3461_v43, 0  ;;  %v18315_v56 = vpack.c.bf16 %v4495_v31, %v4488_v3  ;;  %v3463_v63 = vld [vmem:[#allocation2 + $0x68] sm:$0xff] }
 0xb6b   : > { %23508 = vst [vmem:[#allocation32_spill] sm:$0xff] %v18304_v19  ;;  %v15600_v46 = vpack.c.bf16 %v4469_v20, %v4462_v22  ;;  %v18318_v25 = vsub.f32 %v3563_v61, %v18296_v42  ;;  %v18320_v27 = vand.u32 4294901760, %v3569_v33  ;;  %v3575_v10 = vsel %vm2625_vm3, %v3462_v52, 0 }
 0xb6c   : > { %23509 = vst [vmem:[#allocation33_spill] sm:$0xff] %v18306_v15  ;;  %23510 = vst [vmem:[#allocation34_spill] sm:$0xff] %v18308_v39  ;;  %v23515_v2 = vand.u32 4294901760, %v18210_v18  ;;  %v4476_v5 = vand.u32 4294901760, %v4475_v62  ;;  %v4483_v8 = vand.u32 4294901760, %v4482_v41  ;;  %v4489_v11 = vsub.f32 %v4487_v45, %v4488_v3  ;;  %v3464_v39 = vld [vmem:[#allocation2 + $0x70] sm:$0xff] }
 0xb6d   : > { %15595 = vmatpush3.bf16.msra.mxu1 %v18283_v9  ;;  %23512 = vst [vmem:[#allocation36_spill] sm:$0xff] %v18315_v56  ;;  %23513 = vst [vmem:[#allocation37_spill] sm:$0xff] %v18318_v25  ;;  %v4496_v40 = vsub.f32 %v4494_v0, %v4495_v31  ;;  %v3837_v22 = vand.u32 4294901760, %v18275_v16  ;;  %v23516_v43 = vand.u32 4294901760, %v18261_v6  ;;  %v18330_v20 = vsub.f32 %v3566_v44, %v18304_v19  ;;  %v3465_v31 = vld [vmem:[#allocation2 + $0x78] sm:$0xff] }
 0xb6e   : > { %15597 = vmatprep.subr.bf16.mxu1 %v15596_v37  ;;  %23514 = vst [vmem:[#allocation38_spill] sm:$0xff] %v18320_v27  ;;  %v18332_v52 = vand.u32 4294901760, %v3572_v12  ;;  %v3847_v18 = vand.u32 4294901760, %v18280_v49  ;;  %v23519_v3 = vand.u32 4294901760, %v18264_v59  ;;  %v3578_v62 = vsel %vm2625_vm3, %v3463_v63, 0 }
 0xb6f   : > { %v3856_v61 = vsub.f32 %v18261_v6, %v23516_v43  ;;  %23517 = vst [vmem:[#allocation39_spill] sm:$0xff] %v18330_v20  ;;  %v18342_v0 = vsub.f32 %v3569_v33, %v18320_v27  ;;  %v18344_v45 = vand.u32 4294901760, %v3575_v10  ;;  %v3581_v16 = vsel %vm2625_vm3, %v3464_v39, 0  ;;  %v3466_v43 = vld [vmem:[#allocation2 + $0x80] sm:$0xff] }
 0xb70   : > { %14109 = vmatmul.mubr.f32.vlgmr.msra.gmra.mrb[8].mxu1 %v23515_v2  ;;  %23518 = vst [vmem:[#allocation40_spill] sm:$0xff] %v18332_v52  ;;  %v3866_v41 = vsub.f32 %v18264_v59, %v23519_v3  ;;  %v15604_v49 = vpack.c.bf16 %v4483_v8, %v4476_v5  ;;  %v4490_v44 = vand.u32 4294901760, %v4489_v11  ;;  %v4497_v2 = vand.u32 4294901760, %v4496_v40 }
 0xb71   : > { %14111 = vmatprep.mubr.f32.mxu1 %v3827_v57  ;;  %15599 = vmatpush3.bf16.msra.mxu1 %v15596_v37  ;;  %23520 = vst [vmem:[#allocation41_spill] sm:$0xff] %v18342_v0  ;;  %23521 = vst [vmem:[#allocation42_spill] sm:$0xff] %v18344_v45  ;;  %v3857_v3 = vand.u32 4294901760, %v3856_v61  ;;  %v22803_v63 = vand.u32 4294901760, %v18330_v20  ;;  %v18349_v57 = vsub.f32 %v3572_v12, %v18332_v52  ;;  %v18351_v33 = vand.u32 4294901760, %v3578_v62 }
 0xb72   : > { %15601 = vmatprep.subr.bf16.mxu1 %v15600_v46  ;;  %v3867_v37 = vand.u32 4294901760, %v3866_v41  ;;  %v23524_v39 = vand.u32 4294901760, %v18312_v35  ;;  %v18356_v5 = vand.u32 4294901760, %v3581_v16  ;;  %v3584_v40 = vsel %vm2625_vm3, %v3465_v31, 0  ;;  %v3467_v41 = vld [vmem:[#allocation2 + $0x88] sm:$0xff] }
 0xb73   : > { %23522 = vst [vmem:[#allocation43_spill] sm:$0xff] %v18349_v57  ;;  %23523 = vst [vmem:[#allocation44_spill] sm:$0xff] %v18351_v33  ;;  %v18364_v12 = vsub.f32 %v3575_v10, %v18344_v45  ;;  %v3587_v61 = vsel %vm2625_vm3, %v3466_v43, 0  ;;  %v3896_v31 = vsub.f32 %v18330_v20, %v22803_v63  ;;  %v18374_v11 = vand.u32 4294901760, %v3584_v40  ;;  %v3468_v10 = vld [vmem:[#allocation2 + $0x90] sm:$0xff]  ;;  %v3469_v63 = vld [vmem:[#allocation2 + $0x98] sm:$0xff] }
 0xb74   : > { %14112 = vmatmul.mubr.f32.gmra.mrb[10].mxu1 %v3837_v22  ;;  %v3876_v22 = vsub.f32 %v18312_v35, %v23524_v39  ;;  %23525 = vst [vmem:[#allocation45_spill] sm:$0xff] %v18356_v5  ;;  %v18377_v43 = vsub.f32 %v3581_v16, %v18356_v5  ;;  %v18388_v39 = vpack.c.bf16 %v18222_v32, %v18218_v7  ;;  %v3593_v16 = vsel %vm2625_vm3, %v3468_v10, 0  ;;  %v3474_v7 = vld [vmem:[#allocation2 + $0xc0] sm:$0xff] }
 0xb75   : > { %14114 = vmatprep.mubr.f32.mxu1 %v3847_v18  ;;  %15603 = vmatpush3.bf16.msra.mxu1 %v15600_v46  ;;  %v23526_v46 = vand.u32 4294901760, %v18318_v25  ;;  %23527 = vst [vmem:[#allocation46_spill] sm:$0xff] %v18364_v12  ;;  %v15608_v18 = vpack.c.bf16 %v4497_v2, %v4490_v44  ;;  %23529 = vst [vmem:[#allocation48_spill] sm:$0xff] %v18374_v11  ;;  %v18379_v44 = vand.u32 4294901760, %v3587_v61 }
 0xb76   : > { %15605 = vmatprep.subr.bf16.mxu1 %v15604_v49  ;;  %v3877_v56 = vand.u32 4294901760, %v3876_v22  ;;  %23530 = vst [vmem:[#allocation49_spill] sm:$0xff] %v18377_v43  ;;  %v3897_v22 = vand.u32 4294901760, %v3896_v31  ;;  %v3471_v31 = vld [vmem:[#allocation2 + $0xa8] sm:$0xff] }
 0xb77   : > { %v3886_v8 = vsub.f32 %v18318_v25, %v23526_v46  ;;  %v18372_v46 = vsub.f32 %v3578_v62, %v18351_v33  ;;  %23531 = vst [vmem:[#allocation50_spill] sm:$0xff] %v18379_v44  ;;  %v3590_v62 = vsel %vm2625_vm3, %v3467_v41, 0  ;;  %v3470_v41 = vld [vmem:[#allocation2 + $0xa0] sm:$0xff] }
 0xb78   : > { %14115 = vmatmul.mubr.f32.gmra.mrb[12].mxu1 %v3857_v3  ;;  %v18396_v3 = vsub.f32 %v3584_v40, %v18374_v11  ;;  %v18403_v10 = vand.u32 4294901760, %v3590_v62  ;;  %v18409_v40 = vand.u32 4294901760, %v3593_v16 }
 0xb79   : > { %14117 = vmatprep.mubr.f32.mxu1 %v3867_v37  ;;  %15607 = vmatpush3.bf16.msra.mxu1 %v15604_v49  ;;  %23528 = vst [vmem:[#allocation47_spill] sm:$0xff] %v18372_v46  ;;  %v3887_v37 = vand.u32 4294901760, %v3886_v8  ;;  %v23532_v49 = vand.u32 4294901760, %v18342_v0  ;;  %v23533_v8 = vand.u32 4294901760, %v18349_v57 }
 0xb7a   : > { %15609 = vmatprep.subr.bf16.mxu1 %v15608_v18  ;;  %23534 = vst [vmem:[#allocation51_spill] sm:$0xff] %v18396_v3  ;;  %23536 = vst [vmem:[#allocation53_spill] sm:$0xff] %v18403_v10 }
 0xb7b   : > { %v3906_v2 = vsub.f32 %v18342_v0, %v23532_v49  ;;  %v3916_v15 = vsub.f32 %v18349_v57, %v23533_v8  ;;  %v18401_v0 = vsub.f32 %v3587_v61, %v18379_v44  ;;  %v23537_v8 = vand.u32 4294901760, %v18364_v12  ;;  %23538 = vst [vmem:[#allocation54_spill] sm:$0xff] %v18409_v40 }
 0xb7c   : > { %14118 = vmatmul.mubr.f32.gmra.mrb[14].mxu1 %v3877_v56  ;;  %v3599_v57 = vsel %vm2625_vm3, %v3470_v41, 0  ;;  %v23539_v56 = vand.u32 4294901760, %v18372_v46  ;;  %v18424_v41 = vsub.f32 %v3590_v62, %v18403_v10 }
 0xb7d   : > { %14120 = vmatprep.mubr.f32.mxu1 %v3887_v37  ;;  %15611 = vmatpush3.bf16.msra.mxu1 %v15608_v18  ;;  %23535 = vst [vmem:[#allocation52_spill] sm:$0xff] %v18401_v0  ;;  %v3596_v18 = vsel %vm2625_vm3, %v3469_v63, 0  ;;  %v3907_v37 = vand.u32 4294901760, %v3906_v2  ;;  %v3926_v49 = vsub.f32 %v18364_v12, %v23537_v8  ;;  %v3602_v63 = vsel %vm2625_vm3, %v3471_v31, 0  ;;  %v3472_v2 = vld [vmem:[#allocation2 + $0xb0] sm:$0xff] }
 0xb7e   : > { %15613 = vmatprep.subr.bf16.mxu1 %v18388_v39  ;;  %v3936_v61 = vsub.f32 %v18372_v46, %v23539_v56  ;;  %v18416_v25 = vand.u32 4294901760, %v3596_v18  ;;  %v3917_v32 = vand.u32 4294901760, %v3916_v15  ;;  %v23541_v8 = vand.u32 4294901760, %v18377_v43  ;;  %23542 = vst [vmem:[#allocation56_spill] sm:$0xff] %v18424_v41  ;;  %v3473_v46 = vld [vmem:[#allocation2 + $0xb8] sm:$0xff] }
 0xb7f   : > { %v18427_v56 = vsub.f32 %v3593_v16, %v18409_v40  ;;  %v18429_v20 = vand.u32 4294901760, %v3599_v57  ;;  %v18431_v31 = vand.u32 4294901760, %v3602_v63  ;;  %v3605_v15 = vsel %vm2625_vm3, %v3472_v2, 0 }
 0xb80   : > { %14121 = vmatmul.mubr.f32.gmra.mrb[16].mxu1 %v3897_v22  ;;  %23540 = vst [vmem:[#allocation55_spill] sm:$0xff] %v18416_v25  ;;  %v3946_v12 = vsub.f32 %v18377_v43, %v23541_v8  ;;  %v3937_v8 = vand.u32 4294901760, %v3936_v61  ;;  %v23546_v22 = vand.u32 4294901760, %v18396_v3  ;;  %v23548_v43 = vand.u32 4294901760, %v18401_v0 }
 0xb81   : > { %14123 = vmatprep.mubr.f32.mxu1 %v3907_v37  ;;  %v3927_v37 = vand.u32 4294901760, %v3926_v49  ;;  %23543 = vst [vmem:[#allocation57_spill] sm:$0xff] %v18427_v56  ;;  %23544 = vst [vmem:[#allocation58_spill] sm:$0xff] %v18429_v20  ;;  %v18438_v49 = vsub.f32 %v3596_v18, %v18416_v25  ;;  %v3608_v9 = vsel %vm2625_vm3, %v3473_v46, 0  ;;  %v18447_v61 = vsub.f32 %v3599_v57, %v18429_v20  ;;  %v3475_v18 = vld [vmem:[#allocation2 + $0xc8] sm:$0xff] }
 0xb82   : > { %23545 = vst [vmem:[#allocation59_spill] sm:$0xff] %v18431_v31  ;;  %v3956_v62 = vsub.f32 %v18396_v3, %v23546_v22  ;;  %v3947_v16 = vand.u32 4294901760, %v3946_v12  ;;  %v3966_v35 = vsub.f32 %v18401_v0, %v23548_v43  ;;  %v3611_v22 = vsel %vm2625_vm3, %v3474_v7, 0  ;;  %v3476_v3 = vld [vmem:[#allocation2 + $0xd0] sm:$0xff] }
 0xb83   : > { %23547 = vst [vmem:[#allocation60_spill] sm:$0xff] %v18438_v49  ;;  %23549 = vst [vmem:[#allocation61_spill] sm:$0xff] %v18447_v61  ;;  %v18453_v12 = vsub.f32 %v3602_v63, %v18431_v31  ;;  %v18456_v46 = vand.u32 4294901760, %v3608_v9  ;;  %v23553_v57 = vand.u32 4294901760, %v18424_v41  ;;  %v18461_v59 = vand.u32 4294901760, %v3611_v22 }
 0xb84   : > { %14124 = vmatmul.mubr.f32.gmra.mrb[18].mxu1 %v3917_v32  ;;  %v3957_v43 = vand.u32 4294901760, %v3956_v62  ;;  %v3967_v2 = vand.u32 4294901760, %v3966_v35  ;;  %v3614_v7 = vsel %vm2625_vm3, %v3475_v18, 0  ;;  %v3617_v32 = vsel %vm2625_vm3, %v3476_v3, 0  ;;  %v3477_v35 = vld [vmem:[#allocation2 + $0xd8] sm:$0xff] }
 0xb85   : > { %14126 = vmatprep.mubr.f32.mxu1 %v3927_v37  ;;  %v18449_v37 = vand.u32 4294901760, %v3605_v15  ;;  %23551 = vst [vmem:[#allocation63_spill] sm:$0xff] %v18453_v12  ;;  %23552 = vst [vmem:[#allocation64_spill] sm:$0xff] %v18456_v46  ;;  %v3976_v0 = vsub.f32 %v18424_v41, %v23553_v57  ;;  %v3478_v57 = vld [vmem:[#allocation2 + $0xe0] sm:$0xff]  ;;  %v23557_v41 = vand.u32 4294901760, %v18438_v49  ;;  %v18477_v38 = vsub.f32 %v3608_v9, %v18456_v46 }
 0xb86   : > { %23554 = vst [vmem:[#allocation65_spill] sm:$0xff] %v18461_v59  ;;  %v18484_v3 = vand.u32 4294901760, %v3617_v32  ;;  %v3623_v9 = vsel %vm2625_vm3, %v3478_v57, 0 }
 0xb87   : > { %23550 = vst [vmem:[#allocation62_spill] sm:$0xff] %v18449_v37  ;;  %v18469_v62 = vsub.f32 %v3605_v15, %v18449_v37  ;;  %v3996_v18 = vsub.f32 %v18438_v49, %v23557_v41  ;;  %23558 = vst [vmem:[#allocation67_spill] sm:$0xff] %v18477_v38  ;;  %v18482_v15 = vsub.f32 %v3611_v22, %v18461_v59  ;;  %v3479_v49 = vld [vmem:[#allocation2 + $0xe8] sm:$0xff]  ;;  %v3481_v59 = vld [vmem:[#allocation2 + $0xf8] sm:$0xff]  ;;  %v23569_v41 = vand.u32 4294901760, %v18477_v38 }
 0xb88   : > { %14127 = vmatmul.mubr.f32.gmra.mrb[20].mxu1 %v3937_v8  ;;  %v23555_v8 = vand.u32 4294901760, %v18427_v56  ;;  %23561 = vst [vmem:[#allocation70_spill] sm:$0xff] %v18484_v3  ;;  %v18503_v57 = vsub.f32 %v3617_v32, %v18484_v3  ;;  %v3483_v3 = vld [vmem:[#allocation2 + $0x108] sm:$0xff] }
 0xb89   : > { %14129 = vmatprep.mubr.f32.mxu1 %v3947_v16  ;;  %23556 = vst [vmem:[#allocation66_spill] sm:$0xff] %v18469_v62  ;;  %v3977_v16 = vand.u32 4294901760, %v3976_v0  ;;  %23560 = vst [vmem:[#allocation69_spill] sm:$0xff] %v18482_v15  ;;  %v23563_v0 = vand.u32 4294901760, %v18453_v12  ;;  %v3997_v13 = vand.u32 4294901760, %v3996_v18  ;;  %v4036_v32 = vsub.f32 %v18477_v38, %v23569_v41 }
 0xb8a   : > { %v3986_v63 = vsub.f32 %v18427_v56, %v23555_v8  ;;  %v18479_v8 = vand.u32 4294901760, %v3614_v7  ;;  %23566 = vst [vmem:[#allocation73_spill] sm:$0xff] %v18503_v57 }
 0xb8b   : > { %v4016_v22 = vsub.f32 %v18453_v12, %v23563_v0 }
 0xb8c   : > { %14130 = vmatmul.mubr.f32.gmra.mrb[22].mxu1 %v3957_v43  ;;  %23559 = vst [vmem:[#allocation68_spill] sm:$0xff] %v18479_v8  ;;  %v3620_v43 = vsel %vm2625_vm3, %v3477_v35, 0  ;;  %v3987_v6 = vand.u32 4294901760, %v3986_v63  ;;  %v18497_v63 = vsub.f32 %v3614_v7, %v18479_v8 }
 0xb8d   : > { %14132 = vmatprep.mubr.f32.mxu1 %v3967_v2  ;;  %v23562_v2 = vand.u32 4294901760, %v18447_v61  ;;  %v18499_v35 = vand.u32 4294901760, %v3620_v43  ;;  %v4017_v7 = vand.u32 4294901760, %v4016_v22 }
 0xb8e   : > { %23564 = vst [vmem:[#allocation71_spill] sm:$0xff] %v18497_v63 }
 0xb8f   : > { %v4006_v56 = vsub.f32 %v18447_v61, %v23562_v2  ;;  %23565 = vst [vmem:[#allocation72_spill] sm:$0xff] %v18499_v35  ;;  %v3480_v2 = vld [vmem:[#allocation2 + $0xf0] sm:$0xff]  ;;  %v3626_v61 = vsel %vm2625_vm3, %v3479_v49, 0  ;;  %v18517_v8 = vsub.f32 %v3620_v43, %v18499_v35  ;;  %v3482_v49 = vld [vmem:[#allocation2 + $0x100] sm:$0xff]  ;;  %v4037_v35 = vand.u32 4294901760, %v4036_v32 }
 0xb90   : > { %14133 = vmatmul.mubr.f32.gmra.mrb[24].mxu1 %v3977_v16  ;;  %v18505_v16 = vand.u32 4294901760, %v3623_v9  ;;  %v3629_v12 = vsel %vm2625_vm3, %v3480_v2, 0  ;;  %v3635_v43 = vsel %vm2625_vm3, %v3482_v49, 0 }
 0xb91   : > { %14135 = vmatprep.mubr.f32.mxu1 %v3987_v6  ;;  %v4007_v0 = vand.u32 4294901760, %v4006_v56  ;;  %v23568_v6 = vand.u32 4294901760, %v18469_v62  ;;  %23570 = vst [vmem:[#allocation75_spill] sm:$0xff] %v18517_v8  ;;  %v18519_v56 = vand.u32 4294901760, %v3626_v61  ;;  %v18529_v38 = vand.u32 4294901760, %v3629_v12 }
 0xb92   : > { %23567 = vst [vmem:[#allocation74_spill] sm:$0xff] %v18505_v16  ;;  %v18526_v2 = vsub.f32 %v3623_v9, %v18505_v16 }
 0xb93   : > { %v4026_v18 = vsub.f32 %v18469_v62, %v23568_v6  ;;  %23571 = vst [vmem:[#allocation76_spill] sm:$0xff] %v18519_v56  ;;  %v23572_v6 = vand.u32 4294901760, %v18482_v15  ;;  %23574 = vst [vmem:[#allocation78_spill] sm:$0xff] %v18529_v38  ;;  %v3484_v62 = vld [vmem:[#allocation2 + $0x110] sm:$0xff]  ;;  %v18546_v32 = vsub.f32 %v3629_v12, %v18529_v38  ;;  %v3486_v12 = vld [vmem:[#allocation2 + $0x120] sm:$0xff] }
 0xb94   : > { %14136 = vmatmul.mubr.f32.gmra.mrb[26].mxu1 %v3997_v13  ;;  %23573 = vst [vmem:[#allocation77_spill] sm:$0xff] %v18526_v2  ;;  %v3641_v46 = vsel %vm2625_vm3, %v3484_v62, 0 }
 0xb95   : > { %14138 = vmatprep.mubr.f32.mxu1 %v4007_v0  ;;  %v4046_v13 = vsub.f32 %v18482_v15, %v23572_v6  ;;  %v3632_v0 = vsel %vm2625_vm3, %v3481_v59, 0  ;;  %v4027_v41 = vand.u32 4294901760, %v4026_v18  ;;  %v18534_v6 = vsub.f32 %v3626_v61, %v18519_v56  ;;  %23579 = vst [vmem:[#allocation81_spill] sm:$0xff] %v18546_v32 }
 0xb96   : > { %v18536_v22 = vand.u32 4294901760, %v3632_v0  ;;  %v23577_v59 = vand.u32 4294901760, %v18497_v63  ;;  %v3638_v61 = vsel %vm2625_vm3, %v3483_v3, 0  ;;  %v18561_v56 = vand.u32 4294901760, %v3641_v46 }
 0xb97   : > { %23575 = vst [vmem:[#allocation79_spill] sm:$0xff] %v18534_v6  ;;  %v4047_v9 = vand.u32 4294901760, %v4046_v13  ;;  %v3485_v13 = vld [vmem:[#allocation2 + $0x118] sm:$0xff]  ;;  %v18559_v38 = vand.u32 4294901760, %v3638_v61  ;;  %v23587_v16 = vand.u32 4294901760, %v18534_v6 }
 0xb98   : > { %14139 = vmatmul.mubr.f32.gmra.mrb[28].mxu1 %v4017_v7  ;;  %23576 = vst [vmem:[#allocation80_spill] sm:$0xff] %v18536_v22  ;;  %v4056_v18 = vsub.f32 %v18497_v63, %v23577_v59  ;;  %v23578_v7 = vand.u32 4294901760, %v18503_v57  ;;  %v23581_v59 = vand.u32 4294901760, %v18517_v8  ;;  %v18557_v15 = vsub.f32 %v3632_v0, %v18536_v22  ;;  %23584 = vst [vmem:[#allocation85_spill] sm:$0xff] %v18561_v56  ;;  %v3487_v0 = vld [vmem:[#allocation2 + $0x128] sm:$0xff] }
 0xb99   : > { %14141 = vmatprep.mubr.f32.mxu1 %v4027_v41  ;;  %v18548_v41 = vand.u32 4294901760, %v3635_v43  ;;  %23583 = vst [vmem:[#allocation84_spill] sm:$0xff] %v18559_v38  ;;  %v3644_v62 = vsel %vm2625_vm3, %v3485_v13, 0 }
 0xb9a   : > { %v4066_v49 = vsub.f32 %v18503_v57, %v23578_v7  ;;  %v4076_v63 = vsub.f32 %v18517_v8, %v23581_v59  ;;  %23582 = vst [vmem:[#allocation83_spill] sm:$0xff] %v18557_v15  ;;  %v4057_v57 = vand.u32 4294901760, %v4056_v18  ;;  %v22883_v59 = vand.u32 4294901760, %v18546_v32  ;;  %v3488_v8 = vld [vmem:[#allocation2 + $0x130] sm:$0xff] }
 0xb9b   : > { %23580 = vst [vmem:[#allocation82_spill] sm:$0xff] %v18548_v41  ;;  %v18569_v7 = vsub.f32 %v3635_v43, %v18548_v41  ;;  %v3647_v18 = vsel %vm2625_vm3, %v3486_v12, 0  ;;  %v18576_v37 = vand.u32 4294901760, %v3644_v62  ;;  %v18582_v43 = vsub.f32 %v3641_v46, %v18561_v56 }
 0xb9c   : > { %14142 = vmatmul.mubr.f32.gmra.mrb[30].mxu1 %v4037_v35  ;;  %v4067_v3 = vand.u32 4294901760, %v4066_v49  ;;  %v23585_v35 = vand.u32 4294901760, %v18526_v2  ;;  %v4077_v22 = vand.u32 4294901760, %v4076_v63  ;;  %v4096_v49 = vsub.f32 %v18534_v6, %v23587_v16  ;;  %v3489_v6 = vld [vmem:[#allocation2 + $0x138] sm:$0xff] }
 0xb9d   : > { %14144 = vmatprep.mubr.f32.mxu1 %v4047_v9  ;;  %23586 = vst [vmem:[#allocation86_spill] sm:$0xff] %v18569_v7  ;;  %23588 = vst [vmem:[#allocation87_spill] sm:$0xff] %v18576_v37  ;;  %v3653_v12 = vsel %vm2625_vm3, %v3488_v8, 0  ;;  %v4106_v63 = vsub.f32 %v18546_v32, %v22883_v59  ;;  %v18590_v13 = vand.u32 4294901760, %v3647_v18  ;;  %v18593_v46 = vsub.f32 %v3644_v62, %v18576_v37  ;;  %v3490_v8 = vld [vmem:[#allocation2 + $0x140] sm:$0xff]  ;;  %v3492_v32 = vld [vmem:[#allocation2 + $0x150] sm:$0xff] }
 0xb9e   : > { %v4086_v9 = vsub.f32 %v18526_v2, %v23585_v35  ;;  %v18579_v35 = vsub.f32 %v3638_v61, %v18559_v38  ;;  %23590 = vst [vmem:[#allocation89_spill] sm:$0xff] %v18582_v43  ;;  %v4097_v61 = vand.u32 4294901760, %v4096_v49  ;;  %v23596_v49 = vand.u32 4294901760, %v18569_v7  ;;  %v3491_v38 = vld [vmem:[#allocation2 + $0x148] sm:$0xff] }
 0xb9f   : > { %23591 = vst [vmem:[#allocation90_spill] sm:$0xff] %v18590_v13  ;;  %23592 = vst [vmem:[#allocation91_spill] sm:$0xff] %v18593_v46  ;;  %v18609_v37 = vsub.f32 %v3647_v18, %v18590_v13  ;;  %v3659_v56 = vsel %vm2625_vm3, %v3490_v8, 0  ;;  %v23602_v8 = vand.u32 4294901760, %v18582_v43 }
 0xba0   : > { %14145 = vmatmul.mubr.f32.gmra.mrb[32].mxu1 %v4057_v57  ;;  %23589 = vst [vmem:[#allocation88_spill] sm:$0xff] %v18579_v35  ;;  %v3650_v57 = vsel %vm2625_vm3, %v3487_v0, 0  ;;  %v18597_v0 = vand.u32 4294901760, %v3653_v12  ;;  %v4126_v62 = vsub.f32 %v18569_v7, %v23596_v49  ;;  %v23601_v18 = vand.u32 4294901760, %v18579_v35 }
 0xba1   : > { %14147 = vmatprep.mubr.f32.mxu1 %v4067_v3  ;;  %v4087_v3 = vand.u32 4294901760, %v4086_v9  ;;  %v18595_v2 = vand.u32 4294901760, %v3650_v57  ;;  %v23595_v9 = vand.u32 4294901760, %v18557_v15  ;;  %23597 = vst [vmem:[#allocation94_spill] sm:$0xff] %v18609_v37 }
 0xba2   : > { %23594 = vst [vmem:[#allocation93_spill] sm:$0xff] %v18597_v0  ;;  %v4127_v7 = vand.u32 4294901760, %v4126_v62 }
 0xba3   : > { %23593 = vst [vmem:[#allocation92_spill] sm:$0xff] %v18595_v2  ;;  %v4116_v59 = vsub.f32 %v18557_v15, %v23595_v9  ;;  %v18614_v16 = vsub.f32 %v3650_v57, %v18595_v2  ;;  %v18628_v57 = vand.u32 4294901760, %v3659_v56  ;;  %v3665_v15 = vsel %vm2625_vm3, %v3492_v32, 0  ;;  %v3494_v9 = vld [vmem:[#allocation2 + $0x160] sm:$0xff] }
 0xba4   : > { %14148 = vmatmul.mubr.f32.gmra.mrb[34].mxu1 %v4077_v22  ;;  %v3656_v22 = vsel %vm2625_vm3, %v3489_v6, 0  ;;  %v18617_v6 = vsub.f32 %v3653_v12, %v18597_v0  ;;  %v3662_v12 = vsel %vm2625_vm3, %v3491_v38, 0  ;;  %v3493_v0 = vld [vmem:[#allocation2 + $0x158] sm:$0xff]  ;;  %v23607_v32 = vand.u32 4294901760, %v18609_v37 }
 0xba5   : > { %14150 = vmatprep.mubr.f32.mxu1 %v4087_v3  ;;  %v4107_v3 = vand.u32 4294901760, %v4106_v63  ;;  %23598 = vst [vmem:[#allocation95_spill] sm:$0xff] %v18614_v16  ;;  %v18619_v63 = vand.u32 4294901760, %v3656_v22  ;;  %v4117_v49 = vand.u32 4294901760, %v4116_v59  ;;  %23603 = vst [vmem:[#allocation98_spill] sm:$0xff] %v18628_v57  ;;  %v23604_v59 = vand.u32 4294901760, %v18593_v46 }
 0xba6   : > { %23599 = vst [vmem:[#allocation96_spill] sm:$0xff] %v18617_v6  ;;  %v18640_v38 = vand.u32 4294901760, %v3662_v12 }
 0xba7   : > { %23600 = vst [vmem:[#allocation97_spill] sm:$0xff] %v18619_v63  ;;  %v18638_v62 = vsub.f32 %v3656_v22, %v18619_v63  ;;  %v3671_v22 = vsel %vm2625_vm3, %v3494_v9, 0 }
 0xba8   : > { %14151 = vmatmul.mubr.f32.gmra.mrb[36].mxu1 %v4097_v61  ;;  %v4136_v61 = vsub.f32 %v18579_v35, %v23601_v18  ;;  %v4156_v18 = vsub.f32 %v18593_v46, %v23604_v59  ;;  %23606 = vst [vmem:[#allocation100_spill] sm:$0xff] %v18640_v38  ;;  %v18648_v59 = vand.u32 4294901760, %v3665_v15  ;;  %v3668_v35 = vsel %vm2625_vm3, %v3493_v0, 0  ;;  %v3496_v46 = vld [vmem:[#allocation2 + $0x170] sm:$0xff] }
 0xba9   : > { %14153 = vmatprep.mubr.f32.mxu1 %v4107_v3  ;;  %v4146_v3 = vsub.f32 %v18582_v43, %v23602_v8  ;;  %23605 = vst [vmem:[#allocation99_spill] sm:$0xff] %v18638_v62  ;;  %v3495_v8 = vld [vmem:[#allocation2 + $0x168] sm:$0xff]  ;;  %v18662_v0 = vand.u32 4294901760, %v3668_v35 }
 0xbaa   : > { %v4137_v43 = vand.u32 4294901760, %v4136_v61  ;;  %23609 = vst [vmem:[#allocation102_spill] sm:$0xff] %v18648_v59  ;;  %v4157_v61 = vand.u32 4294901760, %v4156_v18 }
 0xbab   : > { %v4147_v2 = vand.u32 4294901760, %v4146_v3  ;;  %v23610_v3 = vand.u32 4294901760, %v18614_v16  ;;  %23613 = vst [vmem:[#allocation104_spill] sm:$0xff] %v18662_v0 }
 0xbac   : > { %14154 = vmatmul.mubr.f32.gmra.mrb[38].mxu1 %v4117_v49  ;;  %v18646_v49 = vsub.f32 %v3659_v56, %v18628_v57  ;;  %v18660_v57 = vsub.f32 %v3662_v12, %v18640_v38 }
 0xbad   : > { %14156 = vmatprep.mubr.f32.mxu1 %v4127_v7  ;;  %v4166_v7 = vsub.f32 %v18609_v37, %v23607_v32  ;;  %v4176_v63 = vsub.f32 %v18614_v16, %v23610_v3  ;;  %v23611_v32 = vand.u32 4294901760, %v18617_v6  ;;  %v18668_v3 = vsub.f32 %v3665_v15, %v18648_v59  ;;  %v3498_v37 = vld [vmem:[#allocation2 + $0x180] sm:$0xff] }
 0xbae   : > { %23608 = vst [vmem:[#allocation101_spill] sm:$0xff] %v18646_v49  ;;  %23612 = vst [vmem:[#allocation103_spill] sm:$0xff] %v18660_v57  ;;  %v18670_v16 = vand.u32 4294901760, %v3671_v22  ;;  %v18681_v15 = vsub.f32 %v3668_v35, %v18662_v0  ;;  %v3683_v59 = vsel %vm2625_vm3, %v3498_v37, 0 }
 0xbaf   : > { %v4186_v56 = vsub.f32 %v18617_v6, %v23611_v32  ;;  %v4167_v9 = vand.u32 4294901760, %v4166_v7  ;;  %23614 = vst [vmem:[#allocation105_spill] sm:$0xff] %v18668_v3  ;;  %v3497_v32 = vld [vmem:[#allocation2 + $0x178] sm:$0xff]  ;;  %v4177_v12 = vand.u32 4294901760, %v4176_v63  ;;  %v18704_v37 = vand.u32 4294901760, %v3683_v59 }
 0xbb0   : > { %14157 = vmatmul.mubr.f32.gmra.mrb[40].mxu1 %v4137_v43  ;;  %v3674_v43 = vsel %vm2625_vm3, %v3495_v8, 0  ;;  %23615 = vst [vmem:[#allocation106_spill] sm:$0xff] %v18670_v16  ;;  %23619 = vst [vmem:[#allocation109_spill] sm:$0xff] %v18681_v15  ;;  %v3680_v18 = vsel %vm2625_vm3, %v3497_v32, 0 }
 0xbb1   : > { %14159 = vmatprep.mubr.f32.mxu1 %v4147_v2  ;;  %v3677_v2 = vsel %vm2625_vm3, %v3496_v46, 0  ;;  %v4187_v6 = vand.u32 4294901760, %v4186_v56  ;;  %v18672_v38 = vand.u32 4294901760, %v3674_v43  ;;  %v23618_v46 = vand.u32 4294901760, %v18638_v62  ;;  %23626 = vst [vmem:[#allocation114_spill] sm:$0xff] %v18704_v37 }
 0xbb2   : > { %v18674_v13 = vand.u32 4294901760, %v3677_v2  ;;  %v18698_v32 = vand.u32 4294901760, %v3680_v18  ;;  %v23625_v56 = vand.u32 4294901760, %v18660_v57 }
 0xbb3   : > { %23616 = vst [vmem:[#allocation107_spill] sm:$0xff] %v18672_v38  ;;  %v4196_v8 = vsub.f32 %v18638_v62, %v23618_v46  ;;  %v3499_v46 = vld [vmem:[#allocation2 + $0x188] sm:$0xff]  ;;  %v18693_v7 = vsub.f32 %v3674_v43, %v18672_v38  ;;  %v3500_v62 = vld [vmem:[#allocation2 + $0x190] sm:$0xff]  ;;  %v3501_v38 = vld [vmem:[#allocation2 + $0x198] sm:$0xff] }
 0xbb4   : > { %14160 = vmatmul.mubr.f32.gmra.mrb[42].mxu1 %v4157_v61  ;;  %23617 = vst [vmem:[#allocation108_spill] sm:$0xff] %v18674_v13  ;;  %v23620_v61 = vand.u32 4294901760, %v18646_v49  ;;  %v18696_v35 = vsub.f32 %v3677_v2, %v18674_v13  ;;  %23624 = vst [vmem:[#allocation113_spill] sm:$0xff] %v18698_v32  ;;  %v3686_v13 = vsel %vm2625_vm3, %v3499_v46, 0  ;;  %v18721_v46 = vsub.f32 %v3683_v59, %v18704_v37  ;;  %v3505_v37 = vld [vmem:[#allocation2 + $0x1b8] sm:$0xff] }
 0xbb5   : > { %14162 = vmatprep.mubr.f32.mxu1 %v4167_v9  ;;  %v18689_v9 = vsub.f32 %v3671_v22, %v18670_v16  ;;  %23622 = vst [vmem:[#allocation111_spill] sm:$0xff] %v18693_v7  ;;  %v4216_v22 = vsub.f32 %v18660_v57, %v23625_v56  ;;  %v18715_v57 = vsub.f32 %v3680_v18, %v18698_v32  ;;  %v3692_v18 = vsel %vm2625_vm3, %v3501_v38, 0 }
 0xbb6   : > { %v4206_v63 = vsub.f32 %v18646_v49, %v23620_v61  ;;  %23623 = vst [vmem:[#allocation112_spill] sm:$0xff] %v18696_v35  ;;  %v4197_v61 = vand.u32 4294901760, %v4196_v8  ;;  %v3689_v8 = vsel %vm2625_vm3, %v3500_v62, 0  ;;  %23630 = vst [vmem:[#allocation116_spill] sm:$0xff] %v18721_v46  ;;  %v18743_v38 = vand.u32 4294901760, %v3692_v18 }
 0xbb7   : > { %23621 = vst [vmem:[#allocation110_spill] sm:$0xff] %v18689_v9  ;;  %23628 = vst [vmem:[#allocation115_spill] sm:$0xff] %v18715_v57  ;;  %v4217_v16 = vand.u32 4294901760, %v4216_v22  ;;  %v18728_v49 = vand.u32 4294901760, %v3689_v8 }
 0xbb8   : > { %14163 = vmatmul.mubr.f32.gmra.mrb[44].mxu1 %v4177_v12  ;;  %v4207_v12 = vand.u32 4294901760, %v4206_v63  ;;  %v3502_v63 = vld [vmem:[#allocation2 + $0x1a0] sm:$0xff]  ;;  %23637 = vst [vmem:[#allocation120_spill] sm:$0xff] %v18743_v38 }
 0xbb9   : > { %14165 = vmatprep.mubr.f32.mxu1 %v4187_v6  ;;  %v23627_v6 = vand.u32 4294901760, %v18668_v3  ;;  %23633 = vst [vmem:[#allocation118_spill] sm:$0xff] %v18728_v49  ;;  %v3695_v22 = vsel %vm2625_vm3, %v3502_v63, 0 }
 0xbbb   : > { %v4226_v43 = vsub.f32 %v18668_v3, %v23627_v6  ;;  %v23629_v6 = vand.u32 4294901760, %v18681_v15  ;;  %v3503_v3 = vld [vmem:[#allocation2 + $0x1a8] sm:$0xff] }
 0xbbc   : > { %14166 = vmatmul.mubr.f32.gmra.mrb[46].mxu1 %v4197_v61  ;;  %v18723_v61 = vand.u32 4294901760, %v3686_v13 }
 0xbbd   : > { %14168 = vmatprep.mubr.f32.mxu1 %v4207_v12  ;;  %v4236_v2 = vsub.f32 %v18681_v15, %v23629_v6  ;;  %v4227_v62 = vand.u32 4294901760, %v4226_v43  ;;  %v23632_v12 = vand.u32 4294901760, %v18689_v9  ;;  %v23634_v6 = vand.u32 4294901760, %v18693_v7 }
 0xbbe   : > { %23631 = vst [vmem:[#allocation117_spill] sm:$0xff] %v18723_v61  ;;  %v23635_v15 = vand.u32 4294901760, %v18696_v35 }
 0xbbf   : > { %v4246_v56 = vsub.f32 %v18689_v9, %v23632_v12  ;;  %v4256_v59 = vsub.f32 %v18693_v7, %v23634_v6  ;;  %v3504_v12 = vld [vmem:[#allocation2 + $0x1b0] sm:$0xff]  ;;  %v4237_v9 = vand.u32 4294901760, %v4236_v2  ;;  %v18748_v6 = vand.u32 4294901760, %v3695_v22 }
 0xbc0   : > { %14169 = vmatmul.mubr.f32.gmra.mrb[48].mxu1 %v4217_v16  ;;  %v4266_v43 = vsub.f32 %v18696_v35, %v23635_v15  ;;  %v18741_v16 = vsub.f32 %v3686_v13, %v18723_v61  ;;  %v3698_v7 = vsel %vm2625_vm3, %v3503_v3, 0  ;;  %v3701_v15 = vsel %vm2625_vm3, %v3504_v12, 0 }
 0xbc1   : > { %14171 = vmatprep.mubr.f32.mxu1 %v4227_v62  ;;  %v4247_v63 = vand.u32 4294901760, %v4246_v56  ;;  %v18746_v62 = vsub.f32 %v3689_v8, %v18728_v49  ;;  %23638 = vst [vmem:[#allocation121_spill] sm:$0xff] %v18748_v6  ;;  %v4257_v2 = vand.u32 4294901760, %v4256_v59  ;;  %v23639_v13 = vand.u32 4294901760, %v18715_v57 }
 0xbc2   : > { %23636 = vst [vmem:[#allocation119_spill] sm:$0xff] %v18741_v16  ;;  %v4267_v32 = vand.u32 4294901760, %v4266_v43  ;;  %v23640_v56 = vand.u32 4294901760, %v18721_v46  ;;  %v22956_v49 = vand.u32 4294901760, %v18741_v16  ;;  %v18760_v61 = vsub.f32 %v3692_v18, %v18743_v38 }
 0xbc3   : > { %v4276_v35 = vsub.f32 %v18715_v57, %v23639_v13  ;;  %v18762_v3 = vand.u32 4294901760, %v3698_v7  ;;  %v18766_v59 = vsub.f32 %v3695_v22, %v18748_v6  ;;  %v18768_v43 = vand.u32 4294901760, %v3701_v15 }
 0xbc4   : > { %14172 = vmatmul.mubr.f32.gmra.mrb[50].mxu1 %v4237_v9  ;;  %v4286_v8 = vsub.f32 %v18721_v46, %v23640_v56  ;;  %v3704_v12 = vsel %vm2625_vm3, %v3505_v37, 0  ;;  %v4296_v13 = vsub.f32 %v18741_v16, %v22956_v49  ;;  %v22957_v18 = vand.u32 4294901760, %v18760_v61 }
 0xbc5   : > { %14174 = vmatprep.mubr.f32.mxu1 %v4247_v63  ;;  %23641 = vst [vmem:[#allocation122_spill] sm:$0xff] %v18762_v3  ;;  %23642 = vst [vmem:[#allocation123_spill] sm:$0xff] %v18768_v43  ;;  %v4277_v63 = vand.u32 4294901760, %v4276_v35  ;;  %v18776_v56 = vsub.f32 %v3698_v7, %v18762_v3  ;;  %v18778_v9 = vand.u32 4294901760, %v3704_v12  ;;  %v23644_v46 = vand.u32 4294901760, %v18746_v62 }
 0xbc6   : > { %v4287_v22 = vand.u32 4294901760, %v4286_v8  ;;  %v22958_v37 = vand.u32 4294901760, %v18766_v59  ;;  %v18785_v35 = vsub.f32 %v3701_v15, %v18768_v43  ;;  %v4316_v7 = vsub.f32 %v18760_v61, %v22957_v18 }
 0xbc7   : > { %23643 = vst [vmem:[#allocation124_spill] sm:$0xff] %v18778_v9  ;;  %v4306_v57 = vsub.f32 %v18746_v62, %v23644_v46  ;;  %v18792_v8 = vsub.f32 %v3704_v12, %v18778_v9 }
 0xbc8   : > { %14175 = vmatmul.mubr.f32.gmra.mrb[52].mxu1 %v4257_v2  ;;  %23645 = vst [vmem:[#allocation125_spill] sm:$0xff] %v18785_v35  ;;  %v22959_v2 = vand.u32 4294901760, %v18776_v56  ;;  %v4326_v46 = vsub.f32 %v18766_v59, %v22958_v37  ;;  %v22963_v15 = vand.u32 4294901760, %v18785_v35 }
 0xbc9   : > { %14177 = vmatprep.mubr.f32.mxu1 %v4267_v32  ;;  %v4297_v32 = vand.u32 4294901760, %v4296_v13  ;;  %23646 = vst [vmem:[#allocation126_spill] sm:$0xff] %v18792_v8  ;;  %v4307_v49 = vand.u32 4294901760, %v4306_v57 }
 0xbca   : > { %v4336_v13 = vsub.f32 %v18776_v56, %v22959_v2  ;;  %v4327_v18 = vand.u32 4294901760, %v4326_v46  ;;  %v4346_v57 = vsub.f32 %v18785_v35, %v22963_v15 }
 0xbcc   : > { %14178 = vmatmul.mubr.f32.gmra.mrb[54].mxu1 %v4277_v63  ;;  %v4317_v63 = vand.u32 4294901760, %v4316_v7  ;;  %v4337_v12 = vand.u32 4294901760, %v4336_v13 }
 0xbcd   : > { %14180 = vmatprep.mubr.f32.mxu1 %v4287_v22  ;;  %v22962_v22 = vand.u32 4294901760, %v18792_v8 }
 0xbd0   : > { %14181 = vmatmul.mubr.f32.gmra.mrb[56].mxu1 %v4297_v32  ;;  %v4356_v32 = vsub.f32 %v18792_v8, %v22962_v22 }
 0xbd1   : > { %14183 = vmatprep.mubr.f32.mxu1 %v4307_v49  ;;  %v4347_v49 = vand.u32 4294901760, %v4346_v57 }
 0xbd2   : > { %v4357_v2 = vand.u32 4294901760, %v4356_v32 }
 0xbd4   : > { %14184 = vmatmul.mubr.f32.gmra.mrb[58].mxu1 %v4317_v63 }
 0xbd5   : > { %14186 = vmatprep.mubr.f32.mxu1 %v4327_v18 }
 0xbd8   : > { %v3359_v7 = vpop.xlane.xlu1 %3358  ;;  %14187 = vmatmul.mubr.f32.gmra.mrb[60].mxu1 %v4337_v12  ;;  %v3356_v37 = vpop.xlane.xlu0 %3355 }
 0xbd9   : > { %vm3379_vm11 = vcmp.eq.f32.partialorder %v18128_v14, %v3359_v7  ;;  %vm3378_vm12 = vcmp.eq.f32.partialorder %v18131_v30, %v3356_v37  ;;  %14189 = vmatprep.mubr.f32.mxu1 %v4347_v49 }
 0xbda   : > { %v3387_v46 = vsel %vm3379_vm11, %v17541_v47, 64.0  ;;  %v3386_v63 = vsel %vm3378_vm12, %v17541_v47, 64.0 }
 0xbdb   : > { %v3397_v18 = vsel %vm2625_vm3, %v3387_v46, inf  ;;  %v3394_v13 = vsel %vm2625_vm3, %v3386_v63, inf }
 0xbdc   : > { %3398 = vmin.xlane.f32.xlu0 %v3397_v18  ;;  %14190 = vmatmul.mubr.f32.gmra.mrb[62].mxu1 %v4357_v2  ;;  %v3362_v57 = vpop.xlane.xlu0 %3361 }
 0xbdd   : > { %3395 = vmin.xlane.f32.xlu1 %v3394_v13  ;;  %vm3380_vm13 = vcmp.eq.f32.partialorder %v18142_v21, %v3362_v57 }
 0xbde   : > { %v3388_v14 = vsel %vm3380_vm13, %v17541_v47, 64.0 }
 0xbdf   : > { %v3400_v30 = vsel %vm2625_vm3, %v3388_v14, inf }
 0xbe0   : > { %v3368_v37 = vpop.xlane.xlu1 %3367  ;;  %v3365_v12 = vpop.xlane.xlu0 %3364 }
 0xbe1   : > { %vm3382_vm14 = vcmp.eq.f32.partialorder %v18156_v1, %v3368_v37  ;;  %3401 = vmin.xlane.f32.xlu1 %v3400_v30  ;;  %vm3381_vm15 = vcmp.eq.f32.partialorder %v18159_v23, %v3365_v12 }
 0xbe2   : > { %v3390_v32 = vsel %vm3382_vm14, %v17541_v47, 64.0  ;;  %v3389_v49 = vsel %vm3381_vm15, %v17541_v47, 64.0 }
 0xbe3   : > { %v3406_v2 = vsel %vm2625_vm3, %v3390_v32, inf  ;;  %v3403_v7 = vsel %vm2625_vm3, %v3389_v49, inf }
 0xbe4   : > { %v3374_v21 = vpop.xlane.xlu1 %3373  ;;  %3404 = vmin.xlane.f32.xlu0 %v3403_v7  ;;  %v3371_v46 = vpop.xlane.xlu0 %3370 }
 0xbe5   : > { %vm3384_vm0 = vcmp.eq.f32.partialorder %v18177_v51, %v3374_v21  ;;  %3407 = vmin.xlane.f32.xlu1 %v3406_v2  ;;  %vm3383_vm1 = vcmp.eq.f32.partialorder %v18180_v54, %v3371_v46 }
 0xbe6   : > { %v3392_v1 = vsel %vm3384_vm0, %v17541_v47, 64.0  ;;  %v3391_v23 = vsel %vm3383_vm1, %v17541_v47, 64.0 }
 0xbe7   : > { %v3412_v63 = vsel %vm2625_vm3, %v3392_v1, inf  ;;  %v3409_v18 = vsel %vm2625_vm3, %v3391_v23, inf }
 0xbe8   : > { %3410 = vmin.xlane.f32.xlu0 %v3409_v18  ;;  %v3377_v13 = vpop.xlane.xlu0 %3376 }
 0xbe9   : > { %3413 = vmin.xlane.f32.xlu1 %v3412_v63  ;;  %vm3385_vm2 = vcmp.eq.f32.partialorder %v18194_v50, %v3377_v13 }
 0xbea   : > { %v3393_v57 = vsel %vm3385_vm2, %v17541_v47, 64.0 }
 0xbeb   : > { %v3415_v51 = vsel %vm2625_vm3, %v3393_v57, inf }
 0xbec   : > { %3416 = vmin.xlane.f32.xlu0 %v3415_v51 }
 0xc69   : > { %v3399_v14 = vpop.xlane.xlu0 %3398 }
 0xc6a   : > { %vm3419_vm4 = vcmp.eq.f32.partialorder %v17541_v47, %v3399_v14  ;;  %v3396_v54 = vpop.xlane.xlu1 %3395 }
 0xc6b   : > { %v12648_v30 = vsel %vm3419_vm4, 1.0, %v23474_v60  ;;  %vm3418_vm5 = vcmp.eq.f32.partialorder %v17541_v47, %v3396_v54 }
 0xc6c   : > { %3443 = vst.msk [vmem:[#allocation2 + $0x1c8] sm:$0xff] %vm2625_vm3, %v12648_v30  ;;  %v12647_v37 = vsel %vm3418_vm5, 1.0, %v23474_v60 }
 0xc6d   : > { %3442 = vst.msk [vmem:[#allocation2 + $0x1c0] sm:$0xff] %vm2625_vm3, %v12647_v37 }
 0xc6e   : > { %v3402_v50 = vpop.xlane.xlu1 %3401 }
 0xc6f   : > { %vm3420_vm6 = vcmp.eq.f32.partialorder %v17541_v47, %v3402_v50 }
 0xc70   : > { %v12649_v12 = vsel %vm3420_vm6, 1.0, %v23474_v60 }
 0xc71   : > { %3444 = vst.msk [vmem:[#allocation2 + $0x1d0] sm:$0xff] %vm2625_vm3, %v12649_v12  ;;  %v3405_v32 = vpop.xlane.xlu0 %3404 }
 0xc72   : > { %v3408_v49 = vpop.xlane.xlu1 %3407  ;;  %vm3421_vm7 = vcmp.eq.f32.partialorder %v17541_v47, %v3405_v32 }
 0xc73   : > { %vm3422_vm8 = vcmp.eq.f32.partialorder %v17541_v47, %v3408_v49  ;;  %v12650_v2 = vsel %vm3421_vm7, 1.0, %v23474_v60  ;;  %v3507_v7 = vld [vmem:[#allocation2 + $0x1c8] sm:$0xff] }
 0xc74   : > { %v12651_v21 = vsel %vm3422_vm8, 1.0, %v23474_v60  ;;  %3445 = vst.msk [vmem:[#allocation2 + $0x1d8] sm:$0xff] %vm2625_vm3, %v12650_v2  ;;  %v3506_v46 = vld [vmem:[#allocation2 + $0x1c0] sm:$0xff]  ;;  %v3710_v1 = vsel %vm2625_vm3, %v3507_v7, 0 }
 0xc75   : > { %3446 = vst.msk [vmem:[#allocation2 + $0x1e0] sm:$0xff] %vm2625_vm3, %v12651_v21  ;;  %v3411_v23 = vpop.xlane.xlu0 %3410  ;;  %v3707_v63 = vsel %vm2625_vm3, %v3506_v46, 0  ;;  %v18849_v18 = vand.u32 4294901760, %v3710_v1 }
 0xc76   : > { %v3414_v13 = vpop.xlane.xlu1 %3413  ;;  %vm3423_vm9 = vcmp.eq.f32.partialorder %v17541_v47, %v3411_v23  ;;  %v18852_v57 = vand.u32 4294901760, %v3707_v63 }
 0xc77   : > { %23647 = vst [vmem:[#allocation127_spill] sm:$0xff] %v18849_v18  ;;  %vm3424_vm10 = vcmp.eq.f32.partialorder %v17541_v47, %v3414_v13  ;;  %v12652_v51 = vsel %vm3423_vm9, 1.0, %v23474_v60  ;;  %v18857_v14 = vsub.f32 %v3710_v1, %v18849_v18 }
 0xc78   : > { %23648 = vst [vmem:[#allocation128_spill] sm:$0xff] %v18852_v57  ;;  %v12653_v54 = vsel %vm3424_vm10, 1.0, %v23474_v60  ;;  %3447 = vst.msk [vmem:[#allocation2 + $0x1e8] sm:$0xff] %vm2625_vm3, %v12652_v51  ;;  %v18862_v30 = vsub.f32 %v3707_v63, %v18852_v57  ;;  %v3508_v37 = vld [vmem:[#allocation2 + $0x1d0] sm:$0xff] }
 0xc79   : > { %23649 = vst [vmem:[#allocation129_spill] sm:$0xff] %v18857_v14  ;;  %3448 = vst.msk [vmem:[#allocation2 + $0x1f0] sm:$0xff] %vm2625_vm3, %v12653_v54  ;;  %v3417_v50 = vpop.xlane.xlu0 %3416  ;;  %v22960_v12 = vand.u32 4294901760, %v18857_v14  ;;  %v3713_v32 = vsel %vm2625_vm3, %v3508_v37, 0 }
 0xc7a   : > { %23650 = vst [vmem:[#allocation130_spill] sm:$0xff] %v18862_v30  ;;  %vm3425_vm11 = vcmp.eq.f32.partialorder %v17541_v47, %v3417_v50  ;;  %v22961_v49 = vand.u32 4294901760, %v18862_v30  ;;  %v18869_v2 = vand.u32 4294901760, %v3713_v32 }
 0xc7b   : > { %v12654_v7 = vsel %vm3425_vm11, 1.0, %v23474_v60  ;;  %v4376_v21 = vsub.f32 %v18857_v14, %v22960_v12  ;;  %v3509_v46 = vld [vmem:[#allocation2 + $0x1d8] sm:$0xff] }
 0xc7c   : > { %23651 = vst [vmem:[#allocation131_spill] sm:$0xff] %v18869_v2  ;;  %3449 = vst.msk [vmem:[#allocation2 + $0x1f8] sm:$0xff] %vm2625_vm3, %v12654_v7  ;;  %v4366_v1 = vsub.f32 %v18862_v30, %v22961_v49  ;;  %v18880_v23 = vsub.f32 %v3713_v32, %v18869_v2  ;;  %v3716_v47 = vsel %vm2625_vm3, %v3509_v46, 0  ;;  %v3510_v63 = vld [vmem:[#allocation2 + $0x1e0] sm:$0xff] }
 0xc7d   : > { %v18883_v13 = vand.u32 4294901760, %v3716_v47  ;;  %v3719_v60 = vsel %vm2625_vm3, %v3510_v63, 0  ;;  %v4377_v50 = vand.u32 4294901760, %v4376_v21 }
 0xc7e   : > { %23652 = vst [vmem:[#allocation132_spill] sm:$0xff] %v18880_v23  ;;  %v4367_v51 = vand.u32 4294901760, %v4366_v1  ;;  %v22964_v54 = vand.u32 4294901760, %v18880_v23  ;;  %v18887_v37 = vand.u32 4294901760, %v3719_v60 }
 0xc7f   : > { %23653 = vst [vmem:[#allocation133_spill] sm:$0xff] %v18883_v13  ;;  %v18890_v7 = vsub.f32 %v3716_v47, %v18883_v13  ;;  %v3511_v12 = vld [vmem:[#allocation2 + $0x1e8] sm:$0xff] }
 0xc80   : > { %23654 = vst [vmem:[#allocation134_spill] sm:$0xff] %v18887_v37  ;;  %14192 = vmatprep.mubr.f32.mxu1 %v4367_v51  ;;  %v4386_v32 = vsub.f32 %v18880_v23, %v22964_v54  ;;  %v18896_v46 = vsub.f32 %v3719_v60, %v18887_v37  ;;  %v3722_v63 = vsel %vm2625_vm3, %v3511_v12, 0  ;;  %v3512_v1 = vld [vmem:[#allocation2 + $0x1f0] sm:$0xff] }
 0xc81   : > { %14193 = vmatmul.mubr.f32.gmra.mrb[64].mxu1 %v4377_v50  ;;  %v22971_v49 = vand.u32 4294901760, %v18890_v7  ;;  %v18900_v22 = vand.u32 4294901760, %v3722_v63  ;;  %v3725_v21 = vsel %vm2625_vm3, %v3512_v1, 0 }
 0xc82   : > { %23655 = vst [vmem:[#allocation135_spill] sm:$0xff] %v18896_v46  ;;  %v4387_v47 = vand.u32 4294901760, %v4386_v32  ;;  %v22972_v51 = vand.u32 4294901760, %v18896_v46  ;;  %v18904_v15 = vand.u32 4294901760, %v3725_v21 }
 0xc83   : > { %23656 = vst [vmem:[#allocation136_spill] sm:$0xff] %v18900_v22  ;;  %v4396_v60 = vsub.f32 %v18890_v7, %v22971_v49  ;;  %v18910_v54 = vsub.f32 %v3722_v63, %v18900_v22  ;;  %v3513_v12 = vld [vmem:[#allocation2 + $0x1f8] sm:$0xff] }
 0xc84   : > { %23657 = vst [vmem:[#allocation137_spill] sm:$0xff] %v18904_v15  ;;  %14195 = vmatprep.mubr.f32.mxu1 %v4387_v47  ;;  %v4406_v50 = vsub.f32 %v18896_v46, %v22972_v51  ;;  %v18916_v1 = vsub.f32 %v3725_v21, %v18904_v15  ;;  %v3728_v32 = vsel %vm2625_vm3, %v3513_v12, 0  ;;  %vm6978_vm3 = vcmask 261120  }
 0xc85   : > { %v4397_v23 = vand.u32 4294901760, %v4396_v60  ;;  %v22977_v14 = vand.u32 4294901760, %v18910_v54  ;;  %v18920_v30 = vand.u32 4294901760, %v3728_v32 }
 0xc86   : > { %23658 = vst [vmem:[#allocation138_spill] sm:$0xff] %v18916_v1  ;;  %v4407_v49 = vand.u32 4294901760, %v4406_v50  ;;  %v22976_v63 = vand.u32 4294901760, %v18916_v1 }
 0xc87   : > { %23659 = vst [vmem:[#allocation139_spill] sm:$0xff] %v18920_v30  ;;  %14196 = vmatmul.mubr.f32.gmra.mrb[66].mxu1 %v4397_v23  ;;  %v4416_v47 = vsub.f32 %v18910_v54, %v22977_v14  ;;  %v18927_v51 = vsub.f32 %v3728_v32, %v18920_v30  ;;  %v23667_v32 = vld [vmem:[#allocation74_spill] sm:$0xff]  ;;  %v23675_v14 = vld [vmem:[#allocation92_spill] sm:$0xff] }
 0xc88   : > { %14198 = vmatprep.mubr.f32.mxu1 %v4407_v49  ;;  %v4426_v21 = vsub.f32 %v18916_v1, %v22976_v63  ;;  %v23665_v49 = vld [vmem:[#allocation70_spill] sm:$0xff] }
 0xc89   : > { %23660 = vst [vmem:[#allocation140_spill] sm:$0xff] %v18927_v51  ;;  %v4417_v60 = vand.u32 4294901760, %v4416_v47  ;;  %v22975_v12 = vand.u32 4294901760, %v18927_v51  ;;  %v23668_v47 = vld [vmem:[#allocation76_spill] sm:$0xff]  ;;  %v23674_v63 = vld [vmem:[#allocation90_spill] sm:$0xff] }
 0xc8a   : > { %v4427_v46 = vand.u32 4294901760, %v4426_v21  ;;  %v23669_v21 = vld [vmem:[#allocation78_spill] sm:$0xff] }
 0xc8b   : > { %14199 = vmatmul.mubr.f32.gmra.mrb[68].mxu1 %v4417_v60  ;;  %v4436_v23 = vsub.f32 %v18927_v51, %v22975_v12  ;;  %v23670_v60 = vld [vmem:[#allocation80_spill] sm:$0xff]  ;;  %v23673_v12 = vld [vmem:[#allocation87_spill] sm:$0xff] }
 0xc8c   : > { %14201 = vmatprep.mubr.f32.mxu1 %v4427_v46  ;;  %v23666_v46 = vld [vmem:[#allocation72_spill] sm:$0xff] }
 0xc8d   : > { %v4437_v50 = vand.u32 4294901760, %v4436_v23  ;;  %v23671_v23 = vld [vmem:[#allocation84_spill] sm:$0xff] }
 0xc8f   : > { %14202 = vmatmul.mubr.f32.gmra.mrb[70].mxu1 %v4437_v50  ;;  %v23672_v50 = vld [vmem:[#allocation85_spill] sm:$0xff] }
 0xc90   : > { %14220 = vmatprep.mubr.f32.mxu1 %v17608_v24  ;;  %v23745_v24 = vld [vmem:[#allocation129_spill] sm:$0xff] }
 0xc93   : > { %14221 = vmatmul.mubr.f32.vlgmr.msra.gmra.mrb[8].mxu1 %v18150_v4  ;;  %v23744_v4 = vld [vmem:[#allocation130_spill] sm:$0xff] }
 0xc94   : > { %15615 = vmatpush3.bf16.msra.mxu1 %v18388_v39  ;;  %14223 = vmatprep.mubr.f32.mxu1 %v18172_v28  ;;  %v23664_v39 = vld [vmem:[#allocation68_spill] sm:$0xff] }
 0xc95   : > { %15617 = vmatprep.subr.bf16.mxu1 %v18292_v36  ;;  %v23743_v28 = vld [vmem:[#allocation116_spill] sm:$0xff] }
 0xc97   : > { %14224 = vmatmul.mubr.f32.gmra.mrb[10].mxu1 %v18199_v53  ;;  %v23741_v53 = vld [vmem:[#allocation112_spill] sm:$0xff] }
 0xc98   : > { %15619 = vmatpush3.bf16.msra.mxu1 %v18292_v36  ;;  %14226 = vmatprep.mubr.f32.mxu1 %v18205_v17  ;;  %v23662_v36 = vld [vmem:[#allocation64_spill] sm:$0xff]  ;;  %v23740_v17 = vld [vmem:[#allocation111_spill] sm:$0xff] }
 0xc99   : > { %15621 = vmatprep.subr.bf16.mxu1 %v18298_v34 }
 0xc9b   : > { %14227 = vmatmul.mubr.f32.gmra.mrb[12].mxu1 %v18242_v58  ;;  %v23738_v58 = vld [vmem:[#allocation109_spill] sm:$0xff] }
 0xc9c   : > { %15623 = vmatpush3.bf16.msra.mxu1 %v18298_v34  ;;  %14229 = vmatprep.mubr.f32.mxu1 %v18244_v48  ;;  %v23661_v34 = vld [vmem:[#allocation62_spill] sm:$0xff]  ;;  %v23737_v48 = vld [vmem:[#allocation105_spill] sm:$0xff] }
 0xc9d   : > { %15625 = vmatprep.subr.bf16.mxu1 %v18300_v29 }
 0xc9f   : > { %14230 = vmatmul.mubr.f32.gmra.mrb[14].mxu1 %v18288_v26  ;;  %v23735_v26 = vld [vmem:[#allocation101_spill] sm:$0xff] }
 0xca0   : > { %15627 = vmatpush3.bf16.msra.mxu1 %v18300_v29  ;;  %14232 = vmatprep.mubr.f32.mxu1 %v18296_v42  ;;  %v23663_v29 = vld [vmem:[#allocation65_spill] sm:$0xff]  ;;  %v23734_v42 = vld [vmem:[#allocation99_spill] sm:$0xff] }
 0xca1   : > { %15629 = vmatprep.subr.bf16.mxu1 %v18220_v55 }
 0xca3   : > { %14233 = vmatmul.mubr.f32.gmra.mrb[16].mxu1 %v18304_v19  ;;  %v23733_v19 = vld [vmem:[#allocation96_spill] sm:$0xff] }
 0xca4   : > { %14235 = vmatprep.mubr.f32.mxu1 %v18320_v27  ;;  %v23732_v27 = vld [vmem:[#allocation95_spill] sm:$0xff] }
 0xca7   : > { %14236 = vmatmul.mubr.f32.gmra.mrb[18].mxu1 %v18332_v52  ;;  %v23731_v52 = vld [vmem:[#allocation94_spill] sm:$0xff] }
 0xca8   : > { %14238 = vmatprep.mubr.f32.mxu1 %v18344_v45  ;;  %v23730_v45 = vld [vmem:[#allocation91_spill] sm:$0xff] }
 0xcab   : > { %14239 = vmatmul.mubr.f32.gmra.mrb[20].mxu1 %v18351_v33  ;;  %v23729_v33 = vld [vmem:[#allocation89_spill] sm:$0xff] }
 0xcac   : > { %14241 = vmatprep.mubr.f32.mxu1 %v18356_v5  ;;  %v23728_v5 = vld [vmem:[#allocation88_spill] sm:$0xff] }
 0xcaf   : > { %14242 = vmatmul.mubr.f32.gmra.mrb[22].mxu1 %v18374_v11  ;;  %v23727_v11 = vld [vmem:[#allocation86_spill] sm:$0xff] }
 0xcb0   : > { %14244 = vmatprep.mubr.f32.mxu1 %v18379_v44  ;;  %v23726_v44 = vld [vmem:[#allocation83_spill] sm:$0xff] }
 0xcb3   : > { %14245 = vmatmul.mubr.f32.gmra.mrb[24].mxu1 %v18403_v10  ;;  %v23725_v10 = vld [vmem:[#allocation81_spill] sm:$0xff] }
 0xcb4   : > { %14247 = vmatprep.mubr.f32.mxu1 %v18409_v40  ;;  %v23724_v40 = vld [vmem:[#allocation79_spill] sm:$0xff] }
 0xcb7   : > { %14248 = vmatmul.mubr.f32.gmra.mrb[26].mxu1 %v18416_v25  ;;  %v23723_v25 = vld [vmem:[#allocation77_spill] sm:$0xff] }
 0xcb8   : > { %14250 = vmatprep.mubr.f32.mxu1 %v18429_v20  ;;  %v23722_v20 = vld [vmem:[#allocation75_spill] sm:$0xff] }
 0xcbb   : > { %14251 = vmatmul.mubr.f32.gmra.mrb[28].mxu1 %v18431_v31  ;;  %v23721_v31 = vld [vmem:[#allocation73_spill] sm:$0xff] }
 0xcbc   : > { %14253 = vmatprep.mubr.f32.mxu1 %v23661_v34  ;;  %v23720_v34 = vld [vmem:[#allocation71_spill] sm:$0xff] }
 0xcbf   : > { %14254 = vmatmul.mubr.f32.gmra.mrb[30].mxu1 %v23662_v36  ;;  %v23719_v36 = vld [vmem:[#allocation69_spill] sm:$0xff] }
 0xcc0   : > { %14256 = vmatprep.mubr.f32.mxu1 %v23663_v29  ;;  %v23718_v29 = vld [vmem:[#allocation67_spill] sm:$0xff] }
 0xcc3   : > { %14257 = vmatmul.mubr.f32.gmra.mrb[32].mxu1 %v23664_v39  ;;  %v23717_v39 = vld [vmem:[#allocation66_spill] sm:$0xff] }
 0xcc4   : > { %14259 = vmatprep.mubr.f32.mxu1 %v23665_v49  ;;  %v23716_v49 = vld [vmem:[#allocation63_spill] sm:$0xff] }
 0xcc7   : > { %14260 = vmatmul.mubr.f32.gmra.mrb[34].mxu1 %v23666_v46  ;;  %v23676_v46 = vld [vmem:[#allocation93_spill] sm:$0xff] }
 0xcc8   : > { %14262 = vmatprep.mubr.f32.mxu1 %v23667_v32  ;;  %v23677_v32 = vld [vmem:[#allocation97_spill] sm:$0xff] }
 0xccb   : > { %14263 = vmatmul.mubr.f32.gmra.mrb[36].mxu1 %v23668_v47  ;;  %v23678_v47 = vld [vmem:[#allocation98_spill] sm:$0xff] }
 0xccc   : > { %14265 = vmatprep.mubr.f32.mxu1 %v23669_v21  ;;  %v23679_v21 = vld [vmem:[#allocation100_spill] sm:$0xff] }
 0xccf   : > { %14266 = vmatmul.mubr.f32.gmra.mrb[38].mxu1 %v23670_v60  ;;  %v23680_v60 = vld [vmem:[#allocation102_spill] sm:$0xff] }
 0xcd0   : > { %14268 = vmatprep.mubr.f32.mxu1 %v18548_v41  ;;  %v23715_v41 = vld [vmem:[#allocation61_spill] sm:$0xff] }
 0xcd3   : > { %14269 = vmatmul.mubr.f32.gmra.mrb[40].mxu1 %v23671_v23  ;;  %v23681_v23 = vld [vmem:[#allocation106_spill] sm:$0xff] }
 0xcd4   : > { %14271 = vmatprep.mubr.f32.mxu1 %v23672_v50  ;;  %v23682_v50 = vld [vmem:[#allocation107_spill] sm:$0xff] }
 0xcd7   : > { %14272 = vmatmul.mubr.f32.gmra.mrb[42].mxu1 %v23673_v12  ;;  %v23683_v12 = vld [vmem:[#allocation108_spill] sm:$0xff] }
 0xcd8   : > { %14274 = vmatprep.mubr.f32.mxu1 %v23674_v63  ;;  %v23684_v63 = vld [vmem:[#allocation113_spill] sm:$0xff] }
 0xcdb   : > { %14275 = vmatmul.mubr.f32.gmra.mrb[44].mxu1 %v23675_v14  ;;  %v23685_v14 = vld [vmem:[#allocation114_spill] sm:$0xff] }
 0xcdc   : > { %14277 = vmatprep.mubr.f32.mxu1 %v23676_v46  ;;  %v23686_v46 = vld [vmem:[#allocation117_spill] sm:$0xff] }
 0xcdf   : > { %14278 = vmatmul.mubr.f32.gmra.mrb[46].mxu1 %v23677_v32  ;;  %v23687_v32 = vld [vmem:[#allocation118_spill] sm:$0xff] }
 0xce0   : > { %14280 = vmatprep.mubr.f32.mxu1 %v23678_v47  ;;  %v23714_v47 = vld [vmem:[#allocation60_spill] sm:$0xff] }
 0xce3   : > { %14281 = vmatmul.mubr.f32.gmra.mrb[48].mxu1 %v23679_v21  ;;  %v23709_v21 = vld [vmem:[#allocation49_spill] sm:$0xff] }
 0xce4   : > { %14283 = vmatprep.mubr.f32.mxu1 %v23680_v60  ;;  %v23708_v60 = vld [vmem:[#allocation47_spill] sm:$0xff] }
 0xce7   : > { %14284 = vmatmul.mubr.f32.gmra.mrb[50].mxu1 %v18662_v0  ;;  %v23707_v0 = vld [vmem:[#allocation46_spill] sm:$0xff] }
 0xce8   : > { %14286 = vmatprep.mubr.f32.mxu1 %v23681_v23  ;;  %v23706_v23 = vld [vmem:[#allocation43_spill] sm:$0xff] }
 0xceb   : > { %14287 = vmatmul.mubr.f32.gmra.mrb[52].mxu1 %v23682_v50  ;;  %v23705_v50 = vld [vmem:[#allocation41_spill] sm:$0xff] }
 0xcec   : > { %14289 = vmatprep.mubr.f32.mxu1 %v23683_v12  ;;  %v23704_v12 = vld [vmem:[#allocation39_spill] sm:$0xff] }
 0xcef   : > { %14290 = vmatmul.mubr.f32.gmra.mrb[54].mxu1 %v23684_v63  ;;  %v23703_v63 = vld [vmem:[#allocation37_spill] sm:$0xff] }
 0xcf0   : > { %14292 = vmatprep.mubr.f32.mxu1 %v23685_v14 }
 0xcf3   : > { %14293 = vmatmul.mubr.f32.gmra.mrb[56].mxu1 %v23686_v46 }
 0xcf4   : > { %14295 = vmatprep.mubr.f32.mxu1 %v23687_v32  ;;  %v23701_v32 = vld [vmem:[#allocation17_spill] sm:$0xff] }
 0xcf5   : > { %v23702_v46 = vand.u32 4294901760, %v23701_v32  ;;  %v23713_v32 = vld [vmem:[#allocation57_spill] sm:$0xff] }
 0xcf7   : > { %14296 = vmatmul.mubr.f32.gmra.mrb[58].mxu1 %v18743_v38 }
 0xcf8   : > { %14298 = vmatprep.mubr.f32.mxu1 %v18748_v6  ;;  %v23699_v6 = vld [vmem:[#allocation15_spill] sm:$0xff] }
 0xcf9   : > { %v23700_v38 = vand.u32 4294901760, %v23699_v6  ;;  %v23710_v6 = vld [vmem:[#allocation51_spill] sm:$0xff] }
 0xcfb   : > { %14299 = vmatmul.mubr.f32.gmra.mrb[60].mxu1 %v18762_v3  ;;  %v23688_v3 = vld [vmem:[#allocation20_spill] sm:$0xff]  ;;  %v15644_v14 = vpack.c.bf16 %v23702_v46, %v23700_v38 }
 0xcfc   : > { %14301 = vmatprep.mubr.f32.mxu1 %v18768_v43  ;;  %v23689_v43 = vld [vmem:[#allocation6_spill] sm:$0xff]  ;;  %v23711_v38 = vld [vmem:[#allocation52_spill] sm:$0xff] }
 0xcfd   : > { %v23712_v46 = vld [vmem:[#allocation56_spill] sm:$0xff] }
 0xcff   : > { %14302 = vmatmul.mubr.f32.gmra.mrb[62].mxu1 %v18778_v9  ;;  %v23698_v9 = vld [vmem:[#allocation35_spill] sm:$0xff] }
 0xd00   : > { %14304 = vmatprep.mubr.f32.mxu1 %v18852_v57  ;;  %v23690_v57 = vld [vmem:[#allocation12_spill] sm:$0xff] }
 0xd03   : > { %14305 = vmatmul.mubr.f32.gmra.mrb[64].mxu1 %v18849_v18  ;;  %v23691_v18 = vld [vmem:[#allocation23_spill] sm:$0xff] }
 0xd04   : > { %14307 = vmatprep.mubr.f32.mxu1 %v18869_v2  ;;  %v23692_v2 = vld [vmem:[#allocation18_spill] sm:$0xff] }
 0xd07   : > { %14308 = vmatmul.mubr.f32.gmra.mrb[66].mxu1 %v18883_v13  ;;  %v23697_v13 = vld [vmem:[#allocation29_spill] sm:$0xff] }
 0xd08   : > { %14310 = vmatprep.mubr.f32.mxu1 %v18887_v37  ;;  %v23693_v37 = vld [vmem:[#allocation22_spill] sm:$0xff] }
 0xd0b   : > { %14311 = vmatmul.mubr.f32.gmra.mrb[68].mxu1 %v18900_v22  ;;  %v23694_v22 = vld [vmem:[#allocation26_spill] sm:$0xff] }
 0xd0c   : > { %14313 = vmatprep.mubr.f32.mxu1 %v18904_v15  ;;  %v23695_v15 = vld [vmem:[#allocation27_spill] sm:$0xff] }
 0xd0f   : > { %14314 = vmatmul.mubr.f32.gmra.mrb[70].mxu1 %v18920_v30  ;;  %v23696_v30 = vld [vmem:[#allocation28_spill] sm:$0xff] }
 0xd10   : > { %14332 = vmatprep.mubr.f32.mxu1 %v23688_v3 }
 0xd13   : > { %14333 = vmatmul.mubr.f32.vlgmr.msra.gmra.mrb[8].mxu1 %v23689_v43 }
 0xd14   : > { %15631 = vmatpush3.bf16.msra.mxu1 %v18220_v55  ;;  %14335 = vmatprep.mubr.f32.mxu1 %v23690_v57 }
 0xd15   : > { %15633 = vmatprep.subr.bf16.mxu1 %v23691_v18 }
 0xd17   : > { %14336 = vmatmul.mubr.f32.gmra.mrb[10].mxu1 %v23692_v2 }
 0xd18   : > { %15635 = vmatpush3.bf16.msra.mxu1 %v23691_v18  ;;  %14338 = vmatprep.mubr.f32.mxu1 %v23693_v37  ;;  %v23742_v18 = vld [vmem:[#allocation115_spill] sm:$0xff] }
 0xd19   : > { %15637 = vmatprep.subr.bf16.mxu1 %v23694_v22 }
 0xd1b   : > { %14339 = vmatmul.mubr.f32.gmra.mrb[12].mxu1 %v23695_v15 }
 0xd1c   : > { %15639 = vmatpush3.bf16.msra.mxu1 %v23694_v22  ;;  %14341 = vmatprep.mubr.f32.mxu1 %v23696_v30  ;;  %v23739_v22 = vld [vmem:[#allocation110_spill] sm:$0xff] }
 0xd1d   : > { %15641 = vmatprep.subr.bf16.mxu1 %v23697_v13 }
 0xd1f   : > { %14342 = vmatmul.mubr.f32.gmra.mrb[14].mxu1 %v23698_v9 }
 0xd20   : > { %15643 = vmatpush3.bf16.msra.mxu1 %v23697_v13  ;;  %14344 = vmatprep.mubr.f32.mxu1 %v23703_v63  ;;  %v23736_v13 = vld [vmem:[#allocation103_spill] sm:$0xff] }
 0xd21   : > { %15645 = vmatprep.subr.bf16.mxu1 %v15644_v14 }
 0xd23   : > { %14345 = vmatmul.mubr.f32.gmra.mrb[16].mxu1 %v23704_v12 }
 0xd24   : > { %14347 = vmatprep.mubr.f32.mxu1 %v23705_v50 }
 0xd27   : > { %14348 = vmatmul.mubr.f32.gmra.mrb[18].mxu1 %v23706_v23 }
 0xd28   : > { %14350 = vmatprep.mubr.f32.mxu1 %v23707_v0 }
 0xd2b   : > { %14351 = vmatmul.mubr.f32.gmra.mrb[20].mxu1 %v23708_v60 }
 0xd2c   : > { %14353 = vmatprep.mubr.f32.mxu1 %v23709_v21 }
 0xd2f   : > { %14354 = vmatmul.mubr.f32.gmra.mrb[22].mxu1 %v23710_v6 }
 0xd30   : > { %14356 = vmatprep.mubr.f32.mxu1 %v23711_v38 }
 0xd33   : > { %14357 = vmatmul.mubr.f32.gmra.mrb[24].mxu1 %v23712_v46 }
 0xd34   : > { %14359 = vmatprep.mubr.f32.mxu1 %v23713_v32 }
 0xd37   : > { %14360 = vmatmul.mubr.f32.gmra.mrb[26].mxu1 %v23714_v47 }
 0xd38   : > { %14362 = vmatprep.mubr.f32.mxu1 %v23715_v41 }
 0xd3b   : > { %14363 = vmatmul.mubr.f32.gmra.mrb[28].mxu1 %v23716_v49 }
 0xd3c   : > { %14365 = vmatprep.mubr.f32.mxu1 %v23717_v39 }
 0xd3f   : > { %14366 = vmatmul.mubr.f32.gmra.mrb[30].mxu1 %v23718_v29 }
 0xd40   : > { %14368 = vmatprep.mubr.f32.mxu1 %v23719_v36 }
 0xd43   : > { %14369 = vmatmul.mubr.f32.gmra.mrb[32].mxu1 %v23720_v34 }
 0xd44   : > { %14371 = vmatprep.mubr.f32.mxu1 %v23721_v31 }
 0xd47   : > { %14372 = vmatmul.mubr.f32.gmra.mrb[34].mxu1 %v23722_v20 }
 0xd48   : > { %14374 = vmatprep.mubr.f32.mxu1 %v23723_v25 }
 0xd4b   : > { %14375 = vmatmul.mubr.f32.gmra.mrb[36].mxu1 %v23724_v40 }
 0xd4c   : > { %14377 = vmatprep.mubr.f32.mxu1 %v23725_v10 }
 0xd4f   : > { %14378 = vmatmul.mubr.f32.gmra.mrb[38].mxu1 %v23726_v44 }
 0xd50   : > { %14380 = vmatprep.mubr.f32.mxu1 %v23727_v11 }
 0xd53   : > { %14381 = vmatmul.mubr.f32.gmra.mrb[40].mxu1 %v23728_v5 }
 0xd54   : > { %14383 = vmatprep.mubr.f32.mxu1 %v23729_v33 }
 0xd57   : > { %14384 = vmatmul.mubr.f32.gmra.mrb[42].mxu1 %v23730_v45 }
 0xd58   : > { %14386 = vmatprep.mubr.f32.mxu1 %v23731_v52 }
 0xd5b   : > { %14387 = vmatmul.mubr.f32.gmra.mrb[44].mxu1 %v23732_v27 }
 0xd5c   : > { %14389 = vmatprep.mubr.f32.mxu1 %v23733_v19 }
 0xd5f   : > { %14390 = vmatmul.mubr.f32.gmra.mrb[46].mxu1 %v23734_v42 }
 0xd60   : > { %14392 = vmatprep.mubr.f32.mxu1 %v23735_v26 }
 0xd63   : > { %14393 = vmatmul.mubr.f32.gmra.mrb[48].mxu1 %v23736_v13 }
 0xd64   : > { %14395 = vmatprep.mubr.f32.mxu1 %v23737_v48 }
 0xd67   : > { %14396 = vmatmul.mubr.f32.gmra.mrb[50].mxu1 %v23738_v58 }
 0xd68   : > { %14398 = vmatprep.mubr.f32.mxu1 %v23739_v22 }
 0xd6b   : > { %14399 = vmatmul.mubr.f32.gmra.mrb[52].mxu1 %v23740_v17 }
 0xd6c   : > { %14401 = vmatprep.mubr.f32.mxu1 %v23741_v53 }
 0xd6f   : > { %14402 = vmatmul.mubr.f32.gmra.mrb[54].mxu1 %v23742_v18  ;;  %v23746_v18 = vld [vmem:[#allocation132_spill] sm:$0xff] }
 0xd70   : > { %14404 = vmatprep.mubr.f32.mxu1 %v23743_v28 }
 0xd73   : > { %14405 = vmatmul.mubr.f32.gmra.mrb[56].mxu1 %v18741_v16  ;;  %v23747_v16 = vld [vmem:[#allocation135_spill] sm:$0xff] }
 0xd74   : > { %14407 = vmatprep.mubr.f32.mxu1 %v18746_v62 }
 0xd77   : > { %14408 = vmatmul.mubr.f32.gmra.mrb[58].mxu1 %v18760_v61 }
 0xd78   : > { %14410 = vmatprep.mubr.f32.mxu1 %v18766_v59 }
 0xd7b   : > { %14411 = vmatmul.mubr.f32.gmra.mrb[60].mxu1 %v18776_v56 }
 0xd7c   : > { %14413 = vmatprep.mubr.f32.mxu1 %v18785_v35  ;;  %v23748_v35 = vand.u32 4294901760, %v23688_v3  ;;  %v23755_v3 = vand.u32 4294901760, %v23695_v15  ;;  %v23761_v15 = vand.u32 4294901760, %v23705_v50 }
 0xd7f   : > { %14414 = vmatmul.mubr.f32.gmra.mrb[62].mxu1 %v18792_v8  ;;  %v23749_v8 = vand.u32 4294901760, %v23689_v43  ;;  %v23756_v43 = vand.u32 4294901760, %v23696_v30  ;;  %v23766_v30 = vand.u32 4294901760, %v23710_v6 }
 0xd80   : > { %14416 = vmatprep.mubr.f32.mxu1 %v23744_v4 }
 0xd83   : > { %14417 = vmatmul.mubr.f32.gmra.mrb[64].mxu1 %v23745_v24  ;;  %v23750_v24 = vand.u32 4294901760, %v23690_v57  ;;  %v23763_v57 = vand.u32 4294901760, %v23707_v0  ;;  %v23770_v0 = vand.u32 4294901760, %v23714_v47  ;;  %v23777_v47 = vand.u32 4294901760, %v23721_v31 }
 0xd84   : > { %14419 = vmatprep.mubr.f32.mxu1 %v23746_v18  ;;  %v23751_v18 = vld [vmem:[#allocation33_spill] sm:$0xff]  ;;  %v23784_v31 = vand.u32 4294901760, %v23728_v5  ;;  %v23791_v5 = vand.u32 4294901760, %v23735_v26  ;;  %v23798_v26 = vld [vmem:[#allocation115_spill] sm:$0xff] }
 0xd85   : > { %v23799_v50 = vand.u32 4294901760, %v23798_v26  ;;  %v23862_v26 = vld [vmem:[#allocation87_spill] sm:$0xff] }
 0xd87   : > { %14420 = vmatmul.mubr.f32.gmra.mrb[66].mxu1 %v18890_v7 }
 0xd88   : > { %14422 = vmatprep.mubr.f32.mxu1 %v23747_v16  ;;  %v23752_v16 = vand.u32 4294901760, %v23692_v2  ;;  %v23767_v2 = vand.u32 4294901760, %v23711_v38  ;;  %v23807_v38 = vld [vmem:[#allocation125_spill] sm:$0xff] }
 0xd8b   : > { %14423 = vmatmul.mubr.f32.gmra.mrb[68].mxu1 %v18910_v54 }
 0xd8c   : > { %14425 = vmatprep.mubr.f32.mxu1 %v18916_v1  ;;  %v23753_v1 = vand.u32 4294901760, %v23693_v37  ;;  %v23768_v37 = vand.u32 4294901760, %v23712_v46  ;;  %v23808_v46 = vand.u32 4294901760, %v23807_v38  ;;  %v23871_v38 = vld [vmem:[#allocation106_spill] sm:$0xff] }
 0xd8f   : > { %14426 = vmatmul.mubr.f32.gmra.mrb[70].mxu1 %v18927_v51  ;;  %v23754_v51 = vld [vmem:[#allocation34_spill] sm:$0xff] }
 0xd90   : > { %14444 = vmatprep.mubr.f32.mxu1 %v23748_v35  ;;  %v23758_v35 = vand.u32 4294901760, %v23698_v9  ;;  %v23764_v9 = vand.u32 4294901760, %v23708_v60  ;;  %v23775_v60 = vand.u32 4294901760, %v23719_v36  ;;  %v23782_v36 = vand.u32 4294901760, %v23726_v44 }
 0xd91   : > { %v23789_v44 = vand.u32 4294901760, %v23733_v19  ;;  %v23796_v19 = vand.u32 4294901760, %v23740_v17  ;;  %v23805_v17 = vand.u32 4294901760, %v18766_v59  ;;  %v23816_v59 = vand.u32 4294901760, %v18890_v7  ;;  %v23826_v7 = vld [vmem:[#allocation11_spill] sm:$0xff] }
 0xd93   : > { %14445 = vmatmul.mubr.f32.vlgmr.msra.gmra.mrb[8].mxu1 %v23749_v8  ;;  %v23760_v8 = vand.u32 4294901760, %v23704_v12  ;;  %v23773_v12 = vand.u32 4294901760, %v23717_v39  ;;  %v23780_v39 = vand.u32 4294901760, %v23724_v40  ;;  %v23787_v40 = vand.u32 4294901760, %v23731_v52 }
 0xd94   : > { %15647 = vmatpush3.bf16.msra.mxu1 %v15644_v14  ;;  %14447 = vmatprep.mubr.f32.mxu1 %v23750_v24  ;;  %v23757_v24 = vld [vmem:[#allocation36_spill] sm:$0xff]  ;;  %v23765_v14 = vand.u32 4294901760, %v23709_v21  ;;  %v23774_v21 = vand.u32 4294901760, %v23718_v29  ;;  %v23781_v29 = vand.u32 4294901760, %v23725_v10  ;;  %v23788_v10 = vand.u32 4294901760, %v23732_v27 }
 0xd95   : > { %15649 = vmatprep.subr.bf16.mxu1 %v23751_v18  ;;  %v23794_v52 = vand.u32 4294901760, %v23738_v58  ;;  %v23795_v27 = vand.u32 4294901760, %v23739_v22  ;;  %v23803_v58 = vand.u32 4294901760, %v18746_v62  ;;  %v23804_v22 = vand.u32 4294901760, %v18760_v61  ;;  %v23812_v62 = vld [vmem:[#allocation129_spill] sm:$0xff]  ;;  %v23814_v61 = vld [vmem:[#allocation132_spill] sm:$0xff] }
 0xd97   : > { %14448 = vmatmul.mubr.f32.gmra.mrb[10].mxu1 %v23752_v16  ;;  %v23759_v16 = vand.u32 4294901760, %v23703_v63  ;;  %v23772_v63 = vand.u32 4294901760, %v23716_v49  ;;  %v23779_v49 = vand.u32 4294901760, %v23723_v25  ;;  %v23786_v25 = vand.u32 4294901760, %v23730_v45 }
 0xd98   : > { %15651 = vmatpush3.bf16.msra.mxu1 %v23751_v18  ;;  %14450 = vmatprep.mubr.f32.mxu1 %v23753_v1  ;;  %v23762_v18 = vand.u32 4294901760, %v23706_v23  ;;  %v23771_v1 = vand.u32 4294901760, %v23715_v41  ;;  %v23776_v23 = vand.u32 4294901760, %v23720_v34  ;;  %v23778_v41 = vand.u32 4294901760, %v23722_v20 }
 0xd99   : > { %15653 = vmatprep.subr.bf16.mxu1 %v23754_v51  ;;  %v23783_v34 = vand.u32 4294901760, %v23727_v11  ;;  %v23785_v20 = vand.u32 4294901760, %v23729_v33  ;;  %v23790_v11 = vand.u32 4294901760, %v23734_v42  ;;  %v23792_v33 = vand.u32 4294901760, %v23736_v13 }
 0xd9a   : > { %v23793_v45 = vand.u32 4294901760, %v23737_v48  ;;  %v23797_v42 = vand.u32 4294901760, %v23741_v53  ;;  %v23800_v13 = vand.u32 4294901760, %v23743_v28  ;;  %v23801_v48 = vld [vmem:[#allocation119_spill] sm:$0xff]  ;;  %v23806_v53 = vand.u32 4294901760, %v18776_v56  ;;  %v23809_v28 = vld [vmem:[#allocation126_spill] sm:$0xff] }
 0xd9b   : > { %14451 = vmatmul.mubr.f32.gmra.mrb[12].mxu1 %v23755_v3  ;;  %v23802_v6 = vand.u32 4294901760, %v23801_v48  ;;  %v23811_v3 = vand.u32 4294901760, %v23744_v4  ;;  %v23817_v56 = vld [vmem:[#allocation135_spill] sm:$0xff]  ;;  %v23822_v4 = vld [vmem:[#allocation140_spill] sm:$0xff]  ;;  %v23865_v48 = vld [vmem:[#allocation93_spill] sm:$0xff] }
 0xd9c   : > { %15655 = vmatpush3.bf16.msra.mxu1 %v23754_v51  ;;  %14453 = vmatprep.mubr.f32.mxu1 %v23756_v43  ;;  %v23769_v51 = vand.u32 4294901760, %v23713_v32  ;;  %v23810_v32 = vand.u32 4294901760, %v23809_v28  ;;  %v23813_v43 = vand.u32 4294901760, %v23812_v62  ;;  %v23873_v28 = vld [vmem:[#allocation108_spill] sm:$0xff]  ;;  %v23876_v62 = vld [vmem:[#allocation117_spill] sm:$0xff] }
 0xd9d   : > { %15657 = vmatprep.subr.bf16.mxu1 %v23757_v24 }
 0xd9f   : > { %14454 = vmatmul.mubr.f32.gmra.mrb[14].mxu1 %v23758_v35  ;;  %v23818_v35 = vand.u32 4294901760, %v23817_v56  ;;  %v23881_v56 = vld [vmem:[#allocation123_spill] sm:$0xff] }
 0xda0   : > { %15659 = vmatpush3.bf16.msra.mxu1 %v23757_v24  ;;  %14456 = vmatprep.mubr.f32.mxu1 %v23759_v16  ;;  %v23815_v24 = vand.u32 4294901760, %v23814_v61  ;;  %v23819_v16 = vand.u32 4294901760, %v18910_v54  ;;  %v23829_v54 = vld [vmem:[#allocation4_spill] sm:$0xff] }
 0xda1   : > { %15661 = vmatprep.subr.bf16.mxu1 %v18220_v55  ;;  %v23878_v61 = vld [vmem:[#allocation120_spill] sm:$0xff] }
 0xda3   : > { %14457 = vmatmul.mubr.f32.gmra.mrb[16].mxu1 %v23760_v8  ;;  %v23820_v8 = vld [vmem:[#allocation138_spill] sm:$0xff] }
 0xda4   : > { %14459 = vmatprep.mubr.f32.mxu1 %v23761_v15  ;;  %v23821_v15 = vand.u32 4294901760, %v23820_v8  ;;  %v23884_v8 = vld [vmem:[#allocation127_spill] sm:$0xff] }
 0xda7   : > { %14460 = vmatmul.mubr.f32.gmra.mrb[18].mxu1 %v23762_v18  ;;  %v23823_v18 = vand.u32 4294901760, %v23822_v4  ;;  %v23886_v4 = vld [vmem:[#allocation133_spill] sm:$0xff] }
 0xda8   : > { %14462 = vmatprep.mubr.f32.mxu1 %v23763_v57  ;;  %v23824_v57 = vld [vmem:[#allocation19_spill] sm:$0xff] }
 0xdab   : > { %14463 = vmatmul.mubr.f32.gmra.mrb[20].mxu1 %v23764_v9  ;;  %v23825_v9 = vld [vmem:[#allocation21_spill] sm:$0xff] }
 0xdac   : > { %14465 = vmatprep.mubr.f32.mxu1 %v23765_v14  ;;  %v23827_v14 = vld [vmem:[#allocation23_spill] sm:$0xff] }
 0xdaf   : > { %14466 = vmatmul.mubr.f32.gmra.mrb[22].mxu1 %v23766_v30  ;;  %v23828_v30 = vld [vmem:[#allocation16_spill] sm:$0xff] }
 0xdb0   : > { %14468 = vmatprep.mubr.f32.mxu1 %v23767_v2  ;;  %v23830_v2 = vld [vmem:[#allocation26_spill] sm:$0xff] }
 0xdb3   : > { %14469 = vmatmul.mubr.f32.gmra.mrb[24].mxu1 %v23768_v37  ;;  %v23831_v37 = vld [vmem:[#allocation24_spill] sm:$0xff] }
 0xdb4   : > { %14471 = vmatprep.mubr.f32.mxu1 %v23769_v51  ;;  %v23832_v51 = vld [vmem:[#allocation25_spill] sm:$0xff] }
 0xdb7   : > { %14472 = vmatmul.mubr.f32.gmra.mrb[26].mxu1 %v23770_v0  ;;  %v23833_v0 = vld [vmem:[#allocation29_spill] sm:$0xff] }
 0xdb8   : > { %14474 = vmatprep.mubr.f32.mxu1 %v23771_v1  ;;  %v23835_v1 = vld [vmem:[#allocation31_spill] sm:$0xff] }
 0xdbb   : > { %14475 = vmatmul.mubr.f32.gmra.mrb[28].mxu1 %v23772_v63  ;;  %v23836_v63 = vld [vmem:[#allocation32_spill] sm:$0xff] }
 0xdbc   : > { %14477 = vmatprep.mubr.f32.mxu1 %v23773_v12  ;;  %v23837_v12 = vld [vmem:[#allocation38_spill] sm:$0xff] }
 0xdbf   : > { %14478 = vmatmul.mubr.f32.gmra.mrb[30].mxu1 %v23774_v21  ;;  %v23838_v21 = vld [vmem:[#allocation40_spill] sm:$0xff] }
 0xdc0   : > { %14480 = vmatprep.mubr.f32.mxu1 %v23775_v60  ;;  %v23839_v60 = vld [vmem:[#allocation42_spill] sm:$0xff] }
 0xdc3   : > { %14481 = vmatmul.mubr.f32.gmra.mrb[32].mxu1 %v23776_v23  ;;  %v23840_v23 = vld [vmem:[#allocation44_spill] sm:$0xff] }
 0xdc4   : > { %14483 = vmatprep.mubr.f32.mxu1 %v23777_v47  ;;  %v23841_v47 = vld [vmem:[#allocation45_spill] sm:$0xff] }
 0xdc7   : > { %14484 = vmatmul.mubr.f32.gmra.mrb[34].mxu1 %v23778_v41  ;;  %v23842_v41 = vld [vmem:[#allocation48_spill] sm:$0xff] }
 0xdc8   : > { %14486 = vmatprep.mubr.f32.mxu1 %v23779_v49  ;;  %v23843_v49 = vld [vmem:[#allocation50_spill] sm:$0xff] }
 0xdcb   : > { %14487 = vmatmul.mubr.f32.gmra.mrb[36].mxu1 %v23780_v39  ;;  %v23844_v39 = vld [vmem:[#allocation53_spill] sm:$0xff] }
 0xdcc   : > { %14489 = vmatprep.mubr.f32.mxu1 %v23781_v29  ;;  %v23845_v29 = vld [vmem:[#allocation54_spill] sm:$0xff] }
 0xdcf   : > { %14490 = vmatmul.mubr.f32.gmra.mrb[38].mxu1 %v23782_v36  ;;  %v23846_v36 = vld [vmem:[#allocation55_spill] sm:$0xff] }
 0xdd0   : > { %14492 = vmatprep.mubr.f32.mxu1 %v23783_v34  ;;  %v23847_v34 = vld [vmem:[#allocation58_spill] sm:$0xff] }
 0xdd3   : > { %14493 = vmatmul.mubr.f32.gmra.mrb[40].mxu1 %v23784_v31  ;;  %v23848_v31 = vld [vmem:[#allocation59_spill] sm:$0xff] }
 0xdd4   : > { %14495 = vmatprep.mubr.f32.mxu1 %v23785_v20  ;;  %v23849_v20 = vld [vmem:[#allocation62_spill] sm:$0xff] }
 0xdd7   : > { %14496 = vmatmul.mubr.f32.gmra.mrb[42].mxu1 %v23786_v25  ;;  %v23850_v25 = vld [vmem:[#allocation64_spill] sm:$0xff] }
 0xdd8   : > { %14498 = vmatprep.mubr.f32.mxu1 %v23787_v40  ;;  %v23851_v40 = vld [vmem:[#allocation65_spill] sm:$0xff] }
 0xddb   : > { %14499 = vmatmul.mubr.f32.gmra.mrb[44].mxu1 %v23788_v10  ;;  %v23852_v10 = vld [vmem:[#allocation68_spill] sm:$0xff] }
 0xddc   : > { %14501 = vmatprep.mubr.f32.mxu1 %v23789_v44  ;;  %v23853_v44 = vld [vmem:[#allocation70_spill] sm:$0xff] }
 0xddf   : > { %14502 = vmatmul.mubr.f32.gmra.mrb[46].mxu1 %v23790_v11  ;;  %v23854_v11 = vld [vmem:[#allocation72_spill] sm:$0xff] }
 0xde0   : > { %14504 = vmatprep.mubr.f32.mxu1 %v23791_v5  ;;  %v23855_v5 = vld [vmem:[#allocation74_spill] sm:$0xff] }
 0xde3   : > { %14505 = vmatmul.mubr.f32.gmra.mrb[48].mxu1 %v23792_v33  ;;  %v23856_v33 = vld [vmem:[#allocation76_spill] sm:$0xff] }
 0xde4   : > { %14507 = vmatprep.mubr.f32.mxu1 %v23793_v45  ;;  %v23857_v45 = vld [vmem:[#allocation78_spill] sm:$0xff] }
 0xde7   : > { %14508 = vmatmul.mubr.f32.gmra.mrb[50].mxu1 %v23794_v52  ;;  %v23858_v52 = vld [vmem:[#allocation80_spill] sm:$0xff] }
 0xde8   : > { %14510 = vmatprep.mubr.f32.mxu1 %v23795_v27  ;;  %v23859_v27 = vld [vmem:[#allocation82_spill] sm:$0xff] }
 0xdeb   : > { %14511 = vmatmul.mubr.f32.gmra.mrb[52].mxu1 %v23796_v19  ;;  %v23860_v19 = vld [vmem:[#allocation84_spill] sm:$0xff] }
 0xdec   : > { %14513 = vmatprep.mubr.f32.mxu1 %v23797_v42  ;;  %v23861_v42 = vld [vmem:[#allocation85_spill] sm:$0xff] }
 0xdef   : > { %14514 = vmatmul.mubr.f32.gmra.mrb[54].mxu1 %v23799_v50  ;;  %v23863_v50 = vld [vmem:[#allocation90_spill] sm:$0xff] }
 0xdf0   : > { %14516 = vmatprep.mubr.f32.mxu1 %v23800_v13  ;;  %v23864_v13 = vld [vmem:[#allocation92_spill] sm:$0xff] }
 0xdf3   : > { %14517 = vmatmul.mubr.f32.gmra.mrb[56].mxu1 %v23802_v6  ;;  %v23866_v6 = vld [vmem:[#allocation97_spill] sm:$0xff] }
 0xdf4   : > { %14519 = vmatprep.mubr.f32.mxu1 %v23803_v58  ;;  %v23867_v58 = vld [vmem:[#allocation98_spill] sm:$0xff] }
 0xdf7   : > { %14520 = vmatmul.mubr.f32.gmra.mrb[58].mxu1 %v23804_v22  ;;  %v23868_v22 = vld [vmem:[#allocation100_spill] sm:$0xff] }
 0xdf8   : > { %14522 = vmatprep.mubr.f32.mxu1 %v23805_v17  ;;  %v23869_v17 = vld [vmem:[#allocation102_spill] sm:$0xff] }
 0xdfb   : > { %14523 = vmatmul.mubr.f32.gmra.mrb[60].mxu1 %v23806_v53  ;;  %v23870_v53 = vld [vmem:[#allocation104_spill] sm:$0xff] }
 0xdfc   : > { %14525 = vmatprep.mubr.f32.mxu1 %v23808_v46  ;;  %v23872_v46 = vld [vmem:[#allocation107_spill] sm:$0xff] }
 0xdff   : > { %14526 = vmatmul.mubr.f32.gmra.mrb[62].mxu1 %v23810_v32  ;;  %v23874_v32 = vld [vmem:[#allocation113_spill] sm:$0xff] }
 0xe00   : > { %14528 = vmatprep.mubr.f32.mxu1 %v23811_v3  ;;  %v23875_v3 = vld [vmem:[#allocation114_spill] sm:$0xff] }
 0xe03   : > { %14529 = vmatmul.mubr.f32.gmra.mrb[64].mxu1 %v23813_v43  ;;  %v23877_v43 = vld [vmem:[#allocation118_spill] sm:$0xff] }
 0xe04   : > { %14531 = vmatprep.mubr.f32.mxu1 %v23815_v24  ;;  %v23879_v24 = vld [vmem:[#allocation121_spill] sm:$0xff] }
 0xe07   : > { %14532 = vmatmul.mubr.f32.gmra.mrb[66].mxu1 %v23816_v59  ;;  %v23880_v59 = vld [vmem:[#allocation122_spill] sm:$0xff] }
 0xe08   : > { %14534 = vmatprep.mubr.f32.mxu1 %v23818_v35  ;;  %v23882_v35 = vld [vmem:[#allocation124_spill] sm:$0xff] }
 0xe0b   : > { %14535 = vmatmul.mubr.f32.gmra.mrb[68].mxu1 %v23819_v16  ;;  %v23883_v16 = vld [vmem:[#allocation128_spill] sm:$0xff] }
 0xe0c   : > { %14537 = vmatprep.mubr.f32.mxu1 %v23821_v15  ;;  %v23885_v15 = vld [vmem:[#allocation131_spill] sm:$0xff] }
 0xe0f   : > { %14538 = vmatmul.mubr.f32.gmra.mrb[70].mxu1 %v23823_v18  ;;  %v23887_v18 = vld [vmem:[#allocation134_spill] sm:$0xff] }
 0xe10   : > { %14556 = vmatprep.mubr.f32.mxu1 %v23824_v57 }
 0xe13   : > { %14557 = vmatmul.mubr.f32.vlgmr.msra.gmra.mrb[8].mxu1 %v23825_v9 }
 0xe14   : > { %15663 = vmatpush3.bf16.msra.mxu1 %v18220_v55  ;;  %14559 = vmatprep.mubr.f32.mxu1 %v23826_v7  ;;  %v23834_v55 = vld [vmem:[#allocation30_spill] sm:$0xff] }
 0xe15   : > { %15665 = vmatprep.subr.bf16.mxu1 %v23827_v14 }
 0xe17   : > { %14560 = vmatmul.mubr.f32.gmra.mrb[10].mxu1 %v23828_v30 }
 0xe18   : > { %15667 = vmatpush3.bf16.msra.mxu1 %v23827_v14  ;;  %14562 = vmatprep.mubr.f32.mxu1 %v23829_v54  ;;  %v23888_v14 = vld [vmem:[#allocation136_spill] sm:$0xff] }
 0xe19   : > { %15669 = vmatprep.subr.bf16.mxu1 %v23830_v2 }
 0xe1b   : > { %14563 = vmatmul.mubr.f32.gmra.mrb[12].mxu1 %v23831_v37 }
 0xe1c   : > { %15671 = vmatpush3.bf16.msra.mxu1 %v23830_v2  ;;  %14565 = vmatprep.mubr.f32.mxu1 %v23832_v51  ;;  %v23889_v2 = vld [vmem:[#allocation137_spill] sm:$0xff] }
 0xe1d   : > { %15673 = vmatprep.subr.bf16.mxu1 %v23833_v0 }
 0xe1f   : > { %14566 = vmatmul.mubr.f32.gmra.mrb[14].mxu1 %v23834_v55 }
 0xe20   : > { %15675 = vmatpush3.bf16.msra.mxu1 %v23833_v0  ;;  %14568 = vmatprep.mubr.f32.mxu1 %v23835_v1  ;;  %v23890_v0 = vld [vmem:[#allocation139_spill] sm:$0xff] }
 0xe23   : > { %14569 = vmatmul.mubr.f32.gmra.mrb[16].mxu1 %v23836_v63 }
 0xe24   : > { %14571 = vmatprep.mubr.f32.mxu1 %v23837_v12 }
 0xe27   : > { %14572 = vmatmul.mubr.f32.gmra.mrb[18].mxu1 %v23838_v21 }
 0xe28   : > { %14574 = vmatprep.mubr.f32.mxu1 %v23839_v60 }
 0xe2b   : > { %14575 = vmatmul.mubr.f32.gmra.mrb[20].mxu1 %v23840_v23 }
 0xe2c   : > { %14577 = vmatprep.mubr.f32.mxu1 %v23841_v47 }
 0xe2f   : > { %14578 = vmatmul.mubr.f32.gmra.mrb[22].mxu1 %v23842_v41 }
 0xe30   : > { %14580 = vmatprep.mubr.f32.mxu1 %v23843_v49 }
 0xe33   : > { %14581 = vmatmul.mubr.f32.gmra.mrb[24].mxu1 %v23844_v39 }
 0xe34   : > { %14583 = vmatprep.mubr.f32.mxu1 %v23845_v29 }
 0xe37   : > { %14584 = vmatmul.mubr.f32.gmra.mrb[26].mxu1 %v23846_v36 }
 0xe38   : > { %14586 = vmatprep.mubr.f32.mxu1 %v23847_v34 }
 0xe3b   : > { %14587 = vmatmul.mubr.f32.gmra.mrb[28].mxu1 %v23848_v31 }
 0xe3c   : > { %14589 = vmatprep.mubr.f32.mxu1 %v23849_v20 }
 0xe3f   : > { %14590 = vmatmul.mubr.f32.gmra.mrb[30].mxu1 %v23850_v25 }
 0xe40   : > { %14592 = vmatprep.mubr.f32.mxu1 %v23851_v40 }
 0xe43   : > { %14593 = vmatmul.mubr.f32.gmra.mrb[32].mxu1 %v23852_v10 }
 0xe44   : > { %14595 = vmatprep.mubr.f32.mxu1 %v23853_v44 }
 0xe47   : > { %14596 = vmatmul.mubr.f32.gmra.mrb[34].mxu1 %v23854_v11 }
 0xe48   : > { %14598 = vmatprep.mubr.f32.mxu1 %v23855_v5 }
 0xe4b   : > { %14599 = vmatmul.mubr.f32.gmra.mrb[36].mxu1 %v23856_v33 }
 0xe4c   : > { %14601 = vmatprep.mubr.f32.mxu1 %v23857_v45 }
 0xe4f   : > { %14602 = vmatmul.mubr.f32.gmra.mrb[38].mxu1 %v23858_v52 }
 0xe50   : > { %14604 = vmatprep.mubr.f32.mxu1 %v23859_v27 }
 0xe53   : > { %14605 = vmatmul.mubr.f32.gmra.mrb[40].mxu1 %v23860_v19 }
 0xe54   : > { %14607 = vmatprep.mubr.f32.mxu1 %v23861_v42 }
 0xe57   : > { %14608 = vmatmul.mubr.f32.gmra.mrb[42].mxu1 %v23862_v26 }
 0xe58   : > { %14610 = vmatprep.mubr.f32.mxu1 %v23863_v50 }
 0xe5b   : > { %14611 = vmatmul.mubr.f32.gmra.mrb[44].mxu1 %v23864_v13 }
 0xe5c   : > { %14613 = vmatprep.mubr.f32.mxu1 %v23865_v48 }
 0xe5f   : > { %14614 = vmatmul.mubr.f32.gmra.mrb[46].mxu1 %v23866_v6 }
 0xe60   : > { %14616 = vmatprep.mubr.f32.mxu1 %v23867_v58 }
 0xe63   : > { %14617 = vmatmul.mubr.f32.gmra.mrb[48].mxu1 %v23868_v22 }
 0xe64   : > { %14619 = vmatprep.mubr.f32.mxu1 %v23869_v17 }
 0xe67   : > { %14620 = vmatmul.mubr.f32.gmra.mrb[50].mxu1 %v23870_v53 }
 0xe68   : > { %14622 = vmatprep.mubr.f32.mxu1 %v23871_v38 }
 0xe6b   : > { %14623 = vmatmul.mubr.f32.gmra.mrb[52].mxu1 %v23872_v46 }
 0xe6c   : > { %14625 = vmatprep.mubr.f32.mxu1 %v23873_v28 }
 0xe6f   : > { %14626 = vmatmul.mubr.f32.gmra.mrb[54].mxu1 %v23874_v32 }
 0xe70   : > { %14628 = vmatprep.mubr.f32.mxu1 %v23875_v3 }
 0xe73   : > { %14629 = vmatmul.mubr.f32.gmra.mrb[56].mxu1 %v23876_v62 }
 0xe74   : > { %14631 = vmatprep.mubr.f32.mxu1 %v23877_v43 }
 0xe77   : > { %14632 = vmatmul.mubr.f32.gmra.mrb[58].mxu1 %v23878_v61 }
 0xe78   : > { %14634 = vmatprep.mubr.f32.mxu1 %v23879_v24 }
 0xe7b   : > { %14635 = vmatmul.mubr.f32.gmra.mrb[60].mxu1 %v23880_v59 }
 0xe7c   : > { %14637 = vmatprep.mubr.f32.mxu1 %v23881_v56 }
 0xe7f   : > { %14638 = vmatmul.mubr.f32.gmra.mrb[62].mxu1 %v23882_v35 }
 0xe80   : > { %14640 = vmatprep.mubr.f32.mxu1 %v23883_v16 }
 0xe83   : > { %14641 = vmatmul.mubr.f32.gmra.mrb[64].mxu1 %v23884_v8 }
 0xe84   : > { %14643 = vmatprep.mubr.f32.mxu1 %v23885_v15 }
 0xe87   : > { %14644 = vmatmul.mubr.f32.gmra.mrb[66].mxu1 %v23886_v4 }
 0xe88   : > { %14646 = vmatprep.mubr.f32.mxu1 %v23887_v18 }
 0xe8b   : > { %14647 = vmatmul.mubr.f32.gmra.mrb[68].mxu1 %v23888_v14 }
 0xe8c   : > { %14649 = vmatprep.mubr.f32.mxu1 %v23889_v2 }
 0xe8f   : > { %14650 = vmatmul.mubr.f32.gmra.mrb[70].mxu1 %v23890_v0 }
 0xe90   : > { %14668 = vmatprep.mubr.f32.mxu1 %v23824_v57  ;;  %v16865_v57 = vld [vmem:[%s22753_s2] ss:$0 sm:$0xff] }
 0xe93   : > { %14669 = vmatmul.mubr.f32.vlgmr.msra.gmra.mrb[8].mxu1 %v23825_v9  ;;  %v449_v9 = vadd.f32 nan, %v16865_v57 }
 0xe94   : > { %14671 = vmatprep.mubr.f32.mxu1 %v23826_v7 }
 0xe95   : > { %v600_v7 = vadd.f32 nan, %v449_v9 }
 0xe97   : > { %14672 = vmatmul.mubr.f32.gmra.mrb[10].mxu1 %v23828_v30  ;;  %v718_v30 = vadd.f32 nan, %v600_v7 }
 0xe98   : > { %14674 = vmatprep.mubr.f32.mxu1 %v23829_v54 }
 0xe99   : > { %v842_v54 = vadd.f32 nan, %v718_v30 }
 0xe9b   : > { %14675 = vmatmul.mubr.f32.gmra.mrb[12].mxu1 %v23831_v37  ;;  %v975_v37 = vadd.f32 nan, %v842_v54 }
 0xe9c   : > { %14677 = vmatprep.mubr.f32.mxu1 %v23832_v51  ;;  %v23891_v51 = vld [vmem:[#allocation3_spill] sm:$0xff] }
 0xe9f   : > { %14678 = vmatmul.mubr.f32.gmra.mrb[14].mxu1 %v23834_v55  ;;  %v19357_v55 = vadd.f32 %v23891_v51, %v975_v37 }
 0xea0   : > { %14680 = vmatprep.mubr.f32.mxu1 %v23835_v1  ;;  %v23892_v1 = vld [vmem:[#allocation5_spill] sm:$0xff] }
 0xea3   : > { %14681 = vmatmul.mubr.f32.gmra.mrb[16].mxu1 %v23836_v63  ;;  %v19360_v63 = vadd.f32 %v23892_v1, %v975_v37 }
 0xea4   : > { %14683 = vmatprep.mubr.f32.mxu1 %v23837_v12 }
 0xea5   : > { %23893 = vst [vmem:[#allocation20_spill] sm:$0xff] %v19360_v63 }
 0xea7   : > { %14684 = vmatmul.mubr.f32.gmra.mrb[18].mxu1 %v23838_v21 }
 0xea8   : > { %14686 = vmatprep.mubr.f32.mxu1 %v23839_v60 }
 0xeab   : > { %14687 = vmatmul.mubr.f32.gmra.mrb[20].mxu1 %v23840_v23 }
 0xeac   : > { %14689 = vmatprep.mubr.f32.mxu1 %v23841_v47  ;;  %v23894_v47 = vld [vmem:[#allocation7_spill] sm:$0xff] }
 0xeaf   : > { %14690 = vmatmul.mubr.f32.gmra.mrb[22].mxu1 %v23842_v41  ;;  %v19369_v41 = vadd.f32 %v23894_v47, %v975_v37 }
 0xeb0   : > { %14692 = vmatprep.mubr.f32.mxu1 %v23843_v49 }
 0xeb1   : > { %23895 = vst [vmem:[#allocation6_spill] sm:$0xff] %v19369_v41 }
 0xeb3   : > { %14693 = vmatmul.mubr.f32.gmra.mrb[24].mxu1 %v23844_v39  ;;  %v23896_v39 = vld [vmem:[#allocation8_spill] sm:$0xff] }
 0xeb4   : > { %14695 = vmatprep.mubr.f32.mxu1 %v23845_v29  ;;  %v19374_v29 = vadd.f32 %v23896_v39, %v975_v37 }
 0xeb6   : > { %23897 = vst [vmem:[#allocation12_spill] sm:$0xff] %v19374_v29 }
 0xeb7   : > { %14696 = vmatmul.mubr.f32.gmra.mrb[26].mxu1 %v23846_v36 }
 0xeb8   : > { %14698 = vmatprep.mubr.f32.mxu1 %v23847_v34 }
 0xebb   : > { %14699 = vmatmul.mubr.f32.gmra.mrb[28].mxu1 %v23848_v31 }
 0xebc   : > { %14701 = vmatprep.mubr.f32.mxu1 %v23849_v20 }
 0xebf   : > { %14702 = vmatmul.mubr.f32.gmra.mrb[30].mxu1 %v23850_v25 }
 0xec0   : > { %14704 = vmatprep.mubr.f32.mxu1 %v23851_v40  ;;  %v23898_v40 = vld [vmem:[#allocation9_spill] sm:$0xff] }
 0xec3   : > { %14705 = vmatmul.mubr.f32.gmra.mrb[32].mxu1 %v23852_v10  ;;  %v19385_v10 = vadd.f32 %v23898_v40, %v975_v37 }
 0xec4   : > { %14707 = vmatprep.mubr.f32.mxu1 %v23853_v44 }
 0xec5   : > { %23899 = vst [vmem:[#allocation18_spill] sm:$0xff] %v19385_v10 }
 0xec7   : > { %14708 = vmatmul.mubr.f32.gmra.mrb[34].mxu1 %v23854_v11  ;;  %v23900_v11 = vld [vmem:[#allocation10_spill] sm:$0xff] }
 0xec8   : > { %14710 = vmatprep.mubr.f32.mxu1 %v23855_v5  ;;  %v19390_v5 = vadd.f32 %v23900_v11, %v975_v37 }
 0xeca   : > { %23901 = vst [vmem:[#allocation22_spill] sm:$0xff] %v19390_v5 }
 0xecb   : > { %14711 = vmatmul.mubr.f32.gmra.mrb[36].mxu1 %v23856_v33 }
 0xecc   : > { %14713 = vmatprep.mubr.f32.mxu1 %v23857_v45 }
 0xecf   : > { %14714 = vmatmul.mubr.f32.gmra.mrb[38].mxu1 %v23858_v52 }
 0xed0   : > { %14716 = vmatprep.mubr.f32.mxu1 %v23859_v27 }
 0xed3   : > { %14717 = vmatmul.mubr.f32.gmra.mrb[40].mxu1 %v23860_v19 }
 0xed4   : > { %14719 = vmatprep.mubr.f32.mxu1 %v23861_v42  ;;  %v23902_v42 = vld [vmem:[#allocation13_spill] sm:$0xff] }
 0xed7   : > { %14720 = vmatmul.mubr.f32.gmra.mrb[42].mxu1 %v23862_v26  ;;  %v19401_v26 = vadd.f32 %v23902_v42, %v975_v37 }
 0xed8   : > { %14722 = vmatprep.mubr.f32.mxu1 %v23863_v50 }
 0xedb   : > { %14723 = vmatmul.mubr.f32.gmra.mrb[44].mxu1 %v23864_v13  ;;  %v23903_v13 = vld [vmem:[#allocation14_spill] sm:$0xff] }
 0xedc   : > { %14725 = vmatprep.mubr.f32.mxu1 %v23865_v48  ;;  %v19406_v48 = vadd.f32 %v23903_v13, %v975_v37 }
 0xedf   : > { %14726 = vmatmul.mubr.f32.gmra.mrb[46].mxu1 %v23866_v6 }
 0xee0   : > { %14728 = vmatprep.mubr.f32.mxu1 %v23867_v58 }
 0xee3   : > { %14729 = vmatmul.mubr.f32.gmra.mrb[48].mxu1 %v23868_v22 }
 0xee4   : > { %14731 = vmatprep.mubr.f32.mxu1 %v23869_v17 }
 0xee7   : > { %14732 = vmatmul.mubr.f32.gmra.mrb[50].mxu1 %v23870_v53 }
 0xee8   : > { %14734 = vmatprep.mubr.f32.mxu1 %v23871_v38 }
 0xeeb   : > { %14735 = vmatmul.mubr.f32.gmra.mrb[52].mxu1 %v23872_v46 }
 0xeec   : > { %14737 = vmatprep.mubr.f32.mxu1 %v23873_v28 }
 0xeef   : > { %14738 = vmatmul.mubr.f32.gmra.mrb[54].mxu1 %v23874_v32 }
 0xef0   : > { %14740 = vmatprep.mubr.f32.mxu1 %v23875_v3 }
 0xef3   : > { %14741 = vmatmul.mubr.f32.gmra.mrb[56].mxu1 %v23876_v62 }
 0xef4   : > { %14743 = vmatprep.mubr.f32.mxu1 %v23877_v43 }
 0xef7   : > { %14744 = vmatmul.mubr.f32.gmra.mrb[58].mxu1 %v23878_v61 }
 0xef8   : > { %14746 = vmatprep.mubr.f32.mxu1 %v23879_v24 }
 0xefb   : > { %14747 = vmatmul.mubr.f32.gmra.mrb[60].mxu1 %v23880_v59 }
 0xefc   : > { %14749 = vmatprep.mubr.f32.mxu1 %v23881_v56 }
 0xeff   : > { %14750 = vmatmul.mubr.f32.gmra.mrb[62].mxu1 %v23882_v35 }
 0xf00   : > { %14752 = vmatprep.mubr.f32.mxu1 %v23883_v16 }
 0xf03   : > { %14753 = vmatmul.mubr.f32.gmra.mrb[64].mxu1 %v23884_v8 }
 0xf04   : > { %14755 = vmatprep.mubr.f32.mxu1 %v23885_v15 }
 0xf07   : > { %14756 = vmatmul.mubr.f32.gmra.mrb[66].mxu1 %v23886_v4 }
 0xf08   : > { %14758 = vmatprep.mubr.f32.mxu1 %v23887_v18 }
 0xf0b   : > { %14759 = vmatmul.mubr.f32.gmra.mrb[68].mxu1 %v23888_v14 }
 0xf0c   : > { %14761 = vmatprep.mubr.f32.mxu1 %v23889_v2 }
 0xf0f   : > { %14762 = vmatmul.mubr.f32.gmra.mrb[70].mxu1 %v23890_v0 }
 0xf66   : > { %v14670_v12 = vpop.f32.mrb[8].mxu1 }
 0xf67   : > { %v19363_v21 = vadd.f32 %v14670_v12, %v19357_v55  ;;  %v6594_v60 = vpop.f32.mrb[9].mxu1 }
 0xf68   : > { %v19366_v23 = vadd.f32 %v6594_v60, %v19360_v63 }
 0xf69   : > { %v6982_v49 = vsel %vm6978_vm3, %v19363_v21, 0.0 }
 0xf6a   : > { %6983 = vadd.xlane.f32.xlu0 %v6982_v49  ;;  %v14673_v36 = vpop.f32.mrb[10].mxu1  ;;  %v6979_v34 = vsel %vm6978_vm3, %v19366_v23, 0.0 }
 0xf6b   : > { %v19379_v31 = vadd.f32 %v14673_v36, %v19369_v41  ;;  %v6606_v20 = vpop.f32.mrb[11].mxu1  ;;  %6980 = vadd.xlane.f32.xlu1 %v6979_v34 }
 0xf6c   : > { %v19382_v25 = vadd.f32 %v6606_v20, %v19374_v29 }
 0xf6d   : > { %v6988_v44 = vsel %vm6978_vm3, %v19379_v31, 0.0 }
 0xf6e   : > { %6989 = vadd.xlane.f32.xlu0 %v6988_v44  ;;  %v14676_v33 = vpop.f32.mrb[12].mxu1  ;;  %v6985_v45 = vsel %vm6978_vm3, %v19382_v25, 0.0 }
 0xf6f   : > { %v19395_v52 = vadd.f32 %v14676_v33, %v19385_v10  ;;  %v6618_v27 = vpop.f32.mrb[13].mxu1  ;;  %6986 = vadd.xlane.f32.xlu1 %v6985_v45 }
 0xf70   : > { %v19398_v19 = vadd.f32 %v6618_v27, %v19390_v5 }
 0xf71   : > { %v6994_v50 = vsel %vm6978_vm3, %v19395_v52, 0.0 }
 0xf72   : > { %6995 = vadd.xlane.f32.xlu0 %v6994_v50  ;;  %v14679_v6 = vpop.f32.mrb[14].mxu1  ;;  %v6991_v58 = vsel %vm6978_vm3, %v19398_v19, 0.0 }
 0xf73   : > { %v19411_v22 = vadd.f32 %v14679_v6, %v19401_v26  ;;  %v6630_v17 = vpop.f32.mrb[15].mxu1  ;;  %6992 = vadd.xlane.f32.xlu1 %v6991_v58 }
 0xf74   : > { %v19414_v53 = vadd.f32 %v6630_v17, %v19406_v48 }
 0xf75   : > { %v7000_v38 = vsel %vm6978_vm3, %v19411_v22, 0.0 }
 0xf76   : > { %7001 = vadd.xlane.f32.xlu0 %v7000_v38  ;;  %v14682_v46 = vpop.f32.mrb[16].mxu1  ;;  %v6997_v28 = vsel %vm6978_vm3, %v19414_v53, 0.0 }
 0xf77   : > { %v19421_v32 = vadd.f32 %v14682_v46, %v19357_v55  ;;  %v6642_v3 = vpop.f32.mrb[17].mxu1  ;;  %6998 = vadd.xlane.f32.xlu1 %v6997_v28 }
 0xf78   : > { %v19424_v62 = vadd.f32 %v6642_v3, %v19360_v63 }
 0xf79   : > { %v7006_v43 = vsel %vm6978_vm3, %v19421_v32, 0.0 }
 0xf7a   : > { %7007 = vadd.xlane.f32.xlu0 %v7006_v43  ;;  %v14685_v61 = vpop.f32.mrb[18].mxu1  ;;  %v7003_v24 = vsel %vm6978_vm3, %v19424_v62, 0.0 }
 0xf7b   : > { %v19431_v59 = vadd.f32 %v14685_v61, %v19369_v41  ;;  %v6654_v56 = vpop.f32.mrb[19].mxu1  ;;  %7004 = vadd.xlane.f32.xlu1 %v7003_v24 }
 0xf7c   : > { %v19434_v35 = vadd.f32 %v6654_v56, %v19374_v29 }
 0xf7d   : > { %v7012_v16 = vsel %vm6978_vm3, %v19431_v59, 0.0 }
 0xf7e   : > { %7013 = vadd.xlane.f32.xlu0 %v7012_v16  ;;  %v14688_v8 = vpop.f32.mrb[20].mxu1  ;;  %v7009_v15 = vsel %vm6978_vm3, %v19434_v35, 0.0 }
 0xf7f   : > { %v19441_v4 = vadd.f32 %v14688_v8, %v19385_v10  ;;  %v6666_v18 = vpop.f32.mrb[21].mxu1  ;;  %7010 = vadd.xlane.f32.xlu1 %v7009_v15 }
 0xf80   : > { %v19444_v14 = vadd.f32 %v6666_v18, %v19390_v5 }
 0xf81   : > { %v7018_v2 = vsel %vm6978_vm3, %v19441_v4, 0.0 }
 0xf82   : > { %7019 = vadd.xlane.f32.xlu0 %v7018_v2  ;;  %v14691_v0 = vpop.f32.mrb[22].mxu1  ;;  %v7015_v57 = vsel %vm6978_vm3, %v19444_v14, 0.0 }
 0xf83   : > { %v19451_v9 = vadd.f32 %v14691_v0, %v19401_v26  ;;  %v6678_v7 = vpop.f32.mrb[23].mxu1  ;;  %7016 = vadd.xlane.f32.xlu1 %v7015_v57 }
 0xf84   : > { %v19454_v30 = vadd.f32 %v6678_v7, %v19406_v48 }
 0xf85   : > { %v7024_v54 = vsel %vm6978_vm3, %v19451_v9, 0.0 }
 0xf86   : > { %7025 = vadd.xlane.f32.xlu0 %v7024_v54  ;;  %v14694_v37 = vpop.f32.mrb[24].mxu1  ;;  %v7021_v51 = vsel %vm6978_vm3, %v19454_v30, 0.0 }
 0xf87   : > { %v19461_v1 = vadd.f32 %v14694_v37, %v19357_v55  ;;  %v6690_v12 = vpop.f32.mrb[25].mxu1  ;;  %7022 = vadd.xlane.f32.xlu1 %v7021_v51 }
 0xf88   : > { %v19464_v60 = vadd.f32 %v6690_v12, %v19360_v63 }
 0xf89   : > { %v7030_v47 = vsel %vm6978_vm3, %v19461_v1, 0.0 }
 0xf8a   : > { %7031 = vadd.xlane.f32.xlu0 %v7030_v47  ;;  %v14697_v49 = vpop.f32.mrb[26].mxu1  ;;  %v7027_v39 = vsel %vm6978_vm3, %v19464_v60, 0.0 }
 0xf8b   : > { %v19471_v36 = vadd.f32 %v14697_v49, %v19369_v41  ;;  %v6702_v34 = vpop.f32.mrb[27].mxu1  ;;  %7028 = vadd.xlane.f32.xlu1 %v7027_v39 }
 0xf8c   : > { %v19474_v20 = vadd.f32 %v6702_v34, %v19374_v29 }
 0xf8d   : > { %v7036_v40 = vsel %vm6978_vm3, %v19471_v36, 0.0 }
 0xf8e   : > { %7037 = vadd.xlane.f32.xlu0 %v7036_v40  ;;  %v14700_v44 = vpop.f32.mrb[28].mxu1  ;;  %v7033_v11 = vsel %vm6978_vm3, %v19474_v20, 0.0 }
 0xf8f   : > { %v19481_v33 = vadd.f32 %v14700_v44, %v19385_v10  ;;  %v6714_v45 = vpop.f32.mrb[29].mxu1  ;;  %7034 = vadd.xlane.f32.xlu1 %v7033_v11 }
 0xf90   : > { %v19484_v27 = vadd.f32 %v6714_v45, %v19390_v5 }
 0xf91   : > { %v7042_v42 = vsel %vm6978_vm3, %v19481_v33, 0.0 }
 0xf92   : > { %7043 = vadd.xlane.f32.xlu0 %v7042_v42  ;;  %v14703_v50 = vpop.f32.mrb[30].mxu1  ;;  %v7039_v13 = vsel %vm6978_vm3, %v19484_v27, 0.0 }
 0xf93   : > { %v19491_v6 = vadd.f32 %v14703_v50, %v19401_v26  ;;  %v6726_v58 = vpop.f32.mrb[31].mxu1  ;;  %7040 = vadd.xlane.f32.xlu1 %v7039_v13 }
 0xf94   : > { %v19494_v17 = vadd.f32 %v6726_v58, %v19406_v48 }
 0xf95   : > { %v7048_v38 = vsel %vm6978_vm3, %v19491_v6, 0.0 }
 0xf96   : > { %7049 = vadd.xlane.f32.xlu0 %v7048_v38  ;;  %v14706_v46 = vpop.f32.mrb[32].mxu1  ;;  %v7045_v28 = vsel %vm6978_vm3, %v19494_v17, 0.0 }
 0xf97   : > { %v19501_v3 = vadd.f32 %v14706_v46, %v19357_v55  ;;  %v6738_v43 = vpop.f32.mrb[33].mxu1  ;;  %7046 = vadd.xlane.f32.xlu1 %v7045_v28 }
 0xf98   : > { %v19504_v61 = vadd.f32 %v6738_v43, %v19360_v63 }
 0xf99   : > { %v7054_v24 = vsel %vm6978_vm3, %v19501_v3, 0.0 }
 0xf9a   : > { %7055 = vadd.xlane.f32.xlu0 %v7054_v24  ;;  %v14709_v56 = vpop.f32.mrb[34].mxu1  ;;  %v7051_v16 = vsel %vm6978_vm3, %v19504_v61, 0.0 }
 0xf9b   : > { %v19511_v8 = vadd.f32 %v14709_v56, %v19369_v41  ;;  %v6750_v15 = vpop.f32.mrb[35].mxu1  ;;  %7052 = vadd.xlane.f32.xlu1 %v7051_v16 }
 0xf9c   : > { %v19514_v18 = vadd.f32 %v6750_v15, %v19374_v29 }
 0xf9d   : > { %v7060_v2 = vsel %vm6978_vm3, %v19511_v8, 0.0 }
 0xf9e   : > { %7061 = vadd.xlane.f32.xlu0 %v7060_v2  ;;  %v14712_v0 = vpop.f32.mrb[36].mxu1  ;;  %v7057_v57 = vsel %vm6978_vm3, %v19514_v18, 0.0 }
 0xf9f   : > { %v19521_v7 = vadd.f32 %v14712_v0, %v19385_v10  ;;  %v6762_v54 = vpop.f32.mrb[37].mxu1  ;;  %7058 = vadd.xlane.f32.xlu1 %v7057_v57 }
 0xfa0   : > { %v19524_v37 = vadd.f32 %v6762_v54, %v19390_v5 }
 0xfa1   : > { %v7066_v51 = vsel %vm6978_vm3, %v19521_v7, 0.0 }
 0xfa2   : > { %7067 = vadd.xlane.f32.xlu0 %v7066_v51  ;;  %v14715_v12 = vpop.f32.mrb[38].mxu1  ;;  %v7063_v47 = vsel %vm6978_vm3, %v19524_v37, 0.0 }
 0xfa3   : > { %v19531_v49 = vadd.f32 %v14715_v12, %v19401_v26  ;;  %v6774_v39 = vpop.f32.mrb[39].mxu1  ;;  %7064 = vadd.xlane.f32.xlu1 %v7063_v47 }
 0xfa4   : > { %v19534_v34 = vadd.f32 %v6774_v39, %v19406_v48 }
 0xfa5   : > { %v7072_v40 = vsel %vm6978_vm3, %v19531_v49, 0.0 }
 0xfa6   : > { %7073 = vadd.xlane.f32.xlu0 %v7072_v40  ;;  %v14718_v44 = vpop.f32.mrb[40].mxu1  ;;  %v7069_v11 = vsel %vm6978_vm3, %v19534_v34, 0.0 }
 0xfa7   : > { %v19541_v45 = vadd.f32 %v14718_v44, %v19357_v55  ;;  %v6786_v42 = vpop.f32.mrb[41].mxu1  ;;  %7070 = vadd.xlane.f32.xlu1 %v7069_v11 }
 0xfa8   : > { %v19544_v50 = vadd.f32 %v6786_v42, %v19360_v63 }
 0xfa9   : > { %v7078_v13 = vsel %vm6978_vm3, %v19541_v45, 0.0 }
 0xfaa   : > { %7079 = vadd.xlane.f32.xlu0 %v7078_v13  ;;  %v14721_v58 = vpop.f32.mrb[42].mxu1  ;;  %v7075_v38 = vsel %vm6978_vm3, %v19544_v50, 0.0 }
 0xfab   : > { %v19551_v46 = vadd.f32 %v14721_v58, %v19369_v41  ;;  %v6798_v28 = vpop.f32.mrb[43].mxu1  ;;  %7076 = vadd.xlane.f32.xlu1 %v7075_v38 }
 0xfac   : > { %v19554_v43 = vadd.f32 %v6798_v28, %v19374_v29 }
 0xfad   : > { %v7084_v24 = vsel %vm6978_vm3, %v19551_v46, 0.0 }
 0xfae   : > { %7085 = vadd.xlane.f32.xlu0 %v7084_v24  ;;  %v14724_v56 = vpop.f32.mrb[44].mxu1  ;;  %v7081_v16 = vsel %vm6978_vm3, %v19554_v43, 0.0 }
 0xfaf   : > { %v19561_v15 = vadd.f32 %v14724_v56, %v19385_v10  ;;  %v6810_v2 = vpop.f32.mrb[45].mxu1  ;;  %7082 = vadd.xlane.f32.xlu1 %v7081_v16 }
 0xfb0   : > { %v19564_v0 = vadd.f32 %v6810_v2, %v19390_v5 }
 0xfb1   : > { %v7090_v57 = vsel %vm6978_vm3, %v19561_v15, 0.0 }
 0xfb2   : > { %7091 = vadd.xlane.f32.xlu0 %v7090_v57  ;;  %v14727_v54 = vpop.f32.mrb[46].mxu1  ;;  %v7087_v51 = vsel %vm6978_vm3, %v19564_v0, 0.0 }
 0xfb3   : > { %v19571_v12 = vadd.f32 %v14727_v54, %v19401_v26  ;;  %v6822_v47 = vpop.f32.mrb[47].mxu1  ;;  %7088 = vadd.xlane.f32.xlu1 %v7087_v51 }
 0xfb4   : > { %v19574_v39 = vadd.f32 %v6822_v47, %v19406_v48 }
 0xfb5   : > { %v7096_v40 = vsel %vm6978_vm3, %v19571_v12, 0.0 }
 0xfb6   : > { %7097 = vadd.xlane.f32.xlu0 %v7096_v40  ;;  %v14730_v44 = vpop.f32.mrb[48].mxu1  ;;  %v7093_v11 = vsel %vm6978_vm3, %v19574_v39, 0.0 }
 0xfb7   : > { %v19581_v42 = vadd.f32 %v14730_v44, %v19357_v55  ;;  %v6834_v13 = vpop.f32.mrb[49].mxu1  ;;  %7094 = vadd.xlane.f32.xlu1 %v7093_v11 }
 0xfb8   : > { %v19584_v58 = vadd.f32 %v6834_v13, %v19360_v63 }
 0xfb9   : > { %v7102_v38 = vsel %vm6978_vm3, %v19581_v42, 0.0 }
 0xfba   : > { %7103 = vadd.xlane.f32.xlu0 %v7102_v38  ;;  %v14733_v28 = vpop.f32.mrb[50].mxu1  ;;  %v7099_v16 = vsel %vm6978_vm3, %v19584_v58, 0.0 }
 0xfbb   : > { %v6846_v24 = vpop.f32.mrb[51].mxu1  ;;  %v19589_v56 = vadd.f32 %v14733_v28, %v19369_v41 }
 0xfbc   : > { %v19594_v54 = vadd.f32 %v6846_v24, %v19374_v29 }
 0xfbd   : > { %v7108_v51 = vsel %vm6978_vm3, %v19589_v56, 0.0 }
 0xfbe   : > { %v14736_v2 = vpop.f32.mrb[52].mxu1  ;;  %7100 = vadd.xlane.f32.xlu0 %v7099_v16  ;;  %v7105_v11 = vsel %vm6978_vm3, %v19594_v54, 0.0 }
 0xfbf   : > { %v6858_v57 = vpop.f32.mrb[53].mxu1  ;;  %v19603_v44 = vadd.f32 %v14736_v2, %v19385_v10 }
 0xfc0   : > { %v19612_v28 = vadd.f32 %v6858_v57, %v19390_v5 }
 0xfc1   : > { %v7114_v24 = vsel %vm6978_vm3, %v19603_v44, 0.0 }
 0xfc2   : > { %v19598_v47 = vpop.f32.mrb[54].mxu1  ;;  %7109 = vadd.xlane.f32.xlu0 %v7108_v51  ;;  %v7111_v2 = vsel %vm6978_vm3, %v19612_v28, 0.0 }
 0xfc3   : > { %v19600_v40 = vpop.f32.mrb[55].mxu1 }
 0xfc6   : > { %v19607_v13 = vpop.f32.mrb[56].mxu1  ;;  %7106 = vadd.xlane.f32.xlu0 %v7105_v11 }
 0xfc7   : > { %23904 = vst [vmem:[#allocation27_spill] sm:$0xff] %v19607_v13  ;;  %v19609_v38 = vpop.f32.mrb[57].mxu1 }
 0xfc8   : > { %23905 = vst [vmem:[#allocation28_spill] sm:$0xff] %v19609_v38 }
 0xfca   : > { %v19616_v16 = vpop.f32.mrb[58].mxu1  ;;  %7115 = vadd.xlane.f32.xlu0 %v7114_v24 }
 0xfcb   : > { %23906 = vst [vmem:[#allocation35_spill] sm:$0xff] %v19616_v16  ;;  %v19618_v51 = vpop.f32.mrb[59].mxu1 }
 0xfcc   : > { %23907 = vst [vmem:[#allocation15_spill] sm:$0xff] %v19618_v51 }
 0xfce   : > { %v19622_v10 = vpop.f32.mrb[60].mxu1  ;;  %7112 = vadd.xlane.f32.xlu0 %v7111_v2 }
 0xfcf   : > { %23908 = vst [vmem:[#allocation17_spill] sm:$0xff] %v19622_v10  ;;  %v19624_v11 = vpop.f32.mrb[61].mxu1 }
 0xfd0   : > { %23909 = vst [vmem:[#allocation37_spill] sm:$0xff] %v19624_v11 }
 0xfd2   : > { %v19626_v29 = vpop.f32.mrb[62].mxu1 }
 0xfd3   : > { %23910 = vst [vmem:[#allocation39_spill] sm:$0xff] %v19626_v29  ;;  %v19628_v57 = vpop.f32.mrb[63].mxu1 }
 0xfd4   : > { %23911 = vst [vmem:[#allocation41_spill] sm:$0xff] %v19628_v57 }
 0xfd6   : > { %v19630_v5 = vpop.f32.mrb[64].mxu1 }
 0xfd7   : > { %23912 = vst [vmem:[#allocation43_spill] sm:$0xff] %v19630_v5  ;;  %v19632_v41 = vpop.f32.mrb[65].mxu1 }
 0xfd8   : > { %23913 = vst [vmem:[#allocation46_spill] sm:$0xff] %v19632_v41 }
 0xfda   : > { %v19634_v16 = vpop.f32.mrb[66].mxu1 }
 0xfdb   : > { %23914 = vst [vmem:[#allocation47_spill] sm:$0xff] %v19634_v16  ;;  %v19636_v24 = vpop.f32.mrb[67].mxu1 }
 0xfdc   : > { %23915 = vst [vmem:[#allocation49_spill] sm:$0xff] %v19636_v24 }
 0xfde   : > { %v19638_v51 = vpop.f32.mrb[68].mxu1 }
 0xfdf   : > { %23916 = vst [vmem:[#allocation51_spill] sm:$0xff] %v19638_v51  ;;  %v19640_v38 = vpop.f32.mrb[69].mxu1 }
 0xfe0   : > { %23917 = vst [vmem:[#allocation52_spill] sm:$0xff] %v19640_v38 }
 0xfe2   : > { %v19642_v10 = vpop.f32.mrb[70].mxu1 }
 0xfe3   : > { %23918 = vst [vmem:[#allocation56_spill] sm:$0xff] %v19642_v10  ;;  %v19644_v2 = vpop.f32.mrb[71].mxu1 }
 0xff7   : > { %v6984_v11 = vpop.xlane.xlu0 %6983 }
 0xff8   : > { %v7173_v29 = vmul.f32 0.03125, %v6984_v11  ;;  %v6981_v63 = vpop.xlane.xlu1 %6980 }
 0xff9   : > { %v7172_v57 = vmul.f32 0.03125, %v6981_v63 }
 0xffa   : > { %v19647_v5 = vsub.f32 %v19363_v21, %v7173_v29 }
 0xffb   : > { %v19650_v41 = vsub.f32 %v19366_v23, %v7172_v57  ;;  %v6990_v16 = vpop.xlane.xlu0 %6989 }
 0xffc   : > { %23919 = vst [vmem:[#allocation57_spill] sm:$0xff] %v19647_v5  ;;  %v7175_v24 = vmul.f32 0.03125, %v6990_v16  ;;  %v6987_v13 = vpop.xlane.xlu1 %6986  ;;  %v7301_v38 = vmul.f32 %v19647_v5, %v19647_v5 }
 0xffd   : > { %23920 = vst [vmem:[#allocation60_spill] sm:$0xff] %v19650_v41  ;;  %v7174_v51 = vmul.f32 0.03125, %v6987_v13  ;;  %v7300_v63 = vmul.f32 %v19650_v41, %v19650_v41 }
 0xffe   : > { %v19655_v10 = vsub.f32 %v19379_v31, %v7175_v24  ;;  %v7367_v11 = vsel %vm6978_vm3, %v7301_v38, 0.0 }
 0xfff   : > { %v6996_v21 = vpop.xlane.xlu0 %6995  ;;  %7368 = vadd.xlane.f32.xlu1 %v7367_v11  ;;  %v19661_v23 = vsub.f32 %v19382_v25, %v7174_v51  ;;  %v7364_v57 = vsel %vm6978_vm3, %v7300_v63, 0.0 }
0x1000   : > { %23921 = vst [vmem:[#allocation61_spill] sm:$0xff] %v19655_v10  ;;  %v6993_v29 = vpop.xlane.xlu1 %6992  ;;  %v7177_v16 = vmul.f32 0.03125, %v6996_v21  ;;  %v7303_v13 = vmul.f32 %v19655_v10, %v19655_v10 }
0x1001   : > { %23922 = vst [vmem:[#allocation63_spill] sm:$0xff] %v19661_v23  ;;  %v7176_v38 = vmul.f32 0.03125, %v6993_v29  ;;  %v7302_v41 = vmul.f32 %v19661_v23, %v19661_v23 }
0x1002   : > { %v19669_v11 = vsub.f32 %v19395_v52, %v7177_v16  ;;  %v7373_v51 = vsel %vm6978_vm3, %v7303_v13, 0.0 }
0x1003   : > { %v7002_v5 = vpop.xlane.xlu0 %7001  ;;  %7365 = vadd.xlane.f32.xlu1 %v7364_v57  ;;  %v19678_v29 = vsub.f32 %v19398_v19, %v7176_v38  ;;  %v7370_v57 = vsel %vm6978_vm3, %v7302_v41, 0.0 }
0x1004   : > { %v7179_v31 = vmul.f32 0.03125, %v7002_v5  ;;  %v6999_v24 = vpop.xlane.xlu1 %6998  ;;  %v7305_v16 = vmul.f32 %v19669_v11, %v19669_v11 }
0x1005   : > { %v7178_v23 = vmul.f32 0.03125, %v6999_v24  ;;  %v7304_v41 = vmul.f32 %v19678_v29, %v19678_v29 }
0x1006   : > { %v19672_v25 = vsub.f32 %v19411_v22, %v7179_v31 }
0x1007   : > { %v7008_v63 = vpop.xlane.xlu0 %7007  ;;  %7374 = vadd.xlane.f32.xlu1 %v7373_v51 }
0x1008   : > { %v7181_v21 = vmul.f32 0.03125, %v7008_v63  ;;  %v7005_v10 = vpop.xlane.xlu1 %7004  ;;  %v7307_v5 = vmul.f32 %v19672_v25, %v19672_v25 }
0x1009   : > { %v7180_v38 = vmul.f32 0.03125, %v7005_v10 }
0x100a   : > { %v19682_v52 = vsub.f32 %v19421_v32, %v7181_v21  ;;  %v7385_v22 = vsel %vm6978_vm3, %v7307_v5, 0.0  ;;  %v19692_v32 = vsub.f32 %v19414_v53, %v7178_v23  ;;  %v7379_v21 = vsel %vm6978_vm3, %v7305_v16, 0.0 }
0x100b   : > { %v7014_v13 = vpop.xlane.xlu0 %7013  ;;  %7386 = vadd.xlane.f32.xlu0 %v7385_v22  ;;  %7371 = vadd.xlane.f32.xlu1 %v7370_v57 }
0x100c   : > { %v7183_v31 = vmul.f32 0.03125, %v7014_v13  ;;  %v7011_v51 = vpop.xlane.xlu1 %7010  ;;  %v7309_v19 = vmul.f32 %v19682_v52, %v19682_v52  ;;  %v19702_v13 = vsub.f32 %v19424_v62, %v7180_v38  ;;  %v7306_v16 = vmul.f32 %v19692_v32, %v19692_v32 }
0x100d   : > { %v7182_v53 = vmul.f32 0.03125, %v7011_v51 }
0x100e   : > { %v19695_v24 = vsub.f32 %v19431_v59, %v7183_v31  ;;  %v7391_v63 = vsel %vm6978_vm3, %v7309_v19, 0.0  ;;  %v7376_v31 = vsel %vm6978_vm3, %v7304_v41, 0.0 }
0x100f   : > { %v7020_v5 = vpop.xlane.xlu0 %7019  ;;  %7392 = vadd.xlane.f32.xlu0 %v7391_v63  ;;  %7380 = vadd.xlane.f32.xlu1 %v7379_v21  ;;  %v19714_v51 = vsub.f32 %v19434_v35, %v7182_v53 }
0x1010   : > { %v7185_v57 = vmul.f32 0.03125, %v7020_v5  ;;  %v7017_v22 = vpop.xlane.xlu1 %7016  ;;  %v7311_v10 = vmul.f32 %v19695_v24, %v19695_v24 }
0x1011   : > { %23923 = vst [vmem:[#allocation66_spill] sm:$0xff] %v19714_v51  ;;  %v7184_v38 = vmul.f32 0.03125, %v7017_v22  ;;  %v7310_v22 = vmul.f32 %v19714_v51, %v19714_v51 }
0x1012   : > { %v19705_v23 = vsub.f32 %v19441_v4, %v7185_v57  ;;  %v7397_v59 = vsel %vm6978_vm3, %v7311_v10, 0.0  ;;  %v7308_v4 = vmul.f32 %v19702_v13, %v19702_v13  ;;  %v7382_v57 = vsel %vm6978_vm3, %v7306_v16, 0.0 }
0x1013   : > { %v7026_v19 = vpop.xlane.xlu0 %7025  ;;  %7398 = vadd.xlane.f32.xlu0 %v7397_v59  ;;  %7377 = vadd.xlane.f32.xlu1 %v7376_v31  ;;  %v7394_v51 = vsel %vm6978_vm3, %v7310_v22, 0.0 }
0x1014   : > { %v7187_v63 = vmul.f32 0.03125, %v7026_v19  ;;  %v7023_v21 = vpop.xlane.xlu1 %7022  ;;  %v7313_v62 = vmul.f32 %v19705_v23, %v19705_v23  ;;  %v7388_v53 = vsel %vm6978_vm3, %v7308_v4, 0.0 }
0x1015   : > { %v7186_v19 = vmul.f32 0.03125, %v7023_v21 }
0x1016   : > { %v19719_v41 = vsub.f32 %v19451_v9, %v7187_v63  ;;  %v7403_v5 = vsel %vm6978_vm3, %v7313_v62, 0.0  ;;  %v19729_v9 = vsub.f32 %v19444_v14, %v7184_v38 }
0x1017   : > { %v7032_v10 = vpop.xlane.xlu0 %7031  ;;  %7404 = vadd.xlane.f32.xlu0 %v7403_v5  ;;  %7383 = vadd.xlane.f32.xlu1 %v7382_v57  ;;  %v19739_v14 = vsub.f32 %v19454_v30, %v7186_v19 }
0x1018   : > { %v7189_v59 = vmul.f32 0.03125, %v7032_v10  ;;  %v7029_v31 = vpop.xlane.xlu1 %7028  ;;  %v7315_v35 = vmul.f32 %v19719_v41, %v19719_v41  ;;  %v7312_v38 = vmul.f32 %v19729_v9, %v19729_v9 }
0x1019   : > { %v7188_v10 = vmul.f32 0.03125, %v7029_v31 }
0x101a   : > { %v19732_v63 = vsub.f32 %v19461_v1, %v7189_v59  ;;  %v7409_v16 = vsel %vm6978_vm3, %v7315_v35, 0.0 }
0x101b   : > { %v7038_v62 = vpop.xlane.xlu0 %7037  ;;  %7410 = vadd.xlane.f32.xlu0 %v7409_v16  ;;  %7389 = vadd.xlane.f32.xlu1 %v7388_v53  ;;  %v19750_v22 = vsub.f32 %v19464_v60, %v7188_v10  ;;  %v7400_v16 = vsel %vm6978_vm3, %v7312_v38, 0.0 }
0x101c   : > { %v7191_v5 = vmul.f32 0.03125, %v7038_v62  ;;  %v7035_v57 = vpop.xlane.xlu1 %7034  ;;  %v7317_v4 = vmul.f32 %v19732_v63, %v19732_v63  ;;  %v7314_v62 = vmul.f32 %v19739_v14, %v19739_v14 }
0x101d   : > { %v7190_v30 = vmul.f32 0.03125, %v7035_v57 }
0x101e   : > { %v19742_v21 = vsub.f32 %v19471_v36, %v7191_v5  ;;  %v7415_v1 = vsel %vm6978_vm3, %v7317_v4, 0.0 }
0x101f   : > { %v7044_v59 = vpop.xlane.xlu0 %7043  ;;  %7416 = vadd.xlane.f32.xlu0 %v7415_v1  ;;  %7395 = vadd.xlane.f32.xlu1 %v7394_v51  ;;  %v19762_v57 = vsub.f32 %v19474_v20, %v7190_v30 }
0x1020   : > { %v7193_v35 = vmul.f32 0.03125, %v7044_v59  ;;  %v7041_v53 = vpop.xlane.xlu1 %7040  ;;  %v7319_v31 = vmul.f32 %v19742_v21, %v19742_v21  ;;  %v7406_v59 = vsel %vm6978_vm3, %v7314_v62, 0.0 }
0x1021   : > { %v7192_v10 = vmul.f32 0.03125, %v7041_v53  ;;  %v7318_v53 = vmul.f32 %v19762_v57, %v19762_v57 }
0x1022   : > { %v19753_v36 = vsub.f32 %v19481_v33, %v7193_v35  ;;  %v7421_v19 = vsel %vm6978_vm3, %v7319_v31, 0.0  ;;  %v7316_v33 = vmul.f32 %v19750_v22, %v19750_v22 }
0x1023   : > { %v7050_v51 = vpop.xlane.xlu0 %7049  ;;  %7422 = vadd.xlane.f32.xlu0 %v7421_v19  ;;  %7401 = vadd.xlane.f32.xlu1 %v7400_v16 }
0x1024   : > { %v7195_v5 = vmul.f32 0.03125, %v7050_v51  ;;  %v7047_v4 = vpop.xlane.xlu1 %7046  ;;  %v7321_v60 = vmul.f32 %v19753_v36, %v19753_v36  ;;  %v7412_v30 = vsel %vm6978_vm3, %v7316_v33, 0.0 }
0x1025   : > { %v7194_v16 = vmul.f32 0.03125, %v7047_v4 }
0x1026   : > { %v19767_v1 = vsub.f32 %v19491_v6, %v7195_v5  ;;  %v7427_v38 = vsel %vm6978_vm3, %v7321_v60, 0.0  ;;  %v19777_v6 = vsub.f32 %v19484_v27, %v7192_v10 }
0x1027   : > { %v7056_v35 = vpop.xlane.xlu0 %7055  ;;  %7428 = vadd.xlane.f32.xlu0 %v7427_v38  ;;  %7407 = vadd.xlane.f32.xlu1 %v7406_v59  ;;  %v19787_v27 = vsub.f32 %v19494_v17, %v7194_v16 }
0x1028   : > { %v7197_v31 = vmul.f32 0.03125, %v7056_v35  ;;  %v7053_v19 = vpop.xlane.xlu1 %7052  ;;  %v7323_v20 = vmul.f32 %v19767_v1, %v19767_v1  ;;  %v7418_v35 = vsel %vm6978_vm3, %v7318_v53, 0.0  ;;  %v7320_v10 = vmul.f32 %v19777_v6, %v19777_v6 }
0x1029   : > { %v7196_v59 = vmul.f32 0.03125, %v7053_v19  ;;  %23924 = vst [vmem:[#allocation67_spill] sm:$0xff] %v19787_v27 }
0x102a   : > { %v19780_v51 = vsub.f32 %v19501_v3, %v7197_v31  ;;  %v7433_v62 = vsel %vm6978_vm3, %v7323_v20, 0.0 }
0x102b   : > { %v7062_v5 = vpop.xlane.xlu0 %7061  ;;  %7434 = vadd.xlane.f32.xlu0 %v7433_v62  ;;  %7413 = vadd.xlane.f32.xlu1 %v7412_v30  ;;  %v19798_v53 = vsub.f32 %v19504_v61, %v7196_v59  ;;  %v7424_v62 = vsel %vm6978_vm3, %v7320_v10, 0.0  ;;  %v19815_v61 = vld [vmem:[%s22754_s3 + $0x8] sm:$0xff] }
0x102c   : > { %v7199_v60 = vmul.f32 0.03125, %v7062_v5  ;;  %v7059_v38 = vpop.xlane.xlu1 %7058  ;;  %v7325_v33 = vmul.f32 %v19780_v51, %v19780_v51  ;;  %v7322_v5 = vmul.f32 %v19787_v27, %v19787_v27 }
0x102d   : > { %23925 = vst [vmem:[#allocation69_spill] sm:$0xff] %v19798_v53  ;;  %v7198_v17 = vmul.f32 0.03125, %v7059_v38 }
0x102e   : > { %v19790_v4 = vsub.f32 %v19511_v8, %v7199_v60  ;;  %v7439_v3 = vsel %vm6978_vm3, %v7325_v33, 0.0  ;;  %v19810_v60 = vld [vmem:[%s22754_s3] sm:$0xff]  ;;  %v23075_v33 = vand.u32 4294901760, %v19815_v61 }
0x102f   : > { %v7068_v31 = vpop.xlane.xlu0 %7067  ;;  %7440 = vadd.xlane.f32.xlu0 %v7439_v3  ;;  %7419 = vadd.xlane.f32.xlu1 %v7418_v35  ;;  %v19822_v10 = vsub.f32 %v19514_v18, %v7198_v17  ;;  %v19840_v18 = vld [vmem:[%s22754_s3 + $0x10] sm:$0xff]  ;;  %v19845_v17 = vld [vmem:[%s22754_s3 + $0x18] sm:$0xff] }
0x1030   : > { %v7201_v20 = vmul.f32 0.03125, %v7068_v31  ;;  %v7065_v30 = vpop.xlane.xlu1 %7064  ;;  %v7327_v19 = vmul.f32 %v19790_v4, %v19790_v4  ;;  %v7324_v31 = vmul.f32 %v19798_v53, %v19798_v53  ;;  %23929 = vst [vmem:[#allocation77_spill] sm:$0xff] %v19840_v18  ;;  %23930 = vst [vmem:[#allocation79_spill] sm:$0xff] %v19845_v17 }
0x1031   : > { %23926 = vst [vmem:[#allocation71_spill] sm:$0xff] %v19822_v10  ;;  %v7326_v53 = vmul.f32 %v19822_v10, %v19822_v10 }
0x1032   : > { %v19801_v8 = vsub.f32 %v19521_v7, %v7201_v20  ;;  %v7445_v16 = vsel %vm6978_vm3, %v7327_v19, 0.0  ;;  %v23076_v7 = vand.u32 4294901760, %v19810_v60  ;;  %v7200_v19 = vmul.f32 0.03125, %v7065_v30 }
0x1033   : > { %v7074_v38 = vpop.xlane.xlu0 %7073  ;;  %7446 = vadd.xlane.f32.xlu0 %v7445_v16  ;;  %7425 = vadd.xlane.f32.xlu1 %v7424_v62  ;;  %v23082_v30 = vand.u32 4294901760, %v19845_v17  ;;  %v23952_v17 = vld [vmem:[#allocation41_spill] sm:$0xff] }
0x1034   : > { %v7203_v59 = vmul.f32 0.03125, %v7074_v38  ;;  %v7071_v35 = vpop.xlane.xlu1 %7070  ;;  %v7329_v3 = vmul.f32 %v19801_v8, %v19801_v8  ;;  %v19830_v20 = vpack.c.bf16 %v23075_v33, %v23076_v7  ;;  %v7430_v38 = vsel %vm6978_vm3, %v7322_v5, 0.0 }
0x1035   : > { %v7436_v7 = vsel %vm6978_vm3, %v7324_v31, 0.0 }
0x1036   : > { %23927 = vst [vmem:[#allocation73_spill] sm:$0xff] %v19830_v20  ;;  %v19833_v16 = vsub.f32 %v19531_v49, %v7203_v59  ;;  %v7451_v62 = vsel %vm6978_vm3, %v7329_v3, 0.0  ;;  %v23083_v49 = vand.u32 4294901760, %v19840_v18  ;;  %15677 = vmatprep.subr.bf16.mxu0 %v19830_v20  ;;  %15724 = vmatprep.subr.bf16.mxu1 %v19830_v20 }
0x1037   : > { %v7080_v33 = vpop.xlane.xlu0 %7079  ;;  %7452 = vadd.xlane.f32.xlu0 %v7451_v62  ;;  %7431 = vadd.xlane.f32.xlu1 %v7430_v38  ;;  %v19865_v62 = vsub.f32 %v19524_v37, %v7200_v19  ;;  %v7202_v38 = vmul.f32 0.03125, %v7071_v35  ;;  %v7442_v35 = vsel %vm6978_vm3, %v7326_v53, 0.0 }
0x1038   : > { %23928 = vst [vmem:[#allocation75_spill] sm:$0xff] %v19833_v16  ;;  %v7205_v59 = vmul.f32 0.03125, %v7080_v33  ;;  %v7077_v3 = vpop.xlane.xlu1 %7076  ;;  %v7331_v5 = vmul.f32 %v19833_v16, %v19833_v16  ;;  %15679 = vmatpush3.bf16.msra.mxu0 %v19830_v20  ;;  %v19861_v33 = vpack.c.bf16 %v23082_v30, %v23083_v49  ;;  %15726 = vmatpush3.bf16.msra.mxu1 %v19830_v20  ;;  %v23947_v49 = vld [vmem:[#allocation22_spill] sm:$0xff] }
0x1039   : > { %v7204_v37 = vmul.f32 0.03125, %v7077_v3  ;;  %v7328_v19 = vmul.f32 %v19865_v62, %v19865_v62 }
0x103a   : > { %23931 = vst [vmem:[#allocation81_spill] sm:$0xff] %v19861_v33  ;;  %v19868_v16 = vsub.f32 %v19541_v45, %v7205_v59  ;;  %v7457_v31 = vsel %vm6978_vm3, %v7331_v5, 0.0  ;;  %15681 = vmatprep.subr.bf16.mxu0 %v19861_v33  ;;  %15725 = vmatprep.subr.bf16.mxu1 %v19861_v33  ;;  %v19879_v45 = vsub.f32 %v19534_v34, %v7202_v38 }
0x103b   : > { %v7086_v10 = vpop.xlane.xlu0 %7085  ;;  %7458 = vadd.xlane.f32.xlu0 %v7457_v31  ;;  %7437 = vadd.xlane.f32.xlu1 %v7436_v7  ;;  %v19890_v5 = vsub.f32 %v19544_v50, %v7204_v37 }
0x103c   : > { %v7207_v27 = vmul.f32 0.03125, %v7086_v10  ;;  %v7083_v18 = vpop.xlane.xlu1 %7082  ;;  %v7333_v30 = vmul.f32 %v19868_v16, %v19868_v16  ;;  %15683 = vmatpush3.bf16.msra.mxu0 %v19861_v33  ;;  %15727 = vmatpush3.bf16.msra.mxu1 %v19861_v33  ;;  %v7330_v31 = vmul.f32 %v19879_v45, %v19879_v45  ;;  %v23948_v33 = vld [vmem:[#allocation37_spill] sm:$0xff] }
0x103d   : > { %v7206_v34 = vmul.f32 0.03125, %v7083_v18 }
0x103e   : > { %v19882_v7 = vsub.f32 %v19551_v46, %v7207_v27  ;;  %v7463_v10 = vsel %vm6978_vm3, %v7333_v30, 0.0  ;;  %v7448_v30 = vsel %vm6978_vm3, %v7328_v19, 0.0 }
0x103f   : > { %v7092_v59 = vpop.xlane.xlu0 %7091  ;;  %7464 = vadd.xlane.f32.xlu0 %v7463_v10  ;;  %7443 = vadd.xlane.f32.xlu1 %v7442_v35  ;;  %v19902_v18 = vsub.f32 %v19554_v43, %v7206_v34 }
0x1040   : > { %v7209_v3 = vmul.f32 0.03125, %v7092_v59  ;;  %v7335_v53 = vmul.f32 %v19882_v7, %v19882_v7  ;;  %v7089_v38 = vpop.xlane.xlu1 %7088 }
0x1041   : > { %v7208_v37 = vmul.f32 0.03125, %v7089_v38  ;;  %v7334_v38 = vmul.f32 %v19902_v18, %v19902_v18 }
0x1042   : > { %v19893_v46 = vsub.f32 %v19561_v15, %v7209_v3  ;;  %v7469_v27 = vsel %vm6978_vm3, %v7335_v53, 0.0  ;;  %v7332_v15 = vmul.f32 %v19890_v5, %v19890_v5  ;;  %v7454_v3 = vsel %vm6978_vm3, %v7330_v31, 0.0 }
0x1043   : > { %v7098_v35 = vpop.xlane.xlu0 %7097  ;;  %7470 = vadd.xlane.f32.xlu0 %v7469_v27  ;;  %7449 = vadd.xlane.f32.xlu1 %v7448_v30 }
0x1044   : > { %v7211_v10 = vmul.f32 0.03125, %v7098_v35  ;;  %v7337_v50 = vmul.f32 %v19893_v46, %v19893_v46  ;;  %v7095_v53 = vpop.xlane.xlu1 %7094  ;;  %v7460_v34 = vsel %vm6978_vm3, %v7332_v15, 0.0  ;;  %v7466_v15 = vsel %vm6978_vm3, %v7334_v38, 0.0 }
0x1045   : > { %v7210_v35 = vmul.f32 0.03125, %v7095_v53 }
0x1046   : > { %v19907_v59 = vsub.f32 %v19571_v12, %v7211_v10  ;;  %v7475_v19 = vsel %vm6978_vm3, %v7337_v50, 0.0  ;;  %v19917_v12 = vsub.f32 %v19564_v0, %v7208_v37 }
0x1047   : > { %v7104_v27 = vpop.xlane.xlu0 %7103  ;;  %7476 = vadd.xlane.f32.xlu0 %v7475_v19  ;;  %7455 = vadd.xlane.f32.xlu1 %v7454_v3  ;;  %v19927_v3 = vsub.f32 %v19574_v39, %v7210_v35 }
0x1048   : > { %v7213_v30 = vmul.f32 0.03125, %v7104_v27  ;;  %v7339_v43 = vmul.f32 %v19907_v59, %v19907_v59 }
0x1049   : > { %v7338_v39 = vmul.f32 %v19927_v3, %v19927_v3 }
0x104a   : > { %v19920_v10 = vsub.f32 %v19581_v42, %v7213_v30  ;;  %v7481_v31 = vsel %vm6978_vm3, %v7339_v43, 0.0  ;;  %v7336_v42 = vmul.f32 %v19917_v12, %v19917_v12 }
0x104b   : > { %7482 = vadd.xlane.f32.xlu0 %v7481_v31  ;;  %v7101_v50 = vpop.xlane.xlu0 %7100  ;;  %7461 = vadd.xlane.f32.xlu1 %v7460_v34 }
0x104c   : > { %v7341_v19 = vmul.f32 %v19920_v10, %v19920_v10  ;;  %v7212_v27 = vmul.f32 0.03125, %v7101_v50  ;;  %v7472_v34 = vsel %vm6978_vm3, %v7336_v42, 0.0 }
0x104e   : > { %v7487_v0 = vsel %vm6978_vm3, %v7341_v19, 0.0  ;;  %v19933_v30 = vsub.f32 %v19584_v58, %v7212_v27  ;;  %v7478_v19 = vsel %vm6978_vm3, %v7338_v39, 0.0  ;;  %v19960_v39 = vadd.f32 %v19598_v47, %v19401_v26 }
0x104f   : > { %7488 = vadd.xlane.f32.xlu0 %v7487_v0  ;;  %v7110_v37 = vpop.xlane.xlu0 %7109  ;;  %7467 = vadd.xlane.f32.xlu1 %v7466_v15 }
0x1050   : > { %v7215_v53 = vmul.f32 0.03125, %v7110_v37 }
0x1052   : > { %v19936_v43 = vsub.f32 %v19589_v56, %v7215_v53  ;;  %v7340_v56 = vmul.f32 %v19933_v30, %v19933_v30 }
0x1053   : > { %v7107_v38 = vpop.xlane.xlu0 %7106  ;;  %7473 = vadd.xlane.f32.xlu1 %v7472_v34 }
0x1054   : > { %v7214_v35 = vmul.f32 0.03125, %v7107_v38  ;;  %v7343_v31 = vmul.f32 %v19936_v43, %v19936_v43  ;;  %v7484_v42 = vsel %vm6978_vm3, %v7340_v56, 0.0 }
0x1056   : > { %v19944_v50 = vsub.f32 %v19594_v54, %v7214_v35  ;;  %v7493_v58 = vsel %vm6978_vm3, %v7343_v31, 0.0 }
0x1057   : > { %7494 = vadd.xlane.f32.xlu0 %v7493_v58  ;;  %v7116_v15 = vpop.xlane.xlu0 %7115  ;;  %7479 = vadd.xlane.f32.xlu1 %v7478_v19  ;;  %v19971_v58 = vadd.f32 %v19600_v40, %v19406_v48  ;;  %v23934_v19 = vld [vmem:[#allocation27_spill] sm:$0xff] }
0x1058   : > { %23932 = vst [vmem:[#allocation83_spill] sm:$0xff] %v19944_v50  ;;  %v7217_v27 = vmul.f32 0.03125, %v7116_v15  ;;  %v7342_v54 = vmul.f32 %v19944_v50, %v19944_v50  ;;  %v19975_v47 = vadd.f32 %v23934_v19, %v19357_v55  ;;  %v23935_v15 = vld [vmem:[#allocation20_spill] sm:$0xff]  ;;  %v23944_v19 = vld [vmem:[#allocation18_spill] sm:$0xff] }
0x105a   : > { %v19951_v0 = vsub.f32 %v19603_v44, %v7217_v27  ;;  %v7490_v35 = vsel %vm6978_vm3, %v7342_v54, 0.0  ;;  %v23936_v27 = vld [vmem:[#allocation28_spill] sm:$0xff]  ;;  %v23938_v54 = vld [vmem:[#allocation6_spill] sm:$0xff]  ;;  %v7126_v40 = vsel %vm6978_vm3, %v19975_v47, 0.0 }
0x105b   : > { %v7113_v37 = vpop.xlane.xlu0 %7112  ;;  %7485 = vadd.xlane.f32.xlu1 %v7484_v42  ;;  %v19982_v42 = vadd.f32 %v23936_v27, %v23935_v15 }
0x105c   : > { %v7216_v53 = vmul.f32 0.03125, %v7113_v37  ;;  %v7345_v34 = vmul.f32 %v19951_v0, %v19951_v0  ;;  %v23939_v37 = vld [vmem:[#allocation35_spill] sm:$0xff] }
0x105d   : > { %23937 = vst [vmem:[#allocation88_spill] sm:$0xff] %v19982_v42 }
0x105e   : > { %v19963_v38 = vsub.f32 %v19612_v28, %v7216_v53  ;;  %v7499_v44 = vsel %vm6978_vm3, %v7345_v34, 0.0  ;;  %v7120_v28 = vsel %vm6978_vm3, %v19960_v39, 0.0  ;;  %v19986_v53 = vadd.f32 %v23939_v37, %v23938_v54 }
0x105f   : > { %7500 = vadd.xlane.f32.xlu0 %v7499_v44  ;;  %7491 = vadd.xlane.f32.xlu1 %v7490_v35  ;;  %v7117_v34 = vsel %vm6978_vm3, %v19971_v58, 0.0  ;;  %v23941_v44 = vld [vmem:[#allocation12_spill] sm:$0xff]  ;;  %v23942_v35 = vld [vmem:[#allocation15_spill] sm:$0xff]  ;;  %v7123_v37 = vsel %vm6978_vm3, %v19982_v42, 0.0 }
0x1060   : > { %23933 = vst [vmem:[#allocation86_spill] sm:$0xff] %v19963_v38  ;;  %v7344_v31 = vmul.f32 %v19963_v38, %v19963_v38  ;;  %23940 = vst [vmem:[#allocation89_spill] sm:$0xff] %v19986_v53  ;;  %v7132_v27 = vsel %vm6978_vm3, %v19986_v53, 0.0 }
0x1062   : > { %v7496_v56 = vsel %vm6978_vm3, %v7344_v31, 0.0  ;;  %v19994_v31 = vadd.f32 %v23942_v35, %v23941_v44 }
0x1063   : > { %7121 = vadd.xlane.f32.xlu0 %v7120_v28  ;;  %7497 = vadd.xlane.f32.xlu1 %v7496_v56  ;;  %v23945_v28 = vld [vmem:[#allocation17_spill] sm:$0xff] }
0x1064   : > { %23943 = vst [vmem:[#allocation91_spill] sm:$0xff] %v19994_v31  ;;  %v19998_v56 = vadd.f32 %v23945_v28, %v23944_v19  ;;  %v7129_v20 = vsel %vm6978_vm3, %v19994_v31, 0.0  ;;  %v23956_v31 = vld [vmem:[#allocation46_spill] sm:$0xff] }
0x1066   : > { %23946 = vst [vmem:[#allocation94_spill] sm:$0xff] %v19998_v56  ;;  %v7138_v28 = vsel %vm6978_vm3, %v19998_v56, 0.0 }
0x1067   : > { %7127 = vadd.xlane.f32.xlu0 %v7126_v40  ;;  %7118 = vadd.xlane.f32.xlu1 %v7117_v34  ;;  %v20006_v40 = vadd.f32 %v23948_v33, %v23947_v49  ;;  %v23950_v34 = vld [vmem:[#allocation39_spill] sm:$0xff] }
0x1068   : > { %v20010_v35 = vadd.f32 %v23950_v34, %v19401_v26 }
0x1069   : > { %23949 = vst [vmem:[#allocation95_spill] sm:$0xff] %v20006_v40  ;;  %v7135_v38 = vsel %vm6978_vm3, %v20006_v40, 0.0  ;;  %v23960_v40 = vld [vmem:[#allocation49_spill] sm:$0xff] }
0x106a   : > { %23951 = vst [vmem:[#allocation96_spill] sm:$0xff] %v20010_v35  ;;  %v7144_v34 = vsel %vm6978_vm3, %v20010_v35, 0.0 }
0x106b   : > { %7133 = vadd.xlane.f32.xlu0 %v7132_v27  ;;  %7124 = vadd.xlane.f32.xlu1 %v7123_v37  ;;  %v20018_v27 = vadd.f32 %v23952_v17, %v19406_v48  ;;  %v23954_v37 = vld [vmem:[#allocation43_spill] sm:$0xff] }
0x106c   : > { %v20022_v33 = vadd.f32 %v23954_v37, %v19357_v55 }
0x106d   : > { %23953 = vst [vmem:[#allocation99_spill] sm:$0xff] %v20018_v27  ;;  %v7141_v37 = vsel %vm6978_vm3, %v20018_v27, 0.0 }
0x106e   : > { %23955 = vst [vmem:[#allocation101_spill] sm:$0xff] %v20022_v33  ;;  %v7150_v55 = vsel %vm6978_vm3, %v20022_v33, 0.0 }
0x106f   : > { %7139 = vadd.xlane.f32.xlu0 %v7138_v28  ;;  %7130 = vadd.xlane.f32.xlu1 %v7129_v20  ;;  %v20030_v28 = vadd.f32 %v23956_v31, %v23935_v15  ;;  %v23958_v20 = vld [vmem:[#allocation47_spill] sm:$0xff] }
0x1070   : > { %v20034_v17 = vadd.f32 %v23958_v20, %v23938_v54  ;;  %v23964_v20 = vld [vmem:[#allocation52_spill] sm:$0xff] }
0x1071   : > { %23957 = vst [vmem:[#allocation103_spill] sm:$0xff] %v20030_v28  ;;  %v7147_v31 = vsel %vm6978_vm3, %v20030_v28, 0.0 }
0x1072   : > { %23959 = vst [vmem:[#allocation105_spill] sm:$0xff] %v20034_v17  ;;  %v7156_v54 = vsel %vm6978_vm3, %v20034_v17, 0.0 }
0x1073   : > { %7145 = vadd.xlane.f32.xlu0 %v7144_v34  ;;  %7136 = vadd.xlane.f32.xlu1 %v7135_v38  ;;  %v20042_v34 = vadd.f32 %v23960_v40, %v23941_v44  ;;  %v23962_v38 = vld [vmem:[#allocation51_spill] sm:$0xff] }
0x1074   : > { %v20046_v15 = vadd.f32 %v23962_v38, %v23944_v19  ;;  %v20066_v38 = vadd.f32 %v19644_v2, %v19406_v48  ;;  %v23971_v48 = vand.u32 4294901760, %v19815_v61 }
0x1075   : > { %23961 = vst [vmem:[#allocation109_spill] sm:$0xff] %v20042_v34  ;;  %v7153_v40 = vsel %vm6978_vm3, %v20042_v34, 0.0 }
0x1076   : > { %23963 = vst [vmem:[#allocation110_spill] sm:$0xff] %v20046_v15  ;;  %v7162_v19 = vsel %vm6978_vm3, %v20046_v15, 0.0  ;;  %23968 = vst [vmem:[#allocation116_spill] sm:$0xff] %v20066_v38  ;;  %v20082_v2 = vsub.f32 %v19815_v61, %v23971_v48 }
0x1077   : > { %7151 = vadd.xlane.f32.xlu0 %v7150_v55  ;;  %7142 = vadd.xlane.f32.xlu1 %v7141_v37  ;;  %v20054_v55 = vadd.f32 %v23964_v20, %v23947_v49  ;;  %v23966_v37 = vld [vmem:[#allocation56_spill] sm:$0xff] }
0x1078   : > { %v20058_v44 = vadd.f32 %v23966_v37, %v19401_v26  ;;  %v7165_v26 = vsel %vm6978_vm3, %v20066_v38, 0.0  ;;  %23972 = vst [vmem:[#allocation33_spill] sm:$0xff] %v20082_v2 }
0x1079   : > { %23965 = vst [vmem:[#allocation111_spill] sm:$0xff] %v20054_v55 }
0x107a   : > { %23967 = vst [vmem:[#allocation112_spill] sm:$0xff] %v20058_v44  ;;  %v7168_v49 = vsel %vm6978_vm3, %v20058_v44, 0.0 }
0x107b   : > { %7157 = vadd.xlane.f32.xlu0 %v7156_v54  ;;  %7148 = vadd.xlane.f32.xlu1 %v7147_v31  ;;  %v7159_v54 = vsel %vm6978_vm3, %v20054_v55, 0.0  ;;  %v23969_v31 = vand.u32 4294901760, %v19810_v60 }
0x107d   : > { %v20077_v20 = vsub.f32 %v19810_v60, %v23969_v31 }
0x107f   : > { %7163 = vadd.xlane.f32.xlu0 %v7162_v19  ;;  %7154 = vadd.xlane.f32.xlu1 %v7153_v40  ;;  %23970 = vst [vmem:[#allocation130_spill] sm:$0xff] %v20077_v20  ;;  %v23097_v19 = vand.u32 4294901760, %v20077_v20  ;;  %v23101_v40 = vand.u32 4294901760, %v20082_v2 }
0x1081   : > { %v8939_v60 = vsub.f32 %v20082_v2, %v23101_v40 }
0x1083   : > { %7169 = vadd.xlane.f32.xlu0 %v7168_v49  ;;  %7160 = vadd.xlane.f32.xlu1 %v7159_v54  ;;  %v8932_v54 = vsub.f32 %v20077_v20, %v23097_v19  ;;  %v8940_v55 = vand.u32 4294901760, %v8939_v60  ;;  %v23973_v60 = vld [vmem:[#allocation57_spill] sm:$0xff] }
0x1085   : > { %v8933_v38 = vand.u32 4294901760, %v8932_v54  ;;  %v20098_v54 = vld [vmem:[%s22756_s5] ss:$0 sm:$0xff] }
0x1087   : > { %7166 = vadd.xlane.f32.xlu1 %v7165_v26  ;;  %v20092_v48 = vpack.c.bf16 %v8940_v55, %v8933_v38 }
0x1089   : > { %15685 = vmatprep.subr.bf16.mxu0 %v20092_v48 }
0x108c   : > { %v7369_v37 = vpop.xlane.xlu1 %7368 }
0x108d   : > { %v7557_v49 = vmul.f32 0.03125, %v7369_v37 }
0x108f   : > { %v7621_v26 = vadd.f32 1e-05, %v7557_v49 }
0x1090   : > { %v7366_v31 = vpop.xlane.xlu1 %7365 }
0x1091   : > { %16609 = vrsqrt.f32 %v7621_v26  ;;  %v7556_v61 = vmul.f32 0.03125, %v7366_v31 }
0x1093   : > { %v7620_v44 = vadd.f32 1e-05, %v7556_v61 }
0x1094   : > { %v7375_v34 = vpop.xlane.xlu1 %7374 }
0x1095   : > { %16611 = vrsqrt.f32 %v7620_v44  ;;  %v7559_v37 = vmul.f32 0.03125, %v7375_v34 }
0x1097   : > { %v7623_v15 = vadd.f32 1e-05, %v7559_v37 }
0x1098   : > { %v7387_v19 = vpop.xlane.xlu0 %7386  ;;  %v7372_v20 = vpop.xlane.xlu1 %7371 }
0x1099   : > { %16613 = vrsqrt.f32 %v7623_v15  ;;  %v7563_v28 = vmul.f32 0.03125, %v7387_v19  ;;  %v7558_v40 = vmul.f32 0.03125, %v7372_v20  ;;  %v20104_v15 = vld [vmem:[%s22757_s6] ss:$0 sm:$0xff] }
0x109b   : > { %v16610_v49 = vpop.eup %16609  ;;  %v7627_v55 = vadd.f32 1e-05, %v7563_v28  ;;  %v7622_v38 = vadd.f32 1e-05, %v7558_v40  ;;  %v23974_v28 = vld [vmem:[#allocation60_spill] sm:$0xff] }
0x109c   : > { %v7749_v26 = vmul.f32 %v16610_v49, %v23973_v60  ;;  %v7393_v31 = vpop.xlane.xlu0 %7392  ;;  %v7381_v61 = vpop.xlane.xlu1 %7380 }
0x109d   : > { %16615 = vrsqrt.f32 %v7627_v55  ;;  %v7565_v34 = vmul.f32 0.03125, %v7393_v31  ;;  %v7561_v44 = vmul.f32 0.03125, %v7381_v61 }
0x109e   : > { %v7819_v20 = vmul.f32 %v20098_v54, %v7749_v26  ;;  %16617 = vrsqrt.f32 %v7622_v38  ;;  %v23975_v38 = vld [vmem:[#allocation61_spill] sm:$0xff] }
0x109f   : > { %v16612_v19 = vpop.eup %16611  ;;  %v7629_v37 = vadd.f32 1e-05, %v7565_v34  ;;  %v7625_v2 = vadd.f32 1e-05, %v7561_v44 }
0x10a0   : > { %v7748_v40 = vmul.f32 %v16612_v19, %v23974_v28  ;;  %v7399_v17 = vpop.xlane.xlu0 %7398  ;;  %v7378_v49 = vpop.xlane.xlu1 %7377  ;;  %v7889_v60 = vadd.f32 %v20104_v15, %v7819_v20 }
0x10a1   : > { %16619 = vrsqrt.f32 %v7629_v37  ;;  %v7567_v55 = vmul.f32 0.03125, %v7399_v17  ;;  %v7560_v31 = vmul.f32 0.03125, %v7378_v49 }
0x10a2   : > { %16621 = vrsqrt.f32 %v7625_v2  ;;  %v7818_v61 = vmul.f32 %v20098_v54, %v7748_v40  ;;  %v7953_v27 = vmax.f32 %v7889_v60, 0.0 }
0x10a3   : > { %v16614_v33 = vpop.eup %16613  ;;  %v7631_v35 = vadd.f32 1e-05, %v7567_v55  ;;  %v7624_v26 = vadd.f32 1e-05, %v7560_v31 }
0x10a4   : > { %v7751_v56 = vmul.f32 %v16614_v33, %v23975_v38  ;;  %v7405_v34 = vpop.xlane.xlu0 %7404  ;;  %v7384_v44 = vpop.xlane.xlu1 %7383  ;;  %v7888_v19 = vadd.f32 %v20104_v15, %v7818_v61  ;;  %v8031_v28 = vsel %vm6978_vm3, %v7953_v27, 0 }
0x10a5   : > { %16623 = vrsqrt.f32 %v7631_v35  ;;  %v7569_v20 = vmul.f32 0.03125, %v7405_v34  ;;  %v7562_v37 = vmul.f32 0.03125, %v7384_v44  ;;  %v20113_v17 = vand.u32 4294901760, %v8031_v28  ;;  %v23978_v44 = vld [vmem:[#allocation63_spill] sm:$0xff] }
0x10a6   : > { %16625 = vrsqrt.f32 %v7624_v26  ;;  %v7952_v2 = vmax.f32 %v7888_v19, 0.0  ;;  %v7821_v40 = vmul.f32 %v20098_v54, %v7751_v56 }
0x10a7   : > { %23976 = vst [vmem:[#allocation34_spill] sm:$0xff] %v20113_v17  ;;  %v16616_v49 = vpop.eup %16615  ;;  %v7633_v60 = vadd.f32 1e-05, %v7569_v20  ;;  %v7626_v55 = vadd.f32 1e-05, %v7562_v37  ;;  %v20117_v33 = vsub.f32 %v8031_v28, %v20113_v17 }
0x10a8   : > { %v16618_v31 = vpop.eup %16617  ;;  %v7755_v61 = vmul.f32 %v16616_v49, %v19672_v25  ;;  %v7411_v38 = vpop.xlane.xlu0 %7410  ;;  %v8028_v35 = vsel %vm6978_vm3, %v7952_v2, 0  ;;  %v7891_v34 = vadd.f32 %v20104_v15, %v7821_v40 }
0x10a9   : > { %23977 = vst [vmem:[#allocation36_spill] sm:$0xff] %v20117_v33  ;;  %v7390_v27 = vpop.xlane.xlu1 %7389  ;;  %v7750_v26 = vmul.f32 %v16618_v31, %v23978_v44  ;;  %16627 = vrsqrt.f32 %v7633_v60  ;;  %v7571_v19 = vmul.f32 0.03125, %v7411_v38  ;;  %v20123_v20 = vand.u32 4294901760, %v8028_v35 }
0x10aa   : > { %v7564_v56 = vmul.f32 0.03125, %v7390_v27  ;;  %16629 = vrsqrt.f32 %v7626_v55  ;;  %v23115_v28 = vand.u32 4294901760, %v20117_v33  ;;  %v7955_v37 = vmax.f32 %v7891_v34, 0.0 }
0x10ab   : > { %23979 = vst [vmem:[#allocation115_spill] sm:$0xff] %v20123_v20  ;;  %v16620_v17 = vpop.eup %16619  ;;  %v7635_v42 = vadd.f32 1e-05, %v7571_v19  ;;  %v7820_v49 = vmul.f32 %v20098_v54, %v7750_v26  ;;  %v7825_v2 = vmul.f32 %v20098_v54, %v7755_v61  ;;  %v20132_v55 = vsub.f32 %v8028_v35, %v20123_v20 }
0x10ac   : > { %v7628_v25 = vadd.f32 1e-05, %v7564_v56  ;;  %v16622_v53 = vpop.eup %16621  ;;  %v20129_v40 = vmul.f32 %v16620_v17, %v19682_v52  ;;  %v7417_v60 = vpop.xlane.xlu0 %7416  ;;  %v8301_v38 = vsub.f32 %v20117_v33, %v23115_v28  ;;  %v8037_v27 = vsel %vm6978_vm3, %v7955_v37, 0 }
0x10ad   : > { %v7396_v31 = vpop.xlane.xlu1 %7395  ;;  %23980 = vst [vmem:[#allocation119_spill] sm:$0xff] %v20132_v55  ;;  %v7753_v34 = vmul.f32 %v16622_v53, %v19669_v11  ;;  %16631 = vrsqrt.f32 %v7635_v42  ;;  %v7573_v44 = vmul.f32 0.03125, %v7417_v60  ;;  %v23119_v52 = vand.u32 4294901760, %v20132_v55 }
0x10ae   : > { %v7566_v61 = vmul.f32 0.03125, %v7396_v31  ;;  %16633 = vrsqrt.f32 %v7628_v25  ;;  %v8302_v17 = vand.u32 4294901760, %v8301_v38  ;;  %v7890_v26 = vadd.f32 %v20104_v15, %v7820_v49 }
0x10af   : > { %v16624_v19 = vpop.eup %16623  ;;  %v7637_v35 = vadd.f32 1e-05, %v7573_v44  ;;  %v20141_v20 = vand.u32 4294901760, %v8037_v27  ;;  %v7823_v28 = vmul.f32 %v20098_v54, %v7753_v34  ;;  %v8291_v53 = vsub.f32 %v20132_v55, %v23119_v52 }
0x10b0   : > { %v7630_v56 = vadd.f32 1e-05, %v7566_v61  ;;  %v16626_v33 = vpop.eup %16625  ;;  %v20145_v37 = vmul.f32 %v16624_v19, %v19695_v24  ;;  %v7423_v11 = vpop.xlane.xlu0 %7422  ;;  %v7954_v25 = vmax.f32 %v7890_v26, 0.0  ;;  %v20151_v49 = vadd.f32 %v20104_v15, %v7825_v2 }
0x10b1   : > { %23981 = vst [vmem:[#allocation125_spill] sm:$0xff] %v20141_v20  ;;  %v7402_v42 = vpop.xlane.xlu1 %7401  ;;  %v7752_v60 = vmul.f32 %v16626_v33, %v19678_v29  ;;  %16635 = vrsqrt.f32 %v7637_v35  ;;  %v7575_v31 = vmul.f32 0.03125, %v7423_v11  ;;  %v8292_v34 = vand.u32 4294901760, %v8291_v53 }
0x10b2   : > { %v7568_v38 = vmul.f32 0.03125, %v7402_v42  ;;  %16637 = vrsqrt.f32 %v7630_v56  ;;  %v8034_v24 = vsel %vm6978_vm3, %v7954_v25, 0  ;;  %v20156_v44 = vsub.f32 %v8037_v27, %v20141_v20 }
0x10b3   : > { %v16628_v61 = vpop.eup %16627  ;;  %v7639_v19 = vadd.f32 1e-05, %v7575_v31  ;;  %v20158_v52 = vand.u32 4294901760, %v8034_v24  ;;  %v7822_v2 = vmul.f32 %v20098_v54, %v7752_v60  ;;  %14772 = vmatprep.mubr.f32.mxu0 %v8292_v34  ;;  %v7893_v11 = vadd.f32 %v20104_v15, %v7823_v28 }
0x10b4   : > { %23982 = vst [vmem:[#allocation126_spill] sm:$0xff] %v20156_v44  ;;  %v7632_v50 = vadd.f32 1e-05, %v7568_v38  ;;  %v16630_v26 = vpop.eup %16629  ;;  %v20162_v29 = vmul.f32 %v16628_v61, %v19705_v23  ;;  %v7429_v33 = vpop.xlane.xlu0 %7428  ;;  %v23120_v56 = vand.u32 4294901760, %v20156_v44  ;;  %v7959_v27 = vmax.f32 %v20151_v49, 0.0  ;;  %14773 = vmatmul.mubr.f32.vlgmr.msra.gmra.mrb[10].mxu0 %v8302_v17 }
0x10b5   : > { %23983 = vst [vmem:[#allocation129_spill] sm:$0xff] %v20158_v52  ;;  %v7408_v35 = vpop.xlane.xlu1 %7407  ;;  %v7754_v42 = vmul.f32 %v16630_v26, %v19692_v32  ;;  %16639 = vrsqrt.f32 %v7639_v19  ;;  %v7577_v53 = vmul.f32 0.03125, %v7429_v33  ;;  %v20169_v60 = vsub.f32 %v8034_v24, %v20158_v52  ;;  %15687 = vmatpush3.bf16.msra.mxu0 %v20092_v48 }
0x10b6   : > { %v7570_v25 = vmul.f32 0.03125, %v7408_v35  ;;  %16641 = vrsqrt.f32 %v7632_v50  ;;  %v8321_v23 = vsub.f32 %v20156_v44, %v23120_v56  ;;  %v7892_v31 = vadd.f32 %v20104_v15, %v7822_v2 }
0x10b7   : > { %23984 = vst [vmem:[#allocation132_spill] sm:$0xff] %v20169_v60  ;;  %v16632_v28 = vpop.eup %16631  ;;  %v7641_v49 = vadd.f32 1e-05, %v7577_v53  ;;  %v7957_v32 = vmax.f32 %v7893_v11, 0.0  ;;  %v7824_v34 = vmul.f32 %v20098_v54, %v7754_v42  ;;  %v23121_v19 = vand.u32 4294901760, %v20169_v60 }
0x10b8   : > { %v7634_v38 = vadd.f32 1e-05, %v7570_v25  ;;  %v16634_v17 = vpop.eup %16633  ;;  %v20178_v50 = vmul.f32 %v16632_v28, %v19719_v41  ;;  %v7435_v24 = vpop.xlane.xlu0 %7434  ;;  %v8322_v26 = vand.u32 4294901760, %v8321_v23  ;;  %v7956_v33 = vmax.f32 %v7892_v31, 0.0 }
0x10b9   : > { %v7414_v61 = vpop.xlane.xlu1 %7413  ;;  %v7756_v2 = vmul.f32 %v16634_v17, %v19702_v13  ;;  %16643 = vrsqrt.f32 %v7641_v49  ;;  %v7579_v48 = vmul.f32 0.03125, %v7435_v24  ;;  %v8311_v11 = vsub.f32 %v20169_v60, %v23121_v19 }
0x10ba   : > { %v7572_v35 = vmul.f32 0.03125, %v7414_v61  ;;  %16645 = vrsqrt.f32 %v7634_v38  ;;  %v8040_v42 = vsel %vm6978_vm3, %v7956_v33, 0  ;;  %v8043_v41 = vsel %vm6978_vm3, %v7957_v32, 0  ;;  %v23987_v33 = vld [vmem:[#allocation66_spill] sm:$0xff] }
0x10bb   : > { %v16636_v53 = vpop.eup %16635  ;;  %v7643_v25 = vadd.f32 1e-05, %v7579_v48  ;;  %v20187_v56 = vand.u32 4294901760, %v8040_v42  ;;  %v20189_v23 = vand.u32 4294901760, %v8043_v41  ;;  %v8312_v49 = vand.u32 4294901760, %v8311_v11 }
0x10bc   : > { %v7636_v28 = vadd.f32 1e-05, %v7572_v35  ;;  %v16638_v13 = vpop.eup %16637  ;;  %v20192_v31 = vmul.f32 %v16636_v53, %v19732_v63  ;;  %v7441_v38 = vpop.xlane.xlu0 %7440  ;;  %v7894_v24 = vadd.f32 %v20104_v15, %v7824_v34  ;;  %v8049_v61 = vsel %vm6978_vm3, %v7959_v27, 0 }
0x10bd   : > { %23985 = vst [vmem:[#allocation135_spill] sm:$0xff] %v20187_v56  ;;  %23986 = vst [vmem:[#allocation138_spill] sm:$0xff] %v20189_v23  ;;  %v7420_v17 = vpop.xlane.xlu1 %7419  ;;  %v7758_v32 = vmul.f32 %v16638_v13, %v23987_v33  ;;  %16647 = vrsqrt.f32 %v7643_v25  ;;  %v7581_v48 = vmul.f32 0.03125, %v7441_v38  ;;  %14775 = vmatprep.mubr.f32.mxu0 %v8312_v49  ;;  %v20198_v19 = vsub.f32 %v8040_v42, %v20187_v56 }
0x10be   : > { %v7574_v35 = vmul.f32 0.03125, %v7420_v17  ;;  %16649 = vrsqrt.f32 %v7636_v28  ;;  %v20201_v63 = vsub.f32 %v8043_v41, %v20189_v23  ;;  %v7958_v11 = vmax.f32 %v7894_v24, 0.0  ;;  %14776 = vmatmul.mubr.f32.gmra.mrb[12].mxu0 %v8322_v26 }
0x10bf   : > { %23988 = vst [vmem:[#allocation140_spill] sm:$0xff] %v20198_v19  ;;  %v16640_v53 = vpop.eup %16639  ;;  %v7645_v44 = vadd.f32 1e-05, %v7581_v48  ;;  %v20203_v60 = vand.u32 4294901760, %v8049_v61  ;;  %v7826_v27 = vmul.f32 %v20098_v54, %v7756_v2  ;;  %v23126_v42 = vand.u32 4294901760, %v20198_v19 }
0x10c0   : > { %23989 = vst [vmem:[#allocation19_spill] sm:$0xff] %v20201_v63  ;;  %v7638_v34 = vadd.f32 1e-05, %v7574_v35  ;;  %v16642_v25 = vpop.eup %16641  ;;  %v20207_v13 = vmul.f32 %v16640_v53, %v19742_v21  ;;  %v7447_v28 = vpop.xlane.xlu0 %7446  ;;  %v23127_v41 = vand.u32 4294901760, %v20201_v63  ;;  %v8046_v38 = vsel %vm6978_vm3, %v7958_v11, 0 }
0x10c1   : > { %23990 = vst [vmem:[#allocation21_spill] sm:$0xff] %v20203_v60  ;;  %v7426_v49 = vpop.xlane.xlu1 %7425  ;;  %v7760_v17 = vmul.f32 %v16642_v25, %v19729_v9  ;;  %16651 = vrsqrt.f32 %v7645_v44  ;;  %v7583_v26 = vmul.f32 0.03125, %v7447_v28  ;;  %v8331_v2 = vsub.f32 %v20198_v19, %v23126_v42 }
0x10c2   : > { %v7576_v24 = vmul.f32 0.03125, %v7426_v49  ;;  %16653 = vrsqrt.f32 %v7638_v34  ;;  %v8341_v21 = vsub.f32 %v20201_v63, %v23127_v41  ;;  %v20219_v33 = vand.u32 4294901760, %v8046_v38 }
0x10c3   : > { %v16644_v48 = vpop.eup %16643  ;;  %v7647_v35 = vadd.f32 1e-05, %v7583_v26  ;;  %v20222_v11 = vsub.f32 %v8049_v61, %v20203_v60  ;;  %v7896_v9 = vadd.f32 %v20104_v15, %v7826_v27  ;;  %v8332_v25 = vand.u32 4294901760, %v8331_v2 }
0x10c4   : > { %23991 = vst [vmem:[#allocation11_spill] sm:$0xff] %v20219_v33  ;;  %v7640_v53 = vadd.f32 1e-05, %v7576_v24  ;;  %v16646_v44 = vpop.eup %16645  ;;  %v20226_v34 = vmul.f32 %v16644_v48, %v19753_v36  ;;  %v7453_v28 = vpop.xlane.xlu0 %7452  ;;  %v8342_v49 = vand.u32 4294901760, %v8341_v21  ;;  %v20229_v41 = vsub.f32 %v8046_v38, %v20219_v33 }
0x10c5   : > { %23992 = vst [vmem:[#allocation23_spill] sm:$0xff] %v20222_v11  ;;  %v7432_v42 = vpop.xlane.xlu1 %7431  ;;  %v20232_v63 = vmul.f32 %v16646_v44, %v19739_v14  ;;  %16655 = vrsqrt.f32 %v7647_v35  ;;  %v7585_v26 = vmul.f32 0.03125, %v7453_v28  ;;  %14778 = vmatprep.mubr.f32.mxu0 %v8332_v25  ;;  %v23135_v36 = vand.u32 4294901760, %v20222_v11 }
0x10c6   : > { %23993 = vst [vmem:[#allocation16_spill] sm:$0xff] %v20229_v41  ;;  %v7578_v61 = vmul.f32 0.03125, %v7432_v42  ;;  %16657 = vrsqrt.f32 %v7640_v53  ;;  %v23130_v27 = vand.u32 4294901760, %v20229_v41  ;;  %v7960_v24 = vmax.f32 %v7896_v9, 0.0  ;;  %14779 = vmatmul.mubr.f32.gmra.mrb[14].mxu0 %v8342_v49 }
0x10c7   : > { %v16648_v2 = vpop.eup %16647  ;;  %v7649_v48 = vadd.f32 1e-05, %v7585_v26  ;;  %v7827_v38 = vmul.f32 %v20098_v54, %v20129_v40  ;;  %v7828_v14 = vmul.f32 %v20098_v54, %v7758_v32  ;;  %v8361_v9 = vsub.f32 %v20222_v11, %v23135_v36 }
0x10c8   : > { %v7642_v21 = vadd.f32 1e-05, %v7578_v61  ;;  %v16650_v44 = vpop.eup %16649  ;;  %v20240_v35 = vmul.f32 %v16648_v2, %v19767_v1  ;;  %v8351_v42 = vsub.f32 %v20229_v41, %v23130_v27  ;;  %v7459_v53 = vpop.xlane.xlu0 %7458  ;;  %v8052_v28 = vsel %vm6978_vm3, %v7960_v24, 0 }
0x10c9   : > { %v7438_v25 = vpop.xlane.xlu1 %7437  ;;  %v20250_v40 = vmul.f32 %v16650_v44, %v19750_v22  ;;  %16659 = vrsqrt.f32 %v7649_v48  ;;  %v7587_v32 = vmul.f32 0.03125, %v7459_v53  ;;  %v8362_v26 = vand.u32 4294901760, %v8361_v9 }
0x10ca   : > { %v7580_v49 = vmul.f32 0.03125, %v7438_v25  ;;  %16661 = vrsqrt.f32 %v7642_v21  ;;  %v8352_v1 = vand.u32 4294901760, %v8351_v42  ;;  %v20252_v61 = vand.u32 4294901760, %v8052_v28 }
0x10cb   : > { %v16652_v2 = vpop.eup %16651  ;;  %v7651_v27 = vadd.f32 1e-05, %v7587_v32  ;;  %v7897_v19 = vadd.f32 %v20104_v15, %v7827_v38  ;;  %v7898_v36 = vadd.f32 %v20104_v15, %v7828_v14  ;;  %v7829_v44 = vmul.f32 %v20098_v54, %v20145_v37 }
0x10cc   : > { %23994 = vst [vmem:[#allocation4_spill] sm:$0xff] %v20252_v61  ;;  %v7644_v41 = vadd.f32 1e-05, %v7580_v49  ;;  %v16654_v11 = vpop.eup %16653  ;;  %v20257_v24 = vmul.f32 %v16652_v2, %v19780_v51  ;;  %14781 = vmatprep.mubr.f32.mxu0 %v8352_v1  ;;  %v20260_v22 = vsub.f32 %v8052_v28, %v20252_v61  ;;  %v7465_v48 = vpop.xlane.xlu0 %7464  ;;  %v7830_v42 = vmul.f32 %v20098_v54, %v7760_v17 }
0x10cd   : > { %v7444_v21 = vpop.xlane.xlu1 %7443  ;;  %v20266_v53 = vmul.f32 %v16654_v11, %v19762_v57  ;;  %16663 = vrsqrt.f32 %v7651_v27  ;;  %14782 = vmatmul.mubr.f32.gmra.mrb[16].mxu0 %v8362_v26  ;;  %v7589_v38 = vmul.f32 0.03125, %v7465_v48  ;;  %v7961_v14 = vmax.f32 %v7897_v19, 0.0 }
0x10ce   : > { %23995 = vst [vmem:[#allocation26_spill] sm:$0xff] %v20260_v22  ;;  %16665 = vrsqrt.f32 %v7644_v41  ;;  %v23138_v51 = vand.u32 4294901760, %v20260_v22  ;;  %v7582_v9 = vmul.f32 0.03125, %v7444_v21  ;;  %v7962_v25 = vmax.f32 %v7898_v36, 0.0 }
0x10cf   : > { %v16656_v28 = vpop.eup %16655  ;;  %v7653_v32 = vadd.f32 1e-05, %v7589_v38  ;;  %v8055_v49 = vsel %vm6978_vm3, %v7961_v14, 0  ;;  %v7899_v37 = vadd.f32 %v20104_v15, %v7829_v44  ;;  %v7900_v17 = vadd.f32 %v20104_v15, %v7830_v42 }
0x10d0   : > { %v16658_v1 = vpop.eup %16657  ;;  %v20273_v57 = vmul.f32 %v16656_v28, %v19790_v4  ;;  %v8371_v19 = vsub.f32 %v20260_v22, %v23138_v51  ;;  %v20278_v41 = vand.u32 4294901760, %v8055_v49  ;;  %v7646_v11 = vadd.f32 1e-05, %v7582_v9  ;;  %v7471_v27 = vpop.xlane.xlu0 %7470  ;;  %v24005_v22 = vld [vmem:[#allocation69_spill] sm:$0xff] }
0x10d1   : > { %v7450_v36 = vpop.xlane.xlu1 %7449  ;;  %v20281_v26 = vmul.f32 %v16658_v1, %v19777_v6  ;;  %16667 = vrsqrt.f32 %v7653_v32  ;;  %v8058_v2 = vsel %vm6978_vm3, %v7962_v25, 0  ;;  %v7591_v48 = vmul.f32 0.03125, %v7471_v27 }
0x10d2   : > { %23996 = vst [vmem:[#allocation24_spill] sm:$0xff] %v20278_v41  ;;  %v8372_v21 = vand.u32 4294901760, %v8371_v19  ;;  %v20285_v4 = vsub.f32 %v8055_v49, %v20278_v41  ;;  %16669 = vrsqrt.f32 %v7646_v11  ;;  %v20287_v44 = vand.u32 4294901760, %v8058_v2  ;;  %v24000_v11 = vld [vmem:[#allocation67_spill] sm:$0xff] }
0x10d3   : > { %v16660_v42 = vpop.eup %16659  ;;  %v7655_v38 = vadd.f32 1e-05, %v7591_v48  ;;  %v7963_v14 = vmax.f32 %v7899_v37, 0.0  ;;  %v7584_v9 = vmul.f32 0.03125, %v7450_v36  ;;  %v7964_v28 = vmax.f32 %v7900_v17, 0.0 }
0x10d4   : > { %23997 = vst [vmem:[#allocation25_spill] sm:$0xff] %v20285_v4  ;;  %23998 = vst [vmem:[#allocation29_spill] sm:$0xff] %v20287_v44  ;;  %v16662_v51 = vpop.eup %16661  ;;  %v20290_v6 = vmul.f32 %v16660_v42, %v19801_v8  ;;  %14784 = vmatprep.mubr.f32.mxu0 %v8372_v21  ;;  %v23139_v25 = vand.u32 4294901760, %v20285_v4  ;;  %v20294_v32 = vsub.f32 %v8058_v2, %v20287_v44  ;;  %v7477_v49 = vpop.xlane.xlu0 %7476 }
0x10d5   : > { %v7831_v1 = vmul.f32 %v20098_v54, %v20162_v29  ;;  %v7456_v19 = vpop.xlane.xlu1 %7455  ;;  %v20299_v27 = vmul.f32 %v16662_v51, %v24000_v11  ;;  %16671 = vrsqrt.f32 %v7655_v38  ;;  %v8061_v37 = vsel %vm6978_vm3, %v7963_v14, 0  ;;  %v24003_v14 = vld [vmem:[#allocation75_spill] sm:$0xff] }
0x10d6   : > { %23999 = vst [vmem:[#allocation30_spill] sm:$0xff] %v20294_v32  ;;  %v7648_v17 = vadd.f32 1e-05, %v7584_v9  ;;  %v8381_v8 = vsub.f32 %v20285_v4, %v23139_v25  ;;  %v23146_v36 = vand.u32 4294901760, %v20294_v32  ;;  %v20306_v2 = vand.u32 4294901760, %v8061_v37 }
0x10d7   : > { %v8064_v48 = vsel %vm6978_vm3, %v7964_v28, 0  ;;  %v16664_v21 = vpop.eup %16663  ;;  %v7593_v51 = vmul.f32 0.03125, %v7477_v49  ;;  %v7901_v42 = vadd.f32 %v20104_v15, %v7831_v1 }
0x10d8   : > { %24001 = vst [vmem:[#allocation31_spill] sm:$0xff] %v20306_v2  ;;  %16673 = vrsqrt.f32 %v7648_v17  ;;  %v20309_v29 = vand.u32 4294901760, %v8064_v48  ;;  %v16666_v38 = vpop.eup %16665  ;;  %v20313_v9 = vmul.f32 %v16664_v21, %v24003_v14  ;;  %v8382_v11 = vand.u32 4294901760, %v8381_v8  ;;  %v7483_v28 = vpop.xlane.xlu0 %7482 }
0x10d9   : > { %v8391_v25 = vsub.f32 %v20294_v32, %v23146_v36  ;;  %v20319_v4 = vsub.f32 %v8061_v37, %v20306_v2  ;;  %v20322_v17 = vmul.f32 %v16666_v38, %v24005_v22  ;;  %v7657_v1 = vadd.f32 1e-05, %v7593_v51  ;;  %v7462_v32 = vpop.xlane.xlu1 %7461 }
0x10da   : > { %24002 = vst [vmem:[#allocation32_spill] sm:$0xff] %v20309_v29  ;;  %v20325_v49 = vsub.f32 %v8064_v48, %v20309_v29  ;;  %v7965_v55 = vmax.f32 %v7901_v42, 0.0  ;;  %14785 = vmatmul.mubr.f32.gmra.mrb[18].mxu0 %v8382_v11  ;;  %v7586_v14 = vmul.f32 0.03125, %v7456_v19  ;;  %v7832_v36 = vmul.f32 %v20098_v54, %v20232_v63  ;;  %v24008_v42 = vld [vmem:[#allocation71_spill] sm:$0xff] }
0x10db   : > { %24004 = vst [vmem:[#allocation38_spill] sm:$0xff] %v20319_v4  ;;  %v8392_v21 = vand.u32 4294901760, %v8391_v25  ;;  %v23151_v8 = vand.u32 4294901760, %v20319_v4  ;;  %v16668_v37 = vpop.eup %16667  ;;  %16675 = vrsqrt.f32 %v7657_v1  ;;  %v7595_v38 = vmul.f32 0.03125, %v7483_v28 }
0x10dc   : > { %24006 = vst [vmem:[#allocation40_spill] sm:$0xff] %v20325_v49  ;;  %v23157_v2 = vand.u32 4294901760, %v20325_v49  ;;  %v8067_v22 = vsel %vm6978_vm3, %v7965_v55, 0  ;;  %v16670_v48 = vpop.eup %16669  ;;  %v20333_v51 = vmul.f32 %v16668_v37, %v19868_v16  ;;  %v7650_v63 = vadd.f32 1e-05, %v7586_v14 }
0x10dd   : > { %14787 = vmatprep.mubr.f32.mxu0 %v8392_v21  ;;  %v8401_v25 = vsub.f32 %v20319_v4, %v23151_v8  ;;  %v20338_v19 = vand.u32 4294901760, %v8067_v22  ;;  %v20341_v11 = vmul.f32 %v16670_v48, %v24008_v42  ;;  %v7902_v28 = vadd.f32 %v20104_v15, %v7832_v36  ;;  %v7489_v8 = vpop.xlane.xlu0 %7488 }
0x10de   : > { %v8411_v55 = vsub.f32 %v20325_v49, %v23157_v2  ;;  %v7659_v1 = vadd.f32 1e-05, %v7595_v38  ;;  %16677 = vrsqrt.f32 %v7650_v63  ;;  %v7833_v37 = vmul.f32 %v20098_v54, %v20178_v50 }
0x10df   : > { %24007 = vst [vmem:[#allocation42_spill] sm:$0xff] %v20338_v19  ;;  %v8402_v16 = vand.u32 4294901760, %v8401_v25  ;;  %v20348_v21 = vsub.f32 %v8067_v22, %v20338_v19  ;;  %v16672_v14 = vpop.eup %16671  ;;  %v7966_v48 = vmax.f32 %v7902_v28, 0.0  ;;  %v7588_v42 = vmul.f32 0.03125, %v7462_v32  ;;  %v7468_v25 = vpop.xlane.xlu1 %7467 }
0x10e0   : > { %v8412_v4 = vand.u32 4294901760, %v8411_v55  ;;  %16679 = vrsqrt.f32 %v7659_v1  ;;  %v20353_v29 = vmul.f32 %v16672_v14, %v19882_v7  ;;  %v7903_v38 = vadd.f32 %v20104_v15, %v7833_v37 }
0x10e1   : > { %24009 = vst [vmem:[#allocation44_spill] sm:$0xff] %v20348_v21  ;;  %14788 = vmatmul.mubr.f32.gmra.mrb[20].mxu0 %v8402_v16  ;;  %v23156_v36 = vand.u32 4294901760, %v20348_v21  ;;  %v7834_v22 = vmul.f32 %v20098_v54, %v20250_v40  ;;  %v8070_v50 = vsel %vm6978_vm3, %v7966_v48, 0  ;;  %v7652_v55 = vadd.f32 1e-05, %v7588_v42 }
0x10e2   : > { %v16674_v63 = vpop.eup %16673  ;;  %14790 = vmatprep.mubr.f32.mxu0 %v8412_v4  ;;  %v7597_v28 = vmul.f32 0.03125, %v7489_v8  ;;  %v7835_v32 = vmul.f32 %v20098_v54, %v20192_v31  ;;  %v20368_v16 = vand.u32 4294901760, %v8070_v50  ;;  %v7967_v40 = vmax.f32 %v7903_v38, 0.0 }
0x10e3   : > { %v20363_v7 = vmul.f32 %v16674_v63, %v19865_v62  ;;  %v8421_v1 = vsub.f32 %v20348_v21, %v23156_v36  ;;  %16681 = vrsqrt.f32 %v7652_v55  ;;  %v7904_v4 = vadd.f32 %v20104_v15, %v7834_v22 }
0x10e4   : > { %24010 = vst [vmem:[#allocation45_spill] sm:$0xff] %v20368_v16  ;;  %v7661_v37 = vadd.f32 1e-05, %v7597_v28  ;;  %v7905_v14 = vadd.f32 %v20104_v15, %v7835_v32  ;;  %v20373_v48 = vsub.f32 %v8070_v50, %v20368_v16  ;;  %v8073_v62 = vsel %vm6978_vm3, %v7967_v40, 0  ;;  %v7474_v28 = vpop.xlane.xlu1 %7473 }
0x10e5   : > { %v8422_v8 = vand.u32 4294901760, %v8421_v1  ;;  %v7590_v31 = vmul.f32 0.03125, %v7468_v25  ;;  %v16676_v42 = vpop.eup %16675  ;;  %v20376_v63 = vand.u32 4294901760, %v8073_v62  ;;  %v7968_v36 = vmax.f32 %v7904_v4, 0.0 }
0x10e6   : > { %24011 = vst [vmem:[#allocation48_spill] sm:$0xff] %v20373_v48  ;;  %16683 = vrsqrt.f32 %v7661_v37  ;;  %v7969_v2 = vmax.f32 %v7905_v14, 0.0  ;;  %v20379_v38 = vmul.f32 %v16676_v42, %v19893_v46  ;;  %v23158_v22 = vand.u32 4294901760, %v20373_v48 }
0x10e7   : > { %24012 = vst [vmem:[#allocation50_spill] sm:$0xff] %v20376_v63  ;;  %14791 = vmatmul.mubr.f32.gmra.mrb[22].mxu0 %v8422_v8  ;;  %v7654_v55 = vadd.f32 1e-05, %v7590_v31  ;;  %v7836_v50 = vmul.f32 %v20098_v54, %v20266_v53  ;;  %v20385_v32 = vsub.f32 %v8073_v62, %v20376_v63  ;;  %v8076_v25 = vsel %vm6978_vm3, %v7968_v36, 0  ;;  %v7495_v62 = vpop.xlane.xlu0 %7494 }
0x10e8   : > { %v8079_v1 = vsel %vm6978_vm3, %v7969_v2, 0  ;;  %v7837_v40 = vmul.f32 %v20098_v54, %v20207_v13  ;;  %v16678_v46 = vpop.eup %16677  ;;  %v8431_v4 = vsub.f32 %v20373_v48, %v23158_v22  ;;  %v20394_v37 = vand.u32 4294901760, %v8076_v25 }
0x10e9   : > { %24013 = vst [vmem:[#allocation53_spill] sm:$0xff] %v20385_v32  ;;  %v20396_v14 = vand.u32 4294901760, %v8079_v1  ;;  %16685 = vrsqrt.f32 %v7654_v55  ;;  %v20399_v8 = vmul.f32 %v16678_v46, %v19879_v45  ;;  %v23167_v36 = vand.u32 4294901760, %v20385_v32 }
0x10ea   : > { %24014 = vst [vmem:[#allocation54_spill] sm:$0xff] %v20394_v37  ;;  %v16680_v53 = vpop.eup %16679  ;;  %v7906_v2 = vadd.f32 %v20104_v15, %v7836_v50  ;;  %v7907_v13 = vadd.f32 %v20104_v15, %v7837_v40  ;;  %v8432_v31 = vand.u32 4294901760, %v8431_v4  ;;  %v20408_v22 = vsub.f32 %v8076_v25, %v20394_v37 }
0x10eb   : > { %24015 = vst [vmem:[#allocation55_spill] sm:$0xff] %v20396_v14  ;;  %v20405_v42 = vmul.f32 %v16680_v53, %v19907_v59  ;;  %v20411_v55 = vsub.f32 %v8079_v1, %v20396_v14  ;;  %v8441_v45 = vsub.f32 %v20385_v32, %v23167_v36  ;;  %v7592_v50 = vmul.f32 0.03125, %v7474_v28  ;;  %v7480_v53 = vpop.xlane.xlu1 %7479 }
0x10ec   : > { %24016 = vst [vmem:[#allocation58_spill] sm:$0xff] %v20408_v22  ;;  %v7970_v46 = vmax.f32 %v7906_v2, 0.0  ;;  %v7971_v48 = vmax.f32 %v7907_v13, 0.0  ;;  %14793 = vmatprep.mubr.f32.mxu0 %v8432_v31  ;;  %v23169_v40 = vand.u32 4294901760, %v20408_v22  ;;  %v7838_v59 = vmul.f32 %v20098_v54, %v20281_v26 }
0x10ed   : > { %24017 = vst [vmem:[#allocation59_spill] sm:$0xff] %v20411_v55  ;;  %v23168_v4 = vand.u32 4294901760, %v20411_v55  ;;  %v7599_v25 = vmul.f32 0.03125, %v7495_v62  ;;  %v16682_v21 = vpop.eup %16681  ;;  %v8442_v1 = vand.u32 4294901760, %v8441_v45  ;;  %v7656_v36 = vadd.f32 1e-05, %v7592_v50 }
0x10ee   : > { %v8082_v49 = vsel %vm6978_vm3, %v7970_v46, 0  ;;  %v8085_v14 = vsel %vm6978_vm3, %v7971_v48, 0  ;;  %v20423_v2 = vmul.f32 %v16682_v21, %v19890_v5  ;;  %v8451_v28 = vsub.f32 %v20408_v22, %v23169_v40 }
0x10ef   : > { %v8461_v26 = vsub.f32 %v20411_v55, %v23168_v4  ;;  %v20431_v13 = vand.u32 4294901760, %v8082_v49  ;;  %14794 = vmatmul.mubr.f32.gmra.mrb[24].mxu0 %v8442_v1  ;;  %v20433_v31 = vand.u32 4294901760, %v8085_v14  ;;  %16687 = vrsqrt.f32 %v7656_v36 }
0x10f0   : > { %v16684_v62 = vpop.eup %16683  ;;  %v7908_v48 = vadd.f32 %v20104_v15, %v7838_v59  ;;  %v7663_v45 = vadd.f32 1e-05, %v7599_v25  ;;  %v8452_v5 = vand.u32 4294901760, %v8451_v28  ;;  %v7839_v1 = vmul.f32 %v20098_v54, %v20226_v34  ;;  %v7486_v28 = vpop.xlane.xlu1 %7485 }
0x10f1   : > { %24018 = vst [vmem:[#allocation62_spill] sm:$0xff] %v20431_v13  ;;  %24019 = vst [vmem:[#allocation64_spill] sm:$0xff] %v20433_v31  ;;  %v20437_v21 = vmul.f32 %v16684_v62, %v19920_v10  ;;  %v8462_v46 = vand.u32 4294901760, %v8461_v26  ;;  %v20440_v50 = vsub.f32 %v8082_v49, %v20431_v13  ;;  %v20443_v4 = vsub.f32 %v8085_v14, %v20433_v31 }
0x10f2   : > { %v7972_v40 = vmax.f32 %v7908_v48, 0.0  ;;  %16689 = vrsqrt.f32 %v7663_v45  ;;  %14796 = vmatprep.mubr.f32.mxu0 %v8452_v5  ;;  %v7594_v25 = vmul.f32 0.03125, %v7480_v53  ;;  %v7840_v10 = vmul.f32 %v20098_v54, %v20299_v27 }
0x10f3   : > { %24020 = vst [vmem:[#allocation65_spill] sm:$0xff] %v20440_v50  ;;  %24021 = vst [vmem:[#allocation68_spill] sm:$0xff] %v20443_v4  ;;  %v16686_v36 = vpop.eup %16685  ;;  %v23170_v59 = vand.u32 4294901760, %v20440_v50  ;;  %v7841_v49 = vmul.f32 %v20098_v54, %v20240_v35  ;;  %14797 = vmatmul.mubr.f32.gmra.mrb[26].mxu0 %v8462_v46  ;;  %v23177_v26 = vand.u32 4294901760, %v20443_v4  ;;  %v7909_v62 = vadd.f32 %v20104_v15, %v7839_v1 }
0x10f4   : > { %v20453_v14 = vmul.f32 %v16686_v36, %v19902_v18  ;;  %v8088_v34 = vsel %vm6978_vm3, %v7972_v40, 0  ;;  %v7658_v27 = vadd.f32 1e-05, %v7594_v25  ;;  %v7910_v35 = vadd.f32 %v20104_v15, %v7840_v10 }
0x10f5   : > { %v8471_v53 = vsub.f32 %v20440_v50, %v23170_v59  ;;  %v20461_v48 = vand.u32 4294901760, %v8088_v34  ;;  %v8481_v18 = vsub.f32 %v20443_v4, %v23177_v26  ;;  %v7973_v45 = vmax.f32 %v7909_v62, 0.0  ;;  %v7501_v59 = vpop.xlane.xlu0 %7500 }
0x10f6   : > { %v7911_v5 = vadd.f32 %v20104_v15, %v7841_v49  ;;  %v7596_v46 = vmul.f32 0.03125, %v7486_v28  ;;  %16691 = vrsqrt.f32 %v7658_v27  ;;  %v7974_v36 = vmax.f32 %v7910_v35, 0.0 }
0x10f7   : > { %24022 = vst [vmem:[#allocation70_spill] sm:$0xff] %v20461_v48  ;;  %v8472_v40 = vand.u32 4294901760, %v8471_v53  ;;  %v20469_v1 = vsub.f32 %v8088_v34, %v20461_v48  ;;  %v8482_v50 = vand.u32 4294901760, %v8481_v18  ;;  %v8091_v25 = vsel %vm6978_vm3, %v7973_v45, 0 }
0x10f8   : > { %v7975_v55 = vmax.f32 %v7911_v5, 0.0  ;;  %v7660_v10 = vadd.f32 1e-05, %v7596_v46  ;;  %v20473_v26 = vand.u32 4294901760, %v8091_v25  ;;  %v8094_v49 = vsel %vm6978_vm3, %v7974_v36, 0 }
0x10f9   : > { %24023 = vst [vmem:[#allocation72_spill] sm:$0xff] %v20469_v1  ;;  %14799 = vmatprep.mubr.f32.mxu0 %v8472_v40  ;;  %v23178_v22 = vand.u32 4294901760, %v20469_v1  ;;  %v7842_v28 = vmul.f32 %v20098_v54, %v20322_v17  ;;  %v16688_v34 = vpop.eup %16687  ;;  %v20478_v62 = vand.u32 4294901760, %v8094_v49  ;;  %v7601_v27 = vmul.f32 0.03125, %v7501_v59  ;;  %v7492_v17 = vpop.xlane.xlu1 %7491 }
0x10fa   : > { %24024 = vst [vmem:[#allocation74_spill] sm:$0xff] %v20473_v26  ;;  %14800 = vmatmul.mubr.f32.gmra.mrb[28].mxu0 %v8482_v50  ;;  %v8097_v53 = vsel %vm6978_vm3, %v7975_v55, 0  ;;  %16693 = vrsqrt.f32 %v7660_v10  ;;  %v20482_v35 = vmul.f32 %v16688_v34, %v19917_v12  ;;  %v20488_v45 = vsub.f32 %v8091_v25, %v20473_v26  ;;  %v7122_v34 = vpop.xlane.xlu0 %7121 }
0x10fb   : > { %24025 = vst [vmem:[#allocation76_spill] sm:$0xff] %v20478_v62  ;;  %v8491_v18 = vsub.f32 %v20469_v1, %v23178_v22  ;;  %v20490_v5 = vand.u32 4294901760, %v8097_v53  ;;  %v20493_v46 = vsub.f32 %v8094_v49, %v20478_v62  ;;  %v7912_v55 = vadd.f32 %v20104_v15, %v7842_v28 }
0x10fc   : > { %24026 = vst [vmem:[#allocation78_spill] sm:$0xff] %v20488_v45  ;;  %v16690_v50 = vpop.eup %16689  ;;  %v7665_v59 = vadd.f32 1e-05, %v7601_v27  ;;  %v7843_v12 = vmul.f32 %v20098_v54, %v20257_v24  ;;  %v23179_v25 = vand.u32 4294901760, %v20488_v45  ;;  %v7598_v27 = vmul.f32 0.03125, %v7492_v17 }
0x10fd   : > { %24027 = vst [vmem:[#allocation80_spill] sm:$0xff] %v20490_v5  ;;  %24028 = vst [vmem:[#allocation82_spill] sm:$0xff] %v20493_v46  ;;  %v8492_v40 = vand.u32 4294901760, %v8491_v18  ;;  %v20499_v36 = vmul.f32 %v16690_v50, %v19936_v43  ;;  %v20503_v10 = vsub.f32 %v8097_v53, %v20490_v5  ;;  %v23186_v22 = vand.u32 4294901760, %v20493_v46  ;;  %v7498_v1 = vpop.xlane.xlu1 %7497 }
0x10fe   : > { %v7976_v49 = vmax.f32 %v7912_v55, 0.0  ;;  %16695 = vrsqrt.f32 %v7665_v59  ;;  %v7913_v28 = vadd.f32 %v20104_v15, %v7843_v12  ;;  %v8501_v24 = vsub.f32 %v20488_v45, %v23179_v25 }
0x10ff   : > { %24029 = vst [vmem:[#allocation84_spill] sm:$0xff] %v20503_v10  ;;  %14802 = vmatprep.mubr.f32.mxu0 %v8492_v40  ;;  %v23187_v43 = vand.u32 4294901760, %v20503_v10  ;;  %v7844_v18 = vmul.f32 %v20098_v54, %v20341_v11  ;;  %v8511_v53 = vsub.f32 %v20493_v46, %v23186_v22  ;;  %v7219_v59 = vmul.f32 0.03125, %v7122_v34 }
0x1100   : > { %v8100_v50 = vsel %vm6978_vm3, %v7976_v49, 0  ;;  %v7977_v55 = vmax.f32 %v7913_v28, 0.0  ;;  %v16692_v12 = vpop.eup %16691  ;;  %v8502_v40 = vand.u32 4294901760, %v8501_v24  ;;  %v7662_v17 = vadd.f32 1e-05, %v7598_v27 }
0x1101   : > { %v8521_v25 = vsub.f32 %v20503_v10, %v23187_v43  ;;  %v20520_v45 = vand.u32 4294901760, %v8100_v50  ;;  %v20523_v11 = vmul.f32 %v16692_v12, %v19927_v3  ;;  %v8512_v4 = vand.u32 4294901760, %v8511_v53  ;;  %v7128_v43 = vpop.xlane.xlu0 %7127  ;;  %v20562_v12 = vld [vmem:[%s22757_s6] ss:$0 sm:$0xff] }
0x1102   : > { %v8103_v22 = vsel %vm6978_vm3, %v7977_v55, 0  ;;  %v7914_v49 = vadd.f32 %v20104_v15, %v7844_v18  ;;  %14803 = vmatmul.mubr.f32.gmra.mrb[30].mxu0 %v8502_v40  ;;  %16697 = vrsqrt.f32 %v7662_v17  ;;  %v20533_v3 = vsub.f32 %v19960_v39, %v7219_v59  ;;  %24037 = vst [vmem:[#allocation100_spill] sm:$0xff] %v20562_v12  ;;  %v7119_v40 = vpop.xlane.xlu1 %7118 }
0x1103   : > { %24030 = vst [vmem:[#allocation85_spill] sm:$0xff] %v20520_v45  ;;  %v8522_v34 = vand.u32 4294901760, %v8521_v25  ;;  %v20528_v28 = vsub.f32 %v8100_v50, %v20520_v45  ;;  %v20530_v24 = vand.u32 4294901760, %v8103_v22  ;;  %14805 = vmatprep.mubr.f32.mxu0 %v8512_v4  ;;  %v7845_v53 = vmul.f32 %v20098_v54, %v20273_v57  ;;  %v20547_v4 = vld [vmem:[%s22756_s5] ss:$0 sm:$0xff] }
0x1104   : > { %v16694_v10 = vpop.eup %16693  ;;  %v7978_v27 = vmax.f32 %v7914_v49, 0.0  ;;  %24033 = vst [vmem:[#allocation92_spill] sm:$0xff] %v20533_v3  ;;  %v7600_v55 = vmul.f32 0.03125, %v7498_v1  ;;  %24035 = vst [vmem:[#allocation97_spill] sm:$0xff] %v20547_v4  ;;  %v7846_v39 = vmul.f32 %v20547_v4, %v20363_v7  ;;  %v7847_v49 = vmul.f32 %v20547_v4, %v20290_v6 }
0x1105   : > { %24031 = vst [vmem:[#allocation87_spill] sm:$0xff] %v20528_v28  ;;  %24032 = vst [vmem:[#allocation90_spill] sm:$0xff] %v20530_v24  ;;  %v20538_v18 = vmul.f32 %v16694_v10, %v19933_v30  ;;  %v23191_v25 = vand.u32 4294901760, %v20528_v28  ;;  %v20542_v50 = vsub.f32 %v8103_v22, %v20530_v24  ;;  %v7915_v54 = vadd.f32 %v20104_v15, %v7845_v53 }
0x1106   : > { %v8106_v59 = vsel %vm6978_vm3, %v7978_v27, 0  ;;  %v7664_v57 = vadd.f32 1e-05, %v7600_v55  ;;  %v7221_v30 = vmul.f32 0.03125, %v7128_v43  ;;  %14806 = vmatmul.mubr.f32.gmra.mrb[32].mxu0 %v8522_v34  ;;  %v7916_v7 = vadd.f32 %v20562_v12, %v7846_v39 }
0x1107   : > { %24034 = vst [vmem:[#allocation93_spill] sm:$0xff] %v20542_v50  ;;  %v8531_v22 = vsub.f32 %v20528_v28, %v23191_v25  ;;  %v23190_v1 = vand.u32 4294901760, %v20542_v50  ;;  %v20557_v10 = vand.u32 4294901760, %v8106_v59  ;;  %v7979_v17 = vmax.f32 %v7915_v54, 0.0 }
0x1108   : > { %v16696_v15 = vpop.eup %16695  ;;  %16699 = vrsqrt.f32 %v7664_v57  ;;  %v20566_v43 = vsub.f32 %v19975_v47, %v7221_v30  ;;  %v7980_v54 = vmax.f32 %v7916_v7, 0.0  ;;  %v7917_v47 = vadd.f32 %v20562_v12, %v7847_v49 }
0x1109   : > { %24036 = vst [vmem:[#allocation98_spill] sm:$0xff] %v20557_v10  ;;  %v8532_v34 = vand.u32 4294901760, %v8531_v22  ;;  %v20571_v27 = vmul.f32 %v16696_v15, %v19951_v0  ;;  %v8541_v53 = vsub.f32 %v20542_v50, %v23190_v1  ;;  %v20577_v55 = vsub.f32 %v8106_v59, %v20557_v10  ;;  %v7134_v15 = vpop.xlane.xlu0 %7133 }
0x110a   : > { %24038 = vst [vmem:[#allocation102_spill] sm:$0xff] %v20566_v43  ;;  %v8109_v39 = vsel %vm6978_vm3, %v7979_v17, 0  ;;  %v7218_v57 = vmul.f32 0.03125, %v7119_v40  ;;  %v7848_v0 = vmul.f32 %v20547_v4, %v20399_v8  ;;  %v8112_v1 = vsel %vm6978_vm3, %v7980_v54, 0  ;;  %v24044_v54 = vld [vmem:[#allocation83_spill] sm:$0xff] }
0x110b   : > { %24039 = vst [vmem:[#allocation104_spill] sm:$0xff] %v20577_v55  ;;  %14808 = vmatprep.mubr.f32.mxu0 %v8532_v34  ;;  %v8542_v30 = vand.u32 4294901760, %v8541_v53  ;;  %v23196_v6 = vand.u32 4294901760, %v20577_v55  ;;  %v20582_v22 = vand.u32 4294901760, %v8109_v39  ;;  %v7981_v59 = vmax.f32 %v7917_v47, 0.0  ;;  %v7125_v53 = vpop.xlane.xlu1 %7124 }
0x110c   : > { %v20588_v25 = vsub.f32 %v19971_v58, %v7218_v57  ;;  %v7347_v7 = vmul.f32 %v20533_v3, %v20533_v3  ;;  %v16698_v40 = vpop.eup %16697  ;;  %v20598_v8 = vand.u32 4294901760, %v8112_v1  ;;  %v7918_v34 = vadd.f32 %v20562_v12, %v7848_v0  ;;  %v24047_v0 = vld [vmem:[#allocation89_spill] sm:$0xff] }
0x110d   : > { %24040 = vst [vmem:[#allocation106_spill] sm:$0xff] %v20582_v22  ;;  %14809 = vmatmul.mubr.f32.gmra.mrb[34].mxu0 %v8542_v30  ;;  %v8551_v17 = vsub.f32 %v20577_v55, %v23196_v6  ;;  %v20596_v49 = vsub.f32 %v8109_v39, %v20582_v22  ;;  %v20602_v58 = vmul.f32 %v16698_v40, %v24044_v54  ;;  %v8115_v47 = vsel %vm6978_vm3, %v7981_v59, 0 }
0x110e   : > { %24041 = vst [vmem:[#allocation107_spill] sm:$0xff] %v20588_v25  ;;  %24043 = vst [vmem:[#allocation113_spill] sm:$0xff] %v20598_v8  ;;  %v7505_v57 = vsel %vm6978_vm3, %v7347_v7, 0.0  ;;  %v7223_v30 = vmul.f32 0.03125, %v7134_v15  ;;  %v20608_v6 = vsub.f32 %v8112_v1, %v20598_v8  ;;  %v20610_v39 = vand.u32 4294901760, %v8115_v47 }
0x110f   : > { %24042 = vst [vmem:[#allocation108_spill] sm:$0xff] %v20596_v49  ;;  %v8552_v50 = vand.u32 4294901760, %v8551_v17  ;;  %v23201_v28 = vand.u32 4294901760, %v20596_v49  ;;  %7506 = vadd.xlane.f32.xlu0 %v7505_v57  ;;  %v7982_v55 = vmax.f32 %v7918_v34, 0.0  ;;  %v7849_v40 = vmul.f32 %v20547_v4, %v20313_v9  ;;  %v7140_v34 = vpop.xlane.xlu0 %7139 }
0x1110   : > { %24045 = vst [vmem:[#allocation114_spill] sm:$0xff] %v20608_v6  ;;  %24046 = vst [vmem:[#allocation117_spill] sm:$0xff] %v20610_v39  ;;  %v20613_v46 = vsub.f32 %v24047_v0, %v7223_v30  ;;  %v7220_v59 = vmul.f32 0.03125, %v7125_v53  ;;  %v20622_v1 = vsub.f32 %v8115_v47, %v20610_v39  ;;  %v7850_v17 = vmul.f32 %v20547_v4, %v20423_v2  ;;  %v24050_v53 = vld [vmem:[#allocation88_spill] sm:$0xff] }
0x1111   : > { %14811 = vmatprep.mubr.f32.mxu0 %v8552_v50  ;;  %v8561_v15 = vsub.f32 %v20596_v49, %v23201_v28  ;;  %v8118_v57 = vsel %vm6978_vm3, %v7982_v55, 0  ;;  %v7919_v9 = vadd.f32 %v20562_v12, %v7849_v40  ;;  %v7349_v30 = vmul.f32 %v20566_v43, %v20566_v43  ;;  %v24052_v28 = vld [vmem:[#allocation86_spill] sm:$0xff] }
0x1112   : > { %24048 = vst [vmem:[#allocation118_spill] sm:$0xff] %v20613_v46  ;;  %24049 = vst [vmem:[#allocation120_spill] sm:$0xff] %v20622_v1  ;;  %v16700_v54 = vpop.eup %16699  ;;  %v20629_v50 = vsub.f32 %v24050_v53, %v7220_v59  ;;  %v24053_v47 = vand.u32 4294901760, %v20608_v6  ;;  %v23208_v49 = vand.u32 4294901760, %v20622_v1  ;;  %v20640_v32 = vand.u32 4294901760, %v8118_v57 }
0x1113   : > { %v8562_v0 = vand.u32 4294901760, %v8561_v15  ;;  %v20634_v7 = vmul.f32 %v16700_v54, %v24052_v28  ;;  %v7983_v55 = vmax.f32 %v7919_v9, 0.0  ;;  %v7920_v40 = vadd.f32 %v20562_v12, %v7850_v17 }
0x1114   : > { %24051 = vst [vmem:[#allocation121_spill] sm:$0xff] %v20629_v50  ;;  %v8571_v2 = vsub.f32 %v20608_v6, %v24053_v47  ;;  %24054 = vst [vmem:[#allocation122_spill] sm:$0xff] %v20640_v32  ;;  %v7511_v59 = vsel %vm6978_vm3, %v7349_v30, 0.0  ;;  %v8581_v28 = vsub.f32 %v20622_v1, %v23208_v49  ;;  %v7225_v15 = vmul.f32 0.03125, %v7140_v34  ;;  %v7131_v47 = vpop.xlane.xlu1 %7130  ;;  %v24057_v49 = vld [vmem:[#allocation94_spill] sm:$0xff] }
0x1115   : > { %14812 = vmatmul.mubr.f32.gmra.mrb[36].mxu0 %v8562_v0  ;;  %7512 = vadd.xlane.f32.xlu0 %v7511_v59  ;;  %v7851_v54 = vmul.f32 %v20547_v4, %v20333_v51  ;;  %v20650_v6 = vsub.f32 %v8118_v57, %v20640_v32  ;;  %v8121_v9 = vsel %vm6978_vm3, %v7983_v55, 0  ;;  %v7984_v17 = vmax.f32 %v7920_v40, 0.0  ;;  %v7146_v51 = vpop.xlane.xlu0 %7145 }
0x1116   : > { %v8572_v53 = vand.u32 4294901760, %v8571_v2  ;;  %v7346_v30 = vmul.f32 %v20588_v25, %v20588_v25  ;;  %v8582_v0 = vand.u32 4294901760, %v8581_v28  ;;  %v20655_v2 = vand.u32 4294901760, %v8121_v9 }
0x1117   : > { %24055 = vst [vmem:[#allocation123_spill] sm:$0xff] %v20650_v6  ;;  %v20658_v59 = vsub.f32 %v24057_v49, %v7225_v15  ;;  %v7921_v34 = vadd.f32 %v20562_v12, %v7851_v54  ;;  %v23214_v1 = vand.u32 4294901760, %v20650_v6  ;;  %v8124_v57 = vsel %vm6978_vm3, %v7984_v17, 0  ;;  %v24061_v54 = vld [vmem:[#allocation91_spill] sm:$0xff] }
0x1118   : > { %14814 = vmatprep.mubr.f32.mxu0 %v8572_v53  ;;  %24056 = vst [vmem:[#allocation124_spill] sm:$0xff] %v20655_v2  ;;  %v7502_v55 = vsel %vm6978_vm3, %v7346_v30, 0.0  ;;  %v7222_v40 = vmul.f32 0.03125, %v7131_v47  ;;  %v20665_v25 = vsub.f32 %v8121_v9, %v20655_v2  ;;  %v20667_v53 = vand.u32 4294901760, %v8124_v57 }
0x1119   : > { %24058 = vst [vmem:[#allocation128_spill] sm:$0xff] %v20658_v59  ;;  %14815 = vmatmul.mubr.f32.gmra.mrb[38].mxu0 %v8582_v0  ;;  %v7985_v28 = vmax.f32 %v7921_v34, 0.0  ;;  %7503 = vadd.xlane.f32.xlu1 %v7502_v55  ;;  %v7852_v49 = vmul.f32 %v20547_v4, %v20453_v14  ;;  %v8591_v15 = vsub.f32 %v20650_v6, %v23214_v1  ;;  %v7227_v30 = vmul.f32 0.03125, %v7146_v51  ;;  %v7137_v55 = vpop.xlane.xlu1 %7136 }
0x111a   : > { %24059 = vst [vmem:[#allocation127_spill] sm:$0xff] %v20665_v25  ;;  %24060 = vst [vmem:[#allocation131_spill] sm:$0xff] %v20667_v53  ;;  %v20675_v17 = vsub.f32 %v24061_v54, %v7222_v40  ;;  %v7351_v47 = vmul.f32 %v20613_v46, %v20613_v46  ;;  %v23217_v9 = vand.u32 4294901760, %v20665_v25  ;;  %v20681_v0 = vsub.f32 %v8124_v57, %v20667_v53  ;;  %v24065_v54 = vld [vmem:[#allocation96_spill] sm:$0xff] }
0x111b   : > { %v8127_v34 = vsel %vm6978_vm3, %v7985_v28, 0  ;;  %v7922_v14 = vadd.f32 %v20562_v12, %v7852_v49  ;;  %v8592_v43 = vand.u32 4294901760, %v8591_v15  ;;  %v20689_v1 = vsub.f32 %v24065_v54, %v7227_v30  ;;  %v7152_v54 = vpop.xlane.xlu0 %7151 }
0x111c   : > { %24062 = vst [vmem:[#allocation133_spill] sm:$0xff] %v20675_v17  ;;  %24063 = vst [vmem:[#allocation134_spill] sm:$0xff] %v20681_v0  ;;  %v20685_v3 = vand.u32 4294901760, %v8127_v34  ;;  %v7517_v40 = vsel %vm6978_vm3, %v7351_v47, 0.0  ;;  %v8601_v51 = vsub.f32 %v20665_v25, %v23217_v9  ;;  %v23222_v57 = vand.u32 4294901760, %v20681_v0 }
0x111d   : > { %24066 = vst [vmem:[#allocation137_spill] sm:$0xff] %v20689_v1  ;;  %v7986_v6 = vmax.f32 %v7922_v14, 0.0  ;;  %7518 = vadd.xlane.f32.xlu0 %v7517_v40  ;;  %v7853_v28 = vmul.f32 %v20547_v4, %v20353_v29  ;;  %14817 = vmatprep.mubr.f32.mxu0 %v8592_v43  ;;  %v7348_v15 = vmul.f32 %v20629_v50, %v20629_v50  ;;  %v7224_v47 = vmul.f32 0.03125, %v7137_v55  ;;  %v24069_v55 = vld [vmem:[#allocation95_spill] sm:$0xff] }
0x111e   : > { %24064 = vst [vmem:[#allocation136_spill] sm:$0xff] %v20685_v3  ;;  %v20698_v49 = vsub.f32 %v8127_v34, %v20685_v3  ;;  %v7854_v30 = vmul.f32 %v20547_v4, %v20482_v35  ;;  %v8602_v9 = vand.u32 4294901760, %v8601_v51  ;;  %v8611_v14 = vsub.f32 %v20681_v0, %v23222_v57 }
0x111f   : > { %v8130_v40 = vsel %vm6978_vm3, %v7986_v6, 0  ;;  %v7923_v29 = vadd.f32 %v20562_v12, %v7853_v28  ;;  %v7508_v25 = vsel %vm6978_vm3, %v7348_v15, 0.0  ;;  %v20714_v50 = vsub.f32 %v24069_v55, %v7224_v47 }
0x1120   : > { %24067 = vst [vmem:[#allocation139_spill] sm:$0xff] %v20698_v49  ;;  %v23223_v43 = vand.u32 4294901760, %v20698_v49  ;;  %v20710_v34 = vand.u32 4294901760, %v8130_v40  ;;  %14818 = vmatmul.mubr.f32.gmra.mrb[40].mxu0 %v8602_v9  ;;  %v8612_v35 = vand.u32 4294901760, %v8611_v14  ;;  %7509 = vadd.xlane.f32.xlu1 %v7508_v25  ;;  %v7924_v46 = vadd.f32 %v20562_v12, %v7854_v30  ;;  %v7143_v9 = vpop.xlane.xlu1 %7142 }
0x1121   : > { %24070 = vst [vmem:[#allocation5_spill] sm:$0xff] %v20714_v50  ;;  %v7987_v51 = vmax.f32 %v7923_v29, 0.0  ;;  %v7353_v6 = vmul.f32 %v20658_v59, %v20658_v59  ;;  %v7229_v15 = vmul.f32 0.03125, %v7152_v54  ;;  %v7855_v47 = vmul.f32 %v20547_v4, %v20379_v38  ;;  %v24073_v54 = vld [vmem:[#allocation101_spill] sm:$0xff]  ;;  %v7158_v38 = vpop.xlane.xlu0 %7157 }
0x1122   : > { %24068 = vst [vmem:[#allocation3_spill] sm:$0xff] %v20710_v34  ;;  %v8621_v28 = vsub.f32 %v20698_v49, %v23223_v43  ;;  %v20723_v57 = vsub.f32 %v8130_v40, %v20710_v34  ;;  %14820 = vmatprep.mubr.f32.mxu0 %v8612_v35  ;;  %v7988_v14 = vmax.f32 %v7924_v46, 0.0  ;;  %v7350_v29 = vmul.f32 %v20675_v17, %v20675_v17 }
0x1123   : > { %v8133_v25 = vsel %vm6978_vm3, %v7987_v51, 0  ;;  %v7523_v30 = vsel %vm6978_vm3, %v7353_v6, 0.0  ;;  %v20735_v40 = vsub.f32 %v24073_v54, %v7229_v15  ;;  %v7925_v51 = vadd.f32 %v20562_v12, %v7855_v47  ;;  %v24077_v54 = vld [vmem:[#allocation99_spill] sm:$0xff] }
0x1124   : > { %24071 = vst [vmem:[#allocation7_spill] sm:$0xff] %v20723_v57  ;;  %v8622_v55 = vand.u32 4294901760, %v8621_v28  ;;  %v23228_v43 = vand.u32 4294901760, %v20723_v57  ;;  %v20732_v49 = vand.u32 4294901760, %v8133_v25  ;;  %7524 = vadd.xlane.f32.xlu0 %v7523_v30  ;;  %v8136_v35 = vsel %vm6978_vm3, %v7988_v14, 0 }
0x1125   : > { %24074 = vst [vmem:[#allocation9_spill] sm:$0xff] %v20735_v40  ;;  %v7514_v46 = vsel %vm6978_vm3, %v7350_v29, 0.0  ;;  %v7226_v6 = vmul.f32 0.03125, %v7143_v9  ;;  %v20746_v30 = vand.u32 4294901760, %v8136_v35  ;;  %v7856_v15 = vmul.f32 %v20547_v4, %v20523_v11 }
0x1126   : > { %24072 = vst [vmem:[#allocation8_spill] sm:$0xff] %v20732_v49  ;;  %14821 = vmatmul.mubr.f32.gmra.mrb[42].mxu0 %v8622_v55  ;;  %v8631_v28 = vsub.f32 %v20723_v57, %v23228_v43  ;;  %v20744_v0 = vsub.f32 %v8133_v25, %v20732_v49  ;;  %7515 = vadd.xlane.f32.xlu1 %v7514_v46  ;;  %v7989_v14 = vmax.f32 %v7925_v51, 0.0  ;;  %v7231_v29 = vmul.f32 0.03125, %v7158_v38  ;;  %v7149_v46 = vpop.xlane.xlu1 %7148  ;;  %v24080_v51 = vld [vmem:[#allocation105_spill] sm:$0xff] }
0x1127   : > { %24076 = vst [vmem:[#allocation13_spill] sm:$0xff] %v20746_v30  ;;  %v20751_v47 = vsub.f32 %v24077_v54, %v7226_v6  ;;  %v7355_v9 = vmul.f32 %v20689_v1, %v20689_v1  ;;  %v20757_v25 = vsub.f32 %v8136_v35, %v20746_v30  ;;  %v7926_v57 = vadd.f32 %v20562_v12, %v7856_v15 }
0x1128   : > { %24075 = vst [vmem:[#allocation10_spill] sm:$0xff] %v20744_v0  ;;  %v8632_v55 = vand.u32 4294901760, %v8631_v28  ;;  %v23232_v43 = vand.u32 4294901760, %v20744_v0  ;;  %v8139_v17 = vsel %vm6978_vm3, %v7989_v14, 0  ;;  %v20763_v6 = vsub.f32 %v24080_v51, %v7231_v29 }
0x1129   : > { %24078 = vst [vmem:[#allocation14_spill] sm:$0xff] %v20751_v47  ;;  %24079 = vst [vmem:[#allocation27_spill] sm:$0xff] %v20757_v25  ;;  %v7529_v11 = vsel %vm6978_vm3, %v7355_v9, 0.0  ;;  %v7857_v54 = vmul.f32 %v20547_v4, %v20405_v42  ;;  %v23237_v35 = vand.u32 4294901760, %v20757_v25  ;;  %v20771_v28 = vand.u32 4294901760, %v8139_v17 }
0x112a   : > { %24081 = vst [vmem:[#allocation20_spill] sm:$0xff] %v20763_v6  ;;  %14823 = vmatprep.mubr.f32.mxu0 %v8632_v55  ;;  %v8641_v38 = vsub.f32 %v20744_v0, %v23232_v43  ;;  %v7990_v15 = vmax.f32 %v7926_v57, 0.0  ;;  %7530 = vadd.xlane.f32.xlu0 %v7529_v11  ;;  %v7352_v9 = vmul.f32 %v20714_v50, %v20714_v50  ;;  %v7228_v29 = vmul.f32 0.03125, %v7149_v46  ;;  %v7164_v11 = vpop.xlane.xlu0 %7163  ;;  %v24085_v46 = vld [vmem:[#allocation103_spill] sm:$0xff] }
0x112b   : > { %24082 = vst [vmem:[#allocation28_spill] sm:$0xff] %v20771_v28  ;;  %v7927_v14 = vadd.f32 %v20562_v12, %v7857_v54  ;;  %v7858_v42 = vmul.f32 %v20547_v4, %v20538_v18  ;;  %v8651_v51 = vsub.f32 %v20757_v25, %v23237_v35  ;;  %v20782_v43 = vsub.f32 %v8139_v17, %v20771_v28 }
0x112c   : > { %v8642_v55 = vand.u32 4294901760, %v8641_v38  ;;  %v8142_v57 = vsel %vm6978_vm3, %v7990_v15, 0  ;;  %v7520_v50 = vsel %vm6978_vm3, %v7352_v9, 0.0  ;;  %v20789_v1 = vsub.f32 %v24085_v46, %v7228_v29  ;;  %v7155_v29 = vpop.xlane.xlu1 %7154  ;;  %v24089_v46 = vld [vmem:[#allocation110_spill] sm:$0xff] }
0x112d   : > { %24083 = vst [vmem:[#allocation6_spill] sm:$0xff] %v20782_v43  ;;  %v20785_v0 = vand.u32 4294901760, %v8142_v57  ;;  %v7991_v54 = vmax.f32 %v7927_v14, 0.0  ;;  %v8652_v18 = vand.u32 4294901760, %v8651_v51  ;;  %v23241_v38 = vand.u32 4294901760, %v20782_v43  ;;  %7521 = vadd.xlane.f32.xlu1 %v7520_v50 }
0x112e   : > { %24086 = vst [vmem:[#allocation12_spill] sm:$0xff] %v20789_v1  ;;  %14824 = vmatmul.mubr.f32.gmra.mrb[44].mxu0 %v8642_v55  ;;  %v7928_v35 = vadd.f32 %v20562_v12, %v7858_v42  ;;  %v7357_v17 = vmul.f32 %v20735_v40, %v20735_v40  ;;  %v7233_v25 = vmul.f32 0.03125, %v7164_v11  ;;  %v7859_v9 = vmul.f32 %v20547_v4, %v20437_v21 }
0x112f   : > { %24084 = vst [vmem:[#allocation35_spill] sm:$0xff] %v20785_v0  ;;  %v20796_v15 = vsub.f32 %v8142_v57, %v20785_v0  ;;  %v8145_v14 = vsel %vm6978_vm3, %v7991_v54, 0  ;;  %14826 = vmatprep.mubr.f32.mxu0 %v8652_v18  ;;  %v8661_v50 = vsub.f32 %v20782_v43, %v23241_v38  ;;  %v7354_v21 = vmul.f32 %v20751_v47, %v20751_v47  ;;  %v7170_v43 = vpop.xlane.xlu0 %7169 }
0x1130   : > { %v20804_v55 = vand.u32 4294901760, %v8145_v14  ;;  %v7992_v42 = vmax.f32 %v7928_v35, 0.0  ;;  %v7535_v51 = vsel %vm6978_vm3, %v7357_v17, 0.0  ;;  %v20809_v54 = vsub.f32 %v24089_v46, %v7233_v25 }
0x1131   : > { %24087 = vst [vmem:[#allocation15_spill] sm:$0xff] %v20796_v15  ;;  %v23245_v57 = vand.u32 4294901760, %v20796_v15  ;;  %7536 = vadd.xlane.f32.xlu0 %v7535_v51  ;;  %v7929_v11 = vadd.f32 %v20562_v12, %v7859_v9  ;;  %v8662_v18 = vand.u32 4294901760, %v8661_v50  ;;  %v7230_v35 = vmul.f32 0.03125, %v7155_v29  ;;  %v24093_v50 = vld [vmem:[#allocation109_spill] sm:$0xff] }
0x1132   : > { %24088 = vst [vmem:[#allocation18_spill] sm:$0xff] %v20804_v55  ;;  %24090 = vst [vmem:[#allocation17_spill] sm:$0xff] %v20809_v54  ;;  %v20815_v40 = vsub.f32 %v8145_v14, %v20804_v55  ;;  %v8148_v38 = vsel %vm6978_vm3, %v7992_v42, 0  ;;  %v7526_v9 = vsel %vm6978_vm3, %v7354_v21, 0.0  ;;  %v7860_v29 = vmul.f32 %v20547_v4, %v20602_v58 }
0x1133   : > { %v8671_v17 = vsub.f32 %v20796_v15, %v23245_v57  ;;  %v20821_v51 = vand.u32 4294901760, %v8148_v38  ;;  %v7993_v25 = vmax.f32 %v7929_v11, 0.0  ;;  %14827 = vmatmul.mubr.f32.gmra.mrb[46].mxu0 %v8662_v18  ;;  %7527 = vadd.xlane.f32.xlu1 %v7526_v9  ;;  %v20826_v14 = vsub.f32 %v24093_v50, %v7230_v35  ;;  %v7161_v18 = vpop.xlane.xlu1 %7160 }
0x1134   : > { %24091 = vst [vmem:[#allocation22_spill] sm:$0xff] %v20815_v40  ;;  %v23248_v46 = vand.u32 4294901760, %v20815_v40  ;;  %v7359_v42 = vmul.f32 %v20763_v6, %v20763_v6  ;;  %v7235_v21 = vmul.f32 0.03125, %v7170_v43  ;;  %v7930_v50 = vadd.f32 %v20562_v12, %v7860_v29 }
0x1135   : > { %24092 = vst [vmem:[#allocation37_spill] sm:$0xff] %v20821_v51  ;;  %24094 = vst [vmem:[#allocation39_spill] sm:$0xff] %v20826_v14  ;;  %v8672_v47 = vand.u32 4294901760, %v8671_v17  ;;  %v20833_v57 = vsub.f32 %v8148_v38, %v20821_v51  ;;  %v8151_v11 = vsel %vm6978_vm3, %v7993_v25, 0  ;;  %v24097_v38 = vld [vmem:[#allocation112_spill] sm:$0xff]  ;;  %v7861_v43 = vmul.f32 %v20547_v4, %v20499_v36 }
0x1136   : > { %v8681_v9 = vsub.f32 %v20815_v40, %v23248_v46  ;;  %v20839_v35 = vand.u32 4294901760, %v8151_v11  ;;  %v7541_v58 = vsel %vm6978_vm3, %v7359_v42, 0.0  ;;  %v20845_v15 = vsub.f32 %v24097_v38, %v7235_v21 }
0x1137   : > { %24095 = vst [vmem:[#allocation41_spill] sm:$0xff] %v20833_v57  ;;  %14829 = vmatprep.mubr.f32.mxu0 %v8672_v47  ;;  %v23252_v17 = vand.u32 4294901760, %v20833_v57  ;;  %7542 = vadd.xlane.f32.xlu0 %v7541_v58  ;;  %v7356_v25 = vmul.f32 %v20789_v1, %v20789_v1  ;;  %v7994_v29 = vmax.f32 %v7930_v50, 0.0  ;;  %v7232_v6 = vmul.f32 0.03125, %v7161_v18 }
0x1138   : > { %24096 = vst [vmem:[#allocation43_spill] sm:$0xff] %v20839_v35  ;;  %v8682_v46 = vand.u32 4294901760, %v8681_v9  ;;  %v20852_v40 = vsub.f32 %v8151_v11, %v20839_v35  ;;  %v7931_v42 = vadd.f32 %v20562_v12, %v7861_v43  ;;  %v7862_v36 = vmul.f32 %v20547_v4, %v20634_v7  ;;  %v24099_v11 = vld [vmem:[#allocation111_spill] sm:$0xff] }
0x1139   : > { %v8691_v47 = vsub.f32 %v20833_v57, %v23252_v17  ;;  %v7532_v21 = vsel %vm6978_vm3, %v7356_v25, 0.0  ;;  %v8154_v9 = vsel %vm6978_vm3, %v7994_v29, 0  ;;  %v20864_v50 = vsub.f32 %v24099_v11, %v7232_v6  ;;  %v16868_v6 = vld [vmem:[%s22754_s3 + $0x10] sm:$0xff] }
0x113a   : > { %24098 = vst [vmem:[#allocation46_spill] sm:$0xff] %v20852_v40  ;;  %14830 = vmatmul.mubr.f32.gmra.mrb[48].mxu0 %v8682_v46  ;;  %v23253_v58 = vand.u32 4294901760, %v20852_v40  ;;  %7533 = vadd.xlane.f32.xlu1 %v7532_v21  ;;  %v7361_v18 = vmul.f32 %v20809_v54, %v20809_v54  ;;  %v20868_v17 = vand.u32 4294901760, %v8154_v9  ;;  %v7995_v43 = vmax.f32 %v7931_v42, 0.0  ;;  %v24102_v21 = vld [vmem:[#allocation77_spill] sm:$0xff] }
0x113b   : > { %24100 = vst [vmem:[#allocation47_spill] sm:$0xff] %v20864_v50  ;;  %v8692_v38 = vand.u32 4294901760, %v8691_v47  ;;  %v7932_v25 = vadd.f32 %v20562_v12, %v7862_v36  ;;  %v7863_v29 = vmul.f32 %v20547_v4, %v20571_v27  ;;  %v24103_v47 = vand.u32 4294901760, %v24102_v21  ;;  %v16869_v27 = vld [vmem:[%s22754_s3 + $0x18] sm:$0xff] }
0x113c   : > { %24101 = vst [vmem:[#allocation49_spill] sm:$0xff] %v20868_v17  ;;  %v8701_v7 = vsub.f32 %v20852_v40, %v23253_v58  ;;  %v7547_v46 = vsel %vm6978_vm3, %v7361_v18, 0.0  ;;  %v20885_v42 = vsub.f32 %v8154_v9, %v20868_v17  ;;  %v8157_v36 = vsel %vm6978_vm3, %v7995_v43, 0  ;;  %v24105_v18 = vld [vmem:[#allocation79_spill] sm:$0xff] }
0x113d   : > { %v20882_v11 = vsub.f32 %v16868_v6, %v24103_v47  ;;  %14832 = vmatprep.mubr.f32.mxu0 %v8692_v38  ;;  %v7996_v58 = vmax.f32 %v7932_v25, 0.0  ;;  %7548 = vadd.xlane.f32.xlu0 %v7547_v46  ;;  %v24106_v40 = vand.u32 4294901760, %v24105_v18  ;;  %v20895_v21 = vand.u32 4294901760, %v8157_v36  ;;  %v7167_v6 = vpop.xlane.xlu1 %7166 }
0x113e   : > { %24104 = vst [vmem:[#allocation51_spill] sm:$0xff] %v20885_v42  ;;  %v8702_v54 = vand.u32 4294901760, %v8701_v7  ;;  %v7933_v38 = vadd.f32 %v20562_v12, %v7863_v29  ;;  %v23265_v43 = vand.u32 4294901760, %v20885_v42  ;;  %v7358_v47 = vmul.f32 %v20826_v14, %v20826_v14 }
0x113f   : > { %v20893_v57 = vsub.f32 %v16869_v27, %v24106_v40  ;;  %24107 = vst [vmem:[#allocation52_spill] sm:$0xff] %v20895_v21  ;;  %v23262_v9 = vand.u32 4294901760, %v20882_v11  ;;  %v8160_v25 = vsel %vm6978_vm3, %v7996_v58, 0  ;;  %v20905_v40 = vsub.f32 %v8157_v36, %v20895_v21 }
0x1140   : > { %14833 = vmatmul.mubr.f32.gmra.mrb[50].mxu0 %v8702_v54  ;;  %v20907_v7 = vand.u32 4294901760, %v8160_v25  ;;  %v7997_v27 = vmax.f32 %v7933_v38, 0.0  ;;  %v8711_v58 = vsub.f32 %v20885_v42, %v23265_v43  ;;  %v7538_v54 = vsel %vm6978_vm3, %v7358_v47, 0.0  ;;  %v24111_v42 = vld [vmem:[#allocation116_spill] sm:$0xff] }
0x1141   : > { %v23271_v46 = vand.u32 4294901760, %v20893_v57  ;;  %24108 = vst [vmem:[#allocation56_spill] sm:$0xff] %v20905_v40  ;;  %v8946_v29 = vsub.f32 %v20882_v11, %v23262_v9  ;;  %v7234_v14 = vmul.f32 0.03125, %v7167_v6  ;;  %v23270_v36 = vand.u32 4294901760, %v20905_v40  ;;  %7539 = vadd.xlane.f32.xlu1 %v7538_v54 }
0x1142   : > { %24109 = vst [vmem:[#allocation57_spill] sm:$0xff] %v20907_v7  ;;  %v20921_v1 = vsub.f32 %v8160_v25, %v20907_v7  ;;  %v8163_v38 = vsel %vm6978_vm3, %v7997_v27, 0  ;;  %v8712_v9 = vand.u32 4294901760, %v8711_v58  ;;  %v7363_v25 = vmul.f32 %v20845_v15, %v20845_v15 }
0x1143   : > { %v8953_v18 = vsub.f32 %v20893_v57, %v23271_v46  ;;  %v8947_v59 = vand.u32 4294901760, %v8946_v29  ;;  %v20924_v12 = vand.u32 4294901760, %v8163_v38  ;;  %v20927_v4 = vsub.f32 %v24111_v42, %v7234_v14  ;;  %v24112_v42 = vld [vmem:[#allocation130_spill] sm:$0xff] }
0x1144   : > { %v8721_v6 = vsub.f32 %v20905_v40, %v23270_v36  ;;  %v23276_v47 = vand.u32 4294901760, %v20921_v1  ;;  %v7360_v27 = vmul.f32 %v20864_v50, %v20864_v50  ;;  %14835 = vmatprep.mubr.f32.mxu0 %v8712_v9  ;;  %v7553_v40 = vsel %vm6978_vm3, %v7363_v25, 0.0  ;;  %v24114_v25 = vld [vmem:[#allocation115_spill] sm:$0xff] }
0x1145   : > { %24110 = vst [vmem:[#allocation60_spill] sm:$0xff] %v20924_v12  ;;  %v8954_v43 = vand.u32 4294901760, %v8953_v18  ;;  %v20938_v29 = vsub.f32 %v8163_v38, %v20924_v12  ;;  %v7362_v14 = vmul.f32 %v20927_v4, %v20927_v4  ;;  %v24113_v18 = vld [vmem:[#allocation33_spill] sm:$0xff]  ;;  %7554 = vadd.xlane.f32.xlu0 %v7553_v40  ;;  %v15696_v40 = vpack.c.bf16 %v20893_v57, %v20882_v11 }
0x1146   : > { %v15692_v54 = vpack.c.bf16 %v24113_v18, %v24112_v42  ;;  %v8722_v36 = vand.u32 4294901760, %v8721_v6  ;;  %v8731_v46 = vsub.f32 %v20921_v1, %v23276_v47  ;;  %v7544_v50 = vsel %vm6978_vm3, %v7360_v27, 0.0  ;;  %v24118_v27 = vld [vmem:[#allocation32_spill] sm:$0xff] }
0x1147   : > { %v15688_v58 = vpack.c.bf16 %v8954_v43, %v8947_v59  ;;  %v23275_v9 = vand.u32 4294901760, %v20938_v29  ;;  %7545 = vadd.xlane.f32.xlu1 %v7544_v50  ;;  %v7550_v38 = vsel %vm6978_vm3, %v7362_v14, 0.0  ;;  %v24116_v50 = vld [vmem:[#allocation73_spill] sm:$0xff] }
0x1148   : > { %14836 = vmatmul.mubr.f32.gmra.mrb[52].mxu0 %v8722_v36  ;;  %v8732_v59 = vand.u32 4294901760, %v8731_v46  ;;  %v24115_v36 = vld [vmem:[#allocation34_spill] sm:$0xff]  ;;  %v24117_v46 = vld [vmem:[#allocation31_spill] sm:$0xff] }
0x1149   : > { %15689 = vmatprep.subr.bf16.mxu0 %v15688_v58  ;;  %v8741_v43 = vsub.f32 %v20938_v29, %v23275_v9 }
0x114a   : > { %15691 = vmatpush3.bf16.msra.mxu0 %v15688_v58  ;;  %14838 = vmatprep.mubr.f32.mxu0 %v8732_v59  ;;  %v24119_v58 = vld [vmem:[#allocation55_spill] sm:$0xff] }
0x114b   : > { %15693 = vmatprep.subr.bf16.mxu0 %v15692_v54  ;;  %v8742_v6 = vand.u32 4294901760, %v8741_v43  ;;  %7551 = vadd.xlane.f32.xlu1 %v7550_v38 }
0x114d   : > { %14839 = vmatmul.mubr.f32.gmra.mrb[54].mxu0 %v8742_v6 }
0x114e   : > { %14876 = vmatprep.mubr.f32.mxu0 %v24114_v25  ;;  %v24209_v25 = vld [vmem:[#allocation22_spill] sm:$0xff] }
0x1151   : > { %14877 = vmatmul.mubr.f32.vlgmr.msra.gmra.mrb[10].mxu0 %v24115_v36  ;;  %v24208_v36 = vld [vmem:[#allocation15_spill] sm:$0xff] }
0x1152   : > { %14879 = vmatprep.mubr.f32.mxu0 %v20158_v52  ;;  %15695 = vmatpush3.bf16.msra.mxu0 %v15692_v54  ;;  %v24207_v52 = vld [vmem:[#allocation6_spill] sm:$0xff] }
0x1153   : > { %15697 = vmatprep.subr.bf16.mxu0 %v15696_v40 }
0x1155   : > { %14880 = vmatmul.mubr.f32.gmra.mrb[12].mxu0 %v20141_v20  ;;  %v24205_v20 = vld [vmem:[#allocation10_spill] sm:$0xff] }
0x1156   : > { %14882 = vmatprep.mubr.f32.mxu0 %v20187_v56  ;;  %15699 = vmatpush3.bf16.msra.mxu0 %v15696_v40  ;;  %v24204_v56 = vld [vmem:[#allocation7_spill] sm:$0xff] }
0x1157   : > { %15701 = vmatprep.subr.bf16.mxu0 %v24116_v50 }
0x1159   : > { %14883 = vmatmul.mubr.f32.gmra.mrb[14].mxu0 %v20189_v23  ;;  %v24203_v23 = vld [vmem:[#allocation139_spill] sm:$0xff] }
0x115a   : > { %14885 = vmatprep.mubr.f32.mxu0 %v20219_v33  ;;  %v24202_v33 = vld [vmem:[#allocation134_spill] sm:$0xff] }
0x115d   : > { %14886 = vmatmul.mubr.f32.gmra.mrb[16].mxu0 %v20203_v60  ;;  %v24201_v60 = vld [vmem:[#allocation127_spill] sm:$0xff] }
0x115e   : > { %14888 = vmatprep.mubr.f32.mxu0 %v20252_v61  ;;  %v24200_v61 = vld [vmem:[#allocation123_spill] sm:$0xff] }
0x1161   : > { %14889 = vmatmul.mubr.f32.gmra.mrb[18].mxu0 %v20278_v41  ;;  %v24199_v41 = vld [vmem:[#allocation120_spill] sm:$0xff] }
0x1162   : > { %14891 = vmatprep.mubr.f32.mxu0 %v20287_v44  ;;  %v24198_v44 = vld [vmem:[#allocation114_spill] sm:$0xff] }
0x1165   : > { %14892 = vmatmul.mubr.f32.gmra.mrb[20].mxu0 %v24117_v46  ;;  %v24197_v46 = vld [vmem:[#allocation108_spill] sm:$0xff] }
0x1166   : > { %14894 = vmatprep.mubr.f32.mxu0 %v24118_v27  ;;  %v24196_v27 = vld [vmem:[#allocation104_spill] sm:$0xff] }
0x1169   : > { %14895 = vmatmul.mubr.f32.gmra.mrb[22].mxu0 %v20338_v19  ;;  %v24195_v19 = vld [vmem:[#allocation93_spill] sm:$0xff] }
0x116a   : > { %14897 = vmatprep.mubr.f32.mxu0 %v20368_v16  ;;  %v24194_v16 = vld [vmem:[#allocation87_spill] sm:$0xff] }
0x116d   : > { %14898 = vmatmul.mubr.f32.gmra.mrb[24].mxu0 %v20376_v63  ;;  %v24193_v63 = vld [vmem:[#allocation84_spill] sm:$0xff] }
0x116e   : > { %14900 = vmatprep.mubr.f32.mxu0 %v20394_v37  ;;  %v24192_v37 = vld [vmem:[#allocation82_spill] sm:$0xff] }
0x1171   : > { %14901 = vmatmul.mubr.f32.gmra.mrb[26].mxu0 %v24119_v58  ;;  %v24191_v58 = vld [vmem:[#allocation78_spill] sm:$0xff] }
0x1172   : > { %14903 = vmatprep.mubr.f32.mxu0 %v20431_v13  ;;  %v24190_v13 = vld [vmem:[#allocation72_spill] sm:$0xff] }
0x1175   : > { %14904 = vmatmul.mubr.f32.gmra.mrb[28].mxu0 %v20433_v31  ;;  %v24189_v31 = vld [vmem:[#allocation68_spill] sm:$0xff] }
0x1176   : > { %14906 = vmatprep.mubr.f32.mxu0 %v20461_v48  ;;  %v24188_v48 = vld [vmem:[#allocation65_spill] sm:$0xff] }
0x1179   : > { %14907 = vmatmul.mubr.f32.gmra.mrb[30].mxu0 %v20473_v26 }
0x117a   : > { %14909 = vmatprep.mubr.f32.mxu0 %v20478_v62 }
0x117d   : > { %14910 = vmatmul.mubr.f32.gmra.mrb[32].mxu0 %v20490_v5 }
0x117e   : > { %14912 = vmatprep.mubr.f32.mxu0 %v20520_v45 }
0x1181   : > { %14913 = vmatmul.mubr.f32.gmra.mrb[34].mxu0 %v20530_v24 }
0x1182   : > { %14915 = vmatprep.mubr.f32.mxu0 %v20557_v10 }
0x1185   : > { %14916 = vmatmul.mubr.f32.gmra.mrb[36].mxu0 %v20582_v22 }
0x1186   : > { %14918 = vmatprep.mubr.f32.mxu0 %v20598_v8 }
0x1189   : > { %14919 = vmatmul.mubr.f32.gmra.mrb[38].mxu0 %v20610_v39 }
0x118a   : > { %14921 = vmatprep.mubr.f32.mxu0 %v20640_v32 }
0x118d   : > { %14922 = vmatmul.mubr.f32.gmra.mrb[40].mxu0 %v20655_v2 }
0x118e   : > { %14924 = vmatprep.mubr.f32.mxu0 %v20667_v53 }
0x1191   : > { %14925 = vmatmul.mubr.f32.gmra.mrb[42].mxu0 %v20685_v3 }
0x1192   : > { %14927 = vmatprep.mubr.f32.mxu0 %v20710_v34 }
0x1195   : > { %14928 = vmatmul.mubr.f32.gmra.mrb[44].mxu0 %v20732_v49 }
0x1196   : > { %14930 = vmatprep.mubr.f32.mxu0 %v20746_v30  ;;  %v24123_v30 = vld [vmem:[#allocation102_spill] sm:$0xff] }
0x1199   : > { %14931 = vmatmul.mubr.f32.gmra.mrb[46].mxu0 %v20771_v28 }
0x119a   : > { %14933 = vmatprep.mubr.f32.mxu0 %v20785_v0 }
0x119c   : > { %v7507_v14 = vpop.xlane.xlu0 %7506 }
0x119d   : > { %14934 = vmatmul.mubr.f32.gmra.mrb[48].mxu0 %v20804_v55  ;;  %v7603_v54 = vmul.f32 0.03125, %v7507_v14 }
0x119e   : > { %14936 = vmatprep.mubr.f32.mxu0 %v20821_v51 }
0x119f   : > { %v7667_v59 = vadd.f32 1e-05, %v7603_v54 }
0x11a1   : > { %14937 = vmatmul.mubr.f32.gmra.mrb[50].mxu0 %v20839_v35  ;;  %16701 = vrsqrt.f32 %v7667_v59  ;;  %v24120_v59 = vld [vmem:[#allocation92_spill] sm:$0xff] }
0x11a2   : > { %14939 = vmatprep.mubr.f32.mxu0 %v20868_v17  ;;  %v7513_v43 = vpop.xlane.xlu0 %7512 }
0x11a3   : > { %v7605_v38 = vmul.f32 0.03125, %v7513_v43  ;;  %v24121_v43 = vld [vmem:[#allocation97_spill] sm:$0xff] }
0x11a5   : > { %14940 = vmatmul.mubr.f32.gmra.mrb[52].mxu0 %v20895_v21  ;;  %v7669_v6 = vadd.f32 1e-05, %v7605_v38  ;;  %v24122_v21 = vld [vmem:[#allocation100_spill] sm:$0xff] }
0x11a6   : > { %14942 = vmatprep.mubr.f32.mxu0 %v20907_v7  ;;  %v7504_v40 = vpop.xlane.xlu1 %7503 }
0x11a7   : > { %16703 = vrsqrt.f32 %v7669_v6  ;;  %v7602_v9 = vmul.f32 0.03125, %v7504_v40 }
0x11a9   : > { %14943 = vmatmul.mubr.f32.gmra.mrb[54].mxu0 %v20924_v12  ;;  %v7666_v14 = vadd.f32 1e-05, %v7602_v9 }
0x11aa   : > { %v7519_v47 = vpop.xlane.xlu0 %7518 }
0x11ab   : > { %v16702_v54 = vpop.eup %16701  ;;  %16705 = vrsqrt.f32 %v7666_v14  ;;  %v7607_v35 = vmul.f32 0.03125, %v7519_v47 }
0x11ac   : > { %v7795_v51 = vmul.f32 %v16702_v54, %v24120_v59 }
0x11ad   : > { %v7671_v17 = vadd.f32 1e-05, %v7607_v35  ;;  %v7510_v55 = vpop.xlane.xlu1 %7509 }
0x11ae   : > { %v7865_v0 = vmul.f32 %v24121_v43, %v7795_v51  ;;  %v7604_v38 = vmul.f32 0.03125, %v7510_v55 }
0x11af   : > { %16707 = vrsqrt.f32 %v7671_v17  ;;  %v24124_v17 = vld [vmem:[#allocation107_spill] sm:$0xff] }
0x11b0   : > { %v7935_v7 = vadd.f32 %v24122_v21, %v7865_v0  ;;  %v7668_v6 = vadd.f32 1e-05, %v7604_v38 }
0x11b1   : > { %v16704_v28 = vpop.eup %16703  ;;  %v7525_v40 = vpop.xlane.xlu0 %7524 }
0x11b2   : > { %v7797_v12 = vmul.f32 %v16704_v28, %v24123_v30  ;;  %v7609_v9 = vmul.f32 0.03125, %v7525_v40  ;;  %v7999_v49 = vmax.f32 %v7935_v7, 0.0  ;;  %16709 = vrsqrt.f32 %v7668_v6  ;;  %v24126_v40 = vld [vmem:[#allocation118_spill] sm:$0xff] }
0x11b3   : > { %v7516_v14 = vpop.xlane.xlu1 %7515 }
0x11b4   : > { %v7673_v47 = vadd.f32 1e-05, %v7609_v9  ;;  %v7606_v34 = vmul.f32 0.03125, %v7516_v14  ;;  %v8169_v35 = vsel %vm6978_vm3, %v7999_v49, 0  ;;  %v7867_v54 = vmul.f32 %v24121_v43, %v7797_v12 }
0x11b5   : > { %v16706_v51 = vpop.eup %16705  ;;  %v21011_v3 = vand.u32 4294901760, %v8169_v35 }
0x11b6   : > { %v7794_v55 = vmul.f32 %v16706_v51, %v24124_v17  ;;  %16711 = vrsqrt.f32 %v7673_v47  ;;  %v7670_v0 = vadd.f32 1e-05, %v7606_v34  ;;  %v7937_v59 = vadd.f32 %v24122_v21, %v7867_v54 }
0x11b7   : > { %v7531_v38 = vpop.xlane.xlu0 %7530  ;;  %24125 = vst [vmem:[#allocation61_spill] sm:$0xff] %v21011_v3  ;;  %v21018_v34 = vsub.f32 %v8169_v35, %v21011_v3 }
0x11b8   : > { %16713 = vrsqrt.f32 %v7670_v0  ;;  %v7611_v30 = vmul.f32 0.03125, %v7531_v38  ;;  %v7864_v28 = vmul.f32 %v24121_v43, %v7794_v55  ;;  %v8001_v7 = vmax.f32 %v7937_v59, 0.0  ;;  %v24128_v59 = vld [vmem:[#allocation121_spill] sm:$0xff] }
0x11b9   : > { %v16708_v6 = vpop.eup %16707 }
0x11ba   : > { %v7799_v49 = vmul.f32 %v16708_v6, %v24126_v40  ;;  %v7675_v9 = vadd.f32 1e-05, %v7611_v30  ;;  %v7934_v12 = vadd.f32 %v24122_v21, %v7864_v28  ;;  %v8175_v14 = vsel %vm6978_vm3, %v8001_v7, 0  ;;  %v7522_v47 = vpop.xlane.xlu1 %7521 }
0x11bb   : > { %v7608_v54 = vmul.f32 0.03125, %v7522_v47  ;;  %v21021_v55 = vand.u32 4294901760, %v8175_v14  ;;  %v24130_v47 = vld [vmem:[#allocation128_spill] sm:$0xff] }
0x11bc   : > { %16715 = vrsqrt.f32 %v7675_v9  ;;  %v7998_v51 = vmax.f32 %v7934_v12, 0.0  ;;  %v7869_v17 = vmul.f32 %v24121_v43, %v7799_v49  ;;  %v16710_v0 = vpop.eup %16709 }
0x11bd   : > { %24127 = vst [vmem:[#allocation63_spill] sm:$0xff] %v21021_v55  ;;  %v7796_v38 = vmul.f32 %v16710_v0, %v24128_v59  ;;  %v7672_v6 = vadd.f32 1e-05, %v7608_v54 }
0x11be   : > { %v7537_v30 = vpop.xlane.xlu0 %7536  ;;  %v8166_v28 = vsel %vm6978_vm3, %v7998_v51, 0  ;;  %v7939_v7 = vadd.f32 %v24122_v21, %v7869_v17  ;;  %v21036_v51 = vsub.f32 %v8175_v14, %v21021_v55  ;;  %v24133_v14 = vand.u32 4294901760, %v21018_v34 }
0x11bf   : > { %v7613_v40 = vmul.f32 0.03125, %v7537_v30  ;;  %v21026_v53 = vand.u32 4294901760, %v8166_v28  ;;  %16717 = vrsqrt.f32 %v7672_v6  ;;  %v7866_v49 = vmul.f32 %v24121_v43, %v7796_v38  ;;  %v24131_v30 = vld [vmem:[#allocation133_spill] sm:$0xff] }
0x11c0   : > { %v16712_v35 = vpop.eup %16711  ;;  %v8003_v12 = vmax.f32 %v7939_v7, 0.0  ;;  %v7528_v0 = vpop.xlane.xlu1 %7527 }
0x11c1   : > { %24129 = vst [vmem:[#allocation66_spill] sm:$0xff] %v21026_v53  ;;  %v7801_v2 = vmul.f32 %v16712_v35, %v24130_v47  ;;  %v7677_v32 = vadd.f32 1e-05, %v7613_v40  ;;  %14945 = vmatprep.mubr.f32.mxu0 %v21026_v53  ;;  %v21033_v54 = vsub.f32 %v8166_v28, %v21026_v53  ;;  %v7610_v59 = vmul.f32 0.03125, %v7528_v0 }
0x11c2   : > { %v16714_v17 = vpop.eup %16713  ;;  %14946 = vmatmul.mubr.f32.gmra.mrb[56].mxu0 %v21011_v3  ;;  %v7936_v6 = vadd.f32 %v24122_v21, %v7866_v49  ;;  %v8181_v38 = vsel %vm6978_vm3, %v8003_v12, 0  ;;  %v8761_v0 = vsub.f32 %v21018_v34, %v24133_v14  ;;  %v24134_v14 = vld [vmem:[#allocation137_spill] sm:$0xff] }
0x11c3   : > { %v7798_v7 = vmul.f32 %v16714_v17, %v24131_v30  ;;  %16719 = vrsqrt.f32 %v7677_v32  ;;  %v23317_v40 = vand.u32 4294901760, %v21033_v54  ;;  %v21043_v35 = vand.u32 4294901760, %v8181_v38 }
0x11c4   : > { %v7674_v28 = vadd.f32 1e-05, %v7610_v59  ;;  %v7543_v47 = vpop.xlane.xlu0 %7542  ;;  %v8000_v9 = vmax.f32 %v7936_v6, 0.0  ;;  %v7871_v3 = vmul.f32 %v24121_v43, %v7801_v2  ;;  %v8762_v12 = vand.u32 4294901760, %v8761_v0 }
0x11c5   : > { %24132 = vst [vmem:[#allocation67_spill] sm:$0xff] %v21043_v35  ;;  %v7615_v53 = vmul.f32 0.03125, %v7543_v47  ;;  %v8751_v49 = vsub.f32 %v21033_v54, %v23317_v40  ;;  %v7868_v32 = vmul.f32 %v24121_v43, %v7798_v7  ;;  %v21057_v30 = vsub.f32 %v8181_v38, %v21043_v35 }
0x11c6   : > { %v16716_v17 = vpop.eup %16715  ;;  %16721 = vrsqrt.f32 %v7674_v28  ;;  %v8172_v59 = vsel %vm6978_vm3, %v8000_v9, 0  ;;  %v7941_v6 = vadd.f32 %v24122_v21, %v7871_v3  ;;  %v24136_v9 = vand.u32 4294901760, %v21036_v51 }
0x11c7   : > { %v7803_v2 = vmul.f32 %v16716_v17, %v24134_v14  ;;  %v7679_v47 = vadd.f32 1e-05, %v7615_v53  ;;  %v7534_v39 = vpop.xlane.xlu1 %7533  ;;  %v21060_v8 = vand.u32 4294901760, %v8172_v59  ;;  %v8752_v40 = vand.u32 4294901760, %v8751_v49  ;;  %v24137_v17 = vld [vmem:[#allocation5_spill] sm:$0xff] }
0x11c8   : > { %v7612_v22 = vmul.f32 0.03125, %v7534_v39  ;;  %v7938_v7 = vadd.f32 %v24122_v21, %v7868_v32  ;;  %v8005_v10 = vmax.f32 %v7941_v6, 0.0  ;;  %v8781_v53 = vsub.f32 %v21036_v51, %v24136_v9 }
0x11c9   : > { %24135 = vst [vmem:[#allocation75_spill] sm:$0xff] %v21060_v8  ;;  %16723 = vrsqrt.f32 %v7679_v47  ;;  %14948 = vmatprep.mubr.f32.mxu0 %v21060_v8  ;;  %14841 = vmatprep.mubr.f32.mxu1 %v8752_v40  ;;  %v21065_v3 = vsub.f32 %v8172_v59, %v21060_v8  ;;  %v7873_v38 = vmul.f32 %v24121_v43, %v7803_v2  ;;  %v16718_v28 = vpop.eup %16717  ;;  %v23323_v40 = vand.u32 4294901760, %v21057_v30 }
0x11ca   : > { %v7676_v49 = vadd.f32 1e-05, %v7612_v22  ;;  %v7549_v39 = vpop.xlane.xlu0 %7548  ;;  %14949 = vmatmul.mubr.f32.gmra.mrb[58].mxu0 %v21021_v55  ;;  %v8002_v0 = vmax.f32 %v7938_v7, 0.0  ;;  %14842 = vmatmul.mubr.f32.vlgmr.msra.gmra.mrb[72].mxu1 %v8762_v12  ;;  %v8187_v32 = vsel %vm6978_vm3, %v8005_v10, 0  ;;  %v7800_v59 = vmul.f32 %v16718_v28, %v24137_v17  ;;  %v21088_v12 = vld [vmem:[%s22756_s5] ss:$0 sm:$0xff] }
0x11cb   : > { %v7617_v6 = vmul.f32 0.03125, %v7549_v39  ;;  %v23322_v14 = vand.u32 4294901760, %v21065_v3  ;;  %v21077_v43 = vand.u32 4294901760, %v8187_v32  ;;  %v7943_v22 = vadd.f32 %v24122_v21, %v7873_v38 }
0x11cc   : > { %16725 = vrsqrt.f32 %v7676_v49  ;;  %v8178_v47 = vsel %vm6978_vm3, %v8002_v0, 0  ;;  %v7870_v28 = vmul.f32 %v21088_v12, %v7800_v59  ;;  %v24140_v49 = vld [vmem:[#allocation9_spill] sm:$0xff]  ;;  %v8782_v0 = vand.u32 4294901760, %v8781_v53 }
0x11cd   : > { %24138 = vst [vmem:[#allocation69_spill] sm:$0xff] %v21077_v43  ;;  %v16720_v2 = vpop.eup %16719  ;;  %v7681_v9 = vadd.f32 1e-05, %v7617_v6  ;;  %v21080_v7 = vand.u32 4294901760, %v8178_v47  ;;  %v8771_v10 = vsub.f32 %v21065_v3, %v23322_v14  ;;  %v8801_v21 = vsub.f32 %v21057_v30, %v23323_v40  ;;  %v21099_v14 = vld [vmem:[%s22757_s6] ss:$0 sm:$0xff] }
0x11ce   : > { %v7805_v39 = vmul.f32 %v16720_v2, %v24140_v49  ;;  %v8007_v38 = vmax.f32 %v7943_v22, 0.0  ;;  %v7540_v17 = vpop.xlane.xlu1 %7539  ;;  %v7940_v59 = vadd.f32 %v21099_v14, %v7870_v28  ;;  %v24141_v40 = vld [vmem:[#allocation14_spill] sm:$0xff] }
0x11cf   : > { %24139 = vst [vmem:[#allocation71_spill] sm:$0xff] %v21080_v7  ;;  %16727 = vrsqrt.f32 %v7681_v9  ;;  %14951 = vmatprep.mubr.f32.mxu0 %v21080_v7  ;;  %v8772_v6 = vand.u32 4294901760, %v8771_v10  ;;  %v21103_v2 = vsub.f32 %v8178_v47, %v21080_v7  ;;  %v7614_v49 = vmul.f32 0.03125, %v7540_v17 }
0x11d0   : > { %v16722_v53 = vpop.eup %16721  ;;  %14952 = vmatmul.mubr.f32.gmra.mrb[60].mxu0 %v21043_v35  ;;  %v8193_v22 = vsel %vm6978_vm3, %v8007_v38, 0  ;;  %v21108_v9 = vsub.f32 %v8187_v32, %v21077_v43  ;;  %v7875_v10 = vmul.f32 %v21088_v12, %v7805_v39  ;;  %v8004_v8 = vmax.f32 %v7940_v59, 0.0 }
0x11d1   : > { %v7802_v55 = vmul.f32 %v16722_v53, %v24141_v40  ;;  %14844 = vmatprep.mubr.f32.mxu1 %v8772_v6  ;;  %v23343_v28 = vand.u32 4294901760, %v21103_v2  ;;  %v7678_v24 = vadd.f32 1e-05, %v7614_v49  ;;  %v21113_v47 = vand.u32 4294901760, %v8193_v22  ;;  %v24143_v6 = vld [vmem:[#allocation20_spill] sm:$0xff] }
0x11d2   : > { %14845 = vmatmul.mubr.f32.gmra.mrb[74].mxu1 %v8782_v0  ;;  %v7945_v17 = vadd.f32 %v21099_v14, %v7875_v10  ;;  %v8184_v38 = vsel %vm6978_vm3, %v8004_v8, 0  ;;  %v8802_v40 = vand.u32 4294901760, %v8801_v21  ;;  %v7555_v53 = vpop.xlane.xlu0 %7554  ;;  %v23342_v0 = vand.u32 4294901760, %v21108_v9  ;;  %v24146_v21 = vld [vmem:[#allocation12_spill] sm:$0xff] }
0x11d3   : > { %24142 = vst [vmem:[#allocation83_spill] sm:$0xff] %v21113_v47  ;;  %v16724_v35 = vpop.eup %16723  ;;  %v8791_v32 = vsub.f32 %v21103_v2, %v23343_v28  ;;  %v7872_v39 = vmul.f32 %v21088_v12, %v7802_v55  ;;  %16729 = vrsqrt.f32 %v7678_v24  ;;  %v21122_v49 = vand.u32 4294901760, %v8184_v38 }
0x11d4   : > { %v7807_v59 = vmul.f32 %v16724_v35, %v24143_v6  ;;  %v7619_v7 = vmul.f32 0.03125, %v7555_v53  ;;  %v7546_v10 = vpop.xlane.xlu1 %7545  ;;  %v8009_v5 = vmax.f32 %v7945_v17, 0.0  ;;  %v21131_v24 = vsub.f32 %v8193_v22, %v21113_v47 }
0x11d5   : > { %24144 = vst [vmem:[#allocation89_spill] sm:$0xff] %v21122_v49  ;;  %v8792_v45 = vand.u32 4294901760, %v8791_v32  ;;  %v7942_v8 = vadd.f32 %v21099_v14, %v7872_v39  ;;  %v7616_v26 = vmul.f32 0.03125, %v7546_v10  ;;  %14954 = vmatprep.mubr.f32.mxu0 %v21122_v49  ;;  %v21128_v55 = vsub.f32 %v8184_v38, %v21122_v49  ;;  %v24187_v49 = vld [vmem:[#allocation59_spill] sm:$0xff] }
0x11d6   : > { %v16726_v62 = vpop.eup %16725  ;;  %24145 = vst [vmem:[#allocation88_spill] sm:$0xff] %v21131_v24  ;;  %v7877_v35 = vmul.f32 %v21088_v12, %v7807_v59  ;;  %v7683_v53 = vadd.f32 1e-05, %v7619_v7  ;;  %14955 = vmatmul.mubr.f32.gmra.mrb[62].mxu0 %v21077_v43  ;;  %v8199_v17 = vsel %vm6978_vm3, %v8009_v5, 0  ;;  %v8821_v22 = vsub.f32 %v21108_v9, %v23342_v0  ;;  %v24148_v5 = vld [vmem:[#allocation17_spill] sm:$0xff] }
0x11d7   : > { %v7804_v6 = vmul.f32 %v16726_v62, %v24146_v21  ;;  %14847 = vmatprep.mubr.f32.mxu1 %v8792_v45  ;;  %v8006_v32 = vmax.f32 %v7942_v8, 0.0  ;;  %v7680_v39 = vadd.f32 1e-05, %v7616_v26  ;;  %v23346_v10 = vand.u32 4294901760, %v21128_v55 }
0x11d8   : > { %14848 = vmatmul.mubr.f32.gmra.mrb[76].mxu1 %v8802_v40  ;;  %v21141_v38 = vand.u32 4294901760, %v8199_v17  ;;  %16731 = vrsqrt.f32 %v7683_v53  ;;  %v7552_v62 = vpop.xlane.xlu1 %7551  ;;  %v7947_v8 = vadd.f32 %v21099_v14, %v7877_v35 }
0x11d9   : > { %v16728_v59 = vpop.eup %16727  ;;  %v8190_v7 = vsel %vm6978_vm3, %v8006_v32, 0  ;;  %v7874_v45 = vmul.f32 %v21088_v12, %v7804_v6  ;;  %16733 = vrsqrt.f32 %v7680_v39  ;;  %v7618_v40 = vmul.f32 0.03125, %v7552_v62 }
0x11da   : > { %24147 = vst [vmem:[#allocation86_spill] sm:$0xff] %v21141_v38  ;;  %v7809_v26 = vmul.f32 %v16728_v59, %v24148_v5  ;;  %v21147_v21 = vand.u32 4294901760, %v8190_v7  ;;  %v8811_v0 = vsub.f32 %v21128_v55, %v23346_v10  ;;  %v8011_v43 = vmax.f32 %v7947_v8, 0.0  ;;  %v24152_v10 = vld [vmem:[#allocation39_spill] sm:$0xff] }
0x11db   : > { %v7944_v28 = vadd.f32 %v21099_v14, %v7874_v45  ;;  %v7682_v32 = vadd.f32 1e-05, %v7618_v40  ;;  %v21161_v62 = vsub.f32 %v8199_v17, %v21141_v38  ;;  %v8822_v45 = vand.u32 4294901760, %v8821_v22 }
0x11dc   : > { %24149 = vst [vmem:[#allocation94_spill] sm:$0xff] %v21147_v21  ;;  %14957 = vmatprep.mubr.f32.mxu0 %v21147_v21  ;;  %v21156_v35 = vsub.f32 %v8190_v7, %v21147_v21  ;;  %v7879_v6 = vmul.f32 %v21088_v12, %v7809_v26  ;;  %v8812_v39 = vand.u32 4294901760, %v8811_v0  ;;  %v8205_v40 = vsel %vm6978_vm3, %v8011_v43, 0 }
0x11dd   : > { %14958 = vmatmul.mubr.f32.gmra.mrb[64].mxu0 %v21113_v47  ;;  %v8008_v59 = vmax.f32 %v7944_v28, 0.0  ;;  %24151 = vst [vmem:[#allocation96_spill] sm:$0xff] %v21161_v62  ;;  %v16730_v5 = vpop.eup %16729  ;;  %16735 = vrsqrt.f32 %v7682_v32  ;;  %v24153_v26 = vand.u32 4294901760, %v21131_v24  ;;  %v21177_v32 = vand.u32 4294901760, %v8205_v40 }
0x11de   : > { %24150 = vst [vmem:[#allocation91_spill] sm:$0xff] %v21156_v35  ;;  %v23347_v8 = vand.u32 4294901760, %v21156_v35  ;;  %v7806_v53 = vmul.f32 %v16730_v5, %v24152_v10  ;;  %14850 = vmatprep.mubr.f32.mxu1 %v8812_v39  ;;  %v7949_v28 = vadd.f32 %v21099_v14, %v7879_v6  ;;  %v24157_v10 = vld [vmem:[#allocation47_spill] sm:$0xff] }
0x11df   : > { %v8196_v7 = vsel %vm6978_vm3, %v8008_v59, 0  ;;  %v8841_v0 = vsub.f32 %v21131_v24, %v24153_v26  ;;  %14851 = vmatmul.mubr.f32.gmra.mrb[78].mxu1 %v8822_v45  ;;  %24155 = vst [vmem:[#allocation101_spill] sm:$0xff] %v21177_v32 }
0x11e0   : > { %v21171_v17 = vand.u32 4294901760, %v8196_v7  ;;  %v8831_v22 = vsub.f32 %v21156_v35, %v23347_v8  ;;  %v7876_v43 = vmul.f32 %v21088_v12, %v7806_v53  ;;  %v8013_v39 = vmax.f32 %v7949_v28, 0.0 }
0x11e1   : > { %v8842_v26 = vand.u32 4294901760, %v8841_v0 }
0x11e2   : > { %24154 = vst [vmem:[#allocation95_spill] sm:$0xff] %v21171_v17  ;;  %14960 = vmatprep.mubr.f32.mxu0 %v21171_v17  ;;  %v8832_v59 = vand.u32 4294901760, %v8831_v22  ;;  %v21182_v5 = vsub.f32 %v8196_v7, %v21171_v17  ;;  %v16732_v6 = vpop.eup %16731  ;;  %v7946_v45 = vadd.f32 %v21099_v14, %v7876_v43  ;;  %v8211_v28 = vsel %vm6978_vm3, %v8013_v39, 0 }
0x11e3   : > { %14961 = vmatmul.mubr.f32.gmra.mrb[66].mxu0 %v21141_v38  ;;  %v16734_v8 = vpop.eup %16733  ;;  %v7811_v53 = vmul.f32 %v16732_v6, %v20845_v15  ;;  %v24158_v7 = vand.u32 4294901760, %v21161_v62  ;;  %v21194_v38 = vsub.f32 %v8205_v40, %v21177_v32 }
0x11e4   : > { %24156 = vst [vmem:[#allocation99_spill] sm:$0xff] %v21182_v5  ;;  %14853 = vmatprep.mubr.f32.mxu1 %v8832_v59  ;;  %v23356_v47 = vand.u32 4294901760, %v21182_v5  ;;  %v7808_v21 = vmul.f32 %v16734_v8, %v24157_v10  ;;  %v8010_v22 = vmax.f32 %v7946_v45, 0.0  ;;  %v21202_v8 = vand.u32 4294901760, %v8211_v28 }
0x11e5   : > { %14854 = vmatmul.mubr.f32.gmra.mrb[80].mxu1 %v8842_v26  ;;  %v8861_v17 = vsub.f32 %v21161_v62, %v24158_v7  ;;  %v7881_v0 = vmul.f32 %v21088_v12, %v7811_v53 }
0x11e6   : > { %v8851_v15 = vsub.f32 %v21182_v5, %v23356_v47  ;;  %v8202_v43 = vsel %vm6978_vm3, %v8010_v22, 0  ;;  %v7878_v39 = vmul.f32 %v21088_v12, %v7808_v21  ;;  %24159 = vst [vmem:[#allocation105_spill] sm:$0xff] %v21202_v8  ;;  %v23357_v47 = vand.u32 4294901760, %v21194_v38 }
0x11e7   : > { %v16736_v10 = vpop.eup %16735  ;;  %v21204_v59 = vand.u32 4294901760, %v8202_v43  ;;  %v7951_v45 = vadd.f32 %v21099_v14, %v7881_v0  ;;  %v8862_v7 = vand.u32 4294901760, %v8861_v17 }
0x11e8   : > { %v8852_v6 = vand.u32 4294901760, %v8851_v15  ;;  %v7810_v40 = vmul.f32 %v16736_v10, %v20927_v4  ;;  %v7948_v26 = vadd.f32 %v21099_v14, %v7878_v39  ;;  %v21217_v4 = vsub.f32 %v8211_v28, %v21202_v8 }
0x11e9   : > { %24160 = vst [vmem:[#allocation103_spill] sm:$0xff] %v21204_v59  ;;  %14963 = vmatprep.mubr.f32.mxu0 %v21204_v59  ;;  %v21212_v21 = vsub.f32 %v8202_v43, %v21204_v59  ;;  %v8015_v53 = vmax.f32 %v7951_v45, 0.0  ;;  %v8881_v43 = vsub.f32 %v21194_v38, %v23357_v47  ;;  %v24186_v59 = vld [vmem:[#allocation58_spill] sm:$0xff] }
0x11ea   : > { %14856 = vmatprep.mubr.f32.mxu1 %v8852_v6  ;;  %14964 = vmatmul.mubr.f32.gmra.mrb[68].mxu0 %v21177_v32  ;;  %v8012_v22 = vmax.f32 %v7948_v26, 0.0  ;;  %v7880_v15 = vmul.f32 %v21088_v12, %v7810_v40  ;;  %v23358_v40 = vand.u32 4294901760, %v21217_v4  ;;  %v24185_v32 = vld [vmem:[#allocation53_spill] sm:$0xff] }
0x11eb   : > { %24161 = vst [vmem:[#allocation110_spill] sm:$0xff] %v21212_v21  ;;  %14857 = vmatmul.mubr.f32.gmra.mrb[82].mxu1 %v8862_v7  ;;  %v23360_v17 = vand.u32 4294901760, %v21212_v21  ;;  %v8217_v0 = vsel %vm6978_vm3, %v8015_v53, 0 }
0x11ec   : > { %v8208_v39 = vsel %vm6978_vm3, %v8012_v22, 0  ;;  %v7950_v10 = vadd.f32 %v21099_v14, %v7880_v15  ;;  %v21226_v6 = vand.u32 4294901760, %v8217_v0  ;;  %v8882_v22 = vand.u32 4294901760, %v8881_v43 }
0x11ed   : > { %v21228_v45 = vand.u32 4294901760, %v8208_v39  ;;  %v8871_v12 = vsub.f32 %v21212_v21, %v23360_v17  ;;  %v24169_v17 = vld [vmem:[#allocation132_spill] sm:$0xff] }
0x11ee   : > { %24162 = vst [vmem:[#allocation109_spill] sm:$0xff] %v21226_v6  ;;  %v8014_v28 = vmax.f32 %v7950_v10, 0.0  ;;  %v21235_v26 = vsub.f32 %v8217_v0, %v21226_v6  ;;  %v8901_v0 = vsub.f32 %v21217_v4, %v23358_v40 }
0x11ef   : > { %24163 = vst [vmem:[#allocation112_spill] sm:$0xff] %v21228_v45  ;;  %14966 = vmatprep.mubr.f32.mxu0 %v21228_v45  ;;  %v8872_v14 = vand.u32 4294901760, %v8871_v12  ;;  %v21239_v7 = vsub.f32 %v8208_v39, %v21228_v45  ;;  %v24184_v45 = vld [vmem:[#allocation48_spill] sm:$0xff] }
0x11f0   : > { %14967 = vmatmul.mubr.f32.gmra.mrb[70].mxu0 %v21202_v8  ;;  %v8214_v53 = vsel %vm6978_vm3, %v8014_v28, 0  ;;  %v23365_v12 = vand.u32 4294901760, %v21235_v26  ;;  %v24167_v28 = vld [vmem:[#allocation119_spill] sm:$0xff]  ;;  %v8902_v47 = vand.u32 4294901760, %v8901_v0  ;;  %v24171_v0 = vand.u32 4294901760, %v24112_v42  ;;  %v24178_v42 = vld [vmem:[#allocation26_spill] sm:$0xff] }
0x11f1   : > { %24164 = vst [vmem:[#allocation111_spill] sm:$0xff] %v21239_v7  ;;  %14859 = vmatprep.mubr.f32.mxu1 %v8872_v14  ;;  %v21243_v15 = vand.u32 4294901760, %v8214_v53  ;;  %v23359_v10 = vand.u32 4294901760, %v21239_v7  ;;  %v24177_v8 = vld [vmem:[#allocation23_spill] sm:$0xff] }
0x11f2   : > { %14860 = vmatmul.mubr.f32.gmra.mrb[84].mxu1 %v8882_v22  ;;  %v8921_v40 = vsub.f32 %v21235_v26, %v23365_v12  ;;  %v24172_v12 = vand.u32 4294901760, %v24113_v18  ;;  %v24179_v18 = vld [vmem:[#allocation25_spill] sm:$0xff] }
0x11f3   : > { %24165 = vst [vmem:[#allocation77_spill] sm:$0xff] %v21243_v15  ;;  %14969 = vmatprep.mubr.f32.mxu0 %v21243_v15  ;;  %v8891_v39 = vsub.f32 %v21239_v7, %v23359_v10  ;;  %v21255_v43 = vsub.f32 %v8214_v53, %v21243_v15  ;;  %v24168_v53 = vld [vmem:[#allocation36_spill] sm:$0xff]  ;;  %v24170_v15 = vld [vmem:[#allocation81_spill] sm:$0xff] }
0x11f4   : > { %14970 = vmatmul.mubr.f32.gmra.mrb[72].mxu0 %v21226_v6  ;;  %v8922_v6 = vand.u32 4294901760, %v8921_v40  ;;  %v24176_v40 = vld [vmem:[#allocation16_spill] sm:$0xff] }
0x11f5   : > { %24166 = vst [vmem:[#allocation79_spill] sm:$0xff] %v21255_v43  ;;  %14980 = vmatprep.mubr.f32.mxu0 %v24167_v28  ;;  %v8892_v14 = vand.u32 4294901760, %v8891_v39  ;;  %v23366_v22 = vand.u32 4294901760, %v21255_v43 }
0x11f7   : > { %14862 = vmatprep.mubr.f32.mxu1 %v8892_v14  ;;  %v8911_v10 = vsub.f32 %v21255_v43, %v23366_v22  ;;  %v21274_v14 = vpack.c.bf16 %v24172_v12, %v24171_v0  ;;  %v24173_v22 = vld [vmem:[#allocation126_spill] sm:$0xff]  ;;  %v24183_v0 = vld [vmem:[#allocation44_spill] sm:$0xff] }
0x11f8   : > { %14863 = vmatmul.mubr.f32.gmra.mrb[86].mxu1 %v8902_v47  ;;  %14981 = vmatmul.mubr.f32.vlgmr.msra.gmra.mrb[10].mxu0 %v24168_v53  ;;  %v24174_v47 = vld [vmem:[#allocation140_spill] sm:$0xff]  ;;  %v24180_v12 = vld [vmem:[#allocation30_spill] sm:$0xff] }
0x11f9   : > { %15703 = vmatpush3.bf16.msra.mxu0 %v24116_v50  ;;  %14983 = vmatprep.mubr.f32.mxu0 %v24169_v17  ;;  %v8912_v39 = vand.u32 4294901760, %v8911_v10  ;;  %v24175_v10 = vld [vmem:[#allocation19_spill] sm:$0xff] }
0x11fa   : > { %15705 = vmatprep.subr.bf16.mxu0 %v24170_v15 }
0x11fb   : > { %14865 = vmatprep.mubr.f32.mxu1 %v8912_v39  ;;  %v24182_v39 = vld [vmem:[#allocation40_spill] sm:$0xff] }
0x11fc   : > { %14866 = vmatmul.mubr.f32.gmra.mrb[88].mxu1 %v8922_v6  ;;  %14984 = vmatmul.mubr.f32.gmra.mrb[12].mxu0 %v24173_v22  ;;  %v24181_v6 = vld [vmem:[#allocation38_spill] sm:$0xff] }
0x11fd   : > { %14986 = vmatprep.mubr.f32.mxu0 %v24174_v47  ;;  %15707 = vmatpush3.bf16.msra.mxu0 %v24170_v15  ;;  %v24206_v15 = vld [vmem:[#allocation27_spill] sm:$0xff] }
0x11fe   : > { %15709 = vmatprep.subr.bf16.mxu0 %v21274_v14 }
0x1200   : > { %14987 = vmatmul.mubr.f32.gmra.mrb[14].mxu0 %v24175_v10 }
0x1201   : > { %14989 = vmatprep.mubr.f32.mxu0 %v24176_v40 }
0x1204   : > { %14990 = vmatmul.mubr.f32.gmra.mrb[16].mxu0 %v24177_v8 }
0x1205   : > { %14992 = vmatprep.mubr.f32.mxu0 %v24178_v42 }
0x1208   : > { %14993 = vmatmul.mubr.f32.gmra.mrb[18].mxu0 %v24179_v18 }
0x1209   : > { %14995 = vmatprep.mubr.f32.mxu0 %v24180_v12 }
0x120c   : > { %14996 = vmatmul.mubr.f32.gmra.mrb[20].mxu0 %v24181_v6 }
0x120d   : > { %14998 = vmatprep.mubr.f32.mxu0 %v24182_v39 }
0x1210   : > { %14999 = vmatmul.mubr.f32.gmra.mrb[22].mxu0 %v24183_v0 }
0x1211   : > { %15001 = vmatprep.mubr.f32.mxu0 %v24184_v45 }
0x1214   : > { %15002 = vmatmul.mubr.f32.gmra.mrb[24].mxu0 %v24185_v32 }
0x1215   : > { %15004 = vmatprep.mubr.f32.mxu0 %v24186_v59 }
0x1218   : > { %15005 = vmatmul.mubr.f32.gmra.mrb[26].mxu0 %v24187_v49 }
0x1219   : > { %15007 = vmatprep.mubr.f32.mxu0 %v24188_v48 }
0x121c   : > { %15008 = vmatmul.mubr.f32.gmra.mrb[28].mxu0 %v24189_v31 }
0x121d   : > { %15010 = vmatprep.mubr.f32.mxu0 %v24190_v13 }
0x1220   : > { %15011 = vmatmul.mubr.f32.gmra.mrb[30].mxu0 %v24191_v58 }
0x1221   : > { %15013 = vmatprep.mubr.f32.mxu0 %v24192_v37 }
0x1224   : > { %15014 = vmatmul.mubr.f32.gmra.mrb[32].mxu0 %v24193_v63 }
0x1225   : > { %15016 = vmatprep.mubr.f32.mxu0 %v24194_v16 }
0x1228   : > { %15017 = vmatmul.mubr.f32.gmra.mrb[34].mxu0 %v24195_v19 }
0x1229   : > { %15019 = vmatprep.mubr.f32.mxu0 %v24196_v27 }
0x122c   : > { %15020 = vmatmul.mubr.f32.gmra.mrb[36].mxu0 %v24197_v46 }
0x122d   : > { %15022 = vmatprep.mubr.f32.mxu0 %v24198_v44 }
0x1230   : > { %15023 = vmatmul.mubr.f32.gmra.mrb[38].mxu0 %v24199_v41  ;;  %v24210_v41 = vld [vmem:[#allocation41_spill] sm:$0xff] }
0x1231   : > { %15025 = vmatprep.mubr.f32.mxu0 %v24200_v61  ;;  %v24211_v61 = vld [vmem:[#allocation46_spill] sm:$0xff] }
0x1234   : > { %15026 = vmatmul.mubr.f32.gmra.mrb[40].mxu0 %v24201_v60  ;;  %v24212_v60 = vld [vmem:[#allocation51_spill] sm:$0xff] }
0x1235   : > { %15028 = vmatprep.mubr.f32.mxu0 %v24202_v33  ;;  %v24213_v33 = vld [vmem:[#allocation56_spill] sm:$0xff] }
0x1238   : > { %15029 = vmatmul.mubr.f32.gmra.mrb[42].mxu0 %v24203_v23 }
0x1239   : > { %15031 = vmatprep.mubr.f32.mxu0 %v24204_v56 }
0x123c   : > { %15032 = vmatmul.mubr.f32.gmra.mrb[44].mxu0 %v24205_v20 }
0x123d   : > { %15034 = vmatprep.mubr.f32.mxu0 %v24206_v15 }
0x1240   : > { %15035 = vmatmul.mubr.f32.gmra.mrb[46].mxu0 %v24207_v52 }
0x1241   : > { %15037 = vmatprep.mubr.f32.mxu0 %v24208_v36 }
0x1244   : > { %15038 = vmatmul.mubr.f32.gmra.mrb[48].mxu0 %v24209_v25 }
0x1245   : > { %15040 = vmatprep.mubr.f32.mxu0 %v24210_v41 }
0x1248   : > { %15041 = vmatmul.mubr.f32.gmra.mrb[50].mxu0 %v24211_v61 }
0x1249   : > { %15043 = vmatprep.mubr.f32.mxu0 %v24212_v60 }
0x124c   : > { %15044 = vmatmul.mubr.f32.gmra.mrb[52].mxu0 %v24213_v33 }
0x124d   : > { %15046 = vmatprep.mubr.f32.mxu0 %v20921_v1 }
0x1250   : > { %15047 = vmatmul.mubr.f32.gmra.mrb[54].mxu0 %v20938_v29 }
0x1251   : > { %15049 = vmatprep.mubr.f32.mxu0 %v21033_v54 }
0x1254   : > { %15050 = vmatmul.mubr.f32.gmra.mrb[56].mxu0 %v21018_v34 }
0x1255   : > { %15052 = vmatprep.mubr.f32.mxu0 %v21065_v3 }
0x1258   : > { %15053 = vmatmul.mubr.f32.gmra.mrb[58].mxu0 %v21036_v51 }
0x1259   : > { %15055 = vmatprep.mubr.f32.mxu0 %v21103_v2 }
0x125c   : > { %15056 = vmatmul.mubr.f32.gmra.mrb[60].mxu0 %v21057_v30 }
0x125d   : > { %15058 = vmatprep.mubr.f32.mxu0 %v21128_v55 }
0x1260   : > { %15059 = vmatmul.mubr.f32.gmra.mrb[62].mxu0 %v21108_v9 }
0x1261   : > { %15061 = vmatprep.mubr.f32.mxu0 %v21156_v35  ;;  %v24214_v35 = vand.u32 4294901760, %v24167_v28  ;;  %v24220_v28 = vand.u32 4294901760, %v24174_v47  ;;  %v24235_v47 = vand.u32 4294901760, %v24189_v31  ;;  %v24243_v31 = vand.u32 4294901760, %v24194_v16  ;;  %v24251_v16 = vld [vmem:[#allocation120_spill] sm:$0xff] }
0x1264   : > { %15062 = vmatmul.mubr.f32.gmra.mrb[64].mxu0 %v21131_v24  ;;  %v24215_v24 = vand.u32 4294901760, %v20882_v11  ;;  %v24222_v11 = vand.u32 4294901760, %v24176_v40 }
0x1265   : > { %15064 = vmatprep.mubr.f32.mxu0 %v21182_v5  ;;  %v24216_v5 = vand.u32 4294901760, %v20893_v57  ;;  %v24221_v57 = vand.u32 4294901760, %v24175_v10 }
0x1268   : > { %15065 = vmatmul.mubr.f32.gmra.mrb[66].mxu0 %v21161_v62  ;;  %v15712_v62 = vpack.c.bf16 %v24216_v5, %v24215_v24  ;;  %v24223_v24 = vand.u32 4294901760, %v24177_v8  ;;  %v24225_v5 = vand.u32 4294901760, %v24179_v18  ;;  %v24230_v8 = vand.u32 4294901760, %v24184_v45 }
0x1269   : > { %15067 = vmatprep.mubr.f32.mxu0 %v21212_v21  ;;  %v24217_v21 = vand.u32 4294901760, %v24168_v53  ;;  %v24233_v53 = vand.u32 4294901760, %v24187_v49  ;;  %v24237_v45 = vand.u32 4294901760, %v24190_v13  ;;  %v24241_v49 = vand.u32 4294901760, %v24193_v63 }
0x126a   : > { %v24245_v13 = vand.u32 4294901760, %v24195_v19  ;;  %v24246_v18 = vand.u32 4294901760, %v24196_v27  ;;  %v24249_v63 = vand.u32 4294901760, %v24197_v46 }
0x126c   : > { %15068 = vmatmul.mubr.f32.gmra.mrb[68].mxu0 %v21194_v38 }
0x126d   : > { %15070 = vmatprep.mubr.f32.mxu0 %v21239_v7  ;;  %v24218_v7 = vand.u32 4294901760, %v24169_v17  ;;  %v24228_v17 = vand.u32 4294901760, %v24182_v39  ;;  %v24253_v39 = vld [vmem:[#allocation123_spill] sm:$0xff] }
0x1270   : > { %15071 = vmatmul.mubr.f32.gmra.mrb[70].mxu0 %v21217_v4 }
0x1271   : > { %15073 = vmatprep.mubr.f32.mxu0 %v21255_v43  ;;  %v24219_v43 = vand.u32 4294901760, %v24173_v22  ;;  %v24232_v22 = vand.u32 4294901760, %v24186_v59  ;;  %v24240_v59 = vand.u32 4294901760, %v24192_v37 }
0x1274   : > { %15074 = vmatmul.mubr.f32.gmra.mrb[72].mxu0 %v21235_v26 }
0x1275   : > { %15084 = vmatprep.mubr.f32.mxu0 %v24214_v35  ;;  %v24224_v35 = vand.u32 4294901760, %v24178_v42 }
0x1278   : > { %15085 = vmatmul.mubr.f32.vlgmr.msra.gmra.mrb[10].mxu0 %v24217_v21  ;;  %v24226_v21 = vand.u32 4294901760, %v24180_v12  ;;  %v24250_v12 = vand.u32 4294901760, %v24198_v44  ;;  %v24262_v44 = vand.u32 4294901760, %v24203_v23  ;;  %v24270_v23 = vand.u32 4294901760, %v24208_v36 }
0x1279   : > { %15711 = vmatpush3.bf16.msra.mxu0 %v21274_v14  ;;  %15087 = vmatprep.mubr.f32.mxu0 %v24218_v7  ;;  %v24229_v7 = vand.u32 4294901760, %v24183_v0  ;;  %v24234_v14 = vand.u32 4294901760, %v24188_v48  ;;  %v24254_v0 = vand.u32 4294901760, %v24253_v39 }
0x127a   : > { %15713 = vmatprep.subr.bf16.mxu0 %v15712_v62 }
0x127c   : > { %15088 = vmatmul.mubr.f32.gmra.mrb[12].mxu0 %v24219_v43  ;;  %v24231_v43 = vand.u32 4294901760, %v24185_v32  ;;  %v24239_v32 = vand.u32 4294901760, %v24191_v58 }
0x127d   : > { %15090 = vmatprep.mubr.f32.mxu0 %v24220_v28  ;;  %15715 = vmatpush3.bf16.msra.mxu0 %v15712_v62  ;;  %v24227_v62 = vand.u32 4294901760, %v24181_v6  ;;  %v24252_v6 = vand.u32 4294901760, %v24251_v16  ;;  %v24257_v28 = vld [vmem:[#allocation127_spill] sm:$0xff]  ;;  %v24305_v16 = vand.u32 4294901760, %v21217_v4 }
0x127e   : > { %15717 = vmatprep.subr.bf16.mxu0 %v24116_v50  ;;  %v24314_v4 = vld [vmem:[#allocation135_spill] sm:$0xff] }
0x1280   : > { %15091 = vmatmul.mubr.f32.gmra.mrb[14].mxu0 %v24221_v57  ;;  %v24258_v57 = vand.u32 4294901760, %v24257_v28  ;;  %v24309_v28 = vld [vmem:[#allocation115_spill] sm:$0xff] }
0x1281   : > { %15093 = vmatprep.mubr.f32.mxu0 %v24222_v11  ;;  %v24259_v11 = vld [vmem:[#allocation134_spill] sm:$0xff] }
0x1284   : > { %15094 = vmatmul.mubr.f32.gmra.mrb[16].mxu0 %v24223_v24  ;;  %v24260_v24 = vand.u32 4294901760, %v24259_v11  ;;  %v24312_v11 = vld [vmem:[#allocation81_spill] sm:$0xff] }
0x1285   : > { %15096 = vmatprep.mubr.f32.mxu0 %v24224_v35 }
0x1288   : > { %15097 = vmatmul.mubr.f32.gmra.mrb[18].mxu0 %v24225_v5  ;;  %v24264_v5 = vand.u32 4294901760, %v24204_v56  ;;  %v24272_v56 = vand.u32 4294901760, %v24210_v41  ;;  %v24280_v41 = vand.u32 4294901760, %v20921_v1  ;;  %v24288_v1 = vand.u32 4294901760, %v21103_v2  ;;  %v24298_v2 = vld [vmem:[#allocation96_spill] sm:$0xff] }
0x1289   : > { %15099 = vmatprep.mubr.f32.mxu0 %v24226_v21  ;;  %v24265_v21 = vand.u32 4294901760, %v24205_v20 }
0x128c   : > { %15100 = vmatmul.mubr.f32.gmra.mrb[20].mxu0 %v24227_v62  ;;  %v24266_v62 = vand.u32 4294901760, %v24206_v15 }
0x128d   : > { %15102 = vmatprep.mubr.f32.mxu0 %v24228_v17 }
0x1290   : > { %15103 = vmatmul.mubr.f32.gmra.mrb[22].mxu0 %v24229_v7 }
0x1291   : > { %15105 = vmatprep.mubr.f32.mxu0 %v24230_v8  ;;  %v24269_v8 = vand.u32 4294901760, %v24207_v52 }
0x1294   : > { %15106 = vmatmul.mubr.f32.gmra.mrb[24].mxu0 %v24231_v43  ;;  %v24271_v43 = vand.u32 4294901760, %v24209_v25  ;;  %v24279_v25 = vand.u32 4294901760, %v24213_v33  ;;  %v24287_v33 = vand.u32 4294901760, %v21036_v51  ;;  %v24296_v51 = vld [vmem:[#allocation99_spill] sm:$0xff] }
0x1295   : > { %15108 = vmatprep.mubr.f32.mxu0 %v24232_v22  ;;  %v24275_v22 = vand.u32 4294901760, %v24211_v61  ;;  %v24283_v61 = vand.u32 4294901760, %v20938_v29  ;;  %v24290_v29 = vand.u32 4294901760, %v21128_v55  ;;  %v24302_v55 = vand.u32 4294901760, %v21194_v38  ;;  %v24311_v38 = vld [vmem:[#allocation129_spill] sm:$0xff] }
0x1298   : > { %15109 = vmatmul.mubr.f32.gmra.mrb[26].mxu0 %v24233_v53  ;;  %v24276_v53 = vand.u32 4294901760, %v24212_v60  ;;  %v24284_v60 = vand.u32 4294901760, %v21033_v54  ;;  %v24291_v54 = vand.u32 4294901760, %v21108_v9  ;;  %v24303_v9 = vld [vmem:[#allocation111_spill] sm:$0xff] }
0x1299   : > { %15111 = vmatprep.mubr.f32.mxu0 %v24234_v14 }
0x129c   : > { %15112 = vmatmul.mubr.f32.gmra.mrb[28].mxu0 %v24235_v47 }
0x129d   : > { %v21385_v10 = vpop.f32.mrb[72].mxu1  ;;  %15114 = vmatprep.mubr.f32.mxu0 %v24237_v45  ;;  %v24285_v45 = vand.u32 4294901760, %v21018_v34  ;;  %v24292_v34 = vld [vmem:[#allocation91_spill] sm:$0xff] }
0x129e   : > { %24236 = vst [vmem:[#allocation116_spill] sm:$0xff] %v21385_v10  ;;  %v21389_v40 = vpop.f32.mrb[73].mxu1  ;;  %v24373_v10 = vld [vmem:[#allocation109_spill] sm:$0xff] }
0x129f   : > { %24238 = vst [vmem:[#allocation130_spill] sm:$0xff] %v21389_v40  ;;  %v24372_v40 = vld [vmem:[#allocation77_spill] sm:$0xff] }
0x12a0   : > { %15115 = vmatmul.mubr.f32.gmra.mrb[30].mxu0 %v24239_v32  ;;  %v24286_v32 = vand.u32 4294901760, %v21065_v3  ;;  %v24294_v3 = vld [vmem:[#allocation88_spill] sm:$0xff] }
0x12a1   : > { %15117 = vmatprep.mubr.f32.mxu0 %v24240_v59  ;;  %v24289_v59 = vand.u32 4294901760, %v21057_v30  ;;  %v24300_v30 = vld [vmem:[#allocation110_spill] sm:$0xff] }
0x12a4   : > { %15118 = vmatmul.mubr.f32.gmra.mrb[32].mxu0 %v24241_v49  ;;  %v24293_v49 = vand.u32 4294901760, %v24292_v34  ;;  %v24338_v34 = vld [vmem:[#allocation113_spill] sm:$0xff] }
0x12a5   : > { %v21397_v48 = vpop.f32.mrb[74].mxu1  ;;  %15120 = vmatprep.mubr.f32.mxu0 %v24243_v31  ;;  %v24295_v31 = vand.u32 4294901760, %v24294_v3  ;;  %v24340_v3 = vld [vmem:[#allocation122_spill] sm:$0xff] }
0x12a6   : > { %24242 = vst [vmem:[#allocation33_spill] sm:$0xff] %v21397_v48  ;;  %v21401_v42 = vpop.f32.mrb[75].mxu1  ;;  %v24371_v48 = vld [vmem:[#allocation105_spill] sm:$0xff] }
0x12a7   : > { %24244 = vst [vmem:[#allocation73_spill] sm:$0xff] %v21401_v42  ;;  %v24370_v42 = vld [vmem:[#allocation112_spill] sm:$0xff] }
0x12a8   : > { %15121 = vmatmul.mubr.f32.gmra.mrb[34].mxu0 %v24245_v13  ;;  %v24297_v13 = vand.u32 4294901760, %v24296_v51  ;;  %v24342_v51 = vld [vmem:[#allocation131_spill] sm:$0xff] }
0x12a9   : > { %15123 = vmatprep.mubr.f32.mxu0 %v24246_v18  ;;  %v24299_v18 = vand.u32 4294901760, %v24298_v2  ;;  %v24344_v2 = vld [vmem:[#allocation3_spill] sm:$0xff] }
0x12ab   : > { %v21407_v58 = vpop.f32.mrb[76].mxu1 }
0x12ac   : > { %24247 = vst [vmem:[#allocation92_spill] sm:$0xff] %v21407_v58  ;;  %v21409_v37 = vpop.f32.mrb[77].mxu1  ;;  %15124 = vmatmul.mubr.f32.gmra.mrb[36].mxu0 %v24249_v63  ;;  %v24301_v63 = vand.u32 4294901760, %v24300_v30  ;;  %v24346_v30 = vld [vmem:[#allocation13_spill] sm:$0xff] }
0x12ad   : > { %24248 = vst [vmem:[#allocation97_spill] sm:$0xff] %v21409_v37  ;;  %15126 = vmatprep.mubr.f32.mxu0 %v24250_v12  ;;  %v24304_v12 = vand.u32 4294901760, %v24303_v9  ;;  %v24349_v9 = vld [vmem:[#allocation18_spill] sm:$0xff]  ;;  %v24368_v37 = vld [vmem:[#allocation103_spill] sm:$0xff]  ;;  %v24369_v58 = vld [vmem:[#allocation101_spill] sm:$0xff] }
0x12b0   : > { %15127 = vmatmul.mubr.f32.gmra.mrb[38].mxu0 %v24252_v6  ;;  %v24306_v6 = vld [vmem:[#allocation79_spill] sm:$0xff] }
0x12b1   : > { %15129 = vmatprep.mubr.f32.mxu0 %v24254_v0  ;;  %v24307_v39 = vand.u32 4294901760, %v24306_v6  ;;  %v24308_v0 = vand.u32 4294901760, %v21235_v26  ;;  %v24316_v26 = vld [vmem:[#allocation11_spill] sm:$0xff]  ;;  %v24352_v6 = vld [vmem:[#allocation49_spill] sm:$0xff] }
0x12b2   : > { %v21419_v19 = vpop.f32.mrb[78].mxu1 }
0x12b3   : > { %24255 = vst [vmem:[#allocation100_spill] sm:$0xff] %v21419_v19  ;;  %v21421_v27 = vpop.f32.mrb[79].mxu1  ;;  %v24367_v19 = vld [vmem:[#allocation86_spill] sm:$0xff] }
0x12b4   : > { %24256 = vst [vmem:[#allocation102_spill] sm:$0xff] %v21421_v27  ;;  %15130 = vmatmul.mubr.f32.gmra.mrb[40].mxu0 %v24258_v57  ;;  %v24310_v57 = vld [vmem:[#allocation34_spill] sm:$0xff]  ;;  %v24366_v27 = vld [vmem:[#allocation95_spill] sm:$0xff] }
0x12b5   : > { %15132 = vmatprep.mubr.f32.mxu0 %v24260_v24  ;;  %v24313_v24 = vld [vmem:[#allocation125_spill] sm:$0xff] }
0x12b8   : > { %v21427_v46 = vpop.f32.mrb[80].mxu1  ;;  %15133 = vmatmul.mubr.f32.gmra.mrb[42].mxu0 %v24262_v44  ;;  %v24315_v44 = vld [vmem:[#allocation138_spill] sm:$0xff] }
0x12b9   : > { %24261 = vst [vmem:[#allocation107_spill] sm:$0xff] %v21427_v46  ;;  %v21431_v35 = vpop.f32.mrb[81].mxu1  ;;  %15135 = vmatprep.mubr.f32.mxu0 %v24264_v5  ;;  %v24317_v5 = vld [vmem:[#allocation21_spill] sm:$0xff]  ;;  %v24365_v46 = vld [vmem:[#allocation83_spill] sm:$0xff] }
0x12ba   : > { %24263 = vst [vmem:[#allocation118_spill] sm:$0xff] %v21431_v35  ;;  %v24364_v35 = vld [vmem:[#allocation94_spill] sm:$0xff] }
0x12bc   : > { %15136 = vmatmul.mubr.f32.gmra.mrb[44].mxu0 %v24265_v21  ;;  %v24318_v21 = vld [vmem:[#allocation4_spill] sm:$0xff] }
0x12bd   : > { %15138 = vmatprep.mubr.f32.mxu0 %v24266_v62  ;;  %v24319_v62 = vld [vmem:[#allocation24_spill] sm:$0xff] }
0x12be   : > { %v21439_v17 = vpop.f32.mrb[82].mxu1 }
0x12bf   : > { %24267 = vst [vmem:[#allocation121_spill] sm:$0xff] %v21439_v17  ;;  %v21441_v7 = vpop.f32.mrb[83].mxu1  ;;  %v24363_v17 = vld [vmem:[#allocation69_spill] sm:$0xff] }
0x12c0   : > { %24268 = vst [vmem:[#allocation128_spill] sm:$0xff] %v21441_v7  ;;  %15139 = vmatmul.mubr.f32.gmra.mrb[46].mxu0 %v24269_v8  ;;  %v24321_v8 = vld [vmem:[#allocation31_spill] sm:$0xff]  ;;  %v24362_v7 = vld [vmem:[#allocation89_spill] sm:$0xff] }
0x12c1   : > { %15141 = vmatprep.mubr.f32.mxu0 %v24270_v23  ;;  %v24322_v23 = vld [vmem:[#allocation32_spill] sm:$0xff] }
0x12c4   : > { %15142 = vmatmul.mubr.f32.gmra.mrb[48].mxu0 %v24271_v43  ;;  %v24323_v43 = vld [vmem:[#allocation42_spill] sm:$0xff] }
0x12c5   : > { %15144 = vmatprep.mubr.f32.mxu0 %v24272_v56  ;;  %v21451_v20 = vpop.f32.mrb[84].mxu1  ;;  %v24324_v56 = vld [vmem:[#allocation45_spill] sm:$0xff] }
0x12c6   : > { %24273 = vst [vmem:[#allocation133_spill] sm:$0xff] %v21451_v20  ;;  %v21453_v15 = vpop.f32.mrb[85].mxu1  ;;  %v24361_v20 = vld [vmem:[#allocation67_spill] sm:$0xff] }
0x12c7   : > { %24274 = vst [vmem:[#allocation137_spill] sm:$0xff] %v21453_v15  ;;  %v24360_v15 = vld [vmem:[#allocation71_spill] sm:$0xff] }
0x12c8   : > { %15145 = vmatmul.mubr.f32.gmra.mrb[50].mxu0 %v24275_v22  ;;  %v24325_v22 = vld [vmem:[#allocation50_spill] sm:$0xff] }
0x12c9   : > { %15147 = vmatprep.mubr.f32.mxu0 %v24276_v53  ;;  %v24326_v53 = vld [vmem:[#allocation54_spill] sm:$0xff] }
0x12cb   : > { %v21459_v52 = vpop.f32.mrb[86].mxu1 }
0x12cc   : > { %24277 = vst [vmem:[#allocation5_spill] sm:$0xff] %v21459_v52  ;;  %v21461_v36 = vpop.f32.mrb[87].mxu1  ;;  %15148 = vmatmul.mubr.f32.gmra.mrb[52].mxu0 %v24279_v25  ;;  %v24327_v25 = vld [vmem:[#allocation55_spill] sm:$0xff] }
0x12cd   : > { %24278 = vst [vmem:[#allocation9_spill] sm:$0xff] %v21461_v36  ;;  %15150 = vmatprep.mubr.f32.mxu0 %v24280_v41  ;;  %v24328_v41 = vld [vmem:[#allocation62_spill] sm:$0xff]  ;;  %v24358_v36 = vld [vmem:[#allocation75_spill] sm:$0xff] }
0x12ce   : > { %v24359_v52 = vld [vmem:[#allocation63_spill] sm:$0xff] }
0x12cf   : > { %v21467_v14 = vpop.f32.mrb[88].mxu1 }
0x12d0   : > { %24281 = vst [vmem:[#allocation14_spill] sm:$0xff] %v21467_v14  ;;  %v21469_v47 = vpop.f32.mrb[89].mxu1  ;;  %15151 = vmatmul.mubr.f32.gmra.mrb[54].mxu0 %v24283_v61  ;;  %v24329_v61 = vld [vmem:[#allocation64_spill] sm:$0xff]  ;;  %v24357_v14 = vld [vmem:[#allocation61_spill] sm:$0xff] }
0x12d1   : > { %24282 = vst [vmem:[#allocation20_spill] sm:$0xff] %v21469_v47  ;;  %15153 = vmatprep.mubr.f32.mxu0 %v24284_v60  ;;  %v24330_v60 = vld [vmem:[#allocation70_spill] sm:$0xff] }
0x12d2   : > { %v24356_v47 = vld [vmem:[#allocation66_spill] sm:$0xff] }
0x12d4   : > { %15154 = vmatmul.mubr.f32.gmra.mrb[56].mxu0 %v24285_v45  ;;  %v24331_v45 = vld [vmem:[#allocation74_spill] sm:$0xff] }
0x12d5   : > { %15156 = vmatprep.mubr.f32.mxu0 %v24286_v32  ;;  %v24332_v32 = vld [vmem:[#allocation76_spill] sm:$0xff] }
0x12d8   : > { %15157 = vmatmul.mubr.f32.gmra.mrb[58].mxu0 %v24287_v33  ;;  %v24333_v33 = vld [vmem:[#allocation80_spill] sm:$0xff] }
0x12d9   : > { %15159 = vmatprep.mubr.f32.mxu0 %v24288_v1  ;;  %v24334_v1 = vld [vmem:[#allocation85_spill] sm:$0xff] }
0x12dc   : > { %15160 = vmatmul.mubr.f32.gmra.mrb[60].mxu0 %v24289_v59  ;;  %v24335_v59 = vld [vmem:[#allocation90_spill] sm:$0xff] }
0x12dd   : > { %15162 = vmatprep.mubr.f32.mxu0 %v24290_v29  ;;  %v24336_v29 = vld [vmem:[#allocation98_spill] sm:$0xff] }
0x12e0   : > { %15163 = vmatmul.mubr.f32.gmra.mrb[62].mxu0 %v24291_v54  ;;  %v24337_v54 = vld [vmem:[#allocation106_spill] sm:$0xff] }
0x12e1   : > { %15165 = vmatprep.mubr.f32.mxu0 %v24293_v49  ;;  %v24339_v49 = vld [vmem:[#allocation117_spill] sm:$0xff] }
0x12e4   : > { %15166 = vmatmul.mubr.f32.gmra.mrb[64].mxu0 %v24295_v31  ;;  %v24341_v31 = vld [vmem:[#allocation124_spill] sm:$0xff] }
0x12e5   : > { %15168 = vmatprep.mubr.f32.mxu0 %v24297_v13  ;;  %v24343_v13 = vld [vmem:[#allocation136_spill] sm:$0xff] }
0x12e8   : > { %15169 = vmatmul.mubr.f32.gmra.mrb[66].mxu0 %v24299_v18  ;;  %v24345_v18 = vld [vmem:[#allocation8_spill] sm:$0xff] }
0x12e9   : > { %15171 = vmatprep.mubr.f32.mxu0 %v24301_v63  ;;  %v24347_v63 = vld [vmem:[#allocation28_spill] sm:$0xff] }
0x12ec   : > { %15172 = vmatmul.mubr.f32.gmra.mrb[68].mxu0 %v24302_v55  ;;  %v24348_v55 = vld [vmem:[#allocation35_spill] sm:$0xff] }
0x12ed   : > { %15174 = vmatprep.mubr.f32.mxu0 %v24304_v12  ;;  %v24350_v12 = vld [vmem:[#allocation37_spill] sm:$0xff] }
0x12f0   : > { %15175 = vmatmul.mubr.f32.gmra.mrb[70].mxu0 %v24305_v16  ;;  %v24351_v16 = vld [vmem:[#allocation43_spill] sm:$0xff] }
0x12f1   : > { %15177 = vmatprep.mubr.f32.mxu0 %v24307_v39  ;;  %v24353_v39 = vld [vmem:[#allocation52_spill] sm:$0xff] }
0x12f4   : > { %15178 = vmatmul.mubr.f32.gmra.mrb[72].mxu0 %v24308_v0  ;;  %v24354_v0 = vld [vmem:[#allocation57_spill] sm:$0xff] }
0x12f5   : > { %15188 = vmatprep.mubr.f32.mxu0 %v24309_v28 }
0x12f8   : > { %15189 = vmatmul.mubr.f32.vlgmr.msra.gmra.mrb[10].mxu0 %v24310_v57 }
0x12f9   : > { %15719 = vmatpush3.bf16.msra.mxu0 %v24116_v50  ;;  %15191 = vmatprep.mubr.f32.mxu0 %v24311_v38  ;;  %v24320_v50 = vld [vmem:[#allocation29_spill] sm:$0xff] }
0x12fa   : > { %15721 = vmatprep.subr.bf16.mxu0 %v24312_v11 }
0x12fc   : > { %15192 = vmatmul.mubr.f32.gmra.mrb[12].mxu0 %v24313_v24 }
0x12fd   : > { %15194 = vmatprep.mubr.f32.mxu0 %v24314_v4  ;;  %15723 = vmatpush3.bf16.msra.mxu0 %v24312_v11  ;;  %v24355_v11 = vld [vmem:[#allocation60_spill] sm:$0xff] }
0x1300   : > { %15195 = vmatmul.mubr.f32.gmra.mrb[14].mxu0 %v24315_v44 }
0x1301   : > { %15197 = vmatprep.mubr.f32.mxu0 %v24316_v26 }
0x1304   : > { %15198 = vmatmul.mubr.f32.gmra.mrb[16].mxu0 %v24317_v5 }
0x1305   : > { %15200 = vmatprep.mubr.f32.mxu0 %v24318_v21 }
0x1308   : > { %15201 = vmatmul.mubr.f32.gmra.mrb[18].mxu0 %v24319_v62 }
0x1309   : > { %15203 = vmatprep.mubr.f32.mxu0 %v24320_v50 }
0x130c   : > { %15204 = vmatmul.mubr.f32.gmra.mrb[20].mxu0 %v24321_v8 }
0x130d   : > { %15206 = vmatprep.mubr.f32.mxu0 %v24322_v23 }
0x1310   : > { %15207 = vmatmul.mubr.f32.gmra.mrb[22].mxu0 %v24323_v43 }
0x1311   : > { %15209 = vmatprep.mubr.f32.mxu0 %v24324_v56 }
0x1314   : > { %15210 = vmatmul.mubr.f32.gmra.mrb[24].mxu0 %v24325_v22 }
0x1315   : > { %15212 = vmatprep.mubr.f32.mxu0 %v24326_v53 }
0x1318   : > { %15213 = vmatmul.mubr.f32.gmra.mrb[26].mxu0 %v24327_v25 }
0x1319   : > { %15215 = vmatprep.mubr.f32.mxu0 %v24328_v41 }
0x131c   : > { %15216 = vmatmul.mubr.f32.gmra.mrb[28].mxu0 %v24329_v61 }
0x131d   : > { %15218 = vmatprep.mubr.f32.mxu0 %v24330_v60 }
0x1320   : > { %15219 = vmatmul.mubr.f32.gmra.mrb[30].mxu0 %v24331_v45 }
0x1321   : > { %15221 = vmatprep.mubr.f32.mxu0 %v24332_v32 }
0x1324   : > { %15222 = vmatmul.mubr.f32.gmra.mrb[32].mxu0 %v24333_v33 }
0x1325   : > { %15224 = vmatprep.mubr.f32.mxu0 %v24334_v1 }
0x1328   : > { %15225 = vmatmul.mubr.f32.gmra.mrb[34].mxu0 %v24335_v59 }
0x1329   : > { %15227 = vmatprep.mubr.f32.mxu0 %v24336_v29 }
0x132c   : > { %15228 = vmatmul.mubr.f32.gmra.mrb[36].mxu0 %v24337_v54 }
0x132d   : > { %15230 = vmatprep.mubr.f32.mxu0 %v24338_v34 }
0x1330   : > { %15231 = vmatmul.mubr.f32.gmra.mrb[38].mxu0 %v24339_v49 }
0x1331   : > { %15233 = vmatprep.mubr.f32.mxu0 %v24340_v3 }
0x1334   : > { %15234 = vmatmul.mubr.f32.gmra.mrb[40].mxu0 %v24341_v31 }
0x1335   : > { %15236 = vmatprep.mubr.f32.mxu0 %v24342_v51 }
0x1338   : > { %15237 = vmatmul.mubr.f32.gmra.mrb[42].mxu0 %v24343_v13 }
0x1339   : > { %15239 = vmatprep.mubr.f32.mxu0 %v24344_v2 }
0x133c   : > { %15240 = vmatmul.mubr.f32.gmra.mrb[44].mxu0 %v24345_v18 }
0x133d   : > { %15242 = vmatprep.mubr.f32.mxu0 %v24346_v30 }
0x1340   : > { %15243 = vmatmul.mubr.f32.gmra.mrb[46].mxu0 %v24347_v63 }
0x1341   : > { %15245 = vmatprep.mubr.f32.mxu0 %v24348_v55 }
0x1344   : > { %15246 = vmatmul.mubr.f32.gmra.mrb[48].mxu0 %v24349_v9 }
0x1345   : > { %15248 = vmatprep.mubr.f32.mxu0 %v24350_v12 }
0x1348   : > { %15249 = vmatmul.mubr.f32.gmra.mrb[50].mxu0 %v24351_v16 }
0x1349   : > { %15251 = vmatprep.mubr.f32.mxu0 %v24352_v6 }
0x134c   : > { %15252 = vmatmul.mubr.f32.gmra.mrb[52].mxu0 %v24353_v39 }
0x134d   : > { %15254 = vmatprep.mubr.f32.mxu0 %v24354_v0 }
0x1350   : > { %15255 = vmatmul.mubr.f32.gmra.mrb[54].mxu0 %v24355_v11 }
0x1351   : > { %15257 = vmatprep.mubr.f32.mxu0 %v24356_v47 }
0x1354   : > { %15258 = vmatmul.mubr.f32.gmra.mrb[56].mxu0 %v24357_v14 }
0x1355   : > { %15260 = vmatprep.mubr.f32.mxu0 %v24358_v36 }
0x1358   : > { %15261 = vmatmul.mubr.f32.gmra.mrb[58].mxu0 %v24359_v52 }
0x1359   : > { %15263 = vmatprep.mubr.f32.mxu0 %v24360_v15 }
0x135c   : > { %15264 = vmatmul.mubr.f32.gmra.mrb[60].mxu0 %v24361_v20 }
0x135d   : > { %15266 = vmatprep.mubr.f32.mxu0 %v24362_v7 }
0x1360   : > { %15267 = vmatmul.mubr.f32.gmra.mrb[62].mxu0 %v24363_v17 }
0x1361   : > { %15269 = vmatprep.mubr.f32.mxu0 %v24364_v35 }
0x1364   : > { %15270 = vmatmul.mubr.f32.gmra.mrb[64].mxu0 %v24365_v46 }
0x1365   : > { %15272 = vmatprep.mubr.f32.mxu0 %v24366_v27 }
0x1368   : > { %15273 = vmatmul.mubr.f32.gmra.mrb[66].mxu0 %v24367_v19 }
0x1369   : > { %15275 = vmatprep.mubr.f32.mxu0 %v24368_v37 }
0x136c   : > { %15276 = vmatmul.mubr.f32.gmra.mrb[68].mxu0 %v24369_v58 }
0x136d   : > { %15278 = vmatprep.mubr.f32.mxu0 %v24370_v42 }
0x1370   : > { %15279 = vmatmul.mubr.f32.gmra.mrb[70].mxu0 %v24371_v48 }
0x1371   : > { %15281 = vmatprep.mubr.f32.mxu0 %v24372_v40 }
0x1374   : > { %15282 = vmatmul.mubr.f32.gmra.mrb[72].mxu0 %v24373_v10 }
0x1375   : > { %15292 = vmatprep.mubr.f32.mxu0 %v24309_v28 }
0x1378   : > { %15293 = vmatmul.mubr.f32.vlgmr.msra.gmra.mrb[10].mxu0 %v24310_v57 }
0x1379   : > { %15295 = vmatprep.mubr.f32.mxu0 %v24311_v38 }
0x137c   : > { %15296 = vmatmul.mubr.f32.gmra.mrb[12].mxu0 %v24313_v24 }
0x137d   : > { %15298 = vmatprep.mubr.f32.mxu0 %v24314_v4 }
0x1380   : > { %15299 = vmatmul.mubr.f32.gmra.mrb[14].mxu0 %v24315_v44 }
0x1381   : > { %15301 = vmatprep.mubr.f32.mxu0 %v24316_v26 }
0x1384   : > { %15302 = vmatmul.mubr.f32.gmra.mrb[16].mxu0 %v24317_v5 }
0x1385   : > { %15304 = vmatprep.mubr.f32.mxu0 %v24318_v21 }
0x1388   : > { %15305 = vmatmul.mubr.f32.gmra.mrb[18].mxu0 %v24319_v62 }
0x1389   : > { %15307 = vmatprep.mubr.f32.mxu0 %v24320_v50 }
0x138c   : > { %15308 = vmatmul.mubr.f32.gmra.mrb[20].mxu0 %v24321_v8 }
0x138d   : > { %15310 = vmatprep.mubr.f32.mxu0 %v24322_v23 }
0x1390   : > { %15311 = vmatmul.mubr.f32.gmra.mrb[22].mxu0 %v24323_v43 }
0x1391   : > { %15313 = vmatprep.mubr.f32.mxu0 %v24324_v56 }
0x1394   : > { %15314 = vmatmul.mubr.f32.gmra.mrb[24].mxu0 %v24325_v22 }
0x1395   : > { %15316 = vmatprep.mubr.f32.mxu0 %v24326_v53 }
0x1398   : > { %15317 = vmatmul.mubr.f32.gmra.mrb[26].mxu0 %v24327_v25 }
0x1399   : > { %15319 = vmatprep.mubr.f32.mxu0 %v24328_v41 }
0x139c   : > { %15320 = vmatmul.mubr.f32.gmra.mrb[28].mxu0 %v24329_v61 }
0x139d   : > { %15322 = vmatprep.mubr.f32.mxu0 %v24330_v60 }
0x13a0   : > { %15323 = vmatmul.mubr.f32.gmra.mrb[30].mxu0 %v24331_v45 }
0x13a1   : > { %15325 = vmatprep.mubr.f32.mxu0 %v24332_v32 }
0x13a4   : > { %15326 = vmatmul.mubr.f32.gmra.mrb[32].mxu0 %v24333_v33 }
0x13a5   : > { %15328 = vmatprep.mubr.f32.mxu0 %v24334_v1 }
0x13a8   : > { %15329 = vmatmul.mubr.f32.gmra.mrb[34].mxu0 %v24335_v59 }
0x13a9   : > { %15331 = vmatprep.mubr.f32.mxu0 %v24336_v29 }
0x13ac   : > { %15332 = vmatmul.mubr.f32.gmra.mrb[36].mxu0 %v24337_v54 }
0x13ad   : > { %15334 = vmatprep.mubr.f32.mxu0 %v24338_v34 }
0x13b0   : > { %15335 = vmatmul.mubr.f32.gmra.mrb[38].mxu0 %v24339_v49 }
0x13b1   : > { %15337 = vmatprep.mubr.f32.mxu0 %v24340_v3 }
0x13b4   : > { %15338 = vmatmul.mubr.f32.gmra.mrb[40].mxu0 %v24341_v31 }
0x13b5   : > { %15340 = vmatprep.mubr.f32.mxu0 %v24342_v51 }
0x13b8   : > { %15341 = vmatmul.mubr.f32.gmra.mrb[42].mxu0 %v24343_v13 }
0x13b9   : > { %15343 = vmatprep.mubr.f32.mxu0 %v24344_v2 }
0x13bc   : > { %15344 = vmatmul.mubr.f32.gmra.mrb[44].mxu0 %v24345_v18 }
0x13bd   : > { %15346 = vmatprep.mubr.f32.mxu0 %v24346_v30 }
0x13c0   : > { %15347 = vmatmul.mubr.f32.gmra.mrb[46].mxu0 %v24347_v63 }
0x13c1   : > { %15349 = vmatprep.mubr.f32.mxu0 %v24348_v55 }
0x13c4   : > { %15350 = vmatmul.mubr.f32.gmra.mrb[48].mxu0 %v24349_v9 }
0x13c5   : > { %15352 = vmatprep.mubr.f32.mxu0 %v24350_v12 }
0x13c8   : > { %15353 = vmatmul.mubr.f32.gmra.mrb[50].mxu0 %v24351_v16 }
0x13c9   : > { %15355 = vmatprep.mubr.f32.mxu0 %v24352_v6 }
0x13cc   : > { %15356 = vmatmul.mubr.f32.gmra.mrb[52].mxu0 %v24353_v39 }
0x13cd   : > { %15358 = vmatprep.mubr.f32.mxu0 %v24354_v0 }
0x13d0   : > { %15359 = vmatmul.mubr.f32.gmra.mrb[54].mxu0 %v24355_v11 }
0x13d1   : > { %15361 = vmatprep.mubr.f32.mxu0 %v24356_v47 }
0x13d4   : > { %15362 = vmatmul.mubr.f32.gmra.mrb[56].mxu0 %v24357_v14 }
0x13d5   : > { %15364 = vmatprep.mubr.f32.mxu0 %v24358_v36 }
0x13d8   : > { %15365 = vmatmul.mubr.f32.gmra.mrb[58].mxu0 %v24359_v52 }
0x13d9   : > { %15367 = vmatprep.mubr.f32.mxu0 %v24360_v15 }
0x13dc   : > { %15368 = vmatmul.mubr.f32.gmra.mrb[60].mxu0 %v24361_v20 }
0x13dd   : > { %15370 = vmatprep.mubr.f32.mxu0 %v24362_v7 }
0x13e0   : > { %15371 = vmatmul.mubr.f32.gmra.mrb[62].mxu0 %v24363_v17 }
0x13e1   : > { %15373 = vmatprep.mubr.f32.mxu0 %v24364_v35 }
0x13e4   : > { %15374 = vmatmul.mubr.f32.gmra.mrb[64].mxu0 %v24365_v46  ;;  %v21643_v46 = vld [vmem:[%s22755_s4] ss:$0 sm:$0xff] }
0x13e5   : > { %15376 = vmatprep.mubr.f32.mxu0 %v24366_v27 }
0x13e8   : > { %15377 = vmatmul.mubr.f32.gmra.mrb[66].mxu0 %v24367_v19 }
0x13e9   : > { %15379 = vmatprep.mubr.f32.mxu0 %v24368_v37 }
0x13ec   : > { %15380 = vmatmul.mubr.f32.gmra.mrb[68].mxu0 %v24369_v58 }
0x13ed   : > { %15382 = vmatprep.mubr.f32.mxu0 %v24370_v42 }
0x13f0   : > { %15383 = vmatmul.mubr.f32.gmra.mrb[70].mxu0 %v24371_v48 }
0x13f1   : > { %15385 = vmatprep.mubr.f32.mxu0 %v24372_v40 }
0x13f4   : > { %15386 = vmatmul.mubr.f32.gmra.mrb[72].mxu0 %v24373_v10 }
0x144b   : > { %v15294_v27 = vpop.f32.mrb[10].mxu0 }
0x144c   : > { %v21646_v19 = vadd.f32 %v15294_v27, %v21643_v46  ;;  %v11031_v37 = vpop.f32.mrb[11].mxu0 }
0x144d   : > { %v21649_v58 = vadd.f32 %v21643_v46, %v11031_v37 }
0x144e   : > { %v11418_v48 = vsel %vm6978_vm3, %v21646_v19, 0.0 }
0x144f   : > { %11419 = vadd.xlane.f32.xlu0 %v11418_v48  ;;  %v15297_v40 = vpop.f32.mrb[12].mxu0  ;;  %v11415_v10 = vsel %vm6978_vm3, %v21649_v58, 0.0 }
0x1450   : > { %v21656_v42 = vadd.f32 %v15297_v40, %v21643_v46  ;;  %v11043_v35 = vpop.f32.mrb[13].mxu0  ;;  %11416 = vadd.xlane.f32.xlu1 %v11415_v10 }
0x1451   : > { %v21659_v17 = vadd.f32 %v21643_v46, %v11043_v35 }
0x1452   : > { %v11424_v7 = vsel %vm6978_vm3, %v21656_v42, 0.0 }
0x1453   : > { %11425 = vadd.xlane.f32.xlu0 %v11424_v7  ;;  %v15300_v20 = vpop.f32.mrb[14].mxu0  ;;  %v11421_v15 = vsel %vm6978_vm3, %v21659_v17, 0.0 }
0x1454   : > { %v21666_v52 = vadd.f32 %v15300_v20, %v21643_v46  ;;  %v11055_v36 = vpop.f32.mrb[15].mxu0  ;;  %11422 = vadd.xlane.f32.xlu1 %v11421_v15 }
0x1455   : > { %v21669_v14 = vadd.f32 %v21643_v46, %v11055_v36 }
0x1456   : > { %v11430_v47 = vsel %vm6978_vm3, %v21666_v52, 0.0 }
0x1457   : > { %11431 = vadd.xlane.f32.xlu0 %v11430_v47  ;;  %v15303_v28 = vpop.f32.mrb[16].mxu0  ;;  %v11427_v57 = vsel %vm6978_vm3, %v21669_v14, 0.0 }
0x1458   : > { %v21676_v38 = vadd.f32 %v15303_v28, %v21643_v46  ;;  %v11067_v24 = vpop.f32.mrb[17].mxu0  ;;  %11428 = vadd.xlane.f32.xlu1 %v11427_v57 }
0x1459   : > { %v21679_v4 = vadd.f32 %v21643_v46, %v11067_v24 }
0x145a   : > { %v11436_v44 = vsel %vm6978_vm3, %v21676_v38, 0.0 }
0x145b   : > { %11437 = vadd.xlane.f32.xlu0 %v11436_v44  ;;  %v15306_v26 = vpop.f32.mrb[18].mxu0  ;;  %v11433_v5 = vsel %vm6978_vm3, %v21679_v4, 0.0 }
0x145c   : > { %v21686_v21 = vadd.f32 %v15306_v26, %v21643_v46  ;;  %v11079_v62 = vpop.f32.mrb[19].mxu0  ;;  %11434 = vadd.xlane.f32.xlu1 %v11433_v5 }
0x145d   : > { %v21689_v50 = vadd.f32 %v21643_v46, %v11079_v62 }
0x145e   : > { %v11442_v8 = vsel %vm6978_vm3, %v21686_v21, 0.0 }
0x145f   : > { %11443 = vadd.xlane.f32.xlu0 %v11442_v8  ;;  %v15309_v23 = vpop.f32.mrb[20].mxu0  ;;  %v11439_v43 = vsel %vm6978_vm3, %v21689_v50, 0.0 }
0x1460   : > { %v21696_v56 = vadd.f32 %v15309_v23, %v21643_v46  ;;  %v11091_v22 = vpop.f32.mrb[21].mxu0  ;;  %11440 = vadd.xlane.f32.xlu1 %v11439_v43 }
0x1461   : > { %v21699_v53 = vadd.f32 %v21643_v46, %v11091_v22 }
0x1462   : > { %v11448_v25 = vsel %vm6978_vm3, %v21696_v56, 0.0 }
0x1463   : > { %11449 = vadd.xlane.f32.xlu0 %v11448_v25  ;;  %v15312_v41 = vpop.f32.mrb[22].mxu0  ;;  %v11445_v61 = vsel %vm6978_vm3, %v21699_v53, 0.0 }
0x1464   : > { %v21706_v60 = vadd.f32 %v15312_v41, %v21643_v46  ;;  %v11103_v45 = vpop.f32.mrb[23].mxu0  ;;  %11446 = vadd.xlane.f32.xlu1 %v11445_v61 }
0x1465   : > { %v21709_v32 = vadd.f32 %v21643_v46, %v11103_v45 }
0x1466   : > { %v11454_v33 = vsel %vm6978_vm3, %v21706_v60, 0.0 }
0x1467   : > { %11455 = vadd.xlane.f32.xlu0 %v11454_v33  ;;  %v15315_v1 = vpop.f32.mrb[24].mxu0  ;;  %v11451_v59 = vsel %vm6978_vm3, %v21709_v32, 0.0 }
0x1468   : > { %v21716_v29 = vadd.f32 %v15315_v1, %v21643_v46  ;;  %v11115_v54 = vpop.f32.mrb[25].mxu0  ;;  %11452 = vadd.xlane.f32.xlu1 %v11451_v59 }
0x1469   : > { %v21719_v34 = vadd.f32 %v21643_v46, %v11115_v54 }
0x146a   : > { %v11460_v49 = vsel %vm6978_vm3, %v21716_v29, 0.0 }
0x146b   : > { %11461 = vadd.xlane.f32.xlu0 %v11460_v49  ;;  %v15318_v3 = vpop.f32.mrb[26].mxu0  ;;  %v11457_v31 = vsel %vm6978_vm3, %v21719_v34, 0.0 }
0x146c   : > { %v21726_v51 = vadd.f32 %v15318_v3, %v21643_v46  ;;  %v11127_v13 = vpop.f32.mrb[27].mxu0  ;;  %11458 = vadd.xlane.f32.xlu1 %v11457_v31 }
0x146d   : > { %v21729_v2 = vadd.f32 %v21643_v46, %v11127_v13 }
0x146e   : > { %v11466_v18 = vsel %vm6978_vm3, %v21726_v51, 0.0 }
0x146f   : > { %11467 = vadd.xlane.f32.xlu0 %v11466_v18  ;;  %v15321_v30 = vpop.f32.mrb[28].mxu0  ;;  %v11463_v63 = vsel %vm6978_vm3, %v21729_v2, 0.0 }
0x1470   : > { %v21736_v55 = vadd.f32 %v15321_v30, %v21643_v46  ;;  %v11139_v9 = vpop.f32.mrb[29].mxu0  ;;  %11464 = vadd.xlane.f32.xlu1 %v11463_v63 }
0x1471   : > { %v21739_v12 = vadd.f32 %v21643_v46, %v11139_v9 }
0x1472   : > { %v11472_v16 = vsel %vm6978_vm3, %v21736_v55, 0.0 }
0x1473   : > { %11473 = vadd.xlane.f32.xlu0 %v11472_v16  ;;  %v15324_v6 = vpop.f32.mrb[30].mxu0  ;;  %v11469_v39 = vsel %vm6978_vm3, %v21739_v12, 0.0 }
0x1474   : > { %v21746_v0 = vadd.f32 %v15324_v6, %v21643_v46  ;;  %v11151_v11 = vpop.f32.mrb[31].mxu0  ;;  %11470 = vadd.xlane.f32.xlu1 %v11469_v39 }
0x1475   : > { %v21749_v27 = vadd.f32 %v21643_v46, %v11151_v11 }
0x1476   : > { %v11478_v37 = vsel %vm6978_vm3, %v21746_v0, 0.0 }
0x1477   : > { %11479 = vadd.xlane.f32.xlu0 %v11478_v37  ;;  %v15327_v48 = vpop.f32.mrb[32].mxu0  ;;  %v11475_v40 = vsel %vm6978_vm3, %v21749_v27, 0.0 }
0x1478   : > { %v21756_v10 = vadd.f32 %v15327_v48, %v21643_v46  ;;  %v11163_v35 = vpop.f32.mrb[33].mxu0  ;;  %11476 = vadd.xlane.f32.xlu1 %v11475_v40 }
0x1479   : > { %v21759_v7 = vadd.f32 %v21643_v46, %v11163_v35 }
0x147a   : > { %v11484_v20 = vsel %vm6978_vm3, %v21756_v10, 0.0 }
0x147b   : > { %11485 = vadd.xlane.f32.xlu0 %v11484_v20  ;;  %v15330_v15 = vpop.f32.mrb[34].mxu0  ;;  %v11481_v36 = vsel %vm6978_vm3, %v21759_v7, 0.0 }
0x147c   : > { %v21766_v47 = vadd.f32 %v15330_v15, %v21643_v46  ;;  %v11175_v28 = vpop.f32.mrb[35].mxu0  ;;  %11482 = vadd.xlane.f32.xlu1 %v11481_v36 }
0x147d   : > { %v21769_v57 = vadd.f32 %v21643_v46, %v11175_v28 }
0x147e   : > { %v11490_v24 = vsel %vm6978_vm3, %v21766_v47, 0.0 }
0x147f   : > { %11491 = vadd.xlane.f32.xlu0 %v11490_v24  ;;  %v15333_v44 = vpop.f32.mrb[36].mxu0  ;;  %v11487_v26 = vsel %vm6978_vm3, %v21769_v57, 0.0 }
0x1480   : > { %v21776_v5 = vadd.f32 %v15333_v44, %v21643_v46  ;;  %v11187_v62 = vpop.f32.mrb[37].mxu0  ;;  %11488 = vadd.xlane.f32.xlu1 %v11487_v26 }
0x1481   : > { %v21779_v8 = vadd.f32 %v21643_v46, %v11187_v62 }
0x1482   : > { %v11496_v23 = vsel %vm6978_vm3, %v21776_v5, 0.0 }
0x1483   : > { %11497 = vadd.xlane.f32.xlu0 %v11496_v23  ;;  %v15336_v43 = vpop.f32.mrb[38].mxu0  ;;  %v11493_v22 = vsel %vm6978_vm3, %v21779_v8, 0.0 }
0x1484   : > { %v21786_v25 = vadd.f32 %v15336_v43, %v21643_v46  ;;  %v11199_v41 = vpop.f32.mrb[39].mxu0  ;;  %11494 = vadd.xlane.f32.xlu1 %v11493_v22 }
0x1485   : > { %v21789_v61 = vadd.f32 %v21643_v46, %v11199_v41 }
0x1486   : > { %v11502_v45 = vsel %vm6978_vm3, %v21786_v25, 0.0 }
0x1487   : > { %11503 = vadd.xlane.f32.xlu0 %v11502_v45  ;;  %v15339_v33 = vpop.f32.mrb[40].mxu0  ;;  %v11499_v1 = vsel %vm6978_vm3, %v21789_v61, 0.0 }
0x1488   : > { %v21796_v59 = vadd.f32 %v15339_v33, %v21643_v46  ;;  %v11211_v54 = vpop.f32.mrb[41].mxu0  ;;  %11500 = vadd.xlane.f32.xlu1 %v11499_v1 }
0x1489   : > { %v21799_v49 = vadd.f32 %v21643_v46, %v11211_v54 }
0x148a   : > { %v11508_v3 = vsel %vm6978_vm3, %v21796_v59, 0.0 }
0x148b   : > { %11509 = vadd.xlane.f32.xlu0 %v11508_v3  ;;  %v15342_v31 = vpop.f32.mrb[42].mxu0  ;;  %v11505_v13 = vsel %vm6978_vm3, %v21799_v49, 0.0 }
0x148c   : > { %v21806_v18 = vadd.f32 %v15342_v31, %v21643_v46  ;;  %v11223_v30 = vpop.f32.mrb[43].mxu0  ;;  %11506 = vadd.xlane.f32.xlu1 %v11505_v13 }
0x148d   : > { %v21809_v63 = vadd.f32 %v21643_v46, %v11223_v30 }
0x148e   : > { %v11514_v9 = vsel %vm6978_vm3, %v21806_v18, 0.0 }
0x148f   : > { %11515 = vadd.xlane.f32.xlu0 %v11514_v9  ;;  %v15345_v16 = vpop.f32.mrb[44].mxu0  ;;  %v11511_v6 = vsel %vm6978_vm3, %v21809_v63, 0.0 }
0x1490   : > { %v21816_v39 = vadd.f32 %v15345_v16, %v21643_v46  ;;  %v11235_v11 = vpop.f32.mrb[45].mxu0  ;;  %11512 = vadd.xlane.f32.xlu1 %v11511_v6 }
0x1491   : > { %v21819_v37 = vadd.f32 %v21643_v46, %v11235_v11 }
0x1492   : > { %v11520_v48 = vsel %vm6978_vm3, %v21816_v39, 0.0 }
0x1493   : > { %11521 = vadd.xlane.f32.xlu0 %v11520_v48  ;;  %v15348_v40 = vpop.f32.mrb[46].mxu0  ;;  %v11517_v35 = vsel %vm6978_vm3, %v21819_v37, 0.0 }
0x1494   : > { %v21826_v20 = vadd.f32 %v15348_v40, %v21643_v46  ;;  %v11247_v15 = vpop.f32.mrb[47].mxu0  ;;  %11518 = vadd.xlane.f32.xlu1 %v11517_v35 }
0x1495   : > { %v21829_v36 = vadd.f32 %v21643_v46, %v11247_v15  ;;  %v24374_v15 = vld [vmem:[#allocation116_spill] sm:$0xff] }
0x1496   : > { %v11526_v28 = vsel %vm6978_vm3, %v21826_v20, 0.0 }
0x1497   : > { %11527 = vadd.xlane.f32.xlu0 %v11526_v28  ;;  %v15351_v24 = vpop.f32.mrb[48].mxu0  ;;  %v11523_v44 = vsel %vm6978_vm3, %v21829_v36, 0.0  ;;  %v8765_v28 = vadd.f32 %v24374_v15, %v21643_v46 }
0x1498   : > { %v21836_v26 = vadd.f32 %v15351_v24, %v21643_v46  ;;  %v11259_v62 = vpop.f32.mrb[49].mxu0  ;;  %11524 = vadd.xlane.f32.xlu1 %v11523_v44  ;;  %v24375_v44 = vld [vmem:[#allocation130_spill] sm:$0xff] }
0x1499   : > { %v21839_v23 = vadd.f32 %v21643_v46, %v11259_v62  ;;  %v8755_v62 = vadd.f32 %v21643_v46, %v24375_v44  ;;  %v24379_v44 = vld [vmem:[#allocation92_spill] sm:$0xff] }
0x149a   : > { %v11532_v43 = vsel %vm6978_vm3, %v21836_v26, 0.0 }
0x149b   : > { %11533 = vadd.xlane.f32.xlu0 %v11532_v43  ;;  %v15354_v22 = vpop.f32.mrb[50].mxu0  ;;  %v11529_v41 = vsel %vm6978_vm3, %v21839_v23, 0.0 }
0x149c   : > { %v21846_v45 = vadd.f32 %v15354_v22, %v21643_v46  ;;  %v11271_v33 = vpop.f32.mrb[51].mxu0  ;;  %11530 = vadd.xlane.f32.xlu1 %v11529_v41 }
0x149d   : > { %v21849_v1 = vadd.f32 %v21643_v46, %v11271_v33 }
0x149e   : > { %v11538_v54 = vsel %vm6978_vm3, %v21846_v45, 0.0 }
0x149f   : > { %11539 = vadd.xlane.f32.xlu0 %v11538_v54  ;;  %v15357_v3 = vpop.f32.mrb[52].mxu0  ;;  %v11535_v31 = vsel %vm6978_vm3, %v21849_v1, 0.0 }
0x14a0   : > { %v21856_v13 = vadd.f32 %v15357_v3, %v21643_v46  ;;  %v11283_v30 = vpop.f32.mrb[53].mxu0  ;;  %11536 = vadd.xlane.f32.xlu1 %v11535_v31  ;;  %v24376_v3 = vld [vmem:[#allocation33_spill] sm:$0xff] }
0x14a1   : > { %v21859_v9 = vadd.f32 %v21643_v46, %v11283_v30  ;;  %v8785_v31 = vadd.f32 %v24376_v3, %v21643_v46 }
0x14a2   : > { %v11544_v16 = vsel %vm6978_vm3, %v21856_v13, 0.0 }
0x14a3   : > { %11545 = vadd.xlane.f32.xlu0 %v11544_v16  ;;  %v15360_v6 = vpop.f32.mrb[54].mxu0  ;;  %v11541_v11 = vsel %vm6978_vm3, %v21859_v9, 0.0  ;;  %v24377_v16 = vld [vmem:[#allocation73_spill] sm:$0xff] }
0x14a4   : > { %v21866_v48 = vadd.f32 %v15360_v6, %v21643_v46  ;;  %v11295_v40 = vpop.f32.mrb[55].mxu0  ;;  %11542 = vadd.xlane.f32.xlu1 %v11541_v11  ;;  %v8775_v6 = vadd.f32 %v21643_v46, %v24377_v16 }
0x14a5   : > { %v21869_v35 = vadd.f32 %v21643_v46, %v11295_v40 }
0x14a6   : > { %v11550_v24 = vsel %vm6978_vm3, %v21866_v48, 0.0 }
0x14a7   : > { %11551 = vadd.xlane.f32.xlu0 %v11550_v24  ;;  %v15363_v43 = vpop.f32.mrb[56].mxu0  ;;  %v11547_v22 = vsel %vm6978_vm3, %v21869_v35, 0.0 }
0x14a8   : > { %v21879_v41 = vadd.f32 %v15363_v43, %v8765_v28  ;;  %v11307_v33 = vpop.f32.mrb[57].mxu0  ;;  %11548 = vadd.xlane.f32.xlu1 %v11547_v22  ;;  %v24380_v22 = vld [vmem:[#allocation97_spill] sm:$0xff] }
0x14a9   : > { %v21881_v54 = vadd.f32 %v11307_v33, %v8755_v62  ;;  %v8805_v62 = vadd.f32 %v24379_v44, %v21643_v46  ;;  %v8795_v33 = vadd.f32 %v21643_v46, %v24380_v22  ;;  %v24384_v44 = vld [vmem:[#allocation102_spill] sm:$0xff] }
0x14aa   : > { %v11556_v30 = vsel %vm6978_vm3, %v21879_v41, 0.0  ;;  %v8815_v22 = vadd.f32 %v21643_v46, %v24384_v44 }
0x14ab   : > { %11557 = vadd.xlane.f32.xlu0 %v11556_v30  ;;  %v15366_v11 = vpop.f32.mrb[58].mxu0  ;;  %v11553_v40 = vsel %vm6978_vm3, %v21881_v54, 0.0 }
0x14ac   : > { %v21891_v15 = vadd.f32 %v15366_v11, %v8785_v31  ;;  %v11319_v28 = vpop.f32.mrb[59].mxu0  ;;  %11554 = vadd.xlane.f32.xlu1 %v11553_v40  ;;  %v24383_v11 = vld [vmem:[#allocation100_spill] sm:$0xff] }
0x14ad   : > { %v21893_v24 = vadd.f32 %v11319_v28, %v8775_v6  ;;  %v8825_v40 = vadd.f32 %v24383_v11, %v21643_v46 }
0x14ae   : > { %v11562_v43 = vsel %vm6978_vm3, %v21891_v15, 0.0 }
0x14af   : > { %24378 = vst [vmem:[#allocation12_spill] sm:$0xff] %v21893_v24  ;;  %11563 = vadd.xlane.f32.xlu0 %v11562_v43  ;;  %v15369_v3 = vpop.f32.mrb[60].mxu0  ;;  %v11559_v30 = vsel %vm6978_vm3, %v21893_v24, 0.0 }
0x14b0   : > { %v21903_v31 = vadd.f32 %v15369_v3, %v8805_v62  ;;  %v11331_v16 = vpop.f32.mrb[61].mxu0  ;;  %11560 = vadd.xlane.f32.xlu1 %v11559_v30  ;;  %v24387_v30 = vld [vmem:[#allocation107_spill] sm:$0xff] }
0x14b1   : > { %v21905_v6 = vadd.f32 %v11331_v16, %v8795_v33  ;;  %v8845_v16 = vadd.f32 %v24387_v30, %v21643_v46 }
0x14b2   : > { %24381 = vst [vmem:[#allocation17_spill] sm:$0xff] %v21903_v31  ;;  %v11568_v28 = vsel %vm6978_vm3, %v21903_v31, 0.0  ;;  %v24388_v31 = vld [vmem:[#allocation118_spill] sm:$0xff] }
0x14b3   : > { %24382 = vst [vmem:[#allocation39_spill] sm:$0xff] %v21905_v6  ;;  %11569 = vadd.xlane.f32.xlu0 %v11568_v28  ;;  %v15372_v43 = vpop.f32.mrb[62].mxu0  ;;  %v11565_v24 = vsel %vm6978_vm3, %v21905_v6, 0.0  ;;  %v8835_v44 = vadd.f32 %v21643_v46, %v24388_v31 }
0x14b4   : > { %v21915_v62 = vadd.f32 %v15372_v43, %v8825_v40  ;;  %v11343_v3 = vpop.f32.mrb[63].mxu0  ;;  %11566 = vadd.xlane.f32.xlu1 %v11565_v24 }
0x14b5   : > { %v21917_v33 = vadd.f32 %v11343_v3, %v8815_v22  ;;  %v24391_v22 = vld [vmem:[#allocation121_spill] sm:$0xff] }
0x14b6   : > { %24385 = vst [vmem:[#allocation47_spill] sm:$0xff] %v21915_v62  ;;  %v11574_v11 = vsel %vm6978_vm3, %v21915_v62, 0.0  ;;  %v8865_v3 = vadd.f32 %v24391_v22, %v21643_v46  ;;  %v24392_v62 = vld [vmem:[#allocation128_spill] sm:$0xff] }
0x14b7   : > { %24386 = vst [vmem:[#allocation119_spill] sm:$0xff] %v21917_v33  ;;  %11575 = vadd.xlane.f32.xlu0 %v11574_v11  ;;  %v15375_v28 = vpop.f32.mrb[64].mxu0  ;;  %v11571_v6 = vsel %vm6978_vm3, %v21917_v33, 0.0  ;;  %v8855_v31 = vadd.f32 %v21643_v46, %v24392_v62 }
0x14b8   : > { %v21927_v40 = vadd.f32 %v15375_v28, %v8845_v16  ;;  %v11355_v43 = vpop.f32.mrb[65].mxu0  ;;  %11572 = vadd.xlane.f32.xlu1 %v11571_v6 }
0x14b9   : > { %v21929_v24 = vadd.f32 %v11355_v43, %v8835_v44  ;;  %v24395_v44 = vld [vmem:[#allocation133_spill] sm:$0xff] }
0x14ba   : > { %24389 = vst [vmem:[#allocation36_spill] sm:$0xff] %v21927_v40  ;;  %v11580_v30 = vsel %vm6978_vm3, %v21927_v40, 0.0  ;;  %v8885_v43 = vadd.f32 %v24395_v44, %v21643_v46  ;;  %v24396_v40 = vld [vmem:[#allocation137_spill] sm:$0xff] }
0x14bb   : > { %24390 = vst [vmem:[#allocation132_spill] sm:$0xff] %v21929_v24  ;;  %11581 = vadd.xlane.f32.xlu0 %v11580_v30  ;;  %v15378_v11 = vpop.f32.mrb[66].mxu0  ;;  %v11577_v33 = vsel %vm6978_vm3, %v21929_v24, 0.0  ;;  %v8875_v62 = vadd.f32 %v21643_v46, %v24396_v40 }
0x14bc   : > { %v21939_v16 = vadd.f32 %v15378_v11, %v8865_v3  ;;  %v11367_v28 = vpop.f32.mrb[67].mxu0  ;;  %11578 = vadd.xlane.f32.xlu1 %v11577_v33 }
0x14bd   : > { %v21941_v6 = vadd.f32 %v11367_v28, %v8855_v31  ;;  %v24399_v31 = vld [vmem:[#allocation5_spill] sm:$0xff] }
0x14be   : > { %24393 = vst [vmem:[#allocation126_spill] sm:$0xff] %v21939_v16  ;;  %v11586_v22 = vsel %vm6978_vm3, %v21939_v16, 0.0  ;;  %v8905_v28 = vadd.f32 %v24399_v31, %v21643_v46  ;;  %v24400_v16 = vld [vmem:[#allocation9_spill] sm:$0xff] }
0x14bf   : > { %24394 = vst [vmem:[#allocation140_spill] sm:$0xff] %v21941_v6  ;;  %11587 = vadd.xlane.f32.xlu0 %v11586_v22  ;;  %v15381_v30 = vpop.f32.mrb[68].mxu0  ;;  %v11583_v24 = vsel %vm6978_vm3, %v21941_v6, 0.0  ;;  %v8895_v40 = vadd.f32 %v21643_v46, %v24400_v16 }
0x14c0   : > { %v21951_v3 = vadd.f32 %v15381_v30, %v8885_v43  ;;  %v11379_v11 = vpop.f32.mrb[69].mxu0  ;;  %11584 = vadd.xlane.f32.xlu1 %v11583_v24 }
0x14c1   : > { %v21953_v33 = vadd.f32 %v11379_v11, %v8875_v62  ;;  %v24402_v62 = vld [vmem:[#allocation14_spill] sm:$0xff] }
0x14c2   : > { %24397 = vst [vmem:[#allocation19_spill] sm:$0xff] %v21951_v3  ;;  %v11592_v44 = vsel %vm6978_vm3, %v21951_v3, 0.0  ;;  %v8925_v11 = vadd.f32 %v24402_v62, %v21643_v46  ;;  %v24403_v3 = vld [vmem:[#allocation20_spill] sm:$0xff] }
0x14c3   : > { %24398 = vst [vmem:[#allocation16_spill] sm:$0xff] %v21953_v33  ;;  %11593 = vadd.xlane.f32.xlu0 %v11592_v44  ;;  %v15384_v22 = vpop.f32.mrb[70].mxu0  ;;  %v11589_v6 = vsel %vm6978_vm3, %v21953_v33, 0.0  ;;  %v8915_v16 = vadd.f32 %v21643_v46, %v24403_v3 }
0x14c4   : > { %v21963_v43 = vadd.f32 %v15384_v22, %v8905_v28  ;;  %v11391_v30 = vpop.f32.mrb[71].mxu0  ;;  %11590 = vadd.xlane.f32.xlu1 %v11589_v6 }
0x14c5   : > { %v21965_v24 = vadd.f32 %v11391_v30, %v8895_v40 }
0x14c6   : > { %v11598_v31 = vsel %vm6978_vm3, %v21963_v43, 0.0 }
0x14c7   : > { %24401 = vst [vmem:[#allocation23_spill] sm:$0xff] %v21965_v24  ;;  %11599 = vadd.xlane.f32.xlu0 %v11598_v31  ;;  %v15387_v44 = vpop.f32.mrb[72].mxu0  ;;  %v11595_v33 = vsel %vm6978_vm3, %v21965_v24, 0.0 }
0x14c8   : > { %v21975_v28 = vadd.f32 %v15387_v44, %v8925_v11  ;;  %v11403_v22 = vpop.f32.mrb[73].mxu0  ;;  %11596 = vadd.xlane.f32.xlu1 %v11595_v33 }
0x14c9   : > { %v21977_v6 = vadd.f32 %v11403_v22, %v8915_v16 }
0x14ca   : > { %v11604_v40 = vsel %vm6978_vm3, %v21975_v28, 0.0 }
0x14cb   : > { %11605 = vadd.xlane.f32.xlu0 %v11604_v40  ;;  %v11601_v30 = vsel %vm6978_vm3, %v21977_v6, 0.0 }
0x14cc   : > { %11602 = vadd.xlane.f32.xlu1 %v11601_v30 }
0x14dc   : > { %v11420_v46 = vpop.xlane.xlu0 %11419 }
0x14dd   : > { %v11608_v3 = vmul.f32 0.03125, %v11420_v46  ;;  %v11417_v62 = vpop.xlane.xlu1 %11416 }
0x14de   : > { %v11607_v31 = vmul.f32 0.03125, %v11417_v62 }
0x14df   : > { %v21984_v24 = vsub.f32 %v21646_v19, %v11608_v3 }
0x14e0   : > { %v21987_v11 = vsub.f32 %v21649_v58, %v11607_v31  ;;  %v11426_v33 = vpop.xlane.xlu0 %11425 }
0x14e1   : > { %24404 = vst [vmem:[#allocation26_spill] sm:$0xff] %v21984_v24  ;;  %v11610_v16 = vmul.f32 0.03125, %v11426_v33  ;;  %v11423_v44 = vpop.xlane.xlu1 %11422  ;;  %v11736_v22 = vmul.f32 %v21984_v24, %v21984_v24 }
0x14e2   : > { %v11609_v40 = vmul.f32 0.03125, %v11423_v44  ;;  %v11735_v30 = vmul.f32 %v21987_v11, %v21987_v11 }
0x14e3   : > { %v21994_v46 = vsub.f32 %v21656_v42, %v11610_v16  ;;  %v11802_v62 = vsel %vm6978_vm3, %v11736_v22, 0.0 }
0x14e4   : > { %v21998_v19 = vsub.f32 %v21659_v17, %v11609_v40  ;;  %v11432_v58 = vpop.xlane.xlu0 %11431  ;;  %11803 = vadd.xlane.f32.xlu0 %v11802_v62  ;;  %v11799_v3 = vsel %vm6978_vm3, %v11735_v30, 0.0 }
0x14e5   : > { %v11612_v31 = vmul.f32 0.03125, %v11432_v58  ;;  %v11429_v33 = vpop.xlane.xlu1 %11428  ;;  %11800 = vadd.xlane.f32.xlu1 %v11799_v3  ;;  %v11738_v44 = vmul.f32 %v21994_v46, %v21994_v46 }
0x14e6   : > { %v11611_v24 = vmul.f32 0.03125, %v11429_v33  ;;  %v11737_v42 = vmul.f32 %v21998_v19, %v21998_v19 }
0x14e7   : > { %v22006_v16 = vsub.f32 %v21666_v52, %v11612_v31  ;;  %v11808_v17 = vsel %vm6978_vm3, %v11738_v44, 0.0 }
0x14e8   : > { %v22010_v22 = vsub.f32 %v21669_v14, %v11611_v24  ;;  %v11438_v40 = vpop.xlane.xlu0 %11437  ;;  %11809 = vadd.xlane.f32.xlu0 %v11808_v17  ;;  %v11805_v30 = vsel %vm6978_vm3, %v11737_v42, 0.0 }
0x14e9   : > { %v11614_v62 = vmul.f32 0.03125, %v11438_v40  ;;  %v11435_v58 = vpop.xlane.xlu1 %11434  ;;  %11806 = vadd.xlane.f32.xlu1 %v11805_v30  ;;  %v11740_v3 = vmul.f32 %v22006_v16, %v22006_v16 }
0x14ea   : > { %v11613_v33 = vmul.f32 0.03125, %v11435_v58  ;;  %v11739_v52 = vmul.f32 %v22010_v22, %v22010_v22 }
0x14eb   : > { %v22018_v31 = vsub.f32 %v21676_v38, %v11614_v62  ;;  %v11814_v14 = vsel %vm6978_vm3, %v11740_v3, 0.0 }
0x14ec   : > { %v22022_v24 = vsub.f32 %v21679_v4, %v11613_v33  ;;  %v11444_v44 = vpop.xlane.xlu0 %11443  ;;  %11815 = vadd.xlane.f32.xlu0 %v11814_v14  ;;  %v11811_v42 = vsel %vm6978_vm3, %v11739_v52, 0.0 }
0x14ed   : > { %v11616_v17 = vmul.f32 0.03125, %v11444_v44  ;;  %v11441_v40 = vpop.xlane.xlu1 %11440  ;;  %11812 = vadd.xlane.f32.xlu1 %v11811_v42  ;;  %v11742_v30 = vmul.f32 %v22018_v31, %v22018_v31 }
0x14ee   : > { %v11615_v58 = vmul.f32 0.03125, %v11441_v40  ;;  %v11741_v38 = vmul.f32 %v22022_v24, %v22022_v24 }
0x14ef   : > { %v22030_v62 = vsub.f32 %v21686_v21, %v11616_v17  ;;  %v11820_v4 = vsel %vm6978_vm3, %v11742_v30, 0.0 }
0x14f0   : > { %v22034_v3 = vsub.f32 %v21689_v50, %v11615_v58  ;;  %v11450_v33 = vpop.xlane.xlu0 %11449  ;;  %11821 = vadd.xlane.f32.xlu0 %v11820_v4  ;;  %v11817_v52 = vsel %vm6978_vm3, %v11741_v38, 0.0 }
0x14f1   : > { %v11618_v14 = vmul.f32 0.03125, %v11450_v33  ;;  %v11447_v44 = vpop.xlane.xlu1 %11446  ;;  %11818 = vadd.xlane.f32.xlu1 %v11817_v52  ;;  %v11744_v42 = vmul.f32 %v22030_v62, %v22030_v62 }
0x14f2   : > { %v11617_v40 = vmul.f32 0.03125, %v11447_v44  ;;  %v11743_v21 = vmul.f32 %v22034_v3, %v22034_v3 }
0x14f3   : > { %v22042_v17 = vsub.f32 %v21696_v56, %v11618_v14  ;;  %v11826_v50 = vsel %vm6978_vm3, %v11744_v42, 0.0 }
0x14f4   : > { %v22046_v30 = vsub.f32 %v21699_v53, %v11617_v40  ;;  %v11456_v58 = vpop.xlane.xlu0 %11455  ;;  %11827 = vadd.xlane.f32.xlu0 %v11826_v50  ;;  %v11823_v38 = vsel %vm6978_vm3, %v11743_v21, 0.0 }
0x14f5   : > { %v11620_v4 = vmul.f32 0.03125, %v11456_v58  ;;  %v11453_v33 = vpop.xlane.xlu1 %11452  ;;  %11824 = vadd.xlane.f32.xlu1 %v11823_v38  ;;  %v11746_v52 = vmul.f32 %v22042_v17, %v22042_v17 }
0x14f6   : > { %v11619_v44 = vmul.f32 0.03125, %v11453_v33  ;;  %v11745_v56 = vmul.f32 %v22046_v30, %v22046_v30 }
0x14f7   : > { %v22054_v14 = vsub.f32 %v21706_v60, %v11620_v4  ;;  %v11832_v53 = vsel %vm6978_vm3, %v11746_v52, 0.0 }
0x14f8   : > { %v22058_v42 = vsub.f32 %v21709_v32, %v11619_v44  ;;  %v11462_v40 = vpop.xlane.xlu0 %11461  ;;  %11833 = vadd.xlane.f32.xlu0 %v11832_v53  ;;  %v11829_v21 = vsel %vm6978_vm3, %v11745_v56, 0.0 }
0x14f9   : > { %v11622_v50 = vmul.f32 0.03125, %v11462_v40  ;;  %v11459_v58 = vpop.xlane.xlu1 %11458  ;;  %11830 = vadd.xlane.f32.xlu1 %v11829_v21  ;;  %v11748_v38 = vmul.f32 %v22054_v14, %v22054_v14 }
0x14fa   : > { %v11621_v33 = vmul.f32 0.03125, %v11459_v58  ;;  %v11747_v60 = vmul.f32 %v22058_v42, %v22058_v42 }
0x14fb   : > { %v22066_v4 = vsub.f32 %v21716_v29, %v11622_v50  ;;  %v11838_v32 = vsel %vm6978_vm3, %v11748_v38, 0.0 }
0x14fc   : > { %v22070_v52 = vsub.f32 %v21719_v34, %v11621_v33  ;;  %v11468_v44 = vpop.xlane.xlu0 %11467  ;;  %11839 = vadd.xlane.f32.xlu0 %v11838_v32  ;;  %v11835_v56 = vsel %vm6978_vm3, %v11747_v60, 0.0 }
0x14fd   : > { %v11624_v53 = vmul.f32 0.03125, %v11468_v44  ;;  %v11465_v40 = vpop.xlane.xlu1 %11464  ;;  %11836 = vadd.xlane.f32.xlu1 %v11835_v56  ;;  %v11750_v21 = vmul.f32 %v22066_v4, %v22066_v4 }
0x14fe   : > { %v11623_v58 = vmul.f32 0.03125, %v11465_v40  ;;  %v11749_v29 = vmul.f32 %v22070_v52, %v22070_v52 }
0x14ff   : > { %v22078_v50 = vsub.f32 %v21726_v51, %v11624_v53  ;;  %v11844_v34 = vsel %vm6978_vm3, %v11750_v21, 0.0 }
0x1500   : > { %v22082_v38 = vsub.f32 %v21729_v2, %v11623_v58  ;;  %v11474_v33 = vpop.xlane.xlu0 %11473  ;;  %11845 = vadd.xlane.f32.xlu0 %v11844_v34  ;;  %v11841_v60 = vsel %vm6978_vm3, %v11749_v29, 0.0 }
0x1501   : > { %v11626_v32 = vmul.f32 0.03125, %v11474_v33  ;;  %v11471_v44 = vpop.xlane.xlu1 %11470  ;;  %11842 = vadd.xlane.f32.xlu1 %v11841_v60  ;;  %v11752_v56 = vmul.f32 %v22078_v50, %v22078_v50 }
0x1502   : > { %v11625_v40 = vmul.f32 0.03125, %v11471_v44  ;;  %v11751_v51 = vmul.f32 %v22082_v38, %v22082_v38 }
0x1503   : > { %v22090_v53 = vsub.f32 %v21736_v55, %v11626_v32  ;;  %v11850_v2 = vsel %vm6978_vm3, %v11752_v56, 0.0 }
0x1504   : > { %v22094_v21 = vsub.f32 %v21739_v12, %v11625_v40  ;;  %v11480_v58 = vpop.xlane.xlu0 %11479  ;;  %11851 = vadd.xlane.f32.xlu0 %v11850_v2  ;;  %v11847_v29 = vsel %vm6978_vm3, %v11751_v51, 0.0 }
0x1505   : > { %v11628_v34 = vmul.f32 0.03125, %v11480_v58  ;;  %v11477_v33 = vpop.xlane.xlu1 %11476  ;;  %11848 = vadd.xlane.f32.xlu1 %v11847_v29  ;;  %v11754_v60 = vmul.f32 %v22090_v53, %v22090_v53 }
0x1506   : > { %v11627_v44 = vmul.f32 0.03125, %v11477_v33  ;;  %v11753_v55 = vmul.f32 %v22094_v21, %v22094_v21 }
0x1507   : > { %v22102_v32 = vsub.f32 %v21746_v0, %v11628_v34  ;;  %v11856_v12 = vsel %vm6978_vm3, %v11754_v60, 0.0 }
0x1508   : > { %v22106_v56 = vsub.f32 %v21749_v27, %v11627_v44  ;;  %v11486_v40 = vpop.xlane.xlu0 %11485  ;;  %11857 = vadd.xlane.f32.xlu0 %v11856_v12  ;;  %v11853_v51 = vsel %vm6978_vm3, %v11753_v55, 0.0 }
0x1509   : > { %v11630_v2 = vmul.f32 0.03125, %v11486_v40  ;;  %v11483_v58 = vpop.xlane.xlu1 %11482  ;;  %11854 = vadd.xlane.f32.xlu1 %v11853_v51  ;;  %v11756_v29 = vmul.f32 %v22102_v32, %v22102_v32 }
0x150a   : > { %v11629_v33 = vmul.f32 0.03125, %v11483_v58  ;;  %v11755_v0 = vmul.f32 %v22106_v56, %v22106_v56 }
0x150b   : > { %v22114_v34 = vsub.f32 %v21756_v10, %v11630_v2  ;;  %v11862_v27 = vsel %vm6978_vm3, %v11756_v29, 0.0 }
0x150c   : > { %v22118_v60 = vsub.f32 %v21759_v7, %v11629_v33  ;;  %v11492_v44 = vpop.xlane.xlu0 %11491  ;;  %11863 = vadd.xlane.f32.xlu0 %v11862_v27  ;;  %v11859_v55 = vsel %vm6978_vm3, %v11755_v0, 0.0 }
0x150d   : > { %v11632_v12 = vmul.f32 0.03125, %v11492_v44  ;;  %v11489_v40 = vpop.xlane.xlu1 %11488  ;;  %11860 = vadd.xlane.f32.xlu1 %v11859_v55  ;;  %v11758_v51 = vmul.f32 %v22114_v34, %v22114_v34 }
0x150e   : > { %v11631_v58 = vmul.f32 0.03125, %v11489_v40  ;;  %v11757_v10 = vmul.f32 %v22118_v60, %v22118_v60 }
0x150f   : > { %v22126_v2 = vsub.f32 %v21766_v47, %v11632_v12  ;;  %v11868_v7 = vsel %vm6978_vm3, %v11758_v51, 0.0 }
0x1510   : > { %v22130_v29 = vsub.f32 %v21769_v57, %v11631_v58  ;;  %v11498_v33 = vpop.xlane.xlu0 %11497  ;;  %11869 = vadd.xlane.f32.xlu0 %v11868_v7  ;;  %v11865_v0 = vsel %vm6978_vm3, %v11757_v10, 0.0 }
0x1511   : > { %v11634_v27 = vmul.f32 0.03125, %v11498_v33  ;;  %v11495_v44 = vpop.xlane.xlu1 %11494  ;;  %11866 = vadd.xlane.f32.xlu1 %v11865_v0  ;;  %v11760_v55 = vmul.f32 %v22126_v2, %v22126_v2 }
0x1512   : > { %v11633_v40 = vmul.f32 0.03125, %v11495_v44  ;;  %v11759_v47 = vmul.f32 %v22130_v29, %v22130_v29 }
0x1513   : > { %v22138_v12 = vsub.f32 %v21776_v5, %v11634_v27  ;;  %v11874_v57 = vsel %vm6978_vm3, %v11760_v55, 0.0 }
0x1514   : > { %v22142_v51 = vsub.f32 %v21779_v8, %v11633_v40  ;;  %v11504_v58 = vpop.xlane.xlu0 %11503  ;;  %11875 = vadd.xlane.f32.xlu0 %v11874_v57  ;;  %v11871_v10 = vsel %vm6978_vm3, %v11759_v47, 0.0 }
0x1515   : > { %v11636_v7 = vmul.f32 0.03125, %v11504_v58  ;;  %v11501_v33 = vpop.xlane.xlu1 %11500  ;;  %11872 = vadd.xlane.f32.xlu1 %v11871_v10  ;;  %v11762_v0 = vmul.f32 %v22138_v12, %v22138_v12 }
0x1516   : > { %v11635_v44 = vmul.f32 0.03125, %v11501_v33  ;;  %v11761_v5 = vmul.f32 %v22142_v51, %v22142_v51 }
0x1517   : > { %v22150_v27 = vsub.f32 %v21786_v25, %v11636_v7  ;;  %v11880_v8 = vsel %vm6978_vm3, %v11762_v0, 0.0 }
0x1518   : > { %v22154_v55 = vsub.f32 %v21789_v61, %v11635_v44  ;;  %v11510_v40 = vpop.xlane.xlu0 %11509  ;;  %11881 = vadd.xlane.f32.xlu0 %v11880_v8  ;;  %v11877_v47 = vsel %vm6978_vm3, %v11761_v5, 0.0 }
0x1519   : > { %v11638_v57 = vmul.f32 0.03125, %v11510_v40  ;;  %v11507_v58 = vpop.xlane.xlu1 %11506  ;;  %11878 = vadd.xlane.f32.xlu1 %v11877_v47  ;;  %v11764_v10 = vmul.f32 %v22150_v27, %v22150_v27 }
0x151a   : > { %v11637_v33 = vmul.f32 0.03125, %v11507_v58  ;;  %v11763_v25 = vmul.f32 %v22154_v55, %v22154_v55 }
0x151b   : > { %v22162_v7 = vsub.f32 %v21796_v59, %v11638_v57  ;;  %v11886_v61 = vsel %vm6978_vm3, %v11764_v10, 0.0 }
0x151c   : > { %v22166_v0 = vsub.f32 %v21799_v49, %v11637_v33  ;;  %v11516_v44 = vpop.xlane.xlu0 %11515  ;;  %11887 = vadd.xlane.f32.xlu0 %v11886_v61  ;;  %v11883_v5 = vsel %vm6978_vm3, %v11763_v25, 0.0 }
0x151d   : > { %v11640_v8 = vmul.f32 0.03125, %v11516_v44  ;;  %v11513_v40 = vpop.xlane.xlu1 %11512  ;;  %11884 = vadd.xlane.f32.xlu1 %v11883_v5  ;;  %v11766_v47 = vmul.f32 %v22162_v7, %v22162_v7 }
0x151e   : > { %v11639_v58 = vmul.f32 0.03125, %v11513_v40  ;;  %v11765_v59 = vmul.f32 %v22166_v0, %v22166_v0 }
0x151f   : > { %v22174_v57 = vsub.f32 %v21806_v18, %v11640_v8  ;;  %v11892_v49 = vsel %vm6978_vm3, %v11766_v47, 0.0 }
0x1520   : > { %v22178_v10 = vsub.f32 %v21809_v63, %v11639_v58  ;;  %v11522_v33 = vpop.xlane.xlu0 %11521  ;;  %11893 = vadd.xlane.f32.xlu0 %v11892_v49  ;;  %v11889_v25 = vsel %vm6978_vm3, %v11765_v59, 0.0 }
0x1521   : > { %v11642_v61 = vmul.f32 0.03125, %v11522_v33  ;;  %v11519_v44 = vpop.xlane.xlu1 %11518  ;;  %11890 = vadd.xlane.f32.xlu1 %v11889_v25  ;;  %v11768_v5 = vmul.f32 %v22174_v57, %v22174_v57 }
0x1522   : > { %v11641_v40 = vmul.f32 0.03125, %v11519_v44  ;;  %v11767_v18 = vmul.f32 %v22178_v10, %v22178_v10 }
0x1523   : > { %v22186_v8 = vsub.f32 %v21816_v39, %v11642_v61  ;;  %v11898_v63 = vsel %vm6978_vm3, %v11768_v5, 0.0 }
0x1524   : > { %v22190_v47 = vsub.f32 %v21819_v37, %v11641_v40  ;;  %v11528_v58 = vpop.xlane.xlu0 %11527  ;;  %11899 = vadd.xlane.f32.xlu0 %v11898_v63  ;;  %v11895_v59 = vsel %vm6978_vm3, %v11767_v18, 0.0 }
0x1525   : > { %v11644_v49 = vmul.f32 0.03125, %v11528_v58  ;;  %v11525_v33 = vpop.xlane.xlu1 %11524  ;;  %11896 = vadd.xlane.f32.xlu1 %v11895_v59  ;;  %v11770_v25 = vmul.f32 %v22186_v8, %v22186_v8 }
0x1526   : > { %v11643_v44 = vmul.f32 0.03125, %v11525_v33  ;;  %v11769_v39 = vmul.f32 %v22190_v47, %v22190_v47 }
0x1527   : > { %v22198_v61 = vsub.f32 %v21826_v20, %v11644_v49  ;;  %v11904_v37 = vsel %vm6978_vm3, %v11770_v25, 0.0 }
0x1528   : > { %v22202_v5 = vsub.f32 %v21829_v36, %v11643_v44  ;;  %v11534_v40 = vpop.xlane.xlu0 %11533  ;;  %11905 = vadd.xlane.f32.xlu0 %v11904_v37  ;;  %v11901_v18 = vsel %vm6978_vm3, %v11769_v39, 0.0 }
0x1529   : > { %v11646_v63 = vmul.f32 0.03125, %v11534_v40  ;;  %v11531_v58 = vpop.xlane.xlu1 %11530  ;;  %11902 = vadd.xlane.f32.xlu1 %v11901_v18  ;;  %v11772_v59 = vmul.f32 %v22198_v61, %v22198_v61 }
0x152a   : > { %v11645_v33 = vmul.f32 0.03125, %v11531_v58  ;;  %v11771_v20 = vmul.f32 %v22202_v5, %v22202_v5 }
0x152b   : > { %v22210_v49 = vsub.f32 %v21836_v26, %v11646_v63  ;;  %v11910_v36 = vsel %vm6978_vm3, %v11772_v59, 0.0 }
0x152c   : > { %v22214_v25 = vsub.f32 %v21839_v23, %v11645_v33  ;;  %v11540_v44 = vpop.xlane.xlu0 %11539  ;;  %11911 = vadd.xlane.f32.xlu0 %v11910_v36  ;;  %v11907_v39 = vsel %vm6978_vm3, %v11771_v20, 0.0 }
0x152d   : > { %v11648_v37 = vmul.f32 0.03125, %v11540_v44  ;;  %v11537_v40 = vpop.xlane.xlu1 %11536  ;;  %11908 = vadd.xlane.f32.xlu1 %v11907_v39  ;;  %v11774_v18 = vmul.f32 %v22210_v49, %v22210_v49 }
0x152e   : > { %v11647_v58 = vmul.f32 0.03125, %v11537_v40  ;;  %v11773_v26 = vmul.f32 %v22214_v25, %v22214_v25 }
0x152f   : > { %v22222_v63 = vsub.f32 %v21846_v45, %v11648_v37  ;;  %v11916_v23 = vsel %vm6978_vm3, %v11774_v18, 0.0 }
0x1530   : > { %v22226_v59 = vsub.f32 %v21849_v1, %v11647_v58  ;;  %v11546_v33 = vpop.xlane.xlu0 %11545  ;;  %11917 = vadd.xlane.f32.xlu0 %v11916_v23  ;;  %v11913_v20 = vsel %vm6978_vm3, %v11773_v26, 0.0 }
0x1531   : > { %v11650_v36 = vmul.f32 0.03125, %v11546_v33  ;;  %v11543_v44 = vpop.xlane.xlu1 %11542  ;;  %11914 = vadd.xlane.f32.xlu1 %v11913_v20  ;;  %v11776_v39 = vmul.f32 %v22222_v63, %v22222_v63 }
0x1532   : > { %v11649_v40 = vmul.f32 0.03125, %v11543_v44  ;;  %v11775_v45 = vmul.f32 %v22226_v59, %v22226_v59 }
0x1533   : > { %v22234_v37 = vsub.f32 %v21856_v13, %v11650_v36  ;;  %v11922_v1 = vsel %vm6978_vm3, %v11776_v39, 0.0 }
0x1534   : > { %v22238_v18 = vsub.f32 %v21859_v9, %v11649_v40  ;;  %v11552_v58 = vpop.xlane.xlu0 %11551  ;;  %11923 = vadd.xlane.f32.xlu0 %v11922_v1  ;;  %v11919_v26 = vsel %vm6978_vm3, %v11775_v45, 0.0 }
0x1535   : > { %v11652_v23 = vmul.f32 0.03125, %v11552_v58  ;;  %v11549_v33 = vpop.xlane.xlu1 %11548  ;;  %11920 = vadd.xlane.f32.xlu1 %v11919_v26  ;;  %v11778_v20 = vmul.f32 %v22234_v37, %v22234_v37 }
0x1536   : > { %v11651_v44 = vmul.f32 0.03125, %v11549_v33  ;;  %v11777_v13 = vmul.f32 %v22238_v18, %v22238_v18 }
0x1537   : > { %v22246_v36 = vsub.f32 %v21866_v48, %v11652_v23  ;;  %v11928_v9 = vsel %vm6978_vm3, %v11778_v20, 0.0 }
0x1538   : > { %v22250_v39 = vsub.f32 %v21869_v35, %v11651_v44  ;;  %v11558_v40 = vpop.xlane.xlu0 %11557  ;;  %11929 = vadd.xlane.f32.xlu0 %v11928_v9  ;;  %v11925_v45 = vsel %vm6978_vm3, %v11777_v13, 0.0 }
0x1539   : > { %24405 = vst [vmem:[#allocation25_spill] sm:$0xff] %v22246_v36  ;;  %v11654_v1 = vmul.f32 0.03125, %v11558_v40  ;;  %v11555_v58 = vpop.xlane.xlu1 %11554  ;;  %11926 = vadd.xlane.f32.xlu1 %v11925_v45  ;;  %v11780_v26 = vmul.f32 %v22246_v36, %v22246_v36 }
0x153a   : > { %24406 = vst [vmem:[#allocation30_spill] sm:$0xff] %v22250_v39  ;;  %v11653_v33 = vmul.f32 0.03125, %v11555_v58  ;;  %v11779_v48 = vmul.f32 %v22250_v39, %v22250_v39 }
0x153b   : > { %v22258_v23 = vsub.f32 %v21879_v41, %v11654_v1  ;;  %v11934_v35 = vsel %vm6978_vm3, %v11780_v26, 0.0  ;;  %v24410_v26 = vld [vmem:[#allocation12_spill] sm:$0xff] }
0x153c   : > { %v22262_v20 = vsub.f32 %v21881_v54, %v11653_v33  ;;  %v11564_v44 = vpop.xlane.xlu0 %11563  ;;  %11935 = vadd.xlane.f32.xlu0 %v11934_v35  ;;  %v11931_v13 = vsel %vm6978_vm3, %v11779_v48, 0.0 }
0x153d   : > { %24407 = vst [vmem:[#allocation38_spill] sm:$0xff] %v22258_v23  ;;  %v11656_v9 = vmul.f32 0.03125, %v11564_v44  ;;  %v11561_v40 = vpop.xlane.xlu1 %11560  ;;  %11932 = vadd.xlane.f32.xlu1 %v11931_v13  ;;  %v11782_v45 = vmul.f32 %v22258_v23, %v22258_v23 }
0x153e   : > { %24408 = vst [vmem:[#allocation40_spill] sm:$0xff] %v22262_v20  ;;  %v11655_v58 = vmul.f32 0.03125, %v11561_v40  ;;  %v11781_v41 = vmul.f32 %v22262_v20, %v22262_v20 }
0x153f   : > { %v22270_v1 = vsub.f32 %v21891_v15, %v11656_v9  ;;  %v11940_v54 = vsel %vm6978_vm3, %v11782_v45, 0.0  ;;  %v24412_v9 = vld [vmem:[#allocation17_spill] sm:$0xff] }
0x1540   : > { %v22274_v33 = vsub.f32 %v24410_v26, %v11655_v58  ;;  %v11570_v35 = vpop.xlane.xlu0 %11569  ;;  %11941 = vadd.xlane.f32.xlu0 %v11940_v54  ;;  %v11937_v48 = vsel %vm6978_vm3, %v11781_v41, 0.0  ;;  %v24414_v58 = vld [vmem:[#allocation39_spill] sm:$0xff] }
0x1541   : > { %24409 = vst [vmem:[#allocation44_spill] sm:$0xff] %v22270_v1  ;;  %v11658_v44 = vmul.f32 0.03125, %v11570_v35  ;;  %v11567_v13 = vpop.xlane.xlu1 %11566  ;;  %11938 = vadd.xlane.f32.xlu1 %v11937_v48  ;;  %v11784_v40 = vmul.f32 %v22270_v1, %v22270_v1 }
0x1542   : > { %24411 = vst [vmem:[#allocation48_spill] sm:$0xff] %v22274_v33  ;;  %v11657_v23 = vmul.f32 0.03125, %v11567_v13  ;;  %v11783_v15 = vmul.f32 %v22274_v33, %v22274_v33 }
0x1543   : > { %v22282_v20 = vsub.f32 %v24412_v9, %v11658_v44  ;;  %v11946_v45 = vsel %vm6978_vm3, %v11784_v40, 0.0  ;;  %v24416_v9 = vld [vmem:[#allocation47_spill] sm:$0xff] }
0x1544   : > { %v22286_v26 = vsub.f32 %v24414_v58, %v11657_v23  ;;  %v11576_v54 = vpop.xlane.xlu0 %11575  ;;  %11947 = vadd.xlane.f32.xlu0 %v11946_v45  ;;  %v11943_v41 = vsel %vm6978_vm3, %v11783_v15, 0.0  ;;  %v24418_v40 = vld [vmem:[#allocation119_spill] sm:$0xff] }
0x1545   : > { %24413 = vst [vmem:[#allocation53_spill] sm:$0xff] %v22282_v20  ;;  %v11660_v35 = vmul.f32 0.03125, %v11576_v54  ;;  %v11573_v48 = vpop.xlane.xlu1 %11572  ;;  %11944 = vadd.xlane.f32.xlu1 %v11943_v41  ;;  %v11786_v13 = vmul.f32 %v22282_v20, %v22282_v20 }
0x1546   : > { %24415 = vst [vmem:[#allocation58_spill] sm:$0xff] %v22286_v26  ;;  %v11659_v1 = vmul.f32 0.03125, %v11573_v48  ;;  %v11785_v44 = vmul.f32 %v22286_v26, %v22286_v26 }
0x1547   : > { %v22294_v33 = vsub.f32 %v24416_v9, %v11660_v35  ;;  %v11952_v23 = vsel %vm6978_vm3, %v11786_v13, 0.0  ;;  %v24420_v9 = vld [vmem:[#allocation36_spill] sm:$0xff] }
0x1548   : > { %v22298_v58 = vsub.f32 %v24418_v40, %v11659_v1  ;;  %v11582_v45 = vpop.xlane.xlu0 %11581  ;;  %11953 = vadd.xlane.f32.xlu0 %v11952_v23  ;;  %v11949_v15 = vsel %vm6978_vm3, %v11785_v44, 0.0  ;;  %v24422_v13 = vld [vmem:[#allocation132_spill] sm:$0xff] }
0x1549   : > { %24417 = vst [vmem:[#allocation59_spill] sm:$0xff] %v22294_v33  ;;  %v11662_v54 = vmul.f32 0.03125, %v11582_v45  ;;  %v11579_v41 = vpop.xlane.xlu1 %11578  ;;  %11950 = vadd.xlane.f32.xlu1 %v11949_v15  ;;  %v11788_v48 = vmul.f32 %v22294_v33, %v22294_v33 }
0x154a   : > { %24419 = vst [vmem:[#allocation65_spill] sm:$0xff] %v22298_v58  ;;  %v11661_v20 = vmul.f32 0.03125, %v11579_v41  ;;  %v11787_v35 = vmul.f32 %v22298_v58, %v22298_v58 }
0x154b   : > { %v22306_v26 = vsub.f32 %v24420_v9, %v11662_v54  ;;  %v11958_v1 = vsel %vm6978_vm3, %v11788_v48, 0.0  ;;  %v24424_v9 = vld [vmem:[#allocation126_spill] sm:$0xff]  ;;  %v24426_v48 = vld [vmem:[#allocation140_spill] sm:$0xff] }
0x154c   : > { %v22310_v40 = vsub.f32 %v24422_v13, %v11661_v20  ;;  %v11588_v23 = vpop.xlane.xlu0 %11587  ;;  %11959 = vadd.xlane.f32.xlu0 %v11958_v1  ;;  %v11955_v44 = vsel %vm6978_vm3, %v11787_v35, 0.0 }
0x154d   : > { %24421 = vst [vmem:[#allocation68_spill] sm:$0xff] %v22306_v26  ;;  %v11664_v45 = vmul.f32 0.03125, %v11588_v23  ;;  %v11585_v15 = vpop.xlane.xlu1 %11584  ;;  %11956 = vadd.xlane.f32.xlu1 %v11955_v44  ;;  %v11790_v41 = vmul.f32 %v22306_v26, %v22306_v26 }
0x154e   : > { %24423 = vst [vmem:[#allocation72_spill] sm:$0xff] %v22310_v40  ;;  %v11663_v33 = vmul.f32 0.03125, %v11585_v15  ;;  %v11789_v54 = vmul.f32 %v22310_v40, %v22310_v40 }
0x154f   : > { %v22318_v58 = vsub.f32 %v24424_v9, %v11664_v45  ;;  %v11964_v20 = vsel %vm6978_vm3, %v11790_v41, 0.0  ;;  %v24428_v9 = vld [vmem:[#allocation19_spill] sm:$0xff]  ;;  %v24430_v41 = vld [vmem:[#allocation16_spill] sm:$0xff] }
0x1550   : > { %v22322_v13 = vsub.f32 %v24426_v48, %v11663_v33  ;;  %v11594_v1 = vpop.xlane.xlu0 %11593  ;;  %11965 = vadd.xlane.f32.xlu0 %v11964_v20  ;;  %v11961_v35 = vsel %vm6978_vm3, %v11789_v54, 0.0 }
0x1551   : > { %24425 = vst [vmem:[#allocation78_spill] sm:$0xff] %v22318_v58  ;;  %v11666_v23 = vmul.f32 0.03125, %v11594_v1  ;;  %v11591_v44 = vpop.xlane.xlu1 %11590  ;;  %11962 = vadd.xlane.f32.xlu1 %v11961_v35  ;;  %v11792_v15 = vmul.f32 %v22318_v58, %v22318_v58 }
0x1552   : > { %24427 = vst [vmem:[#allocation82_spill] sm:$0xff] %v22322_v13  ;;  %v11665_v26 = vmul.f32 0.03125, %v11591_v44  ;;  %v11791_v45 = vmul.f32 %v22322_v13, %v22322_v13 }
0x1553   : > { %v22330_v40 = vsub.f32 %v24428_v9, %v11666_v23  ;;  %v11970_v33 = vsel %vm6978_vm3, %v11792_v15, 0.0  ;;  %v24433_v15 = vld [vmem:[#allocation23_spill] sm:$0xff] }
0x1554   : > { %v22334_v48 = vsub.f32 %v24430_v41, %v11665_v26  ;;  %v11600_v20 = vpop.xlane.xlu0 %11599  ;;  %11971 = vadd.xlane.f32.xlu0 %v11970_v33  ;;  %v11967_v54 = vsel %vm6978_vm3, %v11791_v45, 0.0 }
0x1555   : > { %24429 = vst [vmem:[#allocation84_spill] sm:$0xff] %v22330_v40  ;;  %v11668_v1 = vmul.f32 0.03125, %v11600_v20  ;;  %v11597_v35 = vpop.xlane.xlu1 %11596  ;;  %11968 = vadd.xlane.f32.xlu1 %v11967_v54  ;;  %v11794_v44 = vmul.f32 %v22330_v40, %v22330_v40 }
0x1556   : > { %24431 = vst [vmem:[#allocation87_spill] sm:$0xff] %v22334_v48  ;;  %v11667_v58 = vmul.f32 0.03125, %v11597_v35  ;;  %v11793_v23 = vmul.f32 %v22334_v48, %v22334_v48 }
0x1557   : > { %v22342_v9 = vsub.f32 %v21963_v43, %v11668_v1  ;;  %v11976_v26 = vsel %vm6978_vm3, %v11794_v44, 0.0 }
0x1558   : > { %v22346_v41 = vsub.f32 %v24433_v15, %v11667_v58  ;;  %11977 = vadd.xlane.f32.xlu0 %v11976_v26  ;;  %v11606_v45 = vpop.xlane.xlu0 %11605  ;;  %v11973_v33 = vsel %vm6978_vm3, %v11793_v23, 0.0 }
0x1559   : > { %24432 = vst [vmem:[#allocation93_spill] sm:$0xff] %v22342_v9  ;;  %v11670_v20 = vmul.f32 0.03125, %v11606_v45  ;;  %11974 = vadd.xlane.f32.xlu1 %v11973_v33  ;;  %v11603_v54 = vpop.xlane.xlu1 %11602  ;;  %v11796_v35 = vmul.f32 %v22342_v9, %v22342_v9 }
0x155a   : > { %24434 = vst [vmem:[#allocation104_spill] sm:$0xff] %v22346_v41  ;;  %v11669_v40 = vmul.f32 0.03125, %v11603_v54  ;;  %v11795_v43 = vmul.f32 %v22346_v41, %v22346_v41 }
0x155b   : > { %v22354_v1 = vsub.f32 %v21975_v28, %v11670_v20  ;;  %v11982_v58 = vsel %vm6978_vm3, %v11796_v35, 0.0 }
0x155c   : > { %v22358_v44 = vsub.f32 %v21977_v6, %v11669_v40  ;;  %11983 = vadd.xlane.f32.xlu0 %v11982_v58  ;;  %v11979_v23 = vsel %vm6978_vm3, %v11795_v43, 0.0 }
0x155d   : > { %24435 = vst [vmem:[#allocation108_spill] sm:$0xff] %v22354_v1  ;;  %11980 = vadd.xlane.f32.xlu1 %v11979_v23  ;;  %v11798_v26 = vmul.f32 %v22354_v1, %v22354_v1 }
0x155e   : > { %24436 = vst [vmem:[#allocation114_spill] sm:$0xff] %v22358_v44  ;;  %v11797_v15 = vmul.f32 %v22358_v44, %v22358_v44 }
0x155f   : > { %v11988_v45 = vsel %vm6978_vm3, %v11798_v26, 0.0 }
0x1560   : > { %11989 = vadd.xlane.f32.xlu0 %v11988_v45  ;;  %v11985_v28 = vsel %vm6978_vm3, %v11797_v15, 0.0 }
0x1561   : > { %11986 = vadd.xlane.f32.xlu1 %v11985_v28 }
0x1571   : > { %v11804_v33 = vpop.xlane.xlu0 %11803 }
0x1572   : > { %v11992_v20 = vmul.f32 0.03125, %v11804_v33  ;;  %v11801_v6 = vpop.xlane.xlu1 %11800 }
0x1573   : > { %v11991_v40 = vmul.f32 0.03125, %v11801_v6 }
0x1574   : > { %v12056_v54 = vadd.f32 1e-05, %v11992_v20 }
0x1575   : > { %v12055_v35 = vadd.f32 1e-05, %v11991_v40  ;;  %v11810_v43 = vpop.xlane.xlu0 %11809 }
0x1576   : > { %16737 = vrsqrt.f32 %v12056_v54  ;;  %v11994_v58 = vmul.f32 0.03125, %v11810_v43  ;;  %v11807_v23 = vpop.xlane.xlu1 %11806 }
0x1577   : > { %16739 = vrsqrt.f32 %v12055_v35  ;;  %v11993_v1 = vmul.f32 0.03125, %v11807_v23 }
0x1578   : > { %v12058_v41 = vadd.f32 1e-05, %v11994_v58 }
0x1579   : > { %v12057_v44 = vadd.f32 1e-05, %v11993_v1  ;;  %v11816_v9 = vpop.xlane.xlu0 %11815 }
0x157a   : > { %16741 = vrsqrt.f32 %v12058_v41  ;;  %v11996_v26 = vmul.f32 0.03125, %v11816_v9  ;;  %v11813_v45 = vpop.xlane.xlu1 %11812  ;;  %v24437_v9 = vld [vmem:[#allocation26_spill] sm:$0xff] }
0x157b   : > { %16743 = vrsqrt.f32 %v12057_v44  ;;  %v11995_v15 = vmul.f32 0.03125, %v11813_v45 }
0x157c   : > { %v12060_v28 = vadd.f32 1e-05, %v11996_v26 }
0x157d   : > { %v12059_v33 = vadd.f32 1e-05, %v11995_v15  ;;  %v11822_v48 = vpop.xlane.xlu0 %11821 }
0x157e   : > { %16745 = vrsqrt.f32 %v12060_v28  ;;  %v11998_v20 = vmul.f32 0.03125, %v11822_v48  ;;  %v11819_v6 = vpop.xlane.xlu1 %11818  ;;  %v22371_v48 = vld [vmem:[%s22758_s7] ss:$0 sm:$0xff] }
0x157f   : > { %16747 = vrsqrt.f32 %v12059_v33  ;;  %v11997_v40 = vmul.f32 0.03125, %v11819_v6 }
0x1580   : > { %v16738_v54 = vpop.eup %16737  ;;  %v12062_v43 = vadd.f32 1e-05, %v11998_v20 }
0x1581   : > { %v16740_v35 = vpop.eup %16739  ;;  %v12061_v23 = vadd.f32 1e-05, %v11997_v40  ;;  %v11828_v58 = vpop.xlane.xlu0 %11827  ;;  %v12184_v13 = vmul.f32 %v16738_v54, %v24437_v9 }
0x1582   : > { %16749 = vrsqrt.f32 %v12062_v43  ;;  %v12000_v1 = vmul.f32 0.03125, %v11828_v58  ;;  %v11825_v41 = vpop.xlane.xlu1 %11824  ;;  %v12183_v45 = vmul.f32 %v16740_v35, %v21987_v11  ;;  %v22380_v11 = vld [vmem:[%s22759_s8] ss:$0 sm:$0xff] }
0x1583   : > { %16751 = vrsqrt.f32 %v12061_v23  ;;  %v11999_v44 = vmul.f32 0.03125, %v11825_v41  ;;  %v12254_v23 = vmul.f32 %v22371_v48, %v12184_v13 }
0x1584   : > { %v16742_v26 = vpop.eup %16741  ;;  %v12064_v15 = vadd.f32 1e-05, %v12000_v1  ;;  %v12253_v35 = vmul.f32 %v22371_v48, %v12183_v45 }
0x1585   : > { %v16744_v28 = vpop.eup %16743  ;;  %v12186_v33 = vmul.f32 %v16742_v26, %v21994_v46  ;;  %v12063_v20 = vadd.f32 1e-05, %v11999_v44  ;;  %v11834_v6 = vpop.xlane.xlu0 %11833 }
0x1586   : > { %v12185_v40 = vmul.f32 %v16744_v28, %v21998_v19  ;;  %16753 = vrsqrt.f32 %v12064_v15  ;;  %v12002_v54 = vmul.f32 0.03125, %v11834_v6  ;;  %v11831_v43 = vpop.xlane.xlu1 %11830  ;;  %v22388_v6 = vadd.f32 %v22380_v11, %v12254_v23 }
0x1587   : > { %16755 = vrsqrt.f32 %v12063_v20  ;;  %v12001_v58 = vmul.f32 0.03125, %v11831_v43  ;;  %v12256_v9 = vmul.f32 %v22371_v48, %v12186_v33  ;;  %v22392_v33 = vadd.f32 %v22380_v11, %v12253_v35 }
0x1588   : > { %v16746_v41 = vpop.eup %16745  ;;  %v12066_v46 = vadd.f32 1e-05, %v12002_v54  ;;  %v12255_v13 = vmul.f32 %v22371_v48, %v12185_v40 }
0x1589   : > { %v16748_v1 = vpop.eup %16747  ;;  %v12188_v19 = vmul.f32 %v16746_v41, %v22006_v16  ;;  %v12065_v44 = vadd.f32 1e-05, %v12001_v58  ;;  %v11840_v26 = vpop.xlane.xlu0 %11839 }
0x158a   : > { %v12187_v15 = vmul.f32 %v16748_v1, %v22010_v22  ;;  %16757 = vrsqrt.f32 %v12066_v46  ;;  %v12004_v28 = vmul.f32 0.03125, %v11840_v26  ;;  %v11837_v20 = vpop.xlane.xlu1 %11836  ;;  %v22396_v22 = vadd.f32 %v22380_v11, %v12256_v9 }
0x158b   : > { %v12258_v45 = vmul.f32 %v22371_v48, %v12188_v19  ;;  %16759 = vrsqrt.f32 %v12065_v44  ;;  %v12003_v54 = vmul.f32 0.03125, %v11837_v20  ;;  %v22400_v1 = vadd.f32 %v22380_v11, %v12255_v13 }
0x158c   : > { %v16750_v43 = vpop.eup %16749  ;;  %v12257_v16 = vmul.f32 %v22371_v48, %v12187_v15  ;;  %v12068_v58 = vadd.f32 1e-05, %v12004_v28  ;;  %v12388_v26 = vmax.f32 %v22388_v6, 0.0 }
0x158d   : > { %v16752_v40 = vpop.eup %16751  ;;  %v12190_v41 = vmul.f32 %v16750_v43, %v22018_v31  ;;  %v12067_v46 = vadd.f32 1e-05, %v12003_v54  ;;  %v11846_v23 = vpop.xlane.xlu0 %11845  ;;  %v22405_v15 = vadd.f32 %v22380_v11, %v12258_v45  ;;  %v12387_v31 = vmax.f32 %v22392_v33, 0.0 }
0x158e   : > { %v12189_v19 = vmul.f32 %v16752_v40, %v22022_v24  ;;  %16761 = vrsqrt.f32 %v12068_v58  ;;  %v12006_v44 = vmul.f32 0.03125, %v11846_v23  ;;  %v11843_v35 = vpop.xlane.xlu1 %11842  ;;  %v22409_v20 = vadd.f32 %v22380_v11, %v12257_v16 }
0x158f   : > { %16763 = vrsqrt.f32 %v12067_v46  ;;  %v12005_v9 = vmul.f32 0.03125, %v11843_v35  ;;  %v12260_v13 = vmul.f32 %v22371_v48, %v12190_v41  ;;  %v12390_v43 = vmax.f32 %v22396_v22, 0.0 }
0x1590   : > { %v16754_v28 = vpop.eup %16753  ;;  %v12070_v54 = vadd.f32 1e-05, %v12006_v44  ;;  %v12259_v58 = vmul.f32 %v22371_v48, %v12189_v19  ;;  %v12389_v46 = vmax.f32 %v22400_v1, 0.0 }
0x1591   : > { %v16756_v24 = vpop.eup %16755  ;;  %v12192_v6 = vmul.f32 %v16754_v28, %v22030_v62  ;;  %v12069_v45 = vadd.f32 1e-05, %v12005_v9  ;;  %v11852_v40 = vpop.xlane.xlu0 %11851  ;;  %v22421_v62 = vadd.f32 %v22380_v11, %v12260_v13 }
0x1592   : > { %v12191_v23 = vmul.f32 %v16756_v24, %v22034_v3  ;;  %16765 = vrsqrt.f32 %v12070_v54  ;;  %v12008_v33 = vmul.f32 0.03125, %v11852_v40  ;;  %v11849_v16 = vpop.xlane.xlu1 %11848  ;;  %v22425_v3 = vadd.f32 %v22380_v11, %v12259_v58 }
0x1593   : > { %v12262_v41 = vmul.f32 %v22371_v48, %v12192_v6  ;;  %16767 = vrsqrt.f32 %v12069_v45  ;;  %v12007_v44 = vmul.f32 0.03125, %v11849_v16  ;;  %v12394_v39 = vmax.f32 %v22421_v62, 0.0 }
0x1594   : > { %v16758_v22 = vpop.eup %16757  ;;  %v12261_v9 = vmul.f32 %v22371_v48, %v12191_v23  ;;  %v12072_v1 = vadd.f32 1e-05, %v12008_v33 }
0x1595   : > { %v16760_v28 = vpop.eup %16759  ;;  %v12332_v54 = vadd.f32 %v22380_v11, %v12262_v41  ;;  %v12194_v24 = vmul.f32 %v16758_v22, %v22042_v17  ;;  %v12071_v6 = vadd.f32 1e-05, %v12007_v44  ;;  %v11858_v45 = vpop.xlane.xlu0 %11857 }
0x1596   : > { %v12331_v40 = vadd.f32 %v22380_v11, %v12261_v9  ;;  %v12193_v16 = vmul.f32 %v16760_v28, %v22046_v30  ;;  %16769 = vrsqrt.f32 %v12072_v1  ;;  %v12010_v13 = vmul.f32 0.03125, %v11858_v45  ;;  %v11855_v19 = vpop.xlane.xlu1 %11854 }
0x1597   : > { %v12396_v35 = vmax.f32 %v12332_v54, 0.0  ;;  %v12264_v23 = vmul.f32 %v22371_v48, %v12194_v24  ;;  %16771 = vrsqrt.f32 %v12071_v6  ;;  %v12009_v33 = vmul.f32 0.03125, %v11855_v19 }
0x1598   : > { %v16762_v58 = vpop.eup %16761  ;;  %v12395_v41 = vmax.f32 %v12331_v40, 0.0  ;;  %v12263_v17 = vmul.f32 %v22371_v48, %v12193_v16  ;;  %v12074_v44 = vadd.f32 1e-05, %v12010_v13  ;;  %v12393_v16 = vmax.f32 %v22425_v3, 0.0 }
0x1599   : > { %v16764_v22 = vpop.eup %16763  ;;  %v22434_v36 = vadd.f32 %v12396_v35, %v12388_v26  ;;  %v12334_v30 = vadd.f32 %v22380_v11, %v12264_v23  ;;  %v12196_v9 = vmul.f32 %v16762_v58, %v22054_v14  ;;  %v12073_v1 = vadd.f32 1e-05, %v12009_v33  ;;  %v11864_v28 = vpop.xlane.xlu0 %11863 }
0x159a   : > { %v22438_v54 = vadd.f32 %v12395_v41, %v12387_v31  ;;  %v12333_v19 = vadd.f32 %v22380_v11, %v12263_v17  ;;  %v12195_v24 = vmul.f32 %v16764_v22, %v22058_v42  ;;  %16773 = vrsqrt.f32 %v12074_v44  ;;  %v11861_v6 = vpop.xlane.xlu1 %11860 }
0x159b   : > { %v12398_v45 = vmax.f32 %v12334_v30, 0.0  ;;  %v12266_v40 = vmul.f32 %v22371_v48, %v12196_v9  ;;  %16775 = vrsqrt.f32 %v12073_v1  ;;  %v12012_v26 = vmul.f32 0.03125, %v11864_v28 }
0x159c   : > { %v16766_v35 = vpop.eup %16765  ;;  %v12397_v13 = vmax.f32 %v12333_v19, 0.0  ;;  %v12265_v14 = vmul.f32 %v22371_v48, %v12195_v24  ;;  %v12011_v23 = vmul.f32 0.03125, %v11861_v6 }
0x159d   : > { %v16768_v31 = vpop.eup %16767  ;;  %v22445_v33 = vadd.f32 %v12398_v45, %v12390_v43  ;;  %v12336_v58 = vadd.f32 %v22380_v11, %v12266_v40  ;;  %v12198_v42 = vmul.f32 %v16766_v35, %v22066_v4  ;;  %v12076_v41 = vadd.f32 1e-05, %v12012_v26  ;;  %v11870_v17 = vpop.xlane.xlu0 %11869 }
0x159e   : > { %v22449_v44 = vadd.f32 %v12397_v13, %v12389_v46  ;;  %v12335_v22 = vadd.f32 %v22380_v11, %v12265_v14  ;;  %v12197_v30 = vmul.f32 %v16768_v31, %v22070_v52  ;;  %v12075_v3 = vadd.f32 1e-05, %v12011_v23  ;;  %v11867_v9 = vpop.xlane.xlu1 %11866 }
0x159f   : > { %v12400_v1 = vmax.f32 %v12336_v58, 0.0  ;;  %v12268_v28 = vmul.f32 %v22371_v48, %v12198_v42  ;;  %16777 = vrsqrt.f32 %v12076_v41  ;;  %v12014_v43 = vmul.f32 0.03125, %v11870_v17 }
0x15a0   : > { %v16770_v19 = vpop.eup %16769  ;;  %v12399_v24 = vmax.f32 %v12335_v22, 0.0  ;;  %v12267_v6 = vmul.f32 %v22371_v48, %v12197_v30  ;;  %16779 = vrsqrt.f32 %v12075_v3  ;;  %v12013_v4 = vmul.f32 0.03125, %v11867_v9 }
0x15a1   : > { %v16772_v45 = vpop.eup %16771  ;;  %v24438_v46 = vmax.f32 %v22405_v15, 0.0  ;;  %v12338_v52 = vadd.f32 %v22380_v11, %v12268_v28  ;;  %v12200_v26 = vmul.f32 %v16770_v19, %v22078_v50  ;;  %v12078_v35 = vadd.f32 1e-05, %v12014_v43  ;;  %v11876_v13 = vpop.xlane.xlu0 %11875 }
0x15a2   : > { %v24439_v14 = vmax.f32 %v22409_v20, 0.0  ;;  %v12337_v31 = vadd.f32 %v22380_v11, %v12267_v6  ;;  %v12199_v58 = vmul.f32 %v16772_v45, %v22082_v38  ;;  %v12077_v42 = vadd.f32 1e-05, %v12013_v4  ;;  %v11873_v41 = vpop.xlane.xlu1 %11872 }
0x15a3   : > { %v22457_v40 = vadd.f32 %v12400_v1, %v24438_v46  ;;  %v12402_v17 = vmax.f32 %v12338_v52, 0.0  ;;  %v12270_v15 = vmul.f32 %v22371_v48, %v12200_v26  ;;  %16781 = vrsqrt.f32 %v12078_v35 }
0x15a4   : > { %v22463_v23 = vadd.f32 %v12399_v24, %v24439_v14  ;;  %v12016_v22 = vmul.f32 0.03125, %v11876_v13  ;;  %v16774_v30 = vpop.eup %16773  ;;  %v12401_v3 = vmax.f32 %v12337_v31, 0.0  ;;  %v12269_v50 = vmul.f32 %v22371_v48, %v12199_v58 }
0x15a5   : > { %16783 = vrsqrt.f32 %v12077_v42  ;;  %v12015_v9 = vmul.f32 0.03125, %v11873_v41  ;;  %v16776_v20 = vpop.eup %16775  ;;  %v22471_v1 = vadd.f32 %v12402_v17, %v12394_v39  ;;  %v12340_v38 = vadd.f32 %v22380_v11, %v12270_v15  ;;  %v11882_v19 = vpop.xlane.xlu0 %11881 }
0x15a6   : > { %v12202_v28 = vmul.f32 %v16774_v30, %v22090_v53  ;;  %v12080_v43 = vadd.f32 1e-05, %v12016_v22  ;;  %v22475_v24 = vadd.f32 %v12401_v3, %v12393_v16  ;;  %v12339_v6 = vadd.f32 %v22380_v11, %v12269_v50  ;;  %v11879_v45 = vpop.xlane.xlu1 %11878 }
0x15a7   : > { %v12201_v4 = vmul.f32 %v16776_v20, %v22094_v21  ;;  %v12404_v46 = vmax.f32 %v12340_v38, 0.0  ;;  %v12079_v26 = vadd.f32 1e-05, %v12015_v9  ;;  %v12018_v16 = vmul.f32 0.03125, %v11882_v19 }
0x15a8   : > { %v12272_v52 = vmul.f32 %v22371_v48, %v12202_v28  ;;  %v12403_v62 = vmax.f32 %v12339_v6, 0.0  ;;  %16785 = vrsqrt.f32 %v12080_v43  ;;  %v12017_v41 = vmul.f32 0.03125, %v11879_v45 }
0x15a9   : > { %v12271_v39 = vmul.f32 %v22371_v48, %v12201_v4  ;;  %v16778_v35 = vpop.eup %16777  ;;  %v22482_v13 = vadd.f32 %v22434_v36, %v12404_v46  ;;  %v11888_v14 = vpop.xlane.xlu0 %11887  ;;  %16787 = vrsqrt.f32 %v12079_v26  ;;  %v12082_v20 = vadd.f32 1e-05, %v12018_v16 }
0x15aa   : > { %v12342_v53 = vadd.f32 %v22380_v11, %v12272_v52  ;;  %v16780_v31 = vpop.eup %16779  ;;  %v22486_v21 = vadd.f32 %v22438_v54, %v12403_v62  ;;  %v12204_v42 = vmul.f32 %v16778_v35, %v22102_v32  ;;  %v11885_v17 = vpop.xlane.xlu1 %11884  ;;  %v12020_v3 = vmul.f32 0.03125, %v11888_v14 }
0x15ab   : > { %v12341_v58 = vadd.f32 %v22380_v11, %v12271_v39  ;;  %v12203_v22 = vmul.f32 %v16780_v31, %v22106_v56  ;;  %v12019_v38 = vmul.f32 0.03125, %v11885_v17  ;;  %v12081_v6 = vadd.f32 1e-05, %v12017_v41 }
0x15ac   : > { %v12406_v15 = vmax.f32 %v12342_v53, 0.0  ;;  %v12274_v30 = vmul.f32 %v22371_v48, %v12204_v42  ;;  %v12084_v62 = vadd.f32 1e-05, %v12020_v3  ;;  %16789 = vrsqrt.f32 %v12082_v20 }
0x15ad   : > { %v12405_v36 = vmax.f32 %v12341_v58, 0.0  ;;  %v16782_v50 = vpop.eup %16781  ;;  %v12273_v54 = vmul.f32 %v22371_v48, %v12203_v22  ;;  %v11894_v28 = vpop.xlane.xlu0 %11893  ;;  %16791 = vrsqrt.f32 %v12081_v6 }
0x15ae   : > { %v22493_v9 = vadd.f32 %v22445_v33, %v12406_v15  ;;  %v12344_v56 = vadd.f32 %v22380_v11, %v12274_v30  ;;  %v12206_v19 = vmul.f32 %v16782_v50, %v22114_v34  ;;  %v11891_v4 = vpop.xlane.xlu1 %11890  ;;  %v12022_v46 = vmul.f32 0.03125, %v11894_v28 }
0x15af   : > { %v16784_v32 = vpop.eup %16783  ;;  %v22497_v43 = vadd.f32 %v22449_v44, %v12405_v36  ;;  %v12343_v45 = vadd.f32 %v22380_v11, %v12273_v54  ;;  %v12083_v44 = vadd.f32 1e-05, %v12019_v38  ;;  %v12021_v41 = vmul.f32 0.03125, %v11891_v4 }
0x15b0   : > { %v12205_v33 = vmul.f32 %v16784_v32, %v22118_v60  ;;  %v12408_v52 = vmax.f32 %v12344_v56, 0.0  ;;  %v12276_v26 = vmul.f32 %v22371_v48, %v12206_v19  ;;  %v12086_v42 = vadd.f32 1e-05, %v12022_v46 }
0x15b1   : > { %v12407_v39 = vmax.f32 %v12343_v45, 0.0  ;;  %v11900_v53 = vpop.xlane.xlu0 %11899  ;;  %16793 = vrsqrt.f32 %v12084_v62  ;;  %v12085_v38 = vadd.f32 1e-05, %v12021_v41 }
0x15b2   : > { %v12275_v35 = vmul.f32 %v22371_v48, %v12205_v33  ;;  %v22506_v16 = vadd.f32 %v22457_v40, %v12408_v52  ;;  %v12346_v34 = vadd.f32 %v22380_v11, %v12276_v26  ;;  %v11897_v14 = vpop.xlane.xlu1 %11896  ;;  %v16786_v31 = vpop.eup %16785  ;;  %v12024_v15 = vmul.f32 0.03125, %v11900_v53 }
0x15b3   : > { %v22510_v60 = vadd.f32 %v22463_v23, %v12407_v39  ;;  %v16788_v22 = vpop.eup %16787  ;;  %16795 = vrsqrt.f32 %v12083_v44  ;;  %v12023_v40 = vmul.f32 0.03125, %v11897_v14  ;;  %v12208_v50 = vmul.f32 %v16786_v31, %v22126_v2 }
0x15b4   : > { %v12345_v58 = vadd.f32 %v22380_v11, %v12275_v35  ;;  %v12410_v17 = vmax.f32 %v12346_v34, 0.0  ;;  %v12088_v54 = vadd.f32 1e-05, %v12024_v15  ;;  %16797 = vrsqrt.f32 %v12086_v42 }
0x15b5   : > { %v11906_v30 = vpop.xlane.xlu0 %11905  ;;  %v12087_v28 = vadd.f32 1e-05, %v12023_v40  ;;  %v12207_v32 = vmul.f32 %v16788_v22, %v22130_v29  ;;  %v12278_v2 = vmul.f32 %v22371_v48, %v12208_v50 }
0x15b6   : > { %v12409_v36 = vmax.f32 %v12345_v58, 0.0  ;;  %v22514_v3 = vadd.f32 %v22471_v1, %v12410_v17  ;;  %v11903_v23 = vpop.xlane.xlu1 %11902  ;;  %v12026_v56 = vmul.f32 0.03125, %v11906_v30  ;;  %16799 = vrsqrt.f32 %v12088_v54  ;;  %v16790_v45 = vpop.eup %16789 }
0x15b7   : > { %v12025_v19 = vmul.f32 0.03125, %v11903_v23  ;;  %16801 = vrsqrt.f32 %v12087_v28  ;;  %v16792_v46 = vpop.eup %16791  ;;  %v12348_v53 = vadd.f32 %v22380_v11, %v12278_v2  ;;  %v12210_v34 = vmul.f32 %v16790_v45, %v22138_v12 }
0x15b8   : > { %v22518_v20 = vadd.f32 %v22475_v24, %v12409_v36  ;;  %v12090_v4 = vadd.f32 1e-05, %v12026_v56  ;;  %16803 = vrsqrt.f32 %v12085_v38  ;;  %v12277_v24 = vmul.f32 %v22371_v48, %v12207_v32 }
0x15b9   : > { %v11912_v6 = vpop.xlane.xlu0 %11911  ;;  %v12089_v33 = vadd.f32 1e-05, %v12025_v19  ;;  %v12209_v41 = vmul.f32 %v16792_v46, %v22142_v51  ;;  %v12412_v23 = vmax.f32 %v12348_v53, 0.0  ;;  %v12280_v12 = vmul.f32 %v22371_v48, %v12210_v34 }
0x15ba   : > { %v11909_v1 = vpop.xlane.xlu1 %11908  ;;  %16805 = vrsqrt.f32 %v12090_v4  ;;  %v12028_v52 = vmul.f32 0.03125, %v11912_v6  ;;  %v12347_v14 = vadd.f32 %v22380_v11, %v12277_v24 }
0x15bb   : > { %v12027_v26 = vmul.f32 0.03125, %v11909_v1  ;;  %v16794_v29 = vpop.eup %16793  ;;  %16807 = vrsqrt.f32 %v12089_v33  ;;  %v12279_v19 = vmul.f32 %v22371_v48, %v12209_v41  ;;  %v12350_v24 = vadd.f32 %v22380_v11, %v12280_v12 }
0x15bc   : > { %v12092_v39 = vadd.f32 1e-05, %v12028_v52  ;;  %v12212_v22 = vmul.f32 %v16794_v29, %v22150_v27  ;;  %v12411_v28 = vmax.f32 %v12347_v14, 0.0 }
0x15bd   : > { %v11918_v62 = vpop.xlane.xlu0 %11917  ;;  %v16796_v44 = vpop.eup %16795  ;;  %v12091_v31 = vadd.f32 1e-05, %v12027_v26 }
0x15be   : > { %v11915_v35 = vpop.xlane.xlu1 %11914  ;;  %16809 = vrsqrt.f32 %v12092_v39  ;;  %v12030_v58 = vmul.f32 0.03125, %v11918_v62  ;;  %v16798_v42 = vpop.eup %16797  ;;  %v12211_v36 = vmul.f32 %v16796_v44, %v22154_v55  ;;  %v12282_v1 = vmul.f32 %v22371_v48, %v12212_v22 }
0x15bf   : > { %v12029_v17 = vmul.f32 0.03125, %v11915_v35  ;;  %v12214_v32 = vmul.f32 %v16798_v42, %v22162_v7  ;;  %16811 = vrsqrt.f32 %v12091_v31  ;;  %v22536_v7 = vadd.f32 %v22482_v13, %v12412_v23 }
0x15c0   : > { %v12094_v40 = vadd.f32 1e-05, %v12030_v58  ;;  %v16800_v54 = vpop.eup %16799  ;;  %v12281_v45 = vmul.f32 %v22371_v48, %v12211_v36  ;;  %v12349_v44 = vadd.f32 %v22380_v11, %v12279_v19 }
0x15c1   : > { %v11924_v15 = vpop.xlane.xlu0 %11923  ;;  %v16802_v38 = vpop.eup %16801  ;;  %v12093_v27 = vadd.f32 1e-05, %v12029_v17  ;;  %v12216_v2 = vmul.f32 %v16800_v54, %v22174_v57  ;;  %v12284_v62 = vmul.f32 %v22371_v48, %v12214_v32  ;;  %v22544_v57 = vadd.f32 %v22486_v21, %v12411_v28 }
0x15c2   : > { %v12032_v30 = vmul.f32 0.03125, %v11924_v15  ;;  %v11921_v50 = vpop.xlane.xlu1 %11920  ;;  %v16804_v51 = vpop.eup %16803  ;;  %16813 = vrsqrt.f32 %v12094_v40  ;;  %v12215_v52 = vmul.f32 %v16802_v38, %v22178_v10  ;;  %v12352_v10 = vadd.f32 %v22380_v11, %v12282_v1 }
0x15c3   : > { %v12031_v6 = vmul.f32 0.03125, %v11921_v50  ;;  %v12213_v29 = vmul.f32 %v16804_v51, %v22166_v0  ;;  %v12351_v14 = vadd.f32 %v22380_v11, %v12281_v45  ;;  %v12286_v31 = vmul.f32 %v22371_v48, %v12216_v2 }
0x15c4   : > { %v12096_v56 = vadd.f32 1e-05, %v12032_v30  ;;  %v16806_v4 = vpop.eup %16805  ;;  %v12414_v17 = vmax.f32 %v12350_v24, 0.0  ;;  %v12354_v15 = vadd.f32 %v22380_v11, %v12284_v62  ;;  %v12413_v40 = vmax.f32 %v12349_v44, 0.0 }
0x15c5   : > { %v11930_v55 = vpop.xlane.xlu0 %11929  ;;  %v16808_v26 = vpop.eup %16807  ;;  %v12218_v39 = vmul.f32 %v16806_v4, %v22186_v8  ;;  %v12095_v13 = vadd.f32 1e-05, %v12031_v6  ;;  %v12285_v8 = vmul.f32 %v22371_v48, %v12215_v52  ;;  %v12283_v22 = vmul.f32 %v22371_v48, %v12213_v29 }
0x15c6   : > { %v12034_v33 = vmul.f32 0.03125, %v11930_v55  ;;  %v11927_v46 = vpop.xlane.xlu1 %11926  ;;  %16815 = vrsqrt.f32 %v12096_v56  ;;  %v12217_v42 = vmul.f32 %v16808_v26, %v22190_v47  ;;  %v12416_v12 = vmax.f32 %v12352_v10, 0.0 }
0x15c7   : > { %v12033_v35 = vmul.f32 0.03125, %v11927_v46  ;;  %16817 = vrsqrt.f32 %v12093_v27  ;;  %v12288_v36 = vmul.f32 %v22371_v48, %v12218_v39  ;;  %v12415_v38 = vmax.f32 %v12351_v14, 0.0 }
0x15c8   : > { %v16810_v34 = vpop.eup %16809  ;;  %v12098_v58 = vadd.f32 1e-05, %v12034_v33  ;;  %16819 = vrsqrt.f32 %v12095_v13  ;;  %v12356_v47 = vadd.f32 %v22380_v11, %v12286_v31  ;;  %v12355_v56 = vadd.f32 %v22380_v11, %v12285_v8 }
0x15c9   : > { %v11936_v53 = vpop.xlane.xlu0 %11935  ;;  %v12097_v21 = vadd.f32 1e-05, %v12033_v35  ;;  %v12220_v30 = vmul.f32 %v16810_v34, %v22198_v61  ;;  %v16812_v23 = vpop.eup %16811  ;;  %v12287_v51 = vmul.f32 %v22371_v48, %v12217_v42  ;;  %v12418_v27 = vmax.f32 %v12354_v15, 0.0 }
0x15ca   : > { %v11933_v0 = vpop.xlane.xlu1 %11932  ;;  %v12036_v41 = vmul.f32 0.03125, %v11936_v53  ;;  %16821 = vrsqrt.f32 %v12098_v58  ;;  %v22560_v61 = vadd.f32 %v22380_v11, %v12283_v22  ;;  %v12358_v6 = vadd.f32 %v22380_v11, %v12288_v36 }
0x15cb   : > { %16823 = vrsqrt.f32 %v12097_v21  ;;  %v12035_v19 = vmul.f32 0.03125, %v11933_v0  ;;  %v12470_v4 = vadd.f32 %v22493_v9, %v12414_v17  ;;  %v12290_v1 = vmul.f32 %v22371_v48, %v12220_v30 }
0x15cc   : > { %v12100_v50 = vadd.f32 1e-05, %v12036_v41  ;;  %v16814_v32 = vpop.eup %16813  ;;  %v12219_v45 = vmul.f32 %v16812_v23, %v22202_v5  ;;  %v12469_v46 = vadd.f32 %v22497_v43, %v12413_v40  ;;  %v22568_v24 = vadd.f32 %v22506_v16, %v12416_v12 }
0x15cd   : > { %v11942_v54 = vpop.xlane.xlu0 %11941  ;;  %v12420_v52 = vmax.f32 %v12356_v47, 0.0  ;;  %v12222_v26 = vmul.f32 %v16814_v32, %v22210_v49  ;;  %v22572_v39 = vadd.f32 %v22510_v60, %v12415_v38  ;;  %v12419_v9 = vmax.f32 %v12355_v56, 0.0 }
0x15ce   : > { %v11939_v28 = vpop.xlane.xlu1 %11938  ;;  %16825 = vrsqrt.f32 %v12100_v50  ;;  %v12038_v2 = vmul.f32 0.03125, %v11942_v54  ;;  %v12357_v35 = vadd.f32 %v22380_v11, %v12287_v51  ;;  %v12099_v44 = vadd.f32 1e-05, %v12035_v19 }
0x15cf   : > { %v22576_v5 = vadd.f32 %v22514_v3, %v12418_v27  ;;  %v12417_v43 = vmax.f32 %v22560_v61, 0.0  ;;  %v12422_v13 = vmax.f32 %v12358_v6, 0.0  ;;  %v12360_v53 = vadd.f32 %v22380_v11, %v12290_v1 }
0x15d0   : > { %v16816_v55 = vpop.eup %16815  ;;  %v12289_v49 = vmul.f32 %v22371_v48, %v12219_v45  ;;  %v12102_v34 = vadd.f32 1e-05, %v12038_v2  ;;  %v22583_v14 = vadd.f32 %v22536_v7, %v12420_v52  ;;  %v12292_v31 = vmul.f32 %v22371_v48, %v12222_v26 }
0x15d1   : > { %v11948_v33 = vpop.xlane.xlu0 %11947  ;;  %v16818_v29 = vpop.eup %16817  ;;  %v12224_v16 = vmul.f32 %v16816_v55, %v22222_v63  ;;  %v22588_v42 = vadd.f32 %v22544_v57, %v12419_v9  ;;  %v12421_v63 = vmax.f32 %v12357_v35, 0.0  ;;  %16827 = vrsqrt.f32 %v12099_v44 }
0x15d2   : > { %v11945_v62 = vpop.xlane.xlu1 %11944  ;;  %v12040_v10 = vmul.f32 0.03125, %v11948_v33  ;;  %v12221_v3 = vmul.f32 %v16818_v29, %v22214_v25  ;;  %v16820_v8 = vpop.eup %16819  ;;  %v12037_v21 = vmul.f32 0.03125, %v11939_v28  ;;  %v22590_v17 = vadd.f32 %v12470_v4, %v12422_v13  ;;  %v24440_v4 = vld [vmem:[#allocation25_spill] sm:$0xff] }
0x15d3   : > { %v12039_v58 = vmul.f32 0.03125, %v11945_v62  ;;  %v12294_v15 = vmul.f32 %v22371_v48, %v12224_v16  ;;  %v12424_v40 = vmax.f32 %v12360_v53, 0.0  ;;  %v12359_v25 = vadd.f32 %v22380_v11, %v12289_v49 }
0x15d4   : > { %v16822_v41 = vpop.eup %16821  ;;  %v12104_v7 = vadd.f32 1e-05, %v12040_v10  ;;  %16829 = vrsqrt.f32 %v12102_v34  ;;  %v12362_v57 = vadd.f32 %v22380_v11, %v12292_v31  ;;  %v12291_v23 = vmul.f32 %v22371_v48, %v12221_v3 }
0x15d5   : > { %v11954_v60 = vpop.xlane.xlu0 %11953  ;;  %v12103_v22 = vadd.f32 1e-05, %v12039_v58  ;;  %v16824_v36 = vpop.eup %16823  ;;  %v12223_v47 = vmul.f32 %v16820_v8, %v22226_v59  ;;  %v12101_v28 = vadd.f32 1e-05, %v12037_v21  ;;  %v12364_v56 = vadd.f32 %v22380_v11, %v12294_v15 }
0x15d6   : > { %v11951_v0 = vpop.xlane.xlu1 %11950  ;;  %v12042_v30 = vmul.f32 0.03125, %v11954_v60  ;;  %16831 = vrsqrt.f32 %v12104_v7  ;;  %v12226_v51 = vmul.f32 %v16822_v41, %v22234_v37  ;;  %v22599_v6 = vadd.f32 %v12469_v46, %v12421_v63  ;;  %v24441_v41 = vld [vmem:[#allocation30_spill] sm:$0xff] }
0x15d7   : > { %v12041_v12 = vmul.f32 0.03125, %v11951_v0  ;;  %16833 = vrsqrt.f32 %v12103_v22  ;;  %v12225_v55 = vmul.f32 %v16824_v36, %v22238_v18  ;;  %v12423_v2 = vmax.f32 %v12359_v25, 0.0 }
0x15d8   : > { %v16826_v54 = vpop.eup %16825  ;;  %v12106_v32 = vadd.f32 1e-05, %v12042_v30  ;;  %v22604_v59 = vadd.f32 %v22380_v11, %v12291_v23  ;;  %v12426_v26 = vmax.f32 %v12362_v57, 0.0  ;;  %v12293_v37 = vmul.f32 %v22371_v48, %v12223_v47 }
0x15d9   : > { %v11960_v50 = vpop.xlane.xlu0 %11959  ;;  %v12105_v19 = vadd.f32 1e-05, %v12041_v12  ;;  %v12228_v1 = vmul.f32 %v16826_v54, %v24440_v4  ;;  %v22608_v46 = vadd.f32 %v22568_v24, %v12424_v40  ;;  %v12428_v18 = vmax.f32 %v12364_v56, 0.0 }
0x15da   : > { %v11957_v38 = vpop.xlane.xlu1 %11956  ;;  %v12044_v27 = vmul.f32 0.03125, %v11960_v50  ;;  %16835 = vrsqrt.f32 %v12106_v32  ;;  %v12296_v9 = vmul.f32 %v22371_v48, %v12226_v51  ;;  %v12295_v44 = vmul.f32 %v22371_v48, %v12225_v55  ;;  %v24443_v50 = vld [vmem:[#allocation48_spill] sm:$0xff] }
0x15db   : > { %16837 = vrsqrt.f32 %v12105_v19  ;;  %v12043_v62 = vmul.f32 0.03125, %v11957_v38  ;;  %v16828_v35 = vpop.eup %16827  ;;  %v12298_v13 = vmul.f32 %v22371_v48, %v12228_v1  ;;  %v22614_v49 = vadd.f32 %v22572_v39, %v12423_v2  ;;  %v24444_v38 = vld [vmem:[#allocation38_spill] sm:$0xff]  ;;  %v24445_v1 = vld [vmem:[#allocation53_spill] sm:$0xff] }
0x15dc   : > { %v12108_v33 = vadd.f32 1e-05, %v12044_v27  ;;  %16839 = vrsqrt.f32 %v12101_v28  ;;  %v12425_v34 = vmax.f32 %v22604_v59, 0.0  ;;  %v22618_v3 = vadd.f32 %v22576_v5, %v12426_v26  ;;  %v24442_v5 = vld [vmem:[#allocation44_spill] sm:$0xff] }
0x15dd   : > { %v11966_v45 = vpop.xlane.xlu0 %11965  ;;  %v12107_v16 = vadd.f32 1e-05, %v12043_v62  ;;  %v12363_v58 = vadd.f32 %v22380_v11, %v12293_v37  ;;  %v22622_v21 = vadd.f32 %v22583_v14, %v12428_v18  ;;  %v12366_v39 = vadd.f32 %v22380_v11, %v12296_v9 }
0x15de   : > { %v11963_v52 = vpop.xlane.xlu1 %11962  ;;  %v12046_v29 = vmul.f32 0.03125, %v11966_v45  ;;  %16841 = vrsqrt.f32 %v12108_v33  ;;  %v16830_v31 = vpop.eup %16829  ;;  %v12227_v15 = vmul.f32 %v16828_v35, %v24441_v41  ;;  %v12365_v36 = vadd.f32 %v22380_v11, %v12295_v44  ;;  %v24446_v44 = vld [vmem:[#allocation58_spill] sm:$0xff]  ;;  %v24448_v41 = vld [vmem:[#allocation59_spill] sm:$0xff] }
0x15df   : > { %v12045_v10 = vmul.f32 0.03125, %v11963_v52  ;;  %v12368_v40 = vadd.f32 %v22380_v11, %v12298_v13  ;;  %16843 = vrsqrt.f32 %v12107_v16  ;;  %v12230_v47 = vmul.f32 %v16830_v31, %v24444_v38 }
0x15e0   : > { %v12110_v0 = vadd.f32 1e-05, %v12046_v29  ;;  %v16832_v63 = vpop.eup %16831  ;;  %v12427_v51 = vmax.f32 %v12363_v58, 0.0  ;;  %v12297_v19 = vmul.f32 %v22371_v48, %v12227_v15  ;;  %v12430_v55 = vmax.f32 %v12366_v39, 0.0 }
0x15e1   : > { %v11972_v53 = vpop.xlane.xlu0 %11971  ;;  %v16834_v22 = vpop.eup %16833  ;;  %v12232_v25 = vmul.f32 %v16832_v63, %v24442_v5  ;;  %v12109_v57 = vadd.f32 1e-05, %v12045_v10  ;;  %v12429_v26 = vmax.f32 %v12365_v36, 0.0  ;;  %v12432_v9 = vmax.f32 %v12368_v40, 0.0 }
0x15e2   : > { %v12048_v24 = vmul.f32 0.03125, %v11972_v53  ;;  %v11969_v60 = vpop.xlane.xlu1 %11968  ;;  %v12231_v54 = vmul.f32 %v16834_v22, %v24443_v50  ;;  %v12300_v35 = vmul.f32 %v22371_v48, %v12230_v47  ;;  %v22638_v16 = vadd.f32 %v22380_v11, %v12297_v19 }
0x15e3   : > { %v12047_v8 = vmul.f32 0.03125, %v11969_v60  ;;  %v12302_v27 = vmul.f32 %v22371_v48, %v12232_v25  ;;  %v12483_v63 = vadd.f32 %v22588_v42, %v12427_v51  ;;  %v12486_v39 = vadd.f32 %v22590_v17, %v12430_v55 }
0x15e4   : > { %v12112_v7 = vadd.f32 1e-05, %v12048_v24  ;;  %v16836_v12 = vpop.eup %16835  ;;  %v12301_v4 = vmul.f32 %v22371_v48, %v12231_v54  ;;  %v24447_v24 = vld [vmem:[#allocation40_spill] sm:$0xff]  ;;  %v22648_v22 = vadd.f32 %v22599_v6, %v12429_v26  ;;  %v22651_v36 = vadd.f32 %v22380_v11, %v12300_v35  ;;  %v22681_v35 = vld [vmem:[%s22759_s8] ss:$0 sm:$0xff] }
0x15e5   : > { %v11978_v30 = vpop.xlane.xlu0 %11977  ;;  %v12111_v14 = vadd.f32 1e-05, %v12047_v8  ;;  %v16838_v56 = vpop.eup %16837  ;;  %v12234_v45 = vmul.f32 %v16836_v12, %v24445_v1  ;;  %v12372_v53 = vadd.f32 %v22380_v11, %v12302_v27  ;;  %v12431_v42 = vmax.f32 %v22638_v16, 0.0  ;;  %v22670_v27 = vld [vmem:[%s22758_s7] ss:$0 sm:$0xff] }
0x15e6   : > { %16845 = vrsqrt.f32 %v12112_v7  ;;  %v11975_v23 = vpop.xlane.xlu1 %11974  ;;  %v12050_v28 = vmul.f32 0.03125, %v11978_v30  ;;  %v16840_v52 = vpop.eup %16839  ;;  %v12233_v13 = vmul.f32 %v16838_v56, %v24446_v44  ;;  %v12371_v31 = vadd.f32 %v22380_v11, %v12301_v4  ;;  %v24451_v4 = vld [vmem:[#allocation82_spill] sm:$0xff] }
0x15e7   : > { %16847 = vrsqrt.f32 %v12110_v0  ;;  %v12049_v32 = vmul.f32 0.03125, %v11975_v23  ;;  %v12229_v60 = vmul.f32 %v16840_v52, %v24447_v24  ;;  %v12304_v58 = vmul.f32 %v22371_v48, %v12234_v45  ;;  %v24449_v23 = vld [vmem:[#allocation78_spill] sm:$0xff] }
0x15e8   : > { %16849 = vrsqrt.f32 %v12111_v14  ;;  %v12114_v2 = vadd.f32 1e-05, %v12050_v28  ;;  %v16842_v18 = vpop.eup %16841  ;;  %v12303_v40 = vmul.f32 %v22371_v48, %v12233_v13  ;;  %v22655_v30 = vadd.f32 %v22608_v46, %v12432_v9  ;;  %v24453_v13 = vld [vmem:[#allocation84_spill] sm:$0xff] }
0x15e9   : > { %v11984_v33 = vpop.xlane.xlu0 %11983  ;;  %16851 = vrsqrt.f32 %v12109_v57  ;;  %v12113_v37 = vadd.f32 1e-05, %v12049_v32  ;;  %v12236_v15 = vmul.f32 %v16842_v18, %v24448_v41  ;;  %v16844_v7 = vpop.eup %16843  ;;  %v12436_v17 = vmax.f32 %v12372_v53, 0.0  ;;  %v24450_v32 = vld [vmem:[#allocation65_spill] sm:$0xff] }
0x15ea   : > { %v12052_v62 = vmul.f32 0.03125, %v11984_v33  ;;  %v11981_v29 = vpop.xlane.xlu1 %11980  ;;  %16853 = vrsqrt.f32 %v12114_v2  ;;  %v22659_v57 = vmul.f32 %v22371_v48, %v12229_v60  ;;  %v12435_v6 = vmax.f32 %v12371_v31, 0.0  ;;  %v24452_v2 = vld [vmem:[#allocation68_spill] sm:$0xff]  ;;  %v24454_v31 = vld [vmem:[#allocation87_spill] sm:$0xff] }
0x15eb   : > { %16855 = vrsqrt.f32 %v12113_v37  ;;  %v12051_v0 = vmul.f32 0.03125, %v11981_v29  ;;  %v12374_v14 = vadd.f32 %v22380_v11, %v12304_v58  ;;  %v12306_v28 = vmul.f32 %v22371_v48, %v12236_v15 }
0x15ec   : > { %v12116_v10 = vadd.f32 1e-05, %v12052_v62  ;;  %v12235_v46 = vmul.f32 %v16844_v7, %v24450_v32  ;;  %v12434_v51 = vmax.f32 %v22651_v36, 0.0  ;;  %v12373_v19 = vadd.f32 %v22380_v11, %v12303_v40 }
0x15ed   : > { %v11990_v8 = vpop.xlane.xlu0 %11989  ;;  %v12115_v5 = vadd.f32 1e-05, %v12051_v0  ;;  %v12492_v48 = vadd.f32 %v22622_v21, %v12436_v17  ;;  %v12491_v37 = vadd.f32 %v12483_v63, %v12435_v6  ;;  %v12438_v62 = vmax.f32 %v12374_v14, 0.0  ;;  %v24455_v63 = vld [vmem:[#allocation72_spill] sm:$0xff] }
0x15ee   : > { %16857 = vrsqrt.f32 %v12116_v10  ;;  %v12054_v50 = vmul.f32 0.03125, %v11990_v8  ;;  %v11987_v38 = vpop.xlane.xlu1 %11986  ;;  %v12376_v44 = vadd.f32 %v22681_v35, %v12306_v28  ;;  %v12305_v21 = vmul.f32 %v22670_v27, %v12235_v46 }
0x15ef   : > { %16859 = vrsqrt.f32 %v12115_v5  ;;  %v12053_v52 = vmul.f32 0.03125, %v11987_v38  ;;  %v12437_v24 = vmax.f32 %v12373_v19, 0.0 }
0x15f0   : > { %v16846_v25 = vpop.eup %16845  ;;  %v12118_v56 = vadd.f32 1e-05, %v12054_v50  ;;  %v12494_v50 = vadd.f32 %v12486_v39, %v12438_v62  ;;  %v12375_v6 = vadd.f32 %v22681_v35, %v12305_v21 }
0x15f1   : > { %v16848_v54 = vpop.eup %16847  ;;  %v12240_v12 = vmul.f32 %v16846_v25, %v24449_v23  ;;  %v12117_v10 = vadd.f32 1e-05, %v12053_v52  ;;  %v24456_v25 = vld [vmem:[#allocation93_spill] sm:$0xff]  ;;  %v12493_v32 = vadd.f32 %v22648_v22, %v12437_v24 }
0x15f2   : > { %v16850_v47 = vpop.eup %16849  ;;  %v12238_v33 = vmul.f32 %v16848_v54, %v24452_v2  ;;  %16861 = vrsqrt.f32 %v12118_v56  ;;  %v12440_v54 = vmax.f32 %v12376_v44, 0.0  ;;  %v12369_v2 = vadd.f32 %v22681_v35, %v22659_v57 }
0x15f3   : > { %v12310_v55 = vmul.f32 %v22670_v27, %v12240_v12  ;;  %v12239_v1 = vmul.f32 %v16850_v47, %v24451_v4  ;;  %v16852_v45 = vpop.eup %16851  ;;  %16863 = vrsqrt.f32 %v12117_v10  ;;  %v12439_v22 = vmax.f32 %v12375_v6, 0.0 }
0x15f4   : > { %v16854_v26 = vpop.eup %16853  ;;  %v12308_v8 = vmul.f32 %v22670_v27, %v12238_v33  ;;  %v12237_v41 = vmul.f32 %v16852_v45, %v24455_v63  ;;  %v12496_v33 = vadd.f32 %v22655_v30, %v12440_v54  ;;  %v12433_v16 = vmax.f32 %v12369_v2, 0.0 }
0x15f5   : > { %v12380_v29 = vadd.f32 %v22380_v11, %v12310_v55  ;;  %v12309_v18 = vmul.f32 %v22670_v27, %v12239_v1  ;;  %v16856_v9 = vpop.eup %16855  ;;  %v12242_v53 = vmul.f32 %v16854_v26, %v24453_v13  ;;  %v24457_v1 = vld [vmem:[#allocation104_spill] sm:$0xff] }
0x15f6   : > { %v12241_v58 = vmul.f32 %v16856_v9, %v24454_v31  ;;  %v12378_v46 = vadd.f32 %v22681_v35, %v12308_v8  ;;  %v12307_v56 = vmul.f32 %v22670_v27, %v12237_v41  ;;  %v12487_v9 = vadd.f32 %v22614_v49, %v12431_v42 }
0x15f7   : > { %v12444_v60 = vmax.f32 %v12380_v29, 0.0  ;;  %v12379_v11 = vadd.f32 %v22681_v35, %v12309_v18  ;;  %v12312_v15 = vmul.f32 %v22670_v27, %v12242_v53  ;;  %v24458_v29 = vld [vmem:[#allocation108_spill] sm:$0xff]  ;;  %v12490_v49 = vadd.f32 %v22618_v3, %v12434_v51 }
0x15f8   : > { %v16858_v0 = vpop.eup %16857  ;;  %v12311_v5 = vmul.f32 %v22670_v27, %v12241_v58  ;;  %v12442_v44 = vmax.f32 %v12378_v46, 0.0  ;;  %v12377_v57 = vadd.f32 %v22681_v35, %v12307_v56  ;;  %v12495_v42 = vadd.f32 %v12487_v9, %v12439_v22 }
0x15f9   : > { %v12500_v7 = vadd.f32 %v12492_v48, %v12444_v60  ;;  %v12443_v40 = vmax.f32 %v12379_v11, 0.0  ;;  %v12244_v17 = vmul.f32 %v16858_v0, %v24456_v25  ;;  %v12382_v14 = vadd.f32 %v22681_v35, %v12312_v15  ;;  %v16860_v28 = vpop.eup %16859  ;;  %v24459_v0 = vld [vmem:[#allocation114_spill] sm:$0xff] }
0x15fa   : > { %v12381_v38 = vadd.f32 %v22681_v35, %v12311_v5  ;;  %v12243_v45 = vmul.f32 %v16860_v28, %v24457_v1  ;;  %v12473_v60 = vadd.f32 %v22518_v20, %v12417_v43  ;;  %v12441_v61 = vmax.f32 %v12377_v57, 0.0 }
0x15fb   : > { %v12508_v23 = vmul.f32 0.125, %v12500_v7  ;;  %v12499_v12 = vadd.f32 %v12491_v37, %v12443_v40  ;;  %v12314_v47 = vmul.f32 %v22670_v27, %v12244_v17  ;;  %v12446_v39 = vmax.f32 %v12382_v14, 0.0 }
0x15fc   : > { %v12445_v55 = vmax.f32 %v12381_v38, 0.0  ;;  %v16862_v48 = vpop.eup %16861  ;;  %v12313_v62 = vmul.f32 %v22670_v27, %v12243_v45  ;;  %v12481_v20 = vadd.f32 %v12473_v60, %v12425_v34  ;;  %v12498_v43 = vadd.f32 %v12490_v49, %v12442_v44 }
0x15fd   : > { %12516 = vst.msk [vmem:[%s22698_s25 + $0x8] sm:$0xff] %vm6978_vm3, %v12508_v23  ;;  %v12507_v19 = vmul.f32 0.125, %v12499_v12  ;;  %v12384_v4 = vadd.f32 %v22681_v35, %v12314_v47  ;;  %v12502_v52 = vadd.f32 %v12494_v50, %v12446_v39  ;;  %v12246_v18 = vmul.f32 %v16862_v48, %v24458_v29  ;;  %v16864_v24 = vpop.eup %16863 }
0x15fe   : > { %v12501_v26 = vadd.f32 %v12493_v32, %v12445_v55  ;;  %v12383_v53 = vadd.f32 %v22681_v35, %v12313_v62  ;;  %v12245_v8 = vmul.f32 %v16864_v24, %v24459_v0  ;;  %v12489_v63 = vadd.f32 %v12481_v20, %v12433_v16 }
0x15ff   : > { %12515 = vst.msk [vmem:[%s22698_s25] sm:$0xff] %vm6978_vm3, %v12507_v19  ;;  %v12448_v37 = vmax.f32 %v12384_v4, 0.0  ;;  %v12510_v30 = vmul.f32 0.125, %v12502_v52  ;;  %v12316_v10 = vmul.f32 %v22670_v27, %v12246_v18 }
0x1600   : > { %v12509_v21 = vmul.f32 0.125, %v12501_v26  ;;  %v12447_v31 = vmax.f32 %v12383_v53, 0.0  ;;  %v12315_v51 = vmul.f32 %v22670_v27, %v12245_v8  ;;  %v12497_v40 = vadd.f32 %v12489_v63, %v12441_v61 }
0x1601   : > { %v12504_v13 = vadd.f32 %v12496_v33, %v12448_v37  ;;  %12518 = vst.msk [vmem:[%s22698_s25 + $0x18] sm:$0xff] %vm6978_vm3, %v12510_v30  ;;  %v12386_v58 = vadd.f32 %v22681_v35, %v12316_v10 }
0x1602   : > { %12517 = vst.msk [vmem:[%s22698_s25 + $0x10] sm:$0xff] %vm6978_vm3, %v12509_v21  ;;  %v12503_v3 = vadd.f32 %v12495_v42, %v12447_v31  ;;  %v12385_v7 = vadd.f32 %v22681_v35, %v12315_v51 }
0x1603   : > { %v12512_v11 = vmul.f32 0.125, %v12504_v13  ;;  %v12450_v36 = vmax.f32 %v12386_v58, 0.0 }
0x1604   : > { %v12511_v41 = vmul.f32 0.125, %v12503_v3  ;;  %v12449_v5 = vmax.f32 %v12385_v7, 0.0 }
0x1605   : > { %12520 = vst.msk [vmem:[%s22698_s25 + $0x28] sm:$0xff] %vm6978_vm3, %v12512_v11  ;;  %v12506_v15 = vadd.f32 %v12498_v43, %v12450_v36 }
0x1606   : > { %12519 = vst.msk [vmem:[%s22698_s25 + $0x20] sm:$0xff] %vm6978_vm3, %v12511_v41  ;;  %v12505_v34 = vadd.f32 %v12497_v40, %v12449_v5 }
0x1607   : > { %v12514_v59 = vmul.f32 0.125, %v12506_v15 }
0x1608   : > { %v12513_v25 = vmul.f32 0.125, %v12505_v34 }
0x1609   : > { %12522 = vst.msk [vmem:[%s22698_s25 + $0x38] sm:$0xff] %vm6978_vm3, %v12514_v59 }
0x160a   : > { %12521 = vst.msk [vmem:[%s22698_s25 + $0x30] sm:$0xff] %vm6978_vm3, %v12513_v25 }
0x160b PF: > { %s19_s30 = sadd.s32 1, %s16880_s30  }
0x160c   : > { %p16_p4 = scmp.ge.s32.totalorder %s19_s30, 6  }
0x160e   :  { %18 = sbr.rel (!%p16_p4) target bundleno = 1 (0x1), region = 86 }

</bundles_post_ra>
